<compile_context>
chip_gen: v7x
topology: tpu7x:2x2x1
jax: 0.10.0
libtpu: 0.0.40
codegen_flags: <defaults>
</compile_context>

<pallas_src>
import functools

import numpy as np
import jax
import jax.numpy as jnp
from jax import lax
from jax.experimental import pallas as pl
from jax.experimental.pallas import tpu as pltpu


# ---------------------------------------------------------------------------
# Fused ResnetBlock2d kernel: (GN -> SiLU -> conv3x3) x 2  + residual
# ---------------------------------------------------------------------------

def _resnet_block_kernel(*refs, offsets, eps, skip_proj):
    """One grid step == one batch sample in the padded flat NHWC frame (P = (H+2)*(W+2)).

    refs (in order):
      x      : (P, Cin)        input activations, padded-flat frame (halo rows == 0)
      mcol   : (P, 1)          1.0 on interior pixels, 0.0 on the halo
      mrow   : (1, P)          same mask as a row vector (MXU stat reduction)
      gmat1  : (Cin, Cin)      group-mean matrix block1: 1/(H*W*Cg) within a group, else 0
      g1, b1 : (1, Cin)        GroupNorm1 weight / bias
      w1     : (9, Cin, Cout)  conv1 taps (bf16)
      cb1    : (1, Cout)       conv1 bias
      gmat2  : (Cout, Cout)    group-mean matrix block2
      g2, b2 : (1, Cout)       GroupNorm2 weight / bias
      w2     : (9, Cout, Cout) conv2 taps (bf16)
      cb2    : (1, Cout)       conv2 bias
      [wsk   : (Cin, Cout)     1x1 `to_out` weight (bf16)]
      [bsk   : (1, Cout)       1x1 `to_out` bias]
      out    : (P, Cout)
    """
    if skip_proj:
        (x_ref, mcol_ref, mrow_ref,
         gmat1_ref, g1_ref, b1_ref, w1_ref, cb1_ref,
         gmat2_ref, g2_ref, b2_ref, w2_ref, cb2_ref,
         wsk_ref, bsk_ref, o_ref) = refs
    else:
        (x_ref, mcol_ref, mrow_ref,
         gmat1_ref, g1_ref, b1_ref, w1_ref, cb1_ref,
         gmat2_ref, g2_ref, b2_ref, w2_ref, cb2_ref,
         o_ref) = refs
        wsk_ref = bsk_ref = None

    mcol = mcol_ref[...]                                   # (P, 1)
    mrow = mrow_ref[...]                                   # (1, P)

    def gn_silu(v, gmat, gamma, beta):
        # GroupNorm statistics over valid pixels only (tiny MXU reductions).
        sum_c = jnp.dot(mrow, v, preferred_element_type=jnp.float32)        # (1, C)
        sumsq_c = jnp.dot(mrow, v * v, preferred_element_type=jnp.float32)  # (1, C)
        mean_c = jnp.dot(sum_c, gmat, preferred_element_type=jnp.float32)   # group mean per ch
        ex2_c = jnp.dot(sumsq_c, gmat, preferred_element_type=jnp.float32)  # group E[x^2]
        var_c = ex2_c - mean_c * mean_c                                     # biased variance
        rstd_c = lax.rsqrt(var_c + eps)
        y = (v - mean_c) * rstd_c * gamma + beta
        # SiLU; re-zero the halo so it acts as the conv's zero-padding.
        return (y * jax.nn.sigmoid(y)) * mcol

    def conv3x3(y, w_ref, bias):
        # 9 row-shifted matmuls, bf16 MXU inputs, f32 accumulation.  The circular wrap
        # only touches halo rows (which are discarded); interior rows never wrap.
        yb = y.astype(jnp.bfloat16)
        acc = None
        for t, off in enumerate(offsets):
            if off == 0:
                yt = yb
            else:
                yt = jnp.concatenate([yb[off:], yb[:off]], axis=0)
            a = jnp.dot(yt, w_ref[t], preferred_element_type=jnp.float32)   # (P, Cout)
            acc = a if acc is None else acc + a
        return acc + bias

    x = x_ref[...].astype(jnp.float32)                     # (P, Cin)

    # Block 1: GN -> SiLU -> conv3x3 (Cin -> Cout).  Halo rows of h are garbage but are
    # masked out of every subsequent stat / matmul that matters.
    y1 = gn_silu(x, gmat1_ref[...], g1_ref[...], b1_ref[...])
    h = conv3x3(y1, w1_ref, cb1_ref[...])                  # (P, Cout), f32

    # Block 2: GN -> SiLU -> conv3x3 (Cout -> Cout).
    y2 = gn_silu(h, gmat2_ref[...], g2_ref[...], b2_ref[...])
    out = conv3x3(y2, w2_ref, cb2_ref[...])                # (P, Cout), f32

    # Residual epilogue.
    if skip_proj:                                          # to_out: 1x1 conv projection
        out = out + jnp.dot(x.astype(jnp.bfloat16), wsk_ref[...],
                            preferred_element_type=jnp.float32) + bsk_ref[...]
    else:                                                  # to_out: Identity
        out = out + x

    o_ref[...] = out.astype(o_ref.dtype)


# ---------------------------------------------------------------------------
# Wrapper
# ---------------------------------------------------------------------------

def _group_mean_matrix(num_channels, num_groups, hw):
    cg = num_channels // num_groups
    g = jnp.arange(num_channels, dtype=jnp.int32) // cg
    same = (g[:, None] == g[None, :]).astype(jnp.float32)
    return same / float(hw * cg)


def resnet_block2d_forward(params, x_nchw, *, num_groups, eps=1e-5):
    """h = block2(block1(x)); return h + to_out(x).  Accepts / returns NCHW."""
    N, Cin, H, W = x_nchw.shape
    Cout = params["conv1_w"].shape[0]
    assert Cin % num_groups == 0 and Cout % num_groups == 0
    Hp, Wp = H + 2, W + 2
    P = Hp * Wp
    offsets = tuple((i - 1) * Wp + (j - 1) for i in range(3) for j in range(3))
    skip_proj = (Cin != Cout)

    # NCHW -> NHWC, zero-pad the spatial halo once, flatten to the padded flat frame.
    x = jnp.transpose(x_nchw, (0, 2, 3, 1))
    x_flat = jnp.pad(x, ((0, 0), (1, 1), (1, 1), (0, 0))).reshape(N, P, Cin)

    # 0/1 validity mask over the padded flat frame (interior pixels only).
    rows = jnp.arange(P, dtype=jnp.int32) // Wp
    cols = jnp.arange(P, dtype=jnp.int32) % Wp
    valid = ((rows >= 1) & (rows <= H) & (cols >= 1) & (cols <= W)).astype(jnp.float32)
    mcol = valid.reshape(P, 1)
    mrow = valid.reshape(1, P)

    # Conv weights -> (kh*kw, Cin, Cout) taps, bf16 for the MXU.
    w1 = jnp.transpose(params["conv1_w"], (2, 3, 1, 0)).reshape(9, Cin, Cout).astype(jnp.bfloat16)
    w2 = jnp.transpose(params["conv2_w"], (2, 3, 1, 0)).reshape(9, Cout, Cout).astype(jnp.bfloat16)

    gmat1 = _group_mean_matrix(Cin, num_groups, H * W)
    gmat2 = _group_mean_matrix(Cout, num_groups, H * W)

    f32 = jnp.float32
    inputs = [
        x_flat, mcol, mrow,
        gmat1, params["gn1_g"].reshape(1, Cin).astype(f32),
        params["gn1_b"].reshape(1, Cin).astype(f32),
        w1, params["conv1_b"].reshape(1, Cout).astype(f32),
        gmat2, params["gn2_g"].reshape(1, Cout).astype(f32),
        params["gn2_b"].reshape(1, Cout).astype(f32),
        w2, params["conv2_b"].reshape(1, Cout).astype(f32),
    ]
    in_specs = [
        pl.BlockSpec((None, P, Cin), lambda n: (n, 0, 0)),
        pl.BlockSpec((P, 1), lambda n: (0, 0)),
        pl.BlockSpec((1, P), lambda n: (0, 0)),
        pl.BlockSpec((Cin, Cin), lambda n: (0, 0)),
        pl.BlockSpec((1, Cin), lambda n: (0, 0)),
        pl.BlockSpec((1, Cin), lambda n: (0, 0)),
        pl.BlockSpec((9, Cin, Cout), lambda n: (0, 0, 0)),
        pl.BlockSpec((1, Cout), lambda n: (0, 0)),
        pl.BlockSpec((Cout, Cout), lambda n: (0, 0)),
        pl.BlockSpec((1, Cout), lambda n: (0, 0)),
        pl.BlockSpec((1, Cout), lambda n: (0, 0)),
        pl.BlockSpec((9, Cout, Cout), lambda n: (0, 0, 0)),
        pl.BlockSpec((1, Cout), lambda n: (0, 0)),
    ]
    if skip_proj:
        wsk = jnp.transpose(params["to_out_w"][:, :, 0, 0]).astype(jnp.bfloat16)  # (Cin, Cout)
        inputs += [wsk, params["to_out_b"].reshape(1, Cout).astype(f32)]
        in_specs += [pl.BlockSpec((Cin, Cout), lambda n: (0, 0)),
                     pl.BlockSpec((1, Cout), lambda n: (0, 0))]

    kernel = functools.partial(_resnet_block_kernel, offsets=offsets, eps=eps,
                               skip_proj=skip_proj)
    out = pl.pallas_call(
        kernel,
        out_shape=jax.ShapeDtypeStruct((N, P, Cout), jnp.float32),
        grid_spec=pltpu.PrefetchScalarGridSpec(
            num_scalar_prefetch=0,
            grid=(N,),
            in_specs=in_specs,
            out_specs=pl.BlockSpec((None, P, Cout), lambda n: (n, 0, 0)),
        ),
        compiler_params=pltpu.CompilerParams(
            dimension_semantics=("parallel",),
            vmem_limit_bytes=64 * 1024 * 1024),
    )(*inputs)

    # Drop the halo and return NCHW (slice + transpose fuse into one XLA copy).
    out = out.reshape(N, Hp, Wp, Cout)[:, 1:H + 1, 1:W + 1, :]
    return jnp.transpose(out, (0, 3, 1, 2))


# ---------------------------------------------------------------------------
# Pure-JAX reference (mirrors the PyTorch module; bf16 conv inputs to match the
# kernel's MXU precision) and deterministic parameter init.
# ---------------------------------------------------------------------------

def resnet_block2d_reference(params, x_nchw, *, num_groups, eps=1e-5):
    def groupnorm(x, g, b):
        n, c, h, w = x.shape
        xg = x.reshape(n, num_groups, c // num_groups, h, w)
        mean = xg.mean(axis=(2, 3, 4), keepdims=True)
        var = jnp.mean((xg - mean) ** 2, axis=(2, 3, 4), keepdims=True)
        xn = ((xg - mean) / jnp.sqrt(var + eps)).reshape(n, c, h, w)
        return xn * g.reshape(1, c, 1, 1) + b.reshape(1, c, 1, 1)

    def silu(x):
        return x * jax.nn.sigmoid(x)

    def conv(x, w, b, padding):
        y = lax.conv_general_dilated(
            x.astype(jnp.bfloat16), w.astype(jnp.bfloat16), (1, 1), padding,
            dimension_numbers=("NCHW", "OIHW", "NCHW"),
            preferred_element_type=jnp.float32)
        return y + b.reshape(1, -1, 1, 1)

    h = conv(silu(groupnorm(x_nchw, params["gn1_g"], params["gn1_b"])),
             params["conv1_w"], params["conv1_b"], ((1, 1), (1, 1)))
    h = conv(silu(groupnorm(h, params["gn2_g"], params["gn2_b"])),
             params["conv2_w"], params["conv2_b"], ((1, 1), (1, 1)))
    if "to_out_w" in params:
        skip = conv(x_nchw, params["to_out_w"], params["to_out_b"], ((0, 0), (0, 0)))
    else:
        skip = x_nchw
    return h + skip


def init_params(key, in_channels, out_channels):
    ks = jax.random.split(key, 8)
    p = {
        "gn1_g": 1.0 + 0.05 * jax.random.normal(ks[0], (in_channels,), jnp.float32),
        "gn1_b": 0.05 * jax.random.normal(ks[1], (in_channels,), jnp.float32),
        "conv1_w": 0.05 * jax.random.normal(ks[2], (out_channels, in_channels, 3, 3),
                                            jnp.float32),
        "conv1_b": 0.01 * jax.random.normal(ks[3], (out_channels,), jnp.float32),
        "gn2_g": 1.0 + 0.05 * jax.random.normal(ks[4], (out_channels,), jnp.float32),
        "gn2_b": 0.05 * jax.random.normal(ks[5], (out_channels,), jnp.float32),
        "conv2_w": 0.05 * jax.random.normal(ks[6], (out_channels, out_channels, 3, 3),
                                            jnp.float32),
        "conv2_b": 0.01 * jax.random.normal(ks[7], (out_channels,), jnp.float32),
    }
    if in_channels != out_channels:
        kw, kb = jax.random.split(ks[0])
        p["to_out_w"] = 0.05 * jax.random.normal(kw, (out_channels, in_channels, 1, 1),
                                                 jnp.float32)
        p["to_out_b"] = 0.01 * jax.random.normal(kb, (out_channels,), jnp.float32)
    return p


# ---------------------------------------------------------------------------

if __name__ == "__main__":
    key = jax.random.PRNGKey(0)
    kx1, kp1, kx2, kp2 = jax.random.split(key, 4)
    num_groups = 4

    # Case 1: in_channels == out_channels  (to_out == Identity).
    N, C, H, W = 2, 8, 16, 16
    x1 = jax.random.normal(kx1, (N, C, H, W), jnp.float32)
    p1 = init_params(kp1, in_channels=C, out_channels=C)
    fwd1 = jax.jit(functools.partial(resnet_block2d_forward, num_groups=num_groups))
    out1 = jax.block_until_ready(fwd1(p1, x1))
    assert out1.shape == (N, C, H, W) and out1.dtype == jnp.float32
    ref1 = resnet_block2d_reference(p1, x1, num_groups=num_groups)
    np.testing.assert_allclose(np.asarray(out1), np.asarray(ref1), rtol=2e-2, atol=2e-2)

    # Case 2: in_channels != out_channels  (to_out == 1x1 conv, fused into the epilogue).
    Cin2, Cout2 = 4, 8
    x2 = jax.random.normal(kx2, (N, Cin2, H, W), jnp.float32)
    p2 = init_params(kp2, in_channels=Cin2, out_channels=Cout2)
    fwd2 = jax.jit(functools.partial(resnet_block2d_forward, num_groups=num_groups))
    out2 = jax.block_until_ready(fwd2(p2, x2))
    assert out2.shape == (N, Cout2, H, W)
    ref2 = resnet_block2d_reference(p2, x2, num_groups=num_groups)
    np.testing.assert_allclose(np.asarray(out2), np.asarray(ref2), rtol=2e-2, atol=2e-2)

    print("KERNEL_OK")
</pallas_src>

<mosaic_0001>
module attributes {stable_mosaic.version = 11 : i64} {
  func.func @_resnet_block_kernel(%arg0: i32, %arg1: memref<1x324x8xf32, #tpu.memory_space<vmem>>, %arg2: memref<324x1xf32, #tpu.memory_space<vmem>>, %arg3: memref<1x324xf32, #tpu.memory_space<vmem>>, %arg4: memref<8x8xf32, #tpu.memory_space<vmem>>, %arg5: memref<1x8xf32, #tpu.memory_space<vmem>>, %arg6: memref<1x8xf32, #tpu.memory_space<vmem>>, %arg7: memref<9x8x8xbf16, #tpu.memory_space<vmem>>, %arg8: memref<1x8xf32, #tpu.memory_space<vmem>>, %arg9: memref<8x8xf32, #tpu.memory_space<vmem>>, %arg10: memref<1x8xf32, #tpu.memory_space<vmem>>, %arg11: memref<1x8xf32, #tpu.memory_space<vmem>>, %arg12: memref<9x8x8xbf16, #tpu.memory_space<vmem>>, %arg13: memref<1x8xf32, #tpu.memory_space<vmem>>, %arg14: memref<1x324x8xf32, #tpu.memory_space<vmem>>) attributes {dimension_semantics = [#tpu.dimension_semantics<parallel>], iteration_bounds = array<i64: 2>, scalar_prefetch = 0 : i64, scratch_operands = 0 : i64, tpu.core_type = #tpu.core_type<tc>, window_params = [{transform_indices = @transform_0, window_bounds = array<i64: 1, 324, 8>}, {pipeline_mode = #tpu.pipeline_mode<synchronous>, transform_indices = @transform_1, window_bounds = array<i64: 324, 1>}, {pipeline_mode = #tpu.pipeline_mode<synchronous>, transform_indices = @transform_2, window_bounds = array<i64: 1, 324>}, {pipeline_mode = #tpu.pipeline_mode<synchronous>, transform_indices = @transform_3, window_bounds = array<i64: 8, 8>}, {pipeline_mode = #tpu.pipeline_mode<synchronous>, transform_indices = @transform_4, window_bounds = array<i64: 1, 8>}, {pipeline_mode = #tpu.pipeline_mode<synchronous>, transform_indices = @transform_5, window_bounds = array<i64: 1, 8>}, {pipeline_mode = #tpu.pipeline_mode<synchronous>, transform_indices = @transform_6, window_bounds = array<i64: 9, 8, 8>}, {pipeline_mode = #tpu.pipeline_mode<synchronous>, transform_indices = @transform_7, window_bounds = array<i64: 1, 8>}, {pipeline_mode = #tpu.pipeline_mode<synchronous>, transform_indices = @transform_8, window_bounds = array<i64: 8, 8>}, {pipeline_mode = #tpu.pipeline_mode<synchronous>, transform_indices = @transform_9, window_bounds = array<i64: 1, 8>}, {pipeline_mode = #tpu.pipeline_mode<synchronous>, transform_indices = @transform_10, window_bounds = array<i64: 1, 8>}, {pipeline_mode = #tpu.pipeline_mode<synchronous>, transform_indices = @transform_11, window_bounds = array<i64: 9, 8, 8>}, {pipeline_mode = #tpu.pipeline_mode<synchronous>, transform_indices = @transform_12, window_bounds = array<i64: 1, 8>}, {transform_indices = @transform_13, window_bounds = array<i64: 1, 324, 8>}]} {
    %c0 = arith.constant 0 : index
    %c0_0 = arith.constant 0 : index
    %0 = vector.load %arg2[%c0, %c0_0] : memref<324x1xf32, #tpu.memory_space<vmem>>, vector<324x1xf32>
    %c0_1 = arith.constant 0 : index
    %c0_2 = arith.constant 0 : index
    %1 = vector.load %arg3[%c0_1, %c0_2] : memref<1x324xf32, #tpu.memory_space<vmem>>, vector<1x324xf32>
    %c0_3 = arith.constant 0 : index
    %c0_4 = arith.constant 0 : index
    %c0_5 = arith.constant 0 : index
    %2 = vector.load %arg1[%c0_3, %c0_4, %c0_5] : memref<1x324x8xf32, #tpu.memory_space<vmem>>, vector<1x324x8xf32>
    %3 = vector.shape_cast %2 : vector<1x324x8xf32> to vector<324x8xf32>
    %c0_6 = arith.constant 0 : index
    %c0_7 = arith.constant 0 : index
    %4 = vector.load %arg4[%c0_6, %c0_7] : memref<8x8xf32, #tpu.memory_space<vmem>>, vector<8x8xf32>
    %c0_8 = arith.constant 0 : index
    %c0_9 = arith.constant 0 : index
    %5 = vector.load %arg5[%c0_8, %c0_9] : memref<1x8xf32, #tpu.memory_space<vmem>>, vector<1x8xf32>
    %c0_10 = arith.constant 0 : index
    %c0_11 = arith.constant 0 : index
    %6 = vector.load %arg6[%c0_10, %c0_11] : memref<1x8xf32, #tpu.memory_space<vmem>>, vector<1x8xf32>
    %cst = arith.constant dense<0.000000e+00> : vector<1x8xf32>
    %7 = tpu.matmul %1, %3, %cst {dimension_numbers = #tpu.dot_dimension_numbers<[1], [0], [0], [1], [0, 0, 1, 1], [], []>} : vector<1x324xf32>, vector<324x8xf32>, vector<1x8xf32> -> vector<1x8xf32>
    %8 = arith.mulf %3, %3 : vector<324x8xf32>
    %cst_12 = arith.constant dense<0.000000e+00> : vector<1x8xf32>
    %9 = tpu.matmul %1, %8, %cst_12 {dimension_numbers = #tpu.dot_dimension_numbers<[1], [0], [0], [1], [0, 0, 1, 1], [], []>} : vector<1x324xf32>, vector<324x8xf32>, vector<1x8xf32> -> vector<1x8xf32>
    %cst_13 = arith.constant dense<0.000000e+00> : vector<1x8xf32>
    %10 = tpu.matmul %7, %4, %cst_13 {dimension_numbers = #tpu.dot_dimension_numbers<[1], [0], [0], [1], [0, 0, 1, 1], [], []>} : vector<1x8xf32>, vector<8x8xf32>, vector<1x8xf32> -> vector<1x8xf32>
    %cst_14 = arith.constant dense<0.000000e+00> : vector<1x8xf32>
    %11 = tpu.matmul %9, %4, %cst_14 {dimension_numbers = #tpu.dot_dimension_numbers<[1], [0], [0], [1], [0, 0, 1, 1], [], []>} : vector<1x8xf32>, vector<8x8xf32>, vector<1x8xf32> -> vector<1x8xf32>
    %12 = arith.mulf %10, %10 : vector<1x8xf32>
    %13 = arith.subf %11, %12 : vector<1x8xf32>
    %cst_15 = arith.constant 9.99999974E-6 : f32
    %14 = vector.broadcast %cst_15 : f32 to vector<1x8xf32>
    %15 = arith.addf %13, %14 : vector<1x8xf32>
    %16 = math.rsqrt %15 : vector<1x8xf32>
    %17 = vector.broadcast %10 : vector<1x8xf32> to vector<324x8xf32>
    %18 = arith.subf %3, %17 : vector<324x8xf32>
    %19 = vector.broadcast %16 : vector<1x8xf32> to vector<324x8xf32>
    %20 = arith.mulf %18, %19 : vector<324x8xf32>
    %21 = vector.broadcast %5 : vector<1x8xf32> to vector<324x8xf32>
    %22 = arith.mulf %20, %21 : vector<324x8xf32>
    %23 = vector.broadcast %6 : vector<1x8xf32> to vector<324x8xf32>
    %24 = arith.addf %22, %23 : vector<324x8xf32>
    %25 = arith.negf %24 : vector<324x8xf32>
    %26 = math.exp %25 : vector<324x8xf32>
    %cst_16 = arith.constant 1.000000e+00 : f32
    %27 = vector.broadcast %cst_16 : f32 to vector<324x8xf32>
    %28 = arith.addf %27, %26 : vector<324x8xf32>
    %29 = arith.divf %27, %28 : vector<324x8xf32>
    %30 = arith.mulf %24, %29 : vector<324x8xf32>
    %31 = vector.broadcast %0 : vector<324x1xf32> to vector<324x8xf32>
    %32 = arith.mulf %30, %31 : vector<324x8xf32>
    %c0_17 = arith.constant 0 : index
    %c0_18 = arith.constant 0 : index
    %33 = vector.load %arg8[%c0_17, %c0_18] : memref<1x8xf32, #tpu.memory_space<vmem>>, vector<1x8xf32>
    %34 = arith.truncf %32 : vector<324x8xf32> to vector<324x8xbf16>
    %35 = vector.extract_strided_slice %34 {offsets = [305, 0], sizes = [19, 8], strides = [1, 1]} : vector<324x8xbf16> to vector<19x8xbf16>
    %36 = vector.extract_strided_slice %34 {offsets = [0, 0], sizes = [305, 8], strides = [1, 1]} : vector<324x8xbf16> to vector<305x8xbf16>
    %37 = tpu.concatenate %35, %36 in 0 : vector<19x8xbf16>, vector<305x8xbf16> -> vector<324x8xbf16>
    %c0_19 = arith.constant 0 : index
    %c0_20 = arith.constant 0 : index
    %c0_21 = arith.constant 0 : index
    %38 = vector.load %arg7[%c0_19, %c0_20, %c0_21] : memref<9x8x8xbf16, #tpu.memory_space<vmem>>, vector<1x8x8xbf16>
    %39 = vector.shape_cast %38 : vector<1x8x8xbf16> to vector<8x8xbf16>
    %cst_22 = arith.constant dense<0.000000e+00> : vector<324x8xf32>
    %40 = tpu.matmul %37, %39, %cst_22 {dimension_numbers = #tpu.dot_dimension_numbers<[1], [0], [0], [1], [0, 0, 1, 1], [], []>} : vector<324x8xbf16>, vector<8x8xbf16>, vector<324x8xf32> -> vector<324x8xf32>
    %41 = vector.extract_strided_slice %34 {offsets = [306, 0], sizes = [18, 8], strides = [1, 1]} : vector<324x8xbf16> to vector<18x8xbf16>
    %42 = vector.extract_strided_slice %34 {offsets = [0, 0], sizes = [306, 8], strides = [1, 1]} : vector<324x8xbf16> to vector<306x8xbf16>
    %43 = tpu.concatenate %41, %42 in 0 : vector<18x8xbf16>, vector<306x8xbf16> -> vector<324x8xbf16>
    %c1 = arith.constant 1 : index
    %c0_23 = arith.constant 0 : index
    %c0_24 = arith.constant 0 : index
    %44 = vector.load %arg7[%c1, %c0_23, %c0_24] : memref<9x8x8xbf16, #tpu.memory_space<vmem>>, vector<1x8x8xbf16>
    %45 = vector.shape_cast %44 : vector<1x8x8xbf16> to vector<8x8xbf16>
    %cst_25 = arith.constant dense<0.000000e+00> : vector<324x8xf32>
    %46 = tpu.matmul %43, %45, %cst_25 {dimension_numbers = #tpu.dot_dimension_numbers<[1], [0], [0], [1], [0, 0, 1, 1], [], []>} : vector<324x8xbf16>, vector<8x8xbf16>, vector<324x8xf32> -> vector<324x8xf32>
    %47 = arith.addf %40, %46 : vector<324x8xf32>
    %48 = vector.extract_strided_slice %34 {offsets = [307, 0], sizes = [17, 8], strides = [1, 1]} : vector<324x8xbf16> to vector<17x8xbf16>
    %49 = vector.extract_strided_slice %34 {offsets = [0, 0], sizes = [307, 8], strides = [1, 1]} : vector<324x8xbf16> to vector<307x8xbf16>
    %50 = tpu.concatenate %48, %49 in 0 : vector<17x8xbf16>, vector<307x8xbf16> -> vector<324x8xbf16>
    %c2 = arith.constant 2 : index
    %c0_26 = arith.constant 0 : index
    %c0_27 = arith.constant 0 : index
    %51 = vector.load %arg7[%c2, %c0_26, %c0_27] : memref<9x8x8xbf16, #tpu.memory_space<vmem>>, vector<1x8x8xbf16>
    %52 = vector.shape_cast %51 : vector<1x8x8xbf16> to vector<8x8xbf16>
    %cst_28 = arith.constant dense<0.000000e+00> : vector<324x8xf32>
    %53 = tpu.matmul %50, %52, %cst_28 {dimension_numbers = #tpu.dot_dimension_numbers<[1], [0], [0], [1], [0, 0, 1, 1], [], []>} : vector<324x8xbf16>, vector<8x8xbf16>, vector<324x8xf32> -> vector<324x8xf32>
    %54 = arith.addf %47, %53 : vector<324x8xf32>
    %55 = vector.extract_strided_slice %34 {offsets = [323, 0], sizes = [1, 8], strides = [1, 1]} : vector<324x8xbf16> to vector<1x8xbf16>
    %56 = vector.extract_strided_slice %34 {offsets = [0, 0], sizes = [323, 8], strides = [1, 1]} : vector<324x8xbf16> to vector<323x8xbf16>
    %57 = tpu.concatenate %55, %56 in 0 : vector<1x8xbf16>, vector<323x8xbf16> -> vector<324x8xbf16>
    %c3 = arith.constant 3 : index
    %c0_29 = arith.constant 0 : index
    %c0_30 = arith.constant 0 : index
    %58 = vector.load %arg7[%c3, %c0_29, %c0_30] : memref<9x8x8xbf16, #tpu.memory_space<vmem>>, vector<1x8x8xbf16>
    %59 = vector.shape_cast %58 : vector<1x8x8xbf16> to vector<8x8xbf16>
    %cst_31 = arith.constant dense<0.000000e+00> : vector<324x8xf32>
    %60 = tpu.matmul %57, %59, %cst_31 {dimension_numbers = #tpu.dot_dimension_numbers<[1], [0], [0], [1], [0, 0, 1, 1], [], []>} : vector<324x8xbf16>, vector<8x8xbf16>, vector<324x8xf32> -> vector<324x8xf32>
    %61 = arith.addf %54, %60 : vector<324x8xf32>
    %c4 = arith.constant 4 : index
    %c0_32 = arith.constant 0 : index
    %c0_33 = arith.constant 0 : index
    %62 = vector.load %arg7[%c4, %c0_32, %c0_33] : memref<9x8x8xbf16, #tpu.memory_space<vmem>>, vector<1x8x8xbf16>
    %63 = vector.shape_cast %62 : vector<1x8x8xbf16> to vector<8x8xbf16>
    %cst_34 = arith.constant dense<0.000000e+00> : vector<324x8xf32>
    %64 = tpu.matmul %34, %63, %cst_34 {dimension_numbers = #tpu.dot_dimension_numbers<[1], [0], [0], [1], [0, 0, 1, 1], [], []>} : vector<324x8xbf16>, vector<8x8xbf16>, vector<324x8xf32> -> vector<324x8xf32>
    %65 = arith.addf %61, %64 : vector<324x8xf32>
    %66 = vector.extract_strided_slice %34 {offsets = [1, 0], sizes = [323, 8], strides = [1, 1]} : vector<324x8xbf16> to vector<323x8xbf16>
    %67 = vector.extract_strided_slice %34 {offsets = [0, 0], sizes = [1, 8], strides = [1, 1]} : vector<324x8xbf16> to vector<1x8xbf16>
    %68 = tpu.concatenate %66, %67 in 0 : vector<323x8xbf16>, vector<1x8xbf16> -> vector<324x8xbf16>
    %c5 = arith.constant 5 : index
    %c0_35 = arith.constant 0 : index
    %c0_36 = arith.constant 0 : index
    %69 = vector.load %arg7[%c5, %c0_35, %c0_36] : memref<9x8x8xbf16, #tpu.memory_space<vmem>>, vector<1x8x8xbf16>
    %70 = vector.shape_cast %69 : vector<1x8x8xbf16> to vector<8x8xbf16>
    %cst_37 = arith.constant dense<0.000000e+00> : vector<324x8xf32>
    %71 = tpu.matmul %68, %70, %cst_37 {dimension_numbers = #tpu.dot_dimension_numbers<[1], [0], [0], [1], [0, 0, 1, 1], [], []>} : vector<324x8xbf16>, vector<8x8xbf16>, vector<324x8xf32> -> vector<324x8xf32>
    %72 = arith.addf %65, %71 : vector<324x8xf32>
    %73 = vector.extract_strided_slice %34 {offsets = [17, 0], sizes = [307, 8], strides = [1, 1]} : vector<324x8xbf16> to vector<307x8xbf16>
    %74 = vector.extract_strided_slice %34 {offsets = [0, 0], sizes = [17, 8], strides = [1, 1]} : vector<324x8xbf16> to vector<17x8xbf16>
    %75 = tpu.concatenate %73, %74 in 0 : vector<307x8xbf16>, vector<17x8xbf16> -> vector<324x8xbf16>
    %c6 = arith.constant 6 : index
    %c0_38 = arith.constant 0 : index
    %c0_39 = arith.constant 0 : index
    %76 = vector.load %arg7[%c6, %c0_38, %c0_39] : memref<9x8x8xbf16, #tpu.memory_space<vmem>>, vector<1x8x8xbf16>
    %77 = vector.shape_cast %76 : vector<1x8x8xbf16> to vector<8x8xbf16>
    %cst_40 = arith.constant dense<0.000000e+00> : vector<324x8xf32>
    %78 = tpu.matmul %75, %77, %cst_40 {dimension_numbers = #tpu.dot_dimension_numbers<[1], [0], [0], [1], [0, 0, 1, 1], [], []>} : vector<324x8xbf16>, vector<8x8xbf16>, vector<324x8xf32> -> vector<324x8xf32>
    %79 = arith.addf %72, %78 : vector<324x8xf32>
    %80 = vector.extract_strided_slice %34 {offsets = [18, 0], sizes = [306, 8], strides = [1, 1]} : vector<324x8xbf16> to vector<306x8xbf16>
    %81 = vector.extract_strided_slice %34 {offsets = [0, 0], sizes = [18, 8], strides = [1, 1]} : vector<324x8xbf16> to vector<18x8xbf16>
    %82 = tpu.concatenate %80, %81 in 0 : vector<306x8xbf16>, vector<18x8xbf16> -> vector<324x8xbf16>
    %c7 = arith.constant 7 : index
    %c0_41 = arith.constant 0 : index
    %c0_42 = arith.constant 0 : index
    %83 = vector.load %arg7[%c7, %c0_41, %c0_42] : memref<9x8x8xbf16, #tpu.memory_space<vmem>>, vector<1x8x8xbf16>
    %84 = vector.shape_cast %83 : vector<1x8x8xbf16> to vector<8x8xbf16>
    %cst_43 = arith.constant dense<0.000000e+00> : vector<324x8xf32>
    %85 = tpu.matmul %82, %84, %cst_43 {dimension_numbers = #tpu.dot_dimension_numbers<[1], [0], [0], [1], [0, 0, 1, 1], [], []>} : vector<324x8xbf16>, vector<8x8xbf16>, vector<324x8xf32> -> vector<324x8xf32>
    %86 = arith.addf %79, %85 : vector<324x8xf32>
    %87 = vector.extract_strided_slice %34 {offsets = [19, 0], sizes = [305, 8], strides = [1, 1]} : vector<324x8xbf16> to vector<305x8xbf16>
    %88 = vector.extract_strided_slice %34 {offsets = [0, 0], sizes = [19, 8], strides = [1, 1]} : vector<324x8xbf16> to vector<19x8xbf16>
    %89 = tpu.concatenate %87, %88 in 0 : vector<305x8xbf16>, vector<19x8xbf16> -> vector<324x8xbf16>
    %c8 = arith.constant 8 : index
    %c0_44 = arith.constant 0 : index
    %c0_45 = arith.constant 0 : index
    %90 = vector.load %arg7[%c8, %c0_44, %c0_45] : memref<9x8x8xbf16, #tpu.memory_space<vmem>>, vector<1x8x8xbf16>
    %91 = vector.shape_cast %90 : vector<1x8x8xbf16> to vector<8x8xbf16>
    %cst_46 = arith.constant dense<0.000000e+00> : vector<324x8xf32>
    %92 = tpu.matmul %89, %91, %cst_46 {dimension_numbers = #tpu.dot_dimension_numbers<[1], [0], [0], [1], [0, 0, 1, 1], [], []>} : vector<324x8xbf16>, vector<8x8xbf16>, vector<324x8xf32> -> vector<324x8xf32>
    %93 = arith.addf %86, %92 : vector<324x8xf32>
    %94 = vector.broadcast %33 : vector<1x8xf32> to vector<324x8xf32>
    %95 = arith.addf %93, %94 : vector<324x8xf32>
    %c0_47 = arith.constant 0 : index
    %c0_48 = arith.constant 0 : index
    %96 = vector.load %arg9[%c0_47, %c0_48] : memref<8x8xf32, #tpu.memory_space<vmem>>, vector<8x8xf32>
    %c0_49 = arith.constant 0 : index
    %c0_50 = arith.constant 0 : index
    %97 = vector.load %arg10[%c0_49, %c0_50] : memref<1x8xf32, #tpu.memory_space<vmem>>, vector<1x8xf32>
    %c0_51 = arith.constant 0 : index
    %c0_52 = arith.constant 0 : index
    %98 = vector.load %arg11[%c0_51, %c0_52] : memref<1x8xf32, #tpu.memory_space<vmem>>, vector<1x8xf32>
    %cst_53 = arith.constant dense<0.000000e+00> : vector<1x8xf32>
    %99 = tpu.matmul %1, %95, %cst_53 {dimension_numbers = #tpu.dot_dimension_numbers<[1], [0], [0], [1], [0, 0, 1, 1], [], []>} : vector<1x324xf32>, vector<324x8xf32>, vector<1x8xf32> -> vector<1x8xf32>
    %100 = arith.mulf %95, %95 : vector<324x8xf32>
    %cst_54 = arith.constant dense<0.000000e+00> : vector<1x8xf32>
    %101 = tpu.matmul %1, %100, %cst_54 {dimension_numbers = #tpu.dot_dimension_numbers<[1], [0], [0], [1], [0, 0, 1, 1], [], []>} : vector<1x324xf32>, vector<324x8xf32>, vector<1x8xf32> -> vector<1x8xf32>
    %cst_55 = arith.constant dense<0.000000e+00> : vector<1x8xf32>
    %102 = tpu.matmul %99, %96, %cst_55 {dimension_numbers = #tpu.dot_dimension_numbers<[1], [0], [0], [1], [0, 0, 1, 1], [], []>} : vector<1x8xf32>, vector<8x8xf32>, vector<1x8xf32> -> vector<1x8xf32>
    %cst_56 = arith.constant dense<0.000000e+00> : vector<1x8xf32>
    %103 = tpu.matmul %101, %96, %cst_56 {dimension_numbers = #tpu.dot_dimension_numbers<[1], [0], [0], [1], [0, 0, 1, 1], [], []>} : vector<1x8xf32>, vector<8x8xf32>, vector<1x8xf32> -> vector<1x8xf32>
    %104 = arith.mulf %102, %102 : vector<1x8xf32>
    %105 = arith.subf %103, %104 : vector<1x8xf32>
    %cst_57 = arith.constant 9.99999974E-6 : f32
    %106 = vector.broadcast %cst_57 : f32 to vector<1x8xf32>
    %107 = arith.addf %105, %106 : vector<1x8xf32>
    %108 = math.rsqrt %107 : vector<1x8xf32>
    %109 = vector.broadcast %102 : vector<1x8xf32> to vector<324x8xf32>
    %110 = arith.subf %95, %109 : vector<324x8xf32>
    %111 = vector.broadcast %108 : vector<1x8xf32> to vector<324x8xf32>
    %112 = arith.mulf %110, %111 : vector<324x8xf32>
    %113 = vector.broadcast %97 : vector<1x8xf32> to vector<324x8xf32>
    %114 = arith.mulf %112, %113 : vector<324x8xf32>
    %115 = vector.broadcast %98 : vector<1x8xf32> to vector<324x8xf32>
    %116 = arith.addf %114, %115 : vector<324x8xf32>
    %117 = arith.negf %116 : vector<324x8xf32>
    %118 = math.exp %117 : vector<324x8xf32>
    %cst_58 = arith.constant 1.000000e+00 : f32
    %119 = vector.broadcast %cst_58 : f32 to vector<324x8xf32>
    %120 = arith.addf %119, %118 : vector<324x8xf32>
    %121 = arith.divf %119, %120 : vector<324x8xf32>
    %122 = arith.mulf %116, %121 : vector<324x8xf32>
    %123 = vector.broadcast %0 : vector<324x1xf32> to vector<324x8xf32>
    %124 = arith.mulf %122, %123 : vector<324x8xf32>
    %c0_59 = arith.constant 0 : index
    %c0_60 = arith.constant 0 : index
    %125 = vector.load %arg13[%c0_59, %c0_60] : memref<1x8xf32, #tpu.memory_space<vmem>>, vector<1x8xf32>
    %126 = arith.truncf %124 : vector<324x8xf32> to vector<324x8xbf16>
    %127 = vector.extract_strided_slice %126 {offsets = [305, 0], sizes = [19, 8], strides = [1, 1]} : vector<324x8xbf16> to vector<19x8xbf16>
    %128 = vector.extract_strided_slice %126 {offsets = [0, 0], sizes = [305, 8], strides = [1, 1]} : vector<324x8xbf16> to vector<305x8xbf16>
    %129 = tpu.concatenate %127, %128 in 0 : vector<19x8xbf16>, vector<305x8xbf16> -> vector<324x8xbf16>
    %c0_61 = arith.constant 0 : index
    %c0_62 = arith.constant 0 : index
    %c0_63 = arith.constant 0 : index
    %130 = vector.load %arg12[%c0_61, %c0_62, %c0_63] : memref<9x8x8xbf16, #tpu.memory_space<vmem>>, vector<1x8x8xbf16>
    %131 = vector.shape_cast %130 : vector<1x8x8xbf16> to vector<8x8xbf16>
    %cst_64 = arith.constant dense<0.000000e+00> : vector<324x8xf32>
    %132 = tpu.matmul %129, %131, %cst_64 {dimension_numbers = #tpu.dot_dimension_numbers<[1], [0], [0], [1], [0, 0, 1, 1], [], []>} : vector<324x8xbf16>, vector<8x8xbf16>, vector<324x8xf32> -> vector<324x8xf32>
    %133 = vector.extract_strided_slice %126 {offsets = [306, 0], sizes = [18, 8], strides = [1, 1]} : vector<324x8xbf16> to vector<18x8xbf16>
    %134 = vector.extract_strided_slice %126 {offsets = [0, 0], sizes = [306, 8], strides = [1, 1]} : vector<324x8xbf16> to vector<306x8xbf16>
    %135 = tpu.concatenate %133, %134 in 0 : vector<18x8xbf16>, vector<306x8xbf16> -> vector<324x8xbf16>
    %c1_65 = arith.constant 1 : index
    %c0_66 = arith.constant 0 : index
    %c0_67 = arith.constant 0 : index
    %136 = vector.load %arg12[%c1_65, %c0_66, %c0_67] : memref<9x8x8xbf16, #tpu.memory_space<vmem>>, vector<1x8x8xbf16>
    %137 = vector.shape_cast %136 : vector<1x8x8xbf16> to vector<8x8xbf16>
    %cst_68 = arith.constant dense<0.000000e+00> : vector<324x8xf32>
    %138 = tpu.matmul %135, %137, %cst_68 {dimension_numbers = #tpu.dot_dimension_numbers<[1], [0], [0], [1], [0, 0, 1, 1], [], []>} : vector<324x8xbf16>, vector<8x8xbf16>, vector<324x8xf32> -> vector<324x8xf32>
    %139 = arith.addf %132, %138 : vector<324x8xf32>
    %140 = vector.extract_strided_slice %126 {offsets = [307, 0], sizes = [17, 8], strides = [1, 1]} : vector<324x8xbf16> to vector<17x8xbf16>
    %141 = vector.extract_strided_slice %126 {offsets = [0, 0], sizes = [307, 8], strides = [1, 1]} : vector<324x8xbf16> to vector<307x8xbf16>
    %142 = tpu.concatenate %140, %141 in 0 : vector<17x8xbf16>, vector<307x8xbf16> -> vector<324x8xbf16>
    %c2_69 = arith.constant 2 : index
    %c0_70 = arith.constant 0 : index
    %c0_71 = arith.constant 0 : index
    %143 = vector.load %arg12[%c2_69, %c0_70, %c0_71] : memref<9x8x8xbf16, #tpu.memory_space<vmem>>, vector<1x8x8xbf16>
    %144 = vector.shape_cast %143 : vector<1x8x8xbf16> to vector<8x8xbf16>
    %cst_72 = arith.constant dense<0.000000e+00> : vector<324x8xf32>
    %145 = tpu.matmul %142, %144, %cst_72 {dimension_numbers = #tpu.dot_dimension_numbers<[1], [0], [0], [1], [0, 0, 1, 1], [], []>} : vector<324x8xbf16>, vector<8x8xbf16>, vector<324x8xf32> -> vector<324x8xf32>
    %146 = arith.addf %139, %145 : vector<324x8xf32>
    %147 = vector.extract_strided_slice %126 {offsets = [323, 0], sizes = [1, 8], strides = [1, 1]} : vector<324x8xbf16> to vector<1x8xbf16>
    %148 = vector.extract_strided_slice %126 {offsets = [0, 0], sizes = [323, 8], strides = [1, 1]} : vector<324x8xbf16> to vector<323x8xbf16>
    %149 = tpu.concatenate %147, %148 in 0 : vector<1x8xbf16>, vector<323x8xbf16> -> vector<324x8xbf16>
    %c3_73 = arith.constant 3 : index
    %c0_74 = arith.constant 0 : index
    %c0_75 = arith.constant 0 : index
    %150 = vector.load %arg12[%c3_73, %c0_74, %c0_75] : memref<9x8x8xbf16, #tpu.memory_space<vmem>>, vector<1x8x8xbf16>
    %151 = vector.shape_cast %150 : vector<1x8x8xbf16> to vector<8x8xbf16>
    %cst_76 = arith.constant dense<0.000000e+00> : vector<324x8xf32>
    %152 = tpu.matmul %149, %151, %cst_76 {dimension_numbers = #tpu.dot_dimension_numbers<[1], [0], [0], [1], [0, 0, 1, 1], [], []>} : vector<324x8xbf16>, vector<8x8xbf16>, vector<324x8xf32> -> vector<324x8xf32>
    %153 = arith.addf %146, %152 : vector<324x8xf32>
    %c4_77 = arith.constant 4 : index
    %c0_78 = arith.constant 0 : index
    %c0_79 = arith.constant 0 : index
    %154 = vector.load %arg12[%c4_77, %c0_78, %c0_79] : memref<9x8x8xbf16, #tpu.memory_space<vmem>>, vector<1x8x8xbf16>
    %155 = vector.shape_cast %154 : vector<1x8x8xbf16> to vector<8x8xbf16>
    %cst_80 = arith.constant dense<0.000000e+00> : vector<324x8xf32>
    %156 = tpu.matmul %126, %155, %cst_80 {dimension_numbers = #tpu.dot_dimension_numbers<[1], [0], [0], [1], [0, 0, 1, 1], [], []>} : vector<324x8xbf16>, vector<8x8xbf16>, vector<324x8xf32> -> vector<324x8xf32>
    %157 = arith.addf %153, %156 : vector<324x8xf32>
    %158 = vector.extract_strided_slice %126 {offsets = [1, 0], sizes = [323, 8], strides = [1, 1]} : vector<324x8xbf16> to vector<323x8xbf16>
    %159 = vector.extract_strided_slice %126 {offsets = [0, 0], sizes = [1, 8], strides = [1, 1]} : vector<324x8xbf16> to vector<1x8xbf16>
    %160 = tpu.concatenate %158, %159 in 0 : vector<323x8xbf16>, vector<1x8xbf16> -> vector<324x8xbf16>
    %c5_81 = arith.constant 5 : index
    %c0_82 = arith.constant 0 : index
    %c0_83 = arith.constant 0 : index
    %161 = vector.load %arg12[%c5_81, %c0_82, %c0_83] : memref<9x8x8xbf16, #tpu.memory_space<vmem>>, vector<1x8x8xbf16>
    %162 = vector.shape_cast %161 : vector<1x8x8xbf16> to vector<8x8xbf16>
    %cst_84 = arith.constant dense<0.000000e+00> : vector<324x8xf32>
    %163 = tpu.matmul %160, %162, %cst_84 {dimension_numbers = #tpu.dot_dimension_numbers<[1], [0], [0], [1], [0, 0, 1, 1], [], []>} : vector<324x8xbf16>, vector<8x8xbf16>, vector<324x8xf32> -> vector<324x8xf32>
    %164 = arith.addf %157, %163 : vector<324x8xf32>
    %165 = vector.extract_strided_slice %126 {offsets = [17, 0], sizes = [307, 8], strides = [1, 1]} : vector<324x8xbf16> to vector<307x8xbf16>
    %166 = vector.extract_strided_slice %126 {offsets = [0, 0], sizes = [17, 8], strides = [1, 1]} : vector<324x8xbf16> to vector<17x8xbf16>
    %167 = tpu.concatenate %165, %166 in 0 : vector<307x8xbf16>, vector<17x8xbf16> -> vector<324x8xbf16>
    %c6_85 = arith.constant 6 : index
    %c0_86 = arith.constant 0 : index
    %c0_87 = arith.constant 0 : index
    %168 = vector.load %arg12[%c6_85, %c0_86, %c0_87] : memref<9x8x8xbf16, #tpu.memory_space<vmem>>, vector<1x8x8xbf16>
    %169 = vector.shape_cast %168 : vector<1x8x8xbf16> to vector<8x8xbf16>
    %cst_88 = arith.constant dense<0.000000e+00> : vector<324x8xf32>
    %170 = tpu.matmul %167, %169, %cst_88 {dimension_numbers = #tpu.dot_dimension_numbers<[1], [0], [0], [1], [0, 0, 1, 1], [], []>} : vector<324x8xbf16>, vector<8x8xbf16>, vector<324x8xf32> -> vector<324x8xf32>
    %171 = arith.addf %164, %170 : vector<324x8xf32>
    %172 = vector.extract_strided_slice %126 {offsets = [18, 0], sizes = [306, 8], strides = [1, 1]} : vector<324x8xbf16> to vector<306x8xbf16>
    %173 = vector.extract_strided_slice %126 {offsets = [0, 0], sizes = [18, 8], strides = [1, 1]} : vector<324x8xbf16> to vector<18x8xbf16>
    %174 = tpu.concatenate %172, %173 in 0 : vector<306x8xbf16>, vector<18x8xbf16> -> vector<324x8xbf16>
    %c7_89 = arith.constant 7 : index
    %c0_90 = arith.constant 0 : index
    %c0_91 = arith.constant 0 : index
    %175 = vector.load %arg12[%c7_89, %c0_90, %c0_91] : memref<9x8x8xbf16, #tpu.memory_space<vmem>>, vector<1x8x8xbf16>
    %176 = vector.shape_cast %175 : vector<1x8x8xbf16> to vector<8x8xbf16>
    %cst_92 = arith.constant dense<0.000000e+00> : vector<324x8xf32>
    %177 = tpu.matmul %174, %176, %cst_92 {dimension_numbers = #tpu.dot_dimension_numbers<[1], [0], [0], [1], [0, 0, 1, 1], [], []>} : vector<324x8xbf16>, vector<8x8xbf16>, vector<324x8xf32> -> vector<324x8xf32>
    %178 = arith.addf %171, %177 : vector<324x8xf32>
    %179 = vector.extract_strided_slice %126 {offsets = [19, 0], sizes = [305, 8], strides = [1, 1]} : vector<324x8xbf16> to vector<305x8xbf16>
    %180 = vector.extract_strided_slice %126 {offsets = [0, 0], sizes = [19, 8], strides = [1, 1]} : vector<324x8xbf16> to vector<19x8xbf16>
    %181 = tpu.concatenate %179, %180 in 0 : vector<305x8xbf16>, vector<19x8xbf16> -> vector<324x8xbf16>
    %c8_93 = arith.constant 8 : index
    %c0_94 = arith.constant 0 : index
    %c0_95 = arith.constant 0 : index
    %182 = vector.load %arg12[%c8_93, %c0_94, %c0_95] : memref<9x8x8xbf16, #tpu.memory_space<vmem>>, vector<1x8x8xbf16>
    %183 = vector.shape_cast %182 : vector<1x8x8xbf16> to vector<8x8xbf16>
    %cst_96 = arith.constant dense<0.000000e+00> : vector<324x8xf32>
    %184 = tpu.matmul %181, %183, %cst_96 {dimension_numbers = #tpu.dot_dimension_numbers<[1], [0], [0], [1], [0, 0, 1, 1], [], []>} : vector<324x8xbf16>, vector<8x8xbf16>, vector<324x8xf32> -> vector<324x8xf32>
    %185 = arith.addf %178, %184 : vector<324x8xf32>
    %186 = vector.broadcast %125 : vector<1x8xf32> to vector<324x8xf32>
    %187 = arith.addf %185, %186 : vector<324x8xf32>
    %188 = arith.addf %187, %3 : vector<324x8xf32>
    %c0_97 = arith.constant 0 : index
    %c0_98 = arith.constant 0 : index
    %c0_99 = arith.constant 0 : index
    %189 = vector.load %arg14[%c0_97, %c0_98, %c0_99] : memref<1x324x8xf32, #tpu.memory_space<vmem>>, vector<1x324x8xf32>
    %190 = vector.shape_cast %189 : vector<1x324x8xf32> to vector<324x8xf32>
    %191 = vector.shape_cast %188 : vector<324x8xf32> to vector<1x324x8xf32>
    tpu.vector_store %arg14[%c0_97, %c0_98, %c0_99], %191 {strides = array<i32>} : memref<1x324x8xf32, #tpu.memory_space<vmem>>, vector<1x324x8xf32>,
    return
  }
  func.func @transform_0(%arg0: i32) -> (i32, i32, i32) {
    %c0_i32 = arith.constant 0 : i32
    %c0_i32_0 = arith.constant 0 : i32
    %c0_i32_1 = arith.constant 0 : i32
    return %arg0, %c0_i32, %c0_i32_0 : i32, i32, i32
  }
  func.func @transform_1(%arg0: i32) -> (i32, i32) {
    %c0_i32 = arith.constant 0 : i32
    %c0_i32_0 = arith.constant 0 : i32
    %c0_i32_1 = arith.constant 0 : i32
    return %c0_i32, %c0_i32_0 : i32, i32
  }
  func.func @transform_2(%arg0: i32) -> (i32, i32) {
    %c0_i32 = arith.constant 0 : i32
    %c0_i32_0 = arith.constant 0 : i32
    %c0_i32_1 = arith.constant 0 : i32
    return %c0_i32, %c0_i32_0 : i32, i32
  }
  func.func @transform_3(%arg0: i32) -> (i32, i32) {
    %c0_i32 = arith.constant 0 : i32
    %c0_i32_0 = arith.constant 0 : i32
    %c0_i32_1 = arith.constant 0 : i32
    return %c0_i32, %c0_i32_0 : i32, i32
  }
  func.func @transform_4(%arg0: i32) -> (i32, i32) {
    %c0_i32 = arith.constant 0 : i32
    %c0_i32_0 = arith.constant 0 : i32
    %c0_i32_1 = arith.constant 0 : i32
    return %c0_i32, %c0_i32_0 : i32, i32
  }
  func.func @transform_5(%arg0: i32) -> (i32, i32) {
    %c0_i32 = arith.constant 0 : i32
    %c0_i32_0 = arith.constant 0 : i32
    %c0_i32_1 = arith.constant 0 : i32
    return %c0_i32, %c0_i32_0 : i32, i32
  }
  func.func @transform_6(%arg0: i32) -> (i32, i32, i32) {
    %c0_i32 = arith.constant 0 : i32
    %c0_i32_0 = arith.constant 0 : i32
    %c0_i32_1 = arith.constant 0 : i32
    %c0_i32_2 = arith.constant 0 : i32
    return %c0_i32, %c0_i32_0, %c0_i32_1 : i32, i32, i32
  }
  func.func @transform_7(%arg0: i32) -> (i32, i32) {
    %c0_i32 = arith.constant 0 : i32
    %c0_i32_0 = arith.constant 0 : i32
    %c0_i32_1 = arith.constant 0 : i32
    return %c0_i32, %c0_i32_0 : i32, i32
  }
  func.func @transform_8(%arg0: i32) -> (i32, i32) {
    %c0_i32 = arith.constant 0 : i32
    %c0_i32_0 = arith.constant 0 : i32
    %c0_i32_1 = arith.constant 0 : i32
    return %c0_i32, %c0_i32_0 : i32, i32
  }
  func.func @transform_9(%arg0: i32) -> (i32, i32) {
    %c0_i32 = arith.constant 0 : i32
    %c0_i32_0 = arith.constant 0 : i32
    %c0_i32_1 = arith.constant 0 : i32
    return %c0_i32, %c0_i32_0 : i32, i32
  }
  func.func @transform_10(%arg0: i32) -> (i32, i32) {
    %c0_i32 = arith.constant 0 : i32
    %c0_i32_0 = arith.constant 0 : i32
    %c0_i32_1 = arith.constant 0 : i32
    return %c0_i32, %c0_i32_0 : i32, i32
  }
  func.func @transform_11(%arg0: i32) -> (i32, i32, i32) {
    %c0_i32 = arith.constant 0 : i32
    %c0_i32_0 = arith.constant 0 : i32
    %c0_i32_1 = arith.constant 0 : i32
    %c0_i32_2 = arith.constant 0 : i32
    return %c0_i32, %c0_i32_0, %c0_i32_1 : i32, i32, i32
  }
  func.func @transform_12(%arg0: i32) -> (i32, i32) {
    %c0_i32 = arith.constant 0 : i32
    %c0_i32_0 = arith.constant 0 : i32
    %c0_i32_1 = arith.constant 0 : i32
    return %c0_i32, %c0_i32_0 : i32, i32
  }
  func.func @transform_13(%arg0: i32) -> (i32, i32, i32) {
    %c0_i32 = arith.constant 0 : i32
    %c0_i32_0 = arith.constant 0 : i32
    %c0_i32_1 = arith.constant 0 : i32
    return %arg0, %c0_i32, %c0_i32_0 : i32, i32, i32
  }
}

</mosaic_0001>

<bundles_post_ra>
// kernel: resnet_block2d_forward.1
= control target key start
LH: loop header
LB: loop body
LE: loop exit
PB: predicated region body
PF: predicated region fallthrough
CT: control target
= control target key end

     0   :  { %s20033_s0 = inlined_call_operand.hbm [shape: f32[2,324,8], index: 0, kind: input, shape index: {}]   ;;  %s20034_s1 = inlined_call_operand.hbm [shape: f32[324,1], index: 1, kind: input, shape index: {}]   ;;  %s20035_s2 = inlined_call_operand.hbm [shape: f32[1,324], index: 2, kind: input, shape index: {}]   ;;  %s20036_s3 = inlined_call_operand.hbm [shape: f32[8,8], index: 3, kind: input, shape index: {}, may-alias: {3,8}]   ;;  %s20037_s4 = inlined_call_operand.hbm [shape: f32[1,8], index: 4, kind: input, shape index: {}]   ;;  %s20038_s5 = inlined_call_operand.hbm [shape: f32[1,8], index: 5, kind: input, shape index: {}]   ;;  %s20039_s6 = inlined_call_operand.hbm [shape: bf16[9,8,8], index: 6, kind: input, shape index: {}]   ;;  %s20040_s7 = inlined_call_operand.hbm [shape: f32[1,8], index: 7, kind: input, shape index: {}]   ;;  %s20041_s8 = inlined_call_operand.hbm [shape: f32[8,8], index: 8, kind: input, shape index: {}, may-alias: {3,8}]   ;;  %s20042_s9 = inlined_call_operand.hbm [shape: f32[1,8], index: 9, kind: input, shape index: {}]   ;;  %s20043_s10 = inlined_call_operand.hbm [shape: f32[1,8], index: 10, kind: input, shape index: {}]   ;;  %s20044_s11 = inlined_call_operand.hbm [shape: bf16[9,8,8], index: 11, kind: input, shape index: {}]   ;;  %s20045_s12 = inlined_call_operand.hbm [shape: f32[1,8], index: 12, kind: input, shape index: {}]   ;;  %s20046_s13 = inlined_call_operand.hbm [shape: f32[2,324,8], index: 13, kind: output, shape index: {}]  }
   0x1   :  { %20409 = sst [smem:[#allocation181_spill]] %s20033_s0 }
   0x2   :  { %20410 = sst [smem:[#allocation182_spill]] %s20034_s1 }
   0x3   :  { %20411 = sst [smem:[#allocation183_spill]] %s20035_s2 }
   0x4   :  { %20412 = sst [smem:[#allocation184_spill]] %s20036_s3 }
   0x5   :  { %20413 = sst [smem:[#allocation185_spill]] %s20046_s13 }
   0x6   :  { %18 = vsyncpa [#allocation3], 0 }
   0x7   :  { %20 = vsyncpa [#allocation3 + $0x1], 0 }
   0x8   :  { %21 = vsyncpa [#allocation6], 0 }
   0x9   :  { %22 = vsyncpa [#allocation9], 0 }
   0xa   :  { %23 = vsyncpa [#allocation12], 0 }
   0xb   :  { %24 = vsyncpa [#allocation15], 0 }
   0xc   :  { %25 = vsyncpa [#allocation18], 0 }
   0xd   :  { %26 = vsyncpa [#allocation21], 0 }
   0xe   :  { %27 = vsyncpa [#allocation4], 0 }
   0xf   :  { %29 = vsyncpa [#allocation4 + $0x1], 0  ;;  %s13434_s25 = smov 0   ;;  %s13436_s26 = smov 0  }
  0x10   :  { %s13438_s27 = smov 0   ;;  %s13440_s28 = smov 0  }
  0x11 LB: > { %20414 = sst [smem:[#allocation32_spill]] %s13326_s25  ;;  %s13340_s29 = smov [#allocation5]   ;;  %s13338_s28 = sphi %s13440_s28, %s21226_s28   ;;  %s13334_s27 = sphi %s13438_s27, %s21225_s27   ;;  %s13330_s26 = sphi %s13436_s26, %s21224_s26   ;;  %s13326_s25 = sphi %s13434_s25, %s21223_s25  }
  0x12   : > { %s356_s30 = sshll.u32 %s13340_s29, 4  ;;  %s13455_s14 = sadd.s32 4294967295, %s13338_s28   ;;  %s13460_s30 = int_to_ptr.vmem [resolvable:$true] %s356_s30 }
  0x13   : > { %20415 = sst [smem:[#allocation33_spill]] %s13455_s14  ;;  %p9403_p0 = scmp.ge.s32.totalorder %s13338_s28, 1 }
  0x14   : > { %p20054_p1 = scmp.eq.s32.totalorder %s13455_s14, 0  ;;  %p344_p2 = scmp.lt.s32.totalorder %s13338_s28, 3 }
  0x15   : > { %s13341_s16 = smov [#allocation8]   ;;  %s13342_s19 = smov [#allocation11]  }
  0x16   : > { %p13462_p3 = pnand %p9403_p0, %p344_p2  ;;  %s381_s17 = sshll.u32 %s13341_s16, 4  ;;  %s13475_s17 = int_to_ptr.vmem [resolvable:$true] %s381_s17 }
  0x17   : > { %s403_s20 = sshll.u32 %s13342_s19, 4  ;;  %s20419_s1 = sld [smem:[#allocation182_spill]]  ;;  %s13477_s20 = int_to_ptr.vmem [resolvable:$true] %s403_s20 }
  0x18   : > { %s20416_s15 = scalar_select %p13462_p3, 1, 0 }
  0x19   : > { %p12382_p5 = pneg %p13462_p3 }
  0x1a   : > { %20417 = sst [smem:[#allocation34_spill]] %s20416_s15 }
  0x1b   : > { %p13471_p6 = pnand %p12382_p5, %p20054_p1 }
  0x1d   : > { %s12882_s23 = scalar_lea.hbm %s20419_s1, 5248  ;;  %p13487_p8 = pneg %p13471_p6 }
  0x1e   : > { %p12883_p7 = scmp.ne.s32.totalorder %s20419_s1, %s12882_s23  ;;  %p12889_p11 = scmp.lt.u32.totalorder %s12882_s23, %s20419_s1 }
  0x20   : > { %p12885_p9 = pnand %p13487_p8, %p12883_p7 }
  0x22   : > { %p12886_p10 = pneg %p12885_p9 }
  0x24   : > { %p12891_p12 = pnand %p12889_p11, %p12886_p10 }
  0x26   : > { %12894 = shalt.err (!%p12891_p12)
}
  0x27   : > { %s12895_s21 = scalar_lea.vmem %s13460_s30, 5248  ;;  %p12903_p5 = scmp.lt.s32.totalorder %s13460_s30, %s13460_s30 }
  0x28   : > { %p12896_p13 = scmp.ne.s32.totalorder %s13460_s30, %s12895_s21  ;;  %p12904_p4 = scmp.lt.s32.totalorder %s12895_s21, %s12895_s21 }
  0x2a   : > { %p12898_p0 = pnand %p12896_p13, %p13487_p8  ;;  %p12905_p7 = por %p12904_p4, %p12903_p5 }
  0x2c   : > { %p12899_p2 = pneg %p12898_p0 }
  0x2e   : > { %p12906_p9 = pnand %p12905_p7, %p12899_p2 }
  0x30   : > { %12909 = shalt.err (!%p12906_p9)
}
  0x31   : > { %s20053_s22 = smov 128   ;;  %s20056_s13 = smov 8  }
  0x32   : > { %12385 = dma.hbm_to_vmem [thread:$0]  (!%p13471_p6), %s20419_s1, 5248, %s13460_s30, [#allocation6], %s20053_s22, %s20053_s22, %s20056_s13  }
  0x33   : > { %s20421_s3 = sld [smem:[#allocation184_spill]] }
  0x39   : > { %s12910_s21 = scalar_lea.hbm %s20421_s3, 128 }
  0x3a   : > { %p12911_p4 = scmp.ne.s32.totalorder %s20421_s3, %s12910_s21  ;;  %p12917_p12 = scmp.lt.u32.totalorder %s12910_s21, %s20421_s3 }
  0x3c   : > { %p12913_p10 = pnand %p12911_p4, %p13487_p8 }
  0x3e   : > { %p12914_p11 = pneg %p12913_p10 }
  0x40   : > { %p12919_p13 = pnand %p12917_p12, %p12914_p11 }
  0x42   : > { %12922 = shalt.err (!%p12919_p13)
}
  0x43   : > { %s12923_s30 = scalar_lea.vmem %s13475_s17, 128  ;;  %p12931_p7 = scmp.lt.s32.totalorder %s13475_s17, %s13475_s17 }
  0x44   : > { %p12924_p0 = scmp.ne.s32.totalorder %s13475_s17, %s12923_s30  ;;  %p12932_p9 = scmp.lt.s32.totalorder %s12923_s30, %s12923_s30 }
  0x46   : > { %p12926_p2 = pnand %p12924_p0, %p13487_p8  ;;  %p12933_p4 = por %p12932_p9, %p12931_p7 }
  0x48   : > { %p12927_p5 = pneg %p12926_p2 }
  0x4a   : > { %p12934_p10 = pnand %p12933_p4, %p12927_p5 }
  0x4c   : > { %12937 = shalt.err (!%p12934_p10)
}
  0x4d   : > { %12391 = dma.hbm_to_vmem [thread:$0]  (!%p13471_p6), %s20421_s3, 128, %s13475_s17, [#allocation9]  }
  0x4e   : > { %s12938_s23 = scalar_lea.hbm %s20038_s5, 16 }
  0x4f   : > { %p12939_p11 = scmp.ne.s32.totalorder %s20038_s5, %s12938_s23  ;;  %p12945_p0 = scmp.lt.u32.totalorder %s12938_s23, %s20038_s5 }
  0x51   : > { %p12941_p12 = pnand %p12939_p11, %p13487_p8 }
  0x53   : > { %p12942_p13 = pneg %p12941_p12 }
  0x55   : > { %p12947_p2 = pnand %p12945_p0, %p12942_p13 }
  0x57   : > { %12950 = shalt.err (!%p12947_p2)
}
  0x58   : > { %s12951_s17 = scalar_lea.vmem %s13477_s20, 16  ;;  %s12958_s30 = scalar_lea.vmem %s13477_s20, 32 }
  0x59   : > { %p12952_p5 = scmp.ne.s32.totalorder %s13477_s20, %s12951_s17  ;;  %p12959_p4 = scmp.lt.s32.totalorder %s13477_s20, %s13477_s20 }
  0x5a   : > { %p12960_p10 = scmp.lt.s32.totalorder %s12958_s30, %s12951_s17 }
  0x5b   : > { %p12954_p7 = pnand %p12952_p5, %p13487_p8 }
  0x5c   : > { %p12961_p11 = por %p12960_p10, %p12959_p4 }
  0x5d   : > { %p12955_p9 = pneg %p12954_p7 }
  0x5f   : > { %p12962_p12 = pnand %p12961_p11, %p12955_p9 }
  0x61   : > { %12965 = shalt.err (!%p12962_p12)
}
  0x62   : > { %12397 = dma.hbm_to_vmem [thread:$0]  (!%p13471_p6), %s20038_s5, 16, %s13477_s20, [#allocation12]  }
  0x63   : > { %s13345_s14 = smov [#allocation14]   ;;  %s13346_s23 = smov [#allocation17]  }
  0x64   : > { %s427_s15 = sshll.u32 %s13345_s14, 4  ;;  %s449_s24 = sshll.u32 %s13346_s23, 4  ;;  %s428_s15 = int_to_ptr.vmem [resolvable:$true] %s427_s15  ;;  %s450_s24 = int_to_ptr.vmem [resolvable:$true] %s449_s24 }
  0x65   : > { %s12966_s21 = scalar_lea.hbm %s20040_s7, 16 }
  0x66   : > { %p12967_p13 = scmp.ne.s32.totalorder %s20040_s7, %s12966_s21  ;;  %p12973_p5 = scmp.lt.u32.totalorder %s12966_s21, %s20040_s7 }
  0x68   : > { %p12969_p0 = pnand %p12967_p13, %p13487_p8 }
  0x6a   : > { %p12970_p2 = pneg %p12969_p0 }
  0x6c   : > { %p12975_p7 = pnand %p12973_p5, %p12970_p2 }
  0x6e   : > { %12978 = shalt.err (!%p12975_p7)
}
  0x6f   : > { %s12979_s20 = scalar_lea.vmem %s428_s15, 16  ;;  %s12986_s25 = scalar_lea.vmem %s428_s15, 32 }
  0x70   : > { %p12980_p9 = scmp.ne.s32.totalorder %s428_s15, %s12979_s20  ;;  %p12987_p11 = scmp.lt.s32.totalorder %s428_s15, %s428_s15 }
  0x71   : > { %p12988_p12 = scmp.lt.s32.totalorder %s12986_s25, %s12979_s20 }
  0x72   : > { %p12982_p4 = pnand %p12980_p9, %p13487_p8 }
  0x73   : > { %p12989_p1 = por %p12988_p12, %p12987_p11 }
  0x74   : > { %p12983_p10 = pneg %p12982_p4 }
  0x76   : > { %p12990_p3 = pnand %p12989_p1, %p12983_p10 }
  0x78   : > { %12993 = shalt.err (!%p12990_p3)
}
  0x79   : > { %12403 = dma.hbm_to_vmem [thread:$0]  (!%p13471_p6), %s20040_s7, 16, %s428_s15, [#allocation15]  }
  0x7a   : > { %s12994_s19 = scalar_lea.hbm %s20042_s9, 16 }
  0x7b   : > { %p12995_p13 = scmp.ne.s32.totalorder %s20042_s9, %s12994_s19  ;;  %p13001_p3 = scmp.lt.u32.totalorder %s12994_s19, %s20042_s9 }
  0x7d   : > { %p12997_p0 = pnand %p12995_p13, %p13487_p8 }
  0x7f   : > { %p12998_p1 = pneg %p12997_p0 }
  0x81   : > { %p13003_p2 = pnand %p13001_p3, %p12998_p1 }
  0x83   : > { %13006 = shalt.err (!%p13003_p2)
}
  0x84   : > { %s13007_s20 = scalar_lea.vmem %s450_s24, 16  ;;  %s13014_s15 = scalar_lea.vmem %s450_s24, 32 }
  0x85   : > { %p13008_p5 = scmp.ne.s32.totalorder %s450_s24, %s13007_s20  ;;  %p13015_p4 = scmp.lt.s32.totalorder %s450_s24, %s450_s24 }
  0x86   : > { %p13016_p10 = scmp.lt.s32.totalorder %s13014_s15, %s13007_s20 }
  0x87   : > { %p13010_p7 = pnand %p13008_p5, %p13487_p8 }
  0x88   : > { %p13017_p11 = por %p13016_p10, %p13015_p4 }
  0x89   : > { %p13011_p9 = pneg %p13010_p7 }
  0x8b   : > { %p13018_p12 = pnand %p13017_p11, %p13011_p9 }
  0x8d   : > { %13021 = shalt.err (!%p13018_p12)
}
  0x8e   : > { %12409 = dma.hbm_to_vmem [thread:$0]  (!%p13471_p6), %s20042_s9, 16, %s450_s24, [#allocation18]  }
  0x8f   : > { %s13347_s23 = smov [#allocation20]   ;;  %s13348_s29 = smov [#allocation7]  }
  0x90   : > { %s470_s22 = sshll.u32 %s13347_s23, 4  ;;  %s370_s19 = sshll.u32 %s13348_s29, 4  ;;  %s471_s22 = int_to_ptr.vmem [resolvable:$true] %s470_s22  ;;  %s371_s19 = int_to_ptr.vmem [resolvable:$true] %s370_s19 }
  0x91   : > { %s13022_s30 = scalar_lea.hbm %s20044_s11, 576 }
  0x92   : > { %p13023_p13 = scmp.ne.s32.totalorder %s20044_s11, %s13022_s30  ;;  %p13029_p3 = scmp.lt.u32.totalorder %s13022_s30, %s20044_s11 }
  0x94   : > { %p13025_p0 = pnand %p13023_p13, %p13487_p8 }
  0x96   : > { %p13026_p1 = pneg %p13025_p0 }
  0x98   : > { %p13031_p2 = pnand %p13029_p3, %p13026_p1 }
  0x9a   : > { %13034 = shalt.err (!%p13031_p2)
}
  0x9b   : > { %s13035_s24 = scalar_lea.vmem %s471_s22, 576  ;;  %p13043_p4 = scmp.lt.s32.totalorder %s471_s22, %s471_s22 }
  0x9c   : > { %p13036_p5 = scmp.ne.s32.totalorder %s471_s22, %s13035_s24  ;;  %p13044_p10 = scmp.lt.s32.totalorder %s13035_s24, %s13035_s24 }
  0x9e   : > { %p13038_p7 = pnand %p13036_p5, %p13487_p8  ;;  %p13045_p11 = por %p13044_p10, %p13043_p4 }
  0xa0   : > { %p13039_p9 = pneg %p13038_p7 }
  0xa2   : > { %p13046_p12 = pnand %p13045_p11, %p13039_p9 }
  0xa4   : > { %13049 = shalt.err (!%p13046_p12)
}
  0xa5   : > { %s20057_s14 = smov 64   ;;  %s13350_s23 = smov 4  }
  0xa6   : > { %12415 = dma.hbm_to_vmem [thread:$0]  (!%p13471_p6), %s20044_s11, 576, %s471_s22, [#allocation21], %s20057_s14, %s20057_s14, %s13350_s23  }
  0xa7   : > { %s20422_s2 = sld [smem:[#allocation183_spill]] }
  0xad   : > { %s13050_s0 = scalar_lea.hbm %s20422_s2, 48 }
  0xae   : > { %p13051_p13 = scmp.ne.s32.totalorder %s20422_s2, %s13050_s0  ;;  %p13057_p3 = scmp.lt.u32.totalorder %s13050_s0, %s20422_s2 }
  0xb0   : > { %p13053_p0 = pnand %p13051_p13, %p13487_p8 }
  0xb2   : > { %p13054_p1 = pneg %p13053_p0 }
  0xb4   : > { %p13059_p2 = pnand %p13057_p3, %p13054_p1 }
  0xb6   : > { %13062 = shalt.err (!%p13059_p2)
}
  0xb7   : > { %s13063_s29 = scalar_lea.vmem %s371_s19, 48  ;;  %s13070_s22 = scalar_lea.vmem %s371_s19, 64 }
  0xb8   : > { %p13064_p5 = scmp.ne.s32.totalorder %s371_s19, %s13063_s29  ;;  %p13071_p4 = scmp.lt.s32.totalorder %s371_s19, %s371_s19 }
  0xb9   : > { %p13072_p10 = scmp.lt.s32.totalorder %s13070_s22, %s13063_s29 }
  0xba   : > { %p13066_p7 = pnand %p13064_p5, %p13487_p8 }
  0xbb   : > { %p13073_p11 = por %p13072_p10, %p13071_p4 }
  0xbc   : > { %p13067_p9 = pneg %p13066_p7 }
  0xbe   : > { %p13074_p12 = pnand %p13073_p11, %p13067_p9 }
  0xc0   : > { %13077 = shalt.err (!%p13074_p12)
}
  0xc1   : > { %12388 = dma.hbm_to_vmem [thread:$0]  (!%p13471_p6), %s20422_s2, 48, %s371_s19, [#allocation6]  }
  0xc2   : > { %s13351_s30 = smov [#allocation10]   ;;  %s13352_s20 = smov [#allocation13]  }
  0xc3   : > { %s392_s0 = sshll.u32 %s13351_s30, 4  ;;  %s413_s15 = sshll.u32 %s13352_s20, 4  ;;  %s393_s0 = int_to_ptr.vmem [resolvable:$true] %s392_s0  ;;  %s414_s15 = int_to_ptr.vmem [resolvable:$true] %s413_s15 }
  0xc4   : > { %s13078_s13 = scalar_lea.hbm %s20037_s4, 16 }
  0xc5   : > { %p13079_p13 = scmp.ne.s32.totalorder %s20037_s4, %s13078_s13  ;;  %p13085_p3 = scmp.lt.u32.totalorder %s13078_s13, %s20037_s4 }
  0xc7   : > { %p13081_p0 = pnand %p13079_p13, %p13487_p8 }
  0xc9   : > { %p13082_p1 = pneg %p13081_p0 }
  0xcb   : > { %p13087_p2 = pnand %p13085_p3, %p13082_p1 }
  0xcd   : > { %13090 = shalt.err (!%p13087_p2)
}
  0xce   : > { %s13091_s19 = scalar_lea.vmem %s393_s0, 16  ;;  %s13098_s17 = scalar_lea.vmem %s393_s0, 32 }
  0xcf   : > { %p13092_p5 = scmp.ne.s32.totalorder %s393_s0, %s13091_s19  ;;  %p13099_p4 = scmp.lt.s32.totalorder %s393_s0, %s393_s0 }
  0xd0   : > { %p13100_p10 = scmp.lt.s32.totalorder %s13098_s17, %s13091_s19 }
  0xd1   : > { %p13094_p7 = pnand %p13092_p5, %p13487_p8 }
  0xd2   : > { %p13101_p11 = por %p13100_p10, %p13099_p4 }
  0xd3   : > { %p13095_p9 = pneg %p13094_p7 }
  0xd5   : > { %p13102_p12 = pnand %p13101_p11, %p13095_p9 }
  0xd7   : > { %13105 = shalt.err (!%p13102_p12)
}
  0xd8   : > { %12394 = dma.hbm_to_vmem [thread:$0]  (!%p13471_p6), %s20037_s4, 16, %s393_s0, [#allocation9]  }
  0xd9   : > { %s13106_s25 = scalar_lea.hbm %s20039_s6, 576 }
  0xda   : > { %p13107_p13 = scmp.ne.s32.totalorder %s20039_s6, %s13106_s25  ;;  %p13113_p3 = scmp.lt.u32.totalorder %s13106_s25, %s20039_s6 }
  0xdc   : > { %p13109_p0 = pnand %p13107_p13, %p13487_p8 }
  0xde   : > { %p13110_p1 = pneg %p13109_p0 }
  0xe0   : > { %p13115_p2 = pnand %p13113_p3, %p13110_p1 }
  0xe2   : > { %13118 = shalt.err (!%p13115_p2)
}
  0xe3   : > { %s13119_s19 = scalar_lea.vmem %s414_s15, 576  ;;  %p13127_p4 = scmp.lt.s32.totalorder %s414_s15, %s414_s15 }
  0xe4   : > { %p13120_p5 = scmp.ne.s32.totalorder %s414_s15, %s13119_s19  ;;  %p13128_p10 = scmp.lt.s32.totalorder %s13119_s19, %s13119_s19 }
  0xe6   : > { %p13122_p7 = pnand %p13120_p5, %p13487_p8  ;;  %p13129_p11 = por %p13128_p10, %p13127_p4 }
  0xe8   : > { %p13123_p9 = pneg %p13122_p7 }
  0xea   : > { %p13130_p12 = pnand %p13129_p11, %p13123_p9 }
  0xec   : > { %13133 = shalt.err (!%p13130_p12)
}
  0xed   : > { %s20423_s0 = smov 64   ;;  %s13353_s20 = smov [#allocation16]  }
  0xee   : > { %12400 = dma.hbm_to_vmem [thread:$0]  (!%p13471_p6), %s20039_s6, 576, %s414_s15, [#allocation12], %s20423_s0, %s20423_s0, %s13350_s23  }
  0xef   : > { %s438_s13 = sshll.u32 %s13353_s20, 4  ;;  %s13354_s14 = smov [#allocation19]   ;;  %s439_s13 = int_to_ptr.vmem [resolvable:$true] %s438_s13 }
  0xf0   : > { %s460_s25 = sshll.u32 %s13354_s14, 4  ;;  %s13134_s22 = scalar_lea.hbm %s20041_s8, 128  ;;  %s461_s25 = int_to_ptr.vmem [resolvable:$true] %s460_s25 }
  0xf1   : > { %p13135_p13 = scmp.ne.s32.totalorder %s20041_s8, %s13134_s22  ;;  %p13141_p3 = scmp.lt.u32.totalorder %s13134_s22, %s20041_s8 }
  0xf3   : > { %p13137_p0 = pnand %p13135_p13, %p13487_p8 }
  0xf5   : > { %p13138_p1 = pneg %p13137_p0 }
  0xf7   : > { %p13143_p2 = pnand %p13141_p3, %p13138_p1 }
  0xf9   : > { %13146 = shalt.err (!%p13143_p2)
}
  0xfa   : > { %s13147_s23 = scalar_lea.vmem %s439_s13, 128  ;;  %p13155_p4 = scmp.lt.s32.totalorder %s439_s13, %s439_s13 }
  0xfb   : > { %p13148_p5 = scmp.ne.s32.totalorder %s439_s13, %s13147_s23  ;;  %p13156_p10 = scmp.lt.s32.totalorder %s13147_s23, %s13147_s23 }
  0xfd   : > { %p13150_p7 = pnand %p13148_p5, %p13487_p8  ;;  %p13157_p11 = por %p13156_p10, %p13155_p4 }
  0xff   : > { %p13151_p9 = pneg %p13150_p7 }
 0x101   : > { %p13158_p12 = pnand %p13157_p11, %p13151_p9 }
 0x103   : > { %13161 = shalt.err (!%p13158_p12)
}
 0x104   : > { %12406 = dma.hbm_to_vmem [thread:$0]  (!%p13471_p6), %s20041_s8, 128, %s439_s13, [#allocation15]  }
 0x105   : > { %s13162_s20 = scalar_lea.hbm %s20043_s10, 16 }
 0x106   : > { %p13163_p13 = scmp.ne.s32.totalorder %s20043_s10, %s13162_s20  ;;  %p13169_p3 = scmp.lt.u32.totalorder %s13162_s20, %s20043_s10 }
 0x108   : > { %p13165_p0 = pnand %p13163_p13, %p13487_p8 }
 0x10a   : > { %p13166_p1 = pneg %p13165_p0 }
 0x10c   : > { %p13171_p2 = pnand %p13169_p3, %p13166_p1 }
 0x10e   : > { %13174 = shalt.err (!%p13171_p2)
}
 0x10f   : > { %s13175_s21 = scalar_lea.vmem %s461_s25, 16  ;;  %s13182_s13 = scalar_lea.vmem %s461_s25, 32 }
 0x110   : > { %p13176_p5 = scmp.ne.s32.totalorder %s461_s25, %s13175_s21  ;;  %p13183_p4 = scmp.lt.s32.totalorder %s461_s25, %s461_s25 }
 0x111   : > { %p13184_p10 = scmp.lt.s32.totalorder %s13182_s13, %s13175_s21 }
 0x112   : > { %p13178_p7 = pnand %p13176_p5, %p13487_p8 }
 0x113   : > { %p13185_p11 = por %p13184_p10, %p13183_p4 }
 0x114   : > { %p13179_p9 = pneg %p13178_p7 }
 0x116   : > { %p13186_p12 = pnand %p13185_p11, %p13179_p9 }
 0x118   : > { %13189 = shalt.err (!%p13186_p12)
}
 0x119   : > { %12412 = dma.hbm_to_vmem [thread:$0]  (!%p13471_p6), %s20043_s10, 16, %s461_s25, [#allocation18]  }
 0x11a   : > { %s13355_s23 = smov [#allocation22]   ;;  %s13190_s30 = scalar_lea.hbm %s20045_s12, 16 }
 0x11b   : > { %s484_s15 = sshll.u32 %s13355_s23, 4  ;;  %p13191_p13 = scmp.ne.s32.totalorder %s20045_s12, %s13190_s30  ;;  %s485_s15 = int_to_ptr.vmem [resolvable:$true] %s484_s15 }
 0x11c   : > { %p13197_p3 = scmp.lt.u32.totalorder %s13190_s30, %s20045_s12 }
 0x11d   : > { %p13193_p0 = pnand %p13191_p13, %p13487_p8 }
 0x11f   : > { %p13194_p1 = pneg %p13193_p0 }
 0x121   : > { %p13199_p2 = pnand %p13197_p3, %p13194_p1 }
 0x123   : > { %13202 = shalt.err (!%p13199_p2)
}
 0x124   : > { %s13203_s25 = scalar_lea.vmem %s485_s15, 16  ;;  %s13210_s22 = scalar_lea.vmem %s485_s15, 32 }
 0x125   : > { %p13204_p5 = scmp.ne.s32.totalorder %s485_s15, %s13203_s25  ;;  %p13211_p4 = scmp.lt.s32.totalorder %s485_s15, %s485_s15 }
 0x126   : > { %p13212_p10 = scmp.lt.s32.totalorder %s13210_s22, %s13203_s25 }
 0x127   : > { %p13206_p7 = pnand %p13204_p5, %p13487_p8 }
 0x128   : > { %p13213_p11 = por %p13212_p10, %p13211_p4 }
 0x129   : > { %p13207_p9 = pneg %p13206_p7 }
 0x12b   : > { %p13214_p12 = pnand %p13213_p11, %p13207_p9 }
 0x12d   : > { %13217 = shalt.err (!%p13214_p12)
}
 0x12e   : > { %s20424_s16 = sld [smem:[#allocation32_spill]]  ;;  %s20425_s19 = sld [smem:[#allocation33_spill]] }
 0x12f   : > { %12418 = dma.hbm_to_vmem [thread:$0]  (!%p13471_p6), %s20045_s12, 16, %s485_s15, [#allocation21]  }
 0x130   : > { %s9402_s17 = sadd.s32 4294967294, %s13338_s28   ;;  %s13728_s18 = sadd.s32 1, %s13338_s28  }
 0x131   : > { %s39_s23 = ssub.s32 %s13338_s28, %s13728_s18  ;;  %s42_s0 = sadd.s32 1, %s13334_s27 }
 0x132   : > { %p40_p8 = scmp.eq.s32.totalorder %s39_s23, 0  ;;  %p49_p13 = scmp.ne.s32.totalorder %s13334_s27, %s13330_s26 }
 0x133   : > { %p50_p0 = scmp.eq.s32.totalorder %s13338_s28, 0  ;;  %p337_p7 = scmp.eq.s32.totalorder %s9402_s17, 1 }
 0x134   : > { %p55_p1 = scmp.ne.s32.totalorder %s13330_s26, %s20424_s16  ;;  %p20426_p2 = scmp.eq.s32.totalorder %s20425_s19, 0 }
 0x135   : > { %s13739_s1 = scalar_select %p40_p8, %s13334_s27, %s42_s0  }
 0x136   : > { %p51_p3 = por %p50_p0, %p49_p13  ;;  %p13743_p5 = por %p20426_p2, %p55_p1 }
 0x137   : > { %p331_p6 = scmp.eq.s32.totalorder %s20425_s19, 1  ;;  %p12439_p9 = scmp.lt.s32.totalorder %s13338_s28, 2 }
 0x138   : > { %s495_s15 = sand.u32 1, %s13334_s27   ;;  %p13754_p10 = por %p337_p7, %p55_p1 }
 0x139   : > { %p13750_p4 = por %p331_p6, %p49_p13  ;;  %s12326_s24 = smul.u32 328, %s495_s15 }
 0x13a   : > { %s20429_s14 = scalar_select %p13754_p10, 1, 0 }
 0x13b   : > { %s20428_s20 = scalar_select %p13750_p4, 1, 0 }
 0x13c   : > { %s12327_s29 = smul.u32 5248, %s13338_s28  ;;  %p13759_p11 = pnand %p12439_p9, %p51_p3 }
 0x13d   : > { %s20431_s13 = sld [smem:[#allocation181_spill]]  ;;  %s499_s19 = scalar_lea.vmem [#allocation2], %s12326_s24 }
 0x13e   : > { %s506_s17 = sshll.u32 %s499_s19, 4  ;;  %s13770_s23 = scalar_lea.sflag [#allocation3], %s495_s15  ;;  %s13768_s17 = int_to_ptr.vmem [resolvable:$true] %s506_s17 }
 0x13f   : > { %p13220_p8 = pneg %p13759_p11 }
 0x143   : > { %s13766_s16 = scalar_lea.hbm %s20431_s13, %s12327_s29  ;;  %s13223_s21 = scalar_lea.hbm %s20431_s13, 10496 }
 0x144   : > { %s13218_s0 = scalar_lea.hbm %s13766_s16, 5248  ;;  %p13224_p1 = scmp.lt.u32.totalorder %s13766_s16, %s20431_s13 }
 0x145   : > { %p13219_p12 = scmp.ne.s32.totalorder %s13766_s16, %s13218_s0  ;;  %p13225_p3 = scmp.lt.u32.totalorder %s13223_s21, %s13218_s0 }
 0x146   : > { %p13227_p6 = scmp.lt.u32.totalorder %s13218_s0, %s13766_s16 }
 0x147   : > { %p13221_p13 = pnand %p13220_p8, %p13219_p12  ;;  %p13226_p2 = por %p13225_p3, %p13224_p1 }
 0x149   : > { %p13222_p0 = pneg %p13221_p13  ;;  %p13228_p7 = por %p13227_p6, %p13226_p2 }
 0x14b   : > { %p13229_p9 = pnand %p13228_p7, %p13222_p0 }
 0x14d   : > { %13232 = shalt.err (!%p13229_p9)
}
 0x14e   : > { %s13233_s15 = scalar_lea.vmem %s13768_s17, 5248  ;;  %s13356_s24 = smov [#allocation2]  }
 0x14f   : > { %p13234_p12 = scmp.ne.s32.totalorder %s13768_s17, %s13233_s15  ;;  %s13238_s19 = sshll.u32 %s13356_s24, 4  ;;  %s13239_s19 = int_to_ptr.vmem [resolvable:$false] %s13238_s19 }
 0x150   : > { %s13240_s2 = scalar_lea.vmem %s13239_s19, 10496  ;;  %p13241_p4 = scmp.lt.s32.totalorder %s13768_s17, %s13239_s19 }
 0x151   : > { %p13236_p13 = pnand %p13234_p12, %p13220_p8  ;;  %p13242_p1 = scmp.lt.s32.totalorder %s13240_s2, %s13233_s15 }
 0x153   : > { %p13237_p10 = pneg %p13236_p13  ;;  %p13243_p3 = por %p13242_p1, %p13241_p4 }
 0x155   : > { %p13244_p2 = pnand %p13243_p3, %p13237_p10 }
 0x157   : > { %13247 = shalt.err (!%p13244_p2)
}
 0x158   : > { %s20432_s3 = smov 8   ;;  %s20433_s0 = smov 128  }
 0x159   : > { %12422 = dma.hbm_to_vmem [thread:$0]  (!%p13759_p11), %s13766_s16, 5248, %s13768_s17, %s13770_s23, %s20433_s0, %s20433_s0, %s20432_s3  }
 0x15a   : > { %s20434_s29 = sld [smem:[#allocation34_spill]] }
 0x160   : > { %p20435_p8 = scmp.ne.s32.totalorder %s20434_s29, 0 }
 0x162   : > { %518 = sbr.rel (%p20435_p8) target bundleno = 3740 (0xe9c), region = 72 }
 0x169   : > { %s13804_s22 = sand.u32 1, %s13330_s26  }
 0x16a   : > { %s12328_s21 = smul.u32 328, %s13804_s22  ;;  %s521_s15 = scalar_lea.sflag [#allocation3], %s13804_s22 }
 0x16c   : > { %s13810_s25 = scalar_lea.vmem [#allocation2], %s12328_s21 }
 0x16d   : > { %13293 = dma.done.wait (%p13743_p5), %s521_s15, 5248  }
 0x16e   : > { %13295 = vsyncadd (%p13743_p5), %s521_s15, 4294962048  ;;  %s20436_s16 = sld [smem:[#allocation33_spill]] }
 0x174   : > { %p20437_p4 = scmp.eq.s32.totalorder %s20436_s16, 0 }
 0x176   : > { %13297 = dma.done.wait (%p20437_p4), [#allocation6], 5296   ;;  %p20438_p10 = pmov %p20437_p4 }
 0x177   : > { %p20439_p11 = pmov %p20437_p4 }
 0x178   : > { %13299 = vsyncadd (%p20438_p10), [#allocation6], 4294962000 }
 0x179   : > { %13301 = dma.done.wait (%p20439_p11), [#allocation9], 144   ;;  %p20440_p0 = pmov %p20437_p4 }
 0x17b   : > { %13303 = vsyncadd (%p20440_p0), [#allocation9], 4294967152  ;;  %p20441_p6 = pmov %p20440_p0 }
 0x17c   : > { %p20442_p7 = pmov %p20440_p0 }
 0x17d   : > { %13305 = dma.done.wait (%p20441_p6), [#allocation12], 592  }
 0x17e   : > { %13307 = vsyncadd (%p20442_p7), [#allocation12], 4294966704  ;;  %p20443_p5 = pmov %p20440_p0 }
 0x17f   : > { %p20444_p9 = pmov %p20440_p0 }
 0x180   : > { %13309 = dma.done.wait (%p20443_p5), [#allocation15], 144  }
 0x181   : > { %13311 = vsyncadd (%p20444_p9), [#allocation15], 4294967152  ;;  %p20445_p12 = pmov %p20440_p0 }
 0x182   : > { %p20446_p13 = pmov %p20440_p0 }
 0x183   : > { %13313 = dma.done.wait (%p20445_p12), [#allocation18], 32  }
 0x184   : > { %13315 = vsyncadd (%p20446_p13), [#allocation18], 4294967264  ;;  %p20447_p1 = pmov %p20440_p0 }
 0x185   : > { %p20448_p3 = pmov %p20440_p0 }
 0x186   : > { %13317 = dma.done.wait (%p20447_p1), [#allocation21], 592  }
 0x187   : > { %13319 = vsyncadd (%p20448_p3), [#allocation21], 4294966704  ;;  %v20059_v0 = vmov 0.0|0.0   ;;  %vm13358_vm0 = vmmov 0   ;;  %v20061_v1 = vmov 0.0   ;;  %v13844_v2 = vld [vmem:[%s13810_s25 + $0x80] sm:$0xff]  ;;  %v703_v14 = vlaneseq }
 0x188   : > { %12180 = vmatprep.subr.bf16.mxu1 %v20059_v0  ;;  %10514 = vmatprep.mubr.msk.f32.mxu1 %vm13358_vm0, %v20061_v1  ;;  %v13847_v3 = vld [vmem:[%s13810_s25 + $0x88] sm:$0xff]  ;;  %v13850_v4 = vld [vmem:[%s13810_s25 + $0x100] sm:$0xff]  ;;  %v13868_v11 = vld [vmem:[%s13810_s25 + $0x90] sm:$0xff]  ;;  %v880_v49 = vmul.f32 %v13844_v2, %v13844_v2  ;;  %vm720_vm1 = vcmask 1043456   ;;  %vm717_vm2 = vcmask 556032   ;;  %vm1048_vm3 = vcmask 64512  }
 0x189   : > { %20449 = vst [vmem:[#allocation35_spill] sm:$0xff] %v13850_v4  ;;  %v12148_v5 = vpack.c.bf16 %v13847_v3, %v13844_v2  ;;  %v13855_v6 = vld [vmem:[%s13810_s25 + $0x108] sm:$0xff]  ;;  %v13858_v7 = vld [vmem:[%s13810_s25] sm:$0xff]  ;;  %v13871_v12 = vld [vmem:[%s13810_s25 + $0x98] sm:$0xff]  ;;  %v13918_v30 = vshrl.u32 %v703_v14, 7  ;;  %v881_v50 = vmul.f32 %v13847_v3, %v13847_v3  ;;  %v882_v55 = vmul.f32 %v13868_v11, %v13868_v11  ;;  %s19781_s30 = scalar_lea.vmem [#allocation23], %s12328_s21 }
 0x18a   : > { %20450 = vst [vmem:[#allocation36_spill] sm:$0xff] %v13855_v6  ;;  %v13861_v8 = vld [vmem:[%s13810_s25 + $0x8] sm:$0xff]  ;;  %v12181_v9 = vpack.c.bf16 %v13855_v6, %v13850_v4  ;;  %v13874_v13 = vld [vmem:[%s13810_s25 + $0x110] sm:$0xff]  ;;  %v12152_v15 = vpack.c.bf16 %v13871_v12, %v13868_v11  ;;  %v13879_v16 = vld [vmem:[%s13810_s25 + $0x118] sm:$0xff]  ;;  %v864_v51 = vmul.f32 %v13858_v7, %v13858_v7  ;;  %v883_v56 = vmul.f32 %v13871_v12, %v13871_v12  ;;  %s12329_s17 = smul.u32 5248, %s20436_s16  ;;  %s9215_s23 = sshll.u32 %s19781_s30, 4  ;;  %s19988_s23 = int_to_ptr.vmem [resolvable:$true] %s9215_s23 }
 0x18b   : > { %v12150_v10 = vpack.c.bf16 %v13861_v8, %v13858_v7  ;;  %20451 = vst [vmem:[#allocation37_spill] sm:$0xff] %v13874_v13  ;;  %12149 = vmatprep.subr.bf16.mxu0 %v12148_v5  ;;  %v13882_v17 = vld [vmem:[%s13810_s25 + $0x10] sm:$0xff]  ;;  %v13885_v18 = vld [vmem:[%s13810_s25 + $0x18] sm:$0xff]  ;;  %v12184_v19 = vpack.c.bf16 %v13879_v16, %v13874_v13  ;;  %v13892_v21 = vld [vmem:[%s13810_s25 + $0xa0] sm:$0xff]  ;;  %v709_v34 = vsub.s32 1, %v13918_v30  ;;  %v713_v48 = vsub.s32 2, %v13918_v30 }
 0x18c   : > { %12182 = vmatpush3.bf16.msra.mxu1 %v12181_v9  ;;  %v12154_v20 = vpack.c.bf16 %v13885_v18, %v13882_v17  ;;  %v13895_v22 = vld [vmem:[%s13810_s25 + $0xa8] sm:$0xff]  ;;  %v13898_v23 = vld [vmem:[%s13810_s25 + $0x120] sm:$0xff]  ;;  %v13913_v28 = vld [vmem:[%s13810_s25 + $0xb0] sm:$0xff]  ;;  %v865_v52 = vmul.f32 %v13861_v8, %v13861_v8  ;;  %v12192_v60 = vpack.c.bf16 %v881_v50, %v880_v49  ;;  %v866_v9 = vmul.f32 %v13882_v17, %v13882_v17  ;;  %s21218_s2 = sld [smem:[#allocation185_spill]]  ;;  %s9202_s0 = scalar_lea.sflag [#allocation4], %s13804_s22 }
 0x18d   : > { %12151 = vmatpush3.bf16.msra.mxu0 %v12150_v10  ;;  %20452 = vst [vmem:[#allocation38_spill] sm:$0xff] %v13898_v23  ;;  %12183 = vmatprep.subr.bf16.mxu1 %v20059_v0  ;;  %v12156_v24 = vpack.c.bf16 %v13895_v22, %v13892_v21  ;;  %v13904_v25 = vld [vmem:[%s13810_s25 + $0x128] sm:$0xff]  ;;  %v13907_v26 = vld [vmem:[%s13810_s25 + $0x20] sm:$0xff]  ;;  %v13916_v29 = vld [vmem:[%s13810_s25 + $0xb8] sm:$0xff]  ;;  %v867_v10 = vmul.f32 %v13885_v18, %v13885_v18  ;;  %vm2135_vm4 = vcmask 1046528   ;;  %vm2158_vm6 = vcmask 1040384  }
 0x18e   : > { %12153 = vmatprep.subr.bf16.mxu0 %v12152_v15  ;;  %20453 = vst [vmem:[#allocation39_spill] sm:$0xff] %v13904_v25  ;;  %v13910_v27 = vld [vmem:[%s13810_s25 + $0x28] sm:$0xff]  ;;  %v12187_v31 = vpack.c.bf16 %v13904_v25, %v13898_v23  ;;  %v13925_v33 = vld [vmem:[%s13810_s25 + $0x130] sm:$0xff]  ;;  %v12160_v35 = vpack.c.bf16 %v13916_v29, %v13913_v28  ;;  %v13932_v36 = vld [vmem:[%s13810_s25 + $0x138] sm:$0xff]  ;;  %v12194_v63 = vpack.c.bf16 %v865_v52, %v864_v51  ;;  %vm1955_vm5 = vsmask.f32 1280 }
 0x18f   : > { %v12158_v32 = vpack.c.bf16 %v13910_v27, %v13907_v26  ;;  %v13935_v37 = vld [vmem:[%s13810_s25 + $0x30] sm:$0xff]  ;;  %v13938_v38 = vld [vmem:[%s13810_s25 + $0x38] sm:$0xff]  ;;  %v13941_v39 = vld [vmem:[%s13810_s25 + $0xc0] sm:$0xff]  ;;  %v12190_v42 = vpack.c.bf16 %v13932_v36, %v13925_v33  ;;  %v886_v51 = vmul.f32 %v13913_v28, %v13913_v28  ;;  %v887_v52 = vmul.f32 %v13916_v29, %v13916_v29  ;;  %s13248_s29 = scalar_lea.vmem %s19988_s23, 5248  ;;  %p21219_p8 = scmp.ne.s32.totalorder %s20428_s20, 0 }
 0x190   : > { %12185 = vmatpush3.bf16.msra.mxu1 %v12184_v19  ;;  %v13944_v40 = vld [vmem:[%s13810_s25 + $0xc8] sm:$0xff]  ;;  %v13946_v41 = vld [vmem:[#allocation7] sm:$0x7]  ;;  %v12162_v43 = vpack.c.bf16 %v13938_v38, %v13935_v37  ;;  %v13959_v46 = vld [vmem:[%s13810_s25 + $0x40] sm:$0xff]  ;;  %v12196_v19 = vpack.c.bf16 %v883_v56, %v882_v55  ;;  %vm2735_vm7 = vsmask.f32 6400  ;;  %p13249_p2 = scmp.ne.s32.totalorder %s19988_s23, %s13248_s29 }
 0x191   : > { %12155 = vmatpush3.bf16.msra.mxu0 %v12154_v20  ;;  %12186 = vmatprep.subr.bf16.mxu1 %v20059_v0  ;;  %v13953_v44 = vrot.slane %v13946_v41, %v709_v34  ;;  %v12164_v45 = vpack.c.bf16 %v13944_v40, %v13941_v39  ;;  %v13962_v47 = vld [vmem:[%s13810_s25 + $0x48] sm:$0xff]  ;;  %v13975_v53 = vld [vmem:[%s13810_s25 + $0xd0] sm:$0xff]  ;;  %v13978_v54 = vld [vmem:[%s13810_s25 + $0xd8] sm:$0xff]  ;;  %v13991_v59 = vrot.slane %v13946_v41, %v713_v48  ;;  %vm2744_vm8 = vsmask.f32 256  ;;  %s13361_s21 = smov [#allocation23]  }
 0x192   : > { %12157 = vmatprep.subr.bf16.mxu0 %v12156_v24  ;;  %v12166_v57 = vpack.c.bf16 %v13962_v47, %v13959_v46  ;;  %v13988_v58 = vld [vmem:[%s13810_s25 + $0x140] sm:$0xf]  ;;  %v13994_v61 = vld [vmem:[%s13810_s25 + $0x50] sm:$0xff]  ;;  %v13997_v62 = vld [vmem:[%s13810_s25 + $0x58] sm:$0xff]  ;;  %v12168_v5 = vpack.c.bf16 %v13978_v54, %v13975_v53  ;;  %v884_v20 = vmul.f32 %v13892_v21, %v13892_v21  ;;  %v885_v24 = vmul.f32 %v13895_v22, %v13895_v22  ;;  %s19985_s3 = scalar_lea.hbm %s21218_s2, %s12329_s17  ;;  %p13250_p4 = pnand %p13249_p2, %p21219_p8 }
 0x193   : > { %20454 = vst [vmem:[#allocation40_spill] sm:$0xff] %v13953_v44  ;;  %788 = vmatprep.mubr.f32.mxu0 %v13953_v44  ;;  %20455 = vst [vmem:[#allocation41_spill] sm:$0xff] %v13991_v59  ;;  %v14006_v14 = vld [vmem:[%s13810_s25 + $0xe0] sm:$0xff]  ;;  %v14009_v15 = vld [vmem:[%s13810_s25 + $0xe8] sm:$0xff]  ;;  %vm1938_vm9 = vsmask.f32 7424 }
 0x194   : > { %12188 = vmatpush3.bf16.msra.mxu1 %v12187_v31  ;;  %v12170_v31 = vpack.c.bf16 %v13997_v62, %v13994_v61  ;;  %v14024_v34 = vld [vmem:[%s13810_s25 + $0x60] sm:$0xff]  ;;  %v14034_v48 = vld [vmem:[%s13810_s25 + $0xf0] sm:$0xff]  ;;  %v14037_v49 = vld [vmem:[%s13810_s25 + $0xf8] sm:$0xff]  ;;  %v12200_v50 = vpack.c.bf16 %v885_v24, %v884_v20  ;;  %v888_v20 = vmul.f32 %v13941_v39, %v13941_v39  ;;  %v889_v24 = vmul.f32 %v13944_v40, %v13944_v40  ;;  %p13251_p10 = pneg %p13250_p4  ;;  %s13252_s15 = sshll.u32 %s13361_s21, 4  ;;  %s13253_s15 = int_to_ptr.vmem [resolvable:$false] %s13252_s15 }
 0x195   : > { %12159 = vmatpush3.bf16.msra.mxu0 %v12158_v32  ;;  %12189 = vmatprep.subr.bf16.mxu1 %v20059_v0  ;;  %v12172_v32 = vpack.c.bf16 %v14009_v15, %v14006_v14  ;;  %20456 = vst [vmem:[#allocation42_spill] sm:$0xff] %v14034_v48  ;;  %v12176_v56 = vpack.c.bf16 %v14037_v49, %v14034_v48  ;;  %vm2129_vm10 = vcmask 1041408   ;;  %vm15285_vm12 = vmand %vm2158_vm6, %vm2744_vm8  ;;  %vm9199_vm13 = vcmask 60416   ;;  %s13254_s16 = scalar_lea.vmem %s13253_s15, 10496  ;;  %p13255_p11 = scmp.lt.s32.totalorder %s19988_s23, %s13253_s15 }
 0x196   : > { %12161 = vmatprep.subr.bf16.mxu0 %v12160_v35  ;;  %v14027_v35 = vld [vmem:[%s13810_s25 + $0x68] sm:$0xff]  ;;  %vm15159_vm11 = vmand %vm2129_vm10, %vm1955_vm5  ;;  %p13256_p0 = scmp.lt.s32.totalorder %s13254_s16, %s13248_s29 }
 0x197   : > { %v12174_v55 = vpack.c.bf16 %v14027_v35, %v14024_v34 }
 0x198   : > { %12191 = vmatpush3.bf16.msra.mxu1 %v12190_v42  ;;  %v12198_v42 = vpack.c.bf16 %v867_v10, %v866_v9  ;;  %v871_v9 = vmul.f32 %v13938_v38, %v13938_v38  ;;  %v14059_v10 = vsub.s32 0, %v13918_v30  ;;  %p13257_p6 = por %p13256_p0, %p13255_p11 }
 0x199   : > { %12163 = vmatpush3.bf16.msra.mxu0 %v12162_v43  ;;  %10512 = vmatprep.subr.mxu1 %v20061_v1  ;;  %v868_v43 = vmul.f32 %v13907_v26, %v13907_v26 }
 0x19a   : > { %12165 = vmatprep.subr.bf16.mxu0 %v12164_v45  ;;  %v869_v45 = vmul.f32 %v13910_v27, %v13910_v27  ;;  %20457 = vst [vmem:[#allocation43_spill] sm:$0xff] %v14059_v10  ;;  %p13258_p7 = pnand %p13257_p6, %p13251_p10 }
 0x19c   : > { %10513 = vmatpush3.msk.msra.mxu1 %vm720_vm1, %v13988_v58 }
 0x19d   : > { %12167 = vmatpush3.bf16.msra.mxu0 %v12166_v57  ;;  %10515 = vmatmul.mubr.msk.f32.vlgmr.msra.gmra.mrb[0].mxu1 %vm717_vm2, %v13991_v59  ;;  %v14049_v57 = vld [vmem:[%s13810_s25 + $0x70] sm:$0xff] }
 0x19e   : > { %12193 = vmatprep.subr.bf16.mxu1 %v12192_v60  ;;  %12169 = vmatprep.subr.bf16.mxu0 %v12168_v5  ;;  %v14052_v60 = vld [vmem:[%s13810_s25 + $0x78] sm:$0xff]  ;;  %v870_v5 = vmul.f32 %v13935_v37, %v13935_v37 }
 0x19f   : > { %12195 = vmatpush3.bf16.msra.mxu1 %v12194_v63  ;;  %972 = vmatprep.mubr.f32.mxu1 %v13953_v44  ;;  %v12202_v63 = vpack.c.bf16 %v869_v45, %v868_v43  ;;  %v872_v43 = vmul.f32 %v13959_v46, %v13959_v46  ;;  %v873_v45 = vmul.f32 %v13962_v47, %v13962_v47 }
 0x1a0   : > { %12197 = vmatprep.subr.bf16.mxu1 %v12196_v19  ;;  %v12204_v19 = vpack.c.bf16 %v887_v52, %v886_v51  ;;  %v12206_v30 = vpack.c.bf16 %v871_v9, %v870_v5  ;;  %v12208_v51 = vpack.c.bf16 %v889_v24, %v888_v20  ;;  %v890_v52 = vmul.f32 %v13975_v53, %v13975_v53 }
 0x1a1   : > { %12171 = vmatpush3.bf16.msra.mxu0 %v12170_v31  ;;  %v12178_v31 = vpack.c.bf16 %v14052_v60, %v14049_v57  ;;  %v899_v5 = vmul.f32 %v13879_v16, %v13879_v16  ;;  %v874_v9 = vmul.f32 %v13994_v61, %v13994_v61  ;;  %v892_v24 = vmul.f32 %v14006_v14, %v14006_v14 }
 0x1a2   : > { %12173 = vmatprep.subr.bf16.mxu0 %v12172_v32  ;;  %v896_v32 = vmul.f32 %v13850_v4, %v13850_v4 }
 0x1a3   : > { %12199 = vmatpush3.bf16.msra.mxu1 %v12198_v42  ;;  %v897_v42 = vmul.f32 %v13855_v6, %v13855_v6 }
 0x1a4   : > { %12201 = vmatprep.subr.bf16.mxu1 %v12200_v50  ;;  %v14077_v50 = vrot.slane %v13946_v41, %v14059_v10  ;;  %v12210_v41 = vpack.c.bf16 %v873_v45, %v872_v43  ;;  %v876_v45 = vmul.f32 %v14024_v34, %v14024_v34 }
 0x1a5   : > { %12175 = vmatpush3.bf16.msra.mxu0 %v12174_v55  ;;  %v891_v55 = vmul.f32 %v13978_v54, %v13978_v54 }
 0x1a6   : > { %12177 = vmatprep.subr.bf16.mxu0 %v12176_v56  ;;  %20458 = vst [vmem:[#allocation44_spill] sm:$0xff] %v14077_v50  ;;  %v12225_v56 = vpack.c.bf16 %v897_v42, %v896_v32  ;;  %v900_v42 = vmul.f32 %v13898_v23, %v13898_v23 }
 0x1a7   : > { %12203 = vmatpush3.bf16.msra.mxu1 %v12202_v63  ;;  %v898_v63 = vmul.f32 %v13874_v13, %v13874_v13  ;;  %v12212_v20 = vpack.c.bf16 %v891_v55, %v890_v52  ;;  %v894_v55 = vmul.f32 %v14034_v48, %v14034_v48 }
 0x1a8   : > { %12205 = vmatprep.subr.bf16.mxu1 %v12204_v19  ;;  %v875_v19 = vmul.f32 %v13997_v62, %v13997_v62 }
 0x1a9   : > { %12179 = vmatpush3.bf16.msra.mxu0 %v12178_v31  ;;  %v893_v31 = vmul.f32 %v14009_v15, %v14009_v15  ;;  %v12228_v32 = vpack.c.bf16 %v899_v5, %v898_v63  ;;  %v902_v5 = vmul.f32 %v13925_v33, %v13925_v33 }
 0x1aa   : > { %12224 = vmatprep.subr.bf16.mxu0 %v20059_v0  ;;  %v12214_v43 = vpack.c.bf16 %v875_v19, %v874_v9  ;;  %v878_v19 = vmul.f32 %v14049_v57, %v14049_v57 }
 0x1ab   : > { %12207 = vmatpush3.bf16.msra.mxu1 %v12206_v30  ;;  %v901_v30 = vmul.f32 %v13904_v25, %v13904_v25  ;;  %v12216_v52 = vpack.c.bf16 %v893_v31, %v892_v24 }
 0x1ac   : > { %789 = vmatmul.mubr.f32.vlgmr.msra.gmra.mrb[0].mxu0 %v14077_v50  ;;  %12209 = vmatprep.subr.bf16.mxu1 %v12208_v51  ;;  %v877_v51 = vmul.f32 %v14027_v35, %v14027_v35 }
 0x1ad   : > { %12226 = vmatpush3.bf16.msra.mxu0 %v12225_v56  ;;  %10535 = vmatprep.mubr.msk.f32.mxu0 %vm13358_vm0, %v20061_v1  ;;  %v895_v56 = vmul.f32 %v14037_v49, %v14037_v49  ;;  %v12231_v63 = vpack.c.bf16 %v901_v30, %v900_v42  ;;  %v904_v42 = vmul.f32 %v13988_v58, %v13988_v58  ;;  %v699_v30 = vld [vmem:[#allocation8] sm:$0xff] }
 0x1ae   : > { %12227 = vmatprep.subr.bf16.mxu0 %v20059_v0  ;;  %v12218_v9 = vpack.c.bf16 %v877_v51, %v876_v45  ;;  %v656_v45 = vld [vmem:[#allocation5 + $0x140] sm:$0xf]  ;;  %v13360_v51 = vmov 0  }
 0x1af   : > { %12211 = vmatpush3.bf16.msra.mxu1 %v12210_v41  ;;  %v903_v41 = vmul.f32 %v13932_v36, %v13932_v36  ;;  %v12220_v24 = vpack.c.bf16 %v895_v56, %v894_v55  ;;  %12507 = vset.pattern.permute.xlu0 %v13360_v51  ;;  %v616_v55 = vld [vmem:[#allocation5] sm:$0xff]  ;;  %v617_v56 = vld [vmem:[#allocation5 + $0x8] sm:$0xff] }
 0x1b0   : > { %12213 = vmatprep.subr.bf16.mxu1 %v12212_v20  ;;  %v879_v20 = vmul.f32 %v14052_v60, %v14052_v60  ;;  %12508 = vset.pattern.permute.xlu1 %v13360_v51  ;;  %v631_v51 = vld [vmem:[#allocation5 + $0x78] sm:$0xff] }
 0x1b1   : > { %12229 = vmatpush3.bf16.msra.mxu0 %v12228_v32  ;;  %v12234_v31 = vpack.c.bf16 %v903_v41, %v902_v5  ;;  %1872 = vperm.xlu1 %12508, %v656_v45   ;;  %v619_v5 = vld [vmem:[#allocation5 + $0x18] sm:$0xff]  ;;  %v620_v41 = vld [vmem:[#allocation5 + $0x20] sm:$0xff]  ;;  %v630_v45 = vld [vmem:[#allocation5 + $0x70] sm:$0xff] }
 0x1b2   : > { %12230 = vmatprep.subr.bf16.mxu0 %v20059_v0  ;;  %v12222_v32 = vpack.c.bf16 %v879_v20, %v878_v19  ;;  %v622_v19 = vld [vmem:[#allocation5 + $0x30] sm:$0xff]  ;;  %v623_v20 = vld [vmem:[#allocation5 + $0x38] sm:$0xff] }
 0x1b3   : > { %12215 = vmatpush3.bf16.msra.mxu1 %v12214_v43  ;;  %v654_v43 = vld [vmem:[#allocation5 + $0x130] sm:$0xff] }
 0x1b4   : > { %12217 = vmatprep.subr.bf16.mxu1 %v12216_v52  ;;  %1862 = vperm.xlu0 %12507, %v654_v43   ;;  %v655_v52 = vld [vmem:[#allocation5 + $0x138] sm:$0xff]  ;;  %v629_v43 = vld [vmem:[#allocation5 + $0x68] sm:$0xff] }
 0x1b5   : > { %12232 = vmatpush3.bf16.msra.mxu0 %v12231_v63  ;;  %1672 = vperm.xlu1 %12508, %v616_v55   ;;  %v618_v63 = vld [vmem:[#allocation5 + $0x10] sm:$0xff]  ;;  %v633_v55 = vld [vmem:[#allocation5 + $0x88] sm:$0xff] }
 0x1b6   : > { %12233 = vmatprep.subr.bf16.mxu0 %v20059_v0 }
 0x1b7   : > { %12219 = vmatpush3.bf16.msra.mxu1 %v12218_v9  ;;  %v621_v9 = vld [vmem:[#allocation5 + $0x28] sm:$0xff] }
 0x1b8   : > { %12221 = vmatprep.subr.bf16.mxu1 %v12220_v24  ;;  %1867 = vperm.xlu0 %12507, %v655_v52   ;;  %v624_v24 = vld [vmem:[#allocation5 + $0x40] sm:$0xff] }
 0x1b9   : > { %12235 = vmatpush3.bf16.msra.mxu0 %v12234_v31  ;;  %1682 = vperm.xlu1 %12508, %v618_v63   ;;  %v625_v31 = vld [vmem:[#allocation5 + $0x48] sm:$0xff]  ;;  %v632_v52 = vld [vmem:[#allocation5 + $0x80] sm:$0xff]  ;;  %v635_v63 = vld [vmem:[#allocation5 + $0x98] sm:$0xff] }
 0x1ba   : > { %10533 = vmatprep.subr.mxu0 %v20061_v1 }
 0x1bb   : > { %12223 = vmatpush3.bf16.msra.mxu1 %v12222_v32  ;;  %v626_v32 = vld [vmem:[#allocation5 + $0x50] sm:$0xff] }
 0x1bc   : > { %10543 = vmatprep.subr.mxu1 %v20061_v1  ;;  %1677 = vperm.xlu0 %12507, %v617_v56   ;;  %v634_v56 = vld [vmem:[#allocation5 + $0x90] sm:$0xff] }
 0x1bd   : > { %10534 = vmatpush3.msk.msra.mxu0 %vm720_vm1, %v904_v42  ;;  %1692 = vperm.xlu1 %12508, %v620_v41   ;;  %v627_v42 = vld [vmem:[#allocation5 + $0x58] sm:$0xff]  ;;  %v637_v41 = vld [vmem:[#allocation5 + $0xa8] sm:$0xff] }
 0x1be   : > { %973 = vmatmul.mubr.f32.vlgmr.msra.gmra.mrb[2].mxu1 %v14077_v50  ;;  %10536 = vmatmul.mubr.msk.f32.vlgmr.msra.gmra.mrb[2].mxu0 %vm717_vm2, %v13991_v59 }
 0x1bf   : > { %10538 = vmatprep.subr.mxu0 %v20061_v1  ;;  %10540 = vmatprep.mubr.msk.f32.mxu0 %vm13358_vm0, %v20061_v1 }
 0x1c0   : > { %10545 = vmatprep.mubr.msk.f32.mxu1 %vm13358_vm0, %v20061_v1  ;;  %10539 = vmatpush3.msra.mxu0 %v699_v30 }
 0x1c1   : > { %10544 = vmatpush3.msra.mxu1 %v699_v30  ;;  %10548 = vmatprep.subr.bf16.mxu0 %v20061_v1  ;;  %v628_v30 = vld [vmem:[#allocation5 + $0x60] sm:$0xff] }
 0x1c2   : > { %12324 = vmatprep.subr.bf16.mxu1 %v20061_v1  ;;  %1687 = vperm.xlu0 %12507, %v619_v5   ;;  %v636_v5 = vld [vmem:[#allocation5 + $0xa0] sm:$0xff] }
 0x1c3   : > { %1702 = vperm.xlu1 %12508, %v622_v19   ;;  %v639_v19 = vld [vmem:[#allocation5 + $0xb8] sm:$0xff] }
 0x1c6   : > { %1697 = vperm.xlu0 %12507, %v621_v9   ;;  %v638_v9 = vld [vmem:[#allocation5 + $0xb0] sm:$0xff] }
 0x1c7   : > { %1712 = vperm.xlu1 %12508, %v624_v24   ;;  %v641_v24 = vld [vmem:[#allocation5 + $0xc8] sm:$0xff] }
 0x1ca   : > { %1707 = vperm.xlu0 %12507, %v623_v20   ;;  %v640_v20 = vld [vmem:[#allocation5 + $0xc0] sm:$0xff] }
 0x1cb   : > { %1722 = vperm.xlu1 %12508, %v626_v32   ;;  %v643_v32 = vld [vmem:[#allocation5 + $0xd8] sm:$0xff] }
 0x1ce   : > { %1717 = vperm.xlu0 %12507, %v625_v31   ;;  %v642_v31 = vld [vmem:[#allocation5 + $0xd0] sm:$0xff] }
 0x1cf   : > { %1732 = vperm.xlu1 %12508, %v628_v30   ;;  %v645_v30 = vld [vmem:[#allocation5 + $0xe8] sm:$0xff] }
 0x1d2   : > { %1727 = vperm.xlu0 %12507, %v627_v42   ;;  %v644_v42 = vld [vmem:[#allocation5 + $0xe0] sm:$0xff] }
 0x1d3   : > { %1742 = vperm.xlu1 %12508, %v630_v45   ;;  %v647_v45 = vld [vmem:[#allocation5 + $0xf8] sm:$0xff] }
 0x1d6   : > { %1737 = vperm.xlu0 %12507, %v629_v43   ;;  %v646_v43 = vld [vmem:[#allocation5 + $0xf0] sm:$0xff] }
 0x1d7   : > { %1752 = vperm.xlu1 %12508, %v632_v52   ;;  %v649_v52 = vld [vmem:[#allocation5 + $0x108] sm:$0xff] }
 0x1da   : > { %1747 = vperm.xlu0 %12507, %v631_v51   ;;  %v648_v51 = vld [vmem:[#allocation5 + $0x100] sm:$0xff] }
 0x1db   : > { %1762 = vperm.xlu1 %12508, %v634_v56   ;;  %v651_v56 = vld [vmem:[#allocation5 + $0x118] sm:$0xff] }
 0x1de   : > { %1757 = vperm.xlu0 %12507, %v633_v55   ;;  %v650_v55 = vld [vmem:[#allocation5 + $0x110] sm:$0xff] }
 0x1df   : > { %1772 = vperm.xlu1 %12508, %v636_v5   ;;  %v653_v5 = vld [vmem:[#allocation5 + $0x128] sm:$0xff] }
 0x1e2   : > { %1767 = vperm.xlu0 %12507, %v635_v63   ;;  %v652_v63 = vld [vmem:[#allocation5 + $0x120] sm:$0xff] }
 0x1e3   : > { %1782 = vperm.xlu1 %12508, %v638_v9  }
 0x1e6   : > { %1777 = vperm.xlu0 %12507, %v637_v41  }
 0x1e7   : > { %1792 = vperm.xlu1 %12508, %v640_v20  }
 0x1ea   : > { %1787 = vperm.xlu0 %12507, %v639_v19  }
 0x1eb   : > { %1802 = vperm.xlu1 %12508, %v642_v31  }
 0x1ee   : > { %1797 = vperm.xlu0 %12507, %v641_v24  }
 0x1ef   : > { %1812 = vperm.xlu1 %12508, %v644_v42  }
 0x1f2   : > { %1807 = vperm.xlu0 %12507, %v643_v32  }
 0x1f3   : > { %1822 = vperm.xlu1 %12508, %v646_v43  }
 0x1f6   : > { %1817 = vperm.xlu0 %12507, %v645_v30  }
 0x1f7   : > { %1832 = vperm.xlu1 %12508, %v648_v51  }
 0x1fa   : > { %1827 = vperm.xlu0 %12507, %v647_v45  }
 0x1fb   : > { %1842 = vperm.xlu1 %12508, %v650_v55  }
 0x1fe   : > { %1837 = vperm.xlu0 %12507, %v649_v52  }
 0x1ff   : > { %1852 = vperm.xlu1 %12508, %v652_v63  }
 0x202   : > { %1847 = vperm.xlu0 %12507, %v651_v56  }
 0x206   : > { %1857 = vperm.xlu0 %12507, %v653_v5  }
 0x270   : > { %v860_v41 = vpop.f32.mrb[0].mxu1 }
 0x271   : > { %v10516_v9 = vpop.f32.mrb[1].mxu1 }
 0x27f   : > { %v9944_v19 = vpop.f32.mrb[0].mxu0 }
 0x280   : > { %v9945_v20 = vpop.f32.mrb[1].mxu0 }
 0x281   : > { %v9946_v24 = vadd.f32 %v9945_v20, %v9944_v19 }
 0x283   : > { %v861_v31 = vadd.f32 %v9946_v24, %v860_v41 }
 0x285   : > { %10541 = vmatmul.mubr.msk.f32.vlgmr.msra.gmra.mrb[4].mxu0 %vm1048_vm3, %v861_v31 }
 0x286   : > { %10550 = vmatprep.mubr.msk.bf16.mxu0 %vm13358_vm0, %v20061_v1 }
 0x291   : > { %v9989_v32 = vpop.f32.mrb[2].mxu1  ;;  %v1044_v42 = vpop.f32.mrb[2].mxu0 }
 0x292   : > { %v9990_v30 = vpop.f32.mrb[3].mxu1  ;;  %v10537_v43 = vpop.f32.mrb[3].mxu0 }
 0x293   : > { %v9991_v45 = vadd.f32 %v9990_v30, %v9989_v32 }
 0x295   : > { %v1045_v51 = vadd.f32 %v9991_v45, %v1044_v42 }
 0x297   : > { %10546 = vmatmul.mubr.msk.f32.vlgmr.msra.gmra.mrb[4].mxu1 %vm1048_vm3, %v1045_v51 }
 0x298   : > { %10656 = vmatprep.mubr.msk.bf16.mxu1 %vm13358_vm0, %v20061_v1 }
 0x358   : > { %v1118_v52 = vpop.f32.mrb[4].mxu0 }
 0x359   : > { %v10542_v55 = vpop.f32.mrb[5].mxu0  ;;  %v1195_v56 = vmul.f32 %v1118_v52, %v1118_v52  ;;  %v14144_v20 = vrot.slane %v1118_v52, %v14059_v10 }
 0x35b   : > { %v1203_v31 = vsub.f32 %v13858_v7, %v14144_v20  ;;  %v1204_v32 = vsub.f32 %v13861_v8, %v14144_v20  ;;  %v1206_v42 = vsub.f32 %v13885_v18, %v14144_v20  ;;  %v1216_v43 = vsub.f32 %v14027_v35, %v14144_v20  ;;  %v14238_v7 = vpop.permute.xlu1 %1872 }
 0x35c   : > { %v1220_v45 = vsub.f32 %v13847_v3, %v14144_v20  ;;  %v1241_v8 = vsub.f32 %v13925_v33, %v14144_v20  ;;  %v1242_v18 = vsub.f32 %v13932_v36, %v14144_v20  ;;  %v1243_v52 = vsub.f32 %v13988_v58, %v14144_v20  ;;  %20460 = vst [vmem:[#allocation46_spill] sm:$0xff] %v14238_v7 }
 0x35d   : > { %v1208_v35 = vsub.f32 %v13910_v27, %v14144_v20  ;;  %v1207_v33 = vsub.f32 %v13907_v26, %v14144_v20  ;;  %v1212_v58 = vsub.f32 %v13962_v47, %v14144_v20  ;;  %v1209_v27 = vsub.f32 %v13935_v37, %v14144_v20 }
 0x35e   : > { %v1213_v26 = vsub.f32 %v13994_v61, %v14144_v20 }
 0x36a   : > { %v1191_v63 = vpop.f32.mrb[4].mxu1 }
 0x36b   : > { %v1196_v5 = vsub.f32 %v1191_v63, %v1195_v56  ;;  %v10547_v41 = vpop.f32.mrb[5].mxu1  ;;  %v14174_v56 = vld [vmem:[#allocation10] ss:$0 sm:$0xff]  ;;  %v1205_v63 = vsub.f32 %v13882_v17, %v14144_v20  ;;  %v1214_v17 = vsub.f32 %v13997_v62, %v14144_v20  ;;  %v14205_v62 = vpop.permute.xlu0 %1862 }
 0x36c   : > { %20459 = vst [vmem:[#allocation45_spill] sm:$0xff] %v14205_v62 }
 0x36d   : > { %v1197_v9 = vadd.f32 1e-05, %v1196_v5  ;;  %v1210_v5 = vsub.f32 %v13938_v38, %v14144_v20  ;;  %v1211_v38 = vsub.f32 %v13959_v46, %v14144_v20 }
 0x36f   : > { %12509 = vrsqrt.f32 %v1197_v9  ;;  %v1218_v9 = vsub.f32 %v14052_v60, %v14144_v20  ;;  %v14246_v0 = vpop.permute.xlu0 %1867 }
 0x370   : > { %20461 = vst [vmem:[#allocation47_spill] sm:$0xff] %v14246_v0 }
 0x373   : > { %v14288_v3 = vpop.permute.xlu0 %1677 }
 0x374   : > { %20463 = vst [vmem:[#allocation49_spill] sm:$0xff] %v14288_v3 }
 0x379   : > { %v12510_v19 = vpop.eup %12509 }
 0x37a   : > { %v14147_v24 = vrot.slane %v12510_v19, %v14059_v10 }
 0x37c   : > { %v1261_v55 = vmul.f32 %v14147_v24, %v1216_v43  ;;  %v1286_v36 = vmul.f32 %v14147_v24, %v1241_v8  ;;  %v1287_v41 = vmul.f32 %v14147_v24, %v1242_v18  ;;  %v1288_v19 = vmul.f32 %v14147_v24, %v1243_v52  ;;  %v14203_v8 = vld [vmem:[#allocation11] ss:$0 sm:$0xff] }
 0x37d   : > { %v1263_v37 = vmul.f32 %v14147_v24, %v1218_v9  ;;  %v1215_v43 = vsub.f32 %v14024_v34, %v14144_v20  ;;  %v1254_v46 = vmul.f32 %v14147_v24, %v1209_v27  ;;  %v1256_v27 = vmul.f32 %v14147_v24, %v1211_v38 }
 0x37e   : > { %v1308_v47 = vmul.f32 %v14174_v56, %v1261_v55  ;;  %v1333_v61 = vmul.f32 %v14174_v56, %v1286_v36  ;;  %v1255_v55 = vmul.f32 %v14147_v24, %v1210_v5  ;;  %v1334_v34 = vmul.f32 %v14174_v56, %v1287_v41 }
 0x37f   : > { %v1335_v36 = vmul.f32 %v14174_v56, %v1288_v19  ;;  %v1257_v5 = vmul.f32 %v14147_v24, %v1212_v58  ;;  %v1310_v41 = vmul.f32 %v14174_v56, %v1263_v37  ;;  %v1248_v38 = vmul.f32 %v14147_v24, %v1203_v31 }
 0x380   : > { %v14228_v1 = vadd.f32 %v14203_v8, %v1308_v47  ;;  %v1249_v19 = vmul.f32 %v14147_v24, %v1204_v32  ;;  %v1301_v9 = vmul.f32 %v14174_v56, %v1254_v46  ;;  %v14236_v51 = vadd.f32 %v14203_v8, %v1333_v61 }
 0x381   : > { %v1250_v58 = vmul.f32 %v14147_v24, %v1205_v63  ;;  %v1251_v37 = vmul.f32 %v14147_v24, %v1206_v42  ;;  %v1302_v47 = vmul.f32 %v14174_v56, %v1255_v55  ;;  %v14244_v52 = vadd.f32 %v14203_v8, %v1334_v34 }
 0x382   : > { %v1252_v31 = vmul.f32 %v14147_v24, %v1207_v33  ;;  %v1303_v32 = vmul.f32 %v14174_v56, %v1256_v27  ;;  %v14251_v46 = vadd.f32 %v14203_v8, %v1335_v36  ;;  %v1260_v61 = vmul.f32 %v14147_v24, %v1215_v43 }
 0x383   : > { %v1253_v63 = vmul.f32 %v14147_v24, %v1208_v35  ;;  %v1304_v42 = vmul.f32 %v14174_v56, %v1257_v5  ;;  %v14257_v55 = vadd.f32 %v14203_v8, %v1310_v41  ;;  %v9452_v34 = vmul.f32 -1.442695, %v14228_v1 }
 0x384   : > { %v1258_v30 = vmul.f32 %v14147_v24, %v1213_v26  ;;  %v1295_v33 = vmul.f32 %v14174_v56, %v1248_v38  ;;  %v14263_v27 = vadd.f32 %v14203_v8, %v1301_v9  ;;  %v9477_v36 = vmul.f32 -1.442695, %v14236_v51 }
 0x385   : > { %v1296_v43 = vmul.f32 %v14174_v56, %v1249_v19  ;;  %v14268_v35 = vadd.f32 %v14203_v8, %v1302_v47  ;;  %v9478_v5 = vmul.f32 -1.442695, %v14244_v52  ;;  %v1265_v41 = vmul.f32 %v14147_v24, %v1220_v45  ;;  %v14281_v19 = vpop.permute.xlu1 %1672 }
 0x386   : > { %v1259_v26 = vmul.f32 %v14147_v24, %v1214_v17  ;;  %v14277_v38 = vadd.f32 %v14203_v8, %v1303_v32  ;;  %v1307_v9 = vmul.f32 %v14174_v56, %v1260_v61  ;;  %v9479_v18 = vmul.f32 -1.442695, %v14251_v46  ;;  %20462 = vst [vmem:[#allocation48_spill] sm:$0xff] %v14281_v19 }
 0x387   : > { %v1297_v47 = vmul.f32 %v14174_v56, %v1250_v58  ;;  %v9454_v60 = vmul.f32 -1.442695, %v14257_v55  ;;  %v14286_v10 = vadd.f32 %v14203_v8, %v1304_v42  ;;  %12511 = vpow2.f32 %v9452_v34 }
 0x388   : > { %v1298_v45 = vmul.f32 %v14174_v56, %v1251_v37  ;;  %v14292_v17 = vadd.f32 %v14203_v8, %v1295_v33  ;;  %v9445_v32 = vmul.f32 -1.442695, %v14263_v27  ;;  %12513 = vpow2.f32 %v9477_v36 }
 0x389   : > { %v14296_v61 = vadd.f32 %v14203_v8, %v1296_v43  ;;  %v9446_v58 = vmul.f32 -1.442695, %v14268_v35  ;;  %v1312_v59 = vmul.f32 %v14174_v56, %v1265_v41  ;;  %12515 = vpow2.f32 %v9478_v5  ;;  %v14315_v41 = vpop.permute.xlu1 %1682 }
 0x38a   : > { %v1305_v42 = vmul.f32 %v14174_v56, %v1258_v30  ;;  %v14302_v34 = vadd.f32 %v14203_v8, %v1307_v9  ;;  %v9447_v37 = vmul.f32 -1.442695, %v14277_v38  ;;  %12517 = vpow2.f32 %v9479_v18  ;;  %20466 = vst [vmem:[#allocation52_spill] sm:$0xff] %v14315_v41  ;;  %v14323_v9 = vpop.permute.xlu0 %1687 }
 0x38b   : > { %v1306_v33 = vmul.f32 %v14174_v56, %v1259_v26  ;;  %12519 = vpow2.f32 %v9454_v60  ;;  %v14307_v36 = vadd.f32 %v14203_v8, %v1297_v47  ;;  %v9448_v43 = vmul.f32 -1.442695, %v14286_v10  ;;  %20467 = vst [vmem:[#allocation53_spill] sm:$0xff] %v14323_v9 }
 0x38c   : > { %v1299_v50 = vmul.f32 %v14174_v56, %v1252_v31  ;;  %v14312_v5 = vadd.f32 %v14203_v8, %v1298_v45  ;;  %v9439_v30 = vmul.f32 -1.442695, %v14292_v17  ;;  %12521 = vpow2.f32 %v9445_v32 }
 0x38d   : > { %20464 = vst [vmem:[#allocation50_spill] sm:$0xff] %v14307_v36  ;;  %v9440_v18 = vmul.f32 -1.442695, %v14296_v61  ;;  %v14319_v26 = vadd.f32 %v14203_v8, %v1312_v59  ;;  %12523 = vpow2.f32 %v9446_v58  ;;  %v14326_v31 = vadd.f32 %v14203_v8, %v1305_v42 }
 0x38e   : > { %20465 = vst [vmem:[#allocation51_spill] sm:$0xff] %v14312_v5  ;;  %v9451_v47 = vmul.f32 -1.442695, %v14302_v34  ;;  %12525 = vpow2.f32 %v9447_v37  ;;  %v1300_v32 = vmul.f32 %v14174_v56, %v1253_v63  ;;  %v14333_v59 = vadd.f32 %v14203_v8, %v1306_v33 }
 0x38f   : > { %v9441_v58 = vmul.f32 -1.442695, %v14307_v36  ;;  %12527 = vpow2.f32 %v9448_v43  ;;  %v14337_v60 = vadd.f32 %v14203_v8, %v1299_v50  ;;  %v9442_v42 = vmul.f32 -1.442695, %v14312_v5  ;;  %v14364_v5 = vpop.permute.xlu0 %1697 }
 0x390   : > { %12529 = vpow2.f32 %v9439_v30  ;;  %v9456_v45 = vmul.f32 -1.442695, %v14319_v26  ;;  %v9449_v50 = vmul.f32 -1.442695, %v14326_v31  ;;  %v20469_v30 = vsub.f32 %v14049_v57, %v14144_v20  ;;  %20472 = vst [vmem:[#allocation57_spill] sm:$0xff] %v14364_v5 }
 0x391   : > { %20468 = vst [vmem:[#allocation54_spill] sm:$0xff] %v14337_v60  ;;  %v14342_v44 = vpop.eup %12511  ;;  %12531 = vpow2.f32 %v9440_v18  ;;  %v14356_v18 = vpop.permute.xlu1 %1692  ;;  %v14359_v63 = vadd.f32 %v14203_v8, %v1300_v32  ;;  %v9450_v33 = vmul.f32 -1.442695, %v14333_v59  ;;  %v9443_v57 = vmul.f32 -1.442695, %v14337_v60 }
 0x392   : > { %v12514_v43 = vpop.eup %12513  ;;  %12533 = vpow2.f32 %v9451_v47  ;;  %v1262_v37 = vmul.f32 %v14147_v24, %v20469_v30  ;;  %20470 = vst [vmem:[#allocation55_spill] sm:$0xff] %v14356_v18  ;;  %v20473_v30 = vsub.f32 %v13871_v12, %v14144_v20  ;;  %v20474_v32 = vsub.f32 %v13844_v2, %v14144_v20 }
 0x393   : > { %v12516_v9 = vpop.eup %12515  ;;  %20471 = vst [vmem:[#allocation56_spill] sm:$0xff] %v14359_v63  ;;  %12535 = vpow2.f32 %v9441_v58  ;;  %v1544_v36 = vadd.f32 1.0, %v12514_v43  ;;  %v20475_v47 = vsub.f32 %v13895_v22, %v14144_v20  ;;  %v20476_v43 = vsub.f32 %v13868_v11, %v14144_v20  ;;  %v14400_v13 = vpop.permute.xlu0 %1707 }
 0x394   : > { %v12518_v41 = vpop.eup %12517  ;;  %12537 = vpow2.f32 %v9442_v42  ;;  %v1267_v4 = vmul.f32 %v14147_v24, %v20473_v30  ;;  %v1264_v18 = vmul.f32 %v14147_v24, %v20474_v32  ;;  %v1309_v12 = vmul.f32 %v14174_v56, %v1262_v37  ;;  %20479 = vst [vmem:[#allocation59_spill] sm:$0xff] %v14400_v13 }
 0x395   : > { %v12520_v58 = vpop.eup %12519  ;;  %12539 = vpow2.f32 %v9456_v45  ;;  %v1269_v48 = vmul.f32 %v14147_v24, %v20475_v47  ;;  %v1545_v30 = vadd.f32 1.0, %v12516_v9  ;;  %v1546_v45 = vadd.f32 1.0, %v12518_v41  ;;  %v14393_v25 = vpop.permute.xlu1 %1702 }
 0x396   : > { %v12522_v5 = vpop.eup %12521  ;;  %12541 = vpow2.f32 %v9449_v50  ;;  %v1266_v22 = vmul.f32 %v14147_v24, %v20476_v43  ;;  %v9444_v50 = vmul.f32 -1.442695, %v14359_v63  ;;  %v1314_v9 = vmul.f32 %v14174_v56, %v1267_v4  ;;  %20477 = vst [vmem:[#allocation58_spill] sm:$0xff] %v14393_v25 }
 0x397   : > { %v12524_v32 = vpop.eup %12523  ;;  %12543 = vpow2.f32 %v9450_v33  ;;  %v1311_v37 = vmul.f32 %v14174_v56, %v1264_v18  ;;  %v1512_v41 = vadd.f32 1.0, %v12522_v5  ;;  %v1316_v11 = vmul.f32 %v14174_v56, %v1269_v48  ;;  %v14438_v23 = vpop.permute.xlu0 %1717 }
 0x398   : > { %v12526_v42 = vpop.eup %12525  ;;  %12545 = vpow2.f32 %v9443_v57  ;;  %v20478_v33 = vsub.f32 %v13916_v29, %v14144_v20  ;;  %v14403_v57 = vadd.f32 %v14203_v8, %v1309_v12  ;;  %v1513_v4 = vadd.f32 1.0, %v12524_v32  ;;  %20488 = vst [vmem:[#allocation65_spill] sm:$0xff] %v14438_v23 }
 0x399   : > { %v12528_v2 = vpop.eup %12527  ;;  %12547 = vrcp.f32 %v1544_v36  ;;  %v1514_v36 = vadd.f32 1.0, %v12526_v42  ;;  %v1313_v48 = vmul.f32 %v14174_v56, %v1266_v22  ;;  %v20481_v29 = vsub.f32 %v13892_v21, %v14144_v20 }
 0x39a   : > { %v1271_v43 = vmul.f32 %v14147_v24, %v20478_v33  ;;  %v12530_v47 = vpop.eup %12529  ;;  %20480 = vst [vmem:[#allocation60_spill] sm:$0xff] %v14403_v57  ;;  %12549 = vrcp.f32 %v1545_v30  ;;  %v1515_v60 = vadd.f32 1.0, %v12528_v2  ;;  %v14413_v12 = vadd.f32 %v14203_v8, %v1314_v9 }
 0x39b   : > { %v12532_v5 = vpop.eup %12531  ;;  %12551 = vrcp.f32 %v1546_v45  ;;  %v1268_v33 = vmul.f32 %v14147_v24, %v20481_v29  ;;  %v14416_v30 = vadd.f32 %v14203_v8, %v1311_v37  ;;  %v1519_v42 = vadd.f32 1.0, %v14342_v44 }
 0x39c   : > { %v12534_v63 = vpop.eup %12533  ;;  %12553 = vpow2.f32 %v9444_v50  ;;  %20482 = vst [vmem:[#allocation61_spill] sm:$0xff] %v14413_v12  ;;  %v14420_v45 = vadd.f32 %v14203_v8, %v1316_v11  ;;  %v1318_v21 = vmul.f32 %v14174_v56, %v1271_v43  ;;  %v9453_v29 = vmul.f32 -1.442695, %v14403_v57 }
 0x39d   : > { %20483 = vst [vmem:[#allocation62_spill] sm:$0xff] %v14416_v30  ;;  %v12536_v32 = vpop.eup %12535  ;;  %12555 = vrcp.f32 %v1512_v41  ;;  %v20485_v2 = vsub.f32 %v13944_v40, %v14144_v20  ;;  %v20486_v9 = vsub.f32 %v13913_v28, %v14144_v20  ;;  %v14432_v41 = vpop.permute.xlu1 %1712  ;;  %v1521_v11 = vadd.f32 1.0, %v12520_v58 }
 0x39e   : > { %20484 = vst [vmem:[#allocation63_spill] sm:$0xff] %v14420_v45  ;;  %v12538_v22 = vpop.eup %12537  ;;  %12557 = vrcp.f32 %v1513_v4  ;;  %20487 = vst [vmem:[#allocation64_spill] sm:$0xff] %v14432_v41  ;;  %v14435_v43 = vadd.f32 %v14203_v8, %v1313_v48  ;;  %v1315_v4 = vmul.f32 %v14174_v56, %v1268_v33  ;;  %v9458_v40 = vmul.f32 -1.442695, %v14413_v12 }
 0x39f   : > { %v1273_v50 = vmul.f32 %v14147_v24, %v20485_v2  ;;  %v1270_v44 = vmul.f32 %v14147_v24, %v20486_v9  ;;  %v12540_v37 = vpop.eup %12539  ;;  %12559 = vrcp.f32 %v1514_v36  ;;  %v9455_v28 = vmul.f32 -1.442695, %v14416_v30 }
 0x3a0   : > { %v12542_v18 = vpop.eup %12541  ;;  %12561 = vrcp.f32 %v1515_v60  ;;  %v20489_v2 = vsub.f32 %v13978_v54, %v14144_v20  ;;  %v1518_v36 = vadd.f32 1.0, %v12534_v63  ;;  %v14447_v48 = vmul.f32 -1.442695, %v14420_v45 }
 0x3a1   : > { %v12544_v58 = vpop.eup %12543  ;;  %12563 = vrcp.f32 %v1519_v42  ;;  %v14450_v33 = vadd.f32 %v14203_v8, %v1318_v21  ;;  %v1523_v6 = vadd.f32 1.0, %v12540_v37  ;;  %v1320_v60 = vmul.f32 %v14174_v56, %v1273_v50  ;;  %v14461_v19 = vpop.permute.xlu1 %1722 }
 0x3a2   : > { %v1275_v9 = vmul.f32 %v14147_v24, %v20489_v2  ;;  %v12546_v57 = vpop.eup %12545  ;;  %12565 = vpow2.f32 %v9453_v29  ;;  %v1317_v12 = vmul.f32 %v14174_v56, %v1270_v44  ;;  %v1516_v54 = vadd.f32 1.0, %v12542_v18  ;;  %20490 = vst [vmem:[#allocation66_spill] sm:$0xff] %v14461_v19 }
 0x3a3   : > { %v12548_v30 = vpop.eup %12547  ;;  %12567 = vrcp.f32 %v1521_v11  ;;  %v14455_v2 = vmul.f32 -1.442695, %v14435_v43  ;;  %v14458_v63 = vadd.f32 %v14203_v8, %v1315_v4  ;;  %v1506_v45 = vadd.f32 1.0, %v12530_v47  ;;  %v14468_v4 = vpop.permute.xlu0 %1727 }
 0x3a4   : > { %v12550_v42 = vpop.eup %12549  ;;  %v1507_v21 = vadd.f32 1.0, %v12532_v5  ;;  %v1517_v3 = vadd.f32 1.0, %v12544_v58  ;;  %v1322_v37 = vmul.f32 %v14174_v56, %v1275_v9  ;;  %12569 = vrcp.f32 %v1518_v36  ;;  %20491 = vst [vmem:[#allocation67_spill] sm:$0xff] %v14468_v4 }
 0x3a5   : > { %v12552_v29 = vpop.eup %12551  ;;  %v1667_v50 = vmul.f32 %v12548_v30, %v14236_v51  ;;  %v1668_v18 = vmul.f32 %v12550_v42, %v14244_v52  ;;  %v14466_v44 = vmul.f32 -1.442695, %v14450_v33  ;;  %12571 = vrcp.f32 %v1523_v6 }
 0x3a6   : > { %v12554_v11 = vpop.eup %12553  ;;  %v1669_v47 = vmul.f32 %v12552_v29, %v14251_v46  ;;  %v14472_v5 = vadd.f32 %v14203_v8, %v1320_v60  ;;  %v14475_v9 = vadd.f32 %v14203_v8, %v1317_v12  ;;  %v1508_v36 = vadd.f32 1.0, %v12536_v32 }
 0x3a7   : > { %v12556_v58 = vpop.eup %12555  ;;  %v1509_v51 = vadd.f32 1.0, %v12538_v22  ;;  %12573 = vrcp.f32 %v1516_v54  ;;  %v14478_v52 = vmul.f32 -1.442695, %v14458_v63  ;;  %v1510_v42 = vadd.f32 1.0, %v12546_v57 }
 0x3a8   : > { %20492 = vst [vmem:[#allocation68_spill] sm:$0xff] %v14472_v5  ;;  %20493 = vst [vmem:[#allocation69_spill] sm:$0xff] %v14475_v9  ;;  %v12558_v30 = vpop.eup %12557  ;;  %12575 = vrcp.f32 %v1517_v3  ;;  %v14481_v6 = vadd.f32 %v14203_v8, %v1322_v37  ;;  %v20495_v46 = vsub.f32 %v13941_v39, %v14144_v20  ;;  %v1913_v32 = vmul.f32 %v14205_v62, %v1667_v50 }
 0x3a9   : > { %v12560_v12 = vpop.eup %12559  ;;  %12577 = vpow2.f32 %v9458_v40  ;;  %v1914_v22 = vmul.f32 %v14246_v0, %v1668_v18  ;;  %v1915_v54 = vmul.f32 %v14238_v7, %v1669_v47  ;;  %v14491_v3 = vmul.f32 -1.442695, %v14472_v5  ;;  %v2203_v47 = vld [vmem:[#allocation13 + $0x4] sm:$0xf]  ;;  %v14506_v0 = vpop.permute.xlu0 %1737 }
 0x3aa   : > { %20494 = vst [vmem:[#allocation70_spill] sm:$0xff] %v14481_v6  ;;  %v1272_v60 = vmul.f32 %v14147_v24, %v20495_v46  ;;  %v12562_v29 = vpop.eup %12561  ;;  %12579 = vrcp.f32 %v1506_v45  ;;  %v14494_v57 = vmul.f32 -1.442695, %v14475_v9  ;;  %v20496_v39 = vsub.f32 %v14009_v15, %v14144_v20  ;;  %v14500_v46 = vpop.permute.xlu1 %1732  ;;  %20498 = vst [vmem:[#allocation72_spill] sm:$0xff] %v14506_v0 }
 0x3ab   : > { %v12564_v40 = vpop.eup %12563  ;;  %20497 = vst [vmem:[#allocation71_spill] sm:$0xff] %v14500_v46  ;;  %v14502_v50 = vadd.f32 1.0, %v12554_v11  ;;  %12581 = vrcp.f32 %v1507_v21  ;;  %v1635_v18 = vmul.f32 %v12556_v58, %v14263_v27  ;;  %v1636_v45 = vmul.f32 %v12558_v30, %v14268_v35 }
 0x3ac   : > { %v1277_v37 = vmul.f32 %v14147_v24, %v20496_v39  ;;  %v12566_v7 = vpop.eup %12565  ;;  %12583 = vpow2.f32 %v9455_v28  ;;  %v14509_v62 = vmul.f32 -1.442695, %v14481_v6  ;;  %v1319_v15 = vmul.f32 %v14174_v56, %v1272_v60 }
 0x3ad   : > { %v20499_v39 = vsub.f32 %v13975_v53, %v14144_v20  ;;  %v12568_v21 = vpop.eup %12567  ;;  %v1637_v27 = vmul.f32 %v12560_v12, %v14277_v38  ;;  %v1638_v35 = vmul.f32 %v12562_v29, %v14286_v10  ;;  %v14518_v58 = vpack.c.bf16 %v1914_v22, %v1913_v32 }
 0x3ae   : > { %v14520_v30 = vpack.c.bf16 %v1915_v54, %v1915_v54  ;;  %v1642_v28 = vmul.f32 %v12564_v40, %v14228_v1  ;;  %v1324_v6 = vmul.f32 %v14174_v56, %v1277_v37  ;;  %v20502_v60 = vsub.f32 %v14037_v49, %v14144_v20  ;;  %v12570_v5 = vpop.eup %12569  ;;  %v14536_v54 = vpop.permute.xlu1 %1742 }
 0x3af   : > { %v1274_v11 = vmul.f32 %v14147_v24, %v20499_v39  ;;  %20500 = vst [vmem:[#allocation73_spill] sm:$0xff] %v14518_v58  ;;  %v2267_v39 = vsel %vm720_vm1, %v2203_v47, 0  ;;  %v1520_v9 = vadd.f32 1.0, %v12566_v7  ;;  %12585 = vrcp.f32 %v1508_v36  ;;  %v14531_v12 = vpop.eup %12571  ;;  %20504 = vst [vmem:[#allocation75_spill] sm:$0xff] %v14536_v54  ;;  %v2132_v47 = vld [vmem:[#allocation13] sm:$0xf] }
 0x3b0   : > { %20501 = vst [vmem:[#allocation74_spill] sm:$0xff] %v14520_v30  ;;  %v1279_v53 = vmul.f32 %v14147_v24, %v20502_v60  ;;  %v1881_v10 = vmul.f32 %v14393_v25, %v1635_v18  ;;  %v1882_v38 = vmul.f32 %v14400_v13, %v1636_v45  ;;  %10549 = vmatpush3.bf16.msra.mxu0 %v2267_v39  ;;  %12587 = vrcp.f32 %v1509_v51  ;;  %v14542_v18 = vpop.permute.xlu0 %1747  ;;  %v20530_v13 = vld [vmem:[#allocation54_spill] sm:$0xff] }
 0x3b1   : > { %v1644_v1 = vmul.f32 %v12568_v21, %v14257_v55  ;;  %v1321_v32 = vmul.f32 %v14174_v56, %v1274_v11  ;;  %v20503_v49 = vmov 0.0   ;;  %v12574_v22 = vpop.eup %12573  ;;  %v1883_v7 = vmul.f32 %v14432_v41, %v1637_v27  ;;  %20505 = vst [vmem:[#allocation76_spill] sm:$0xff] %v14542_v18 }
 0x3b2   : > { %10634 = vmatprep.subr.bf16.mxu0 %v20503_v49  ;;  %v1884_v36 = vmul.f32 %v14438_v23, %v1638_v35  ;;  %v20097_v29 = vrot.slane %v14518_v58, 1  ;;  %v20098_v37 = vrot.slane %v14520_v30, 1  ;;  %v12576_v40 = vpop.eup %12575  ;;  %v1641_v55 = vmul.f32 %v12570_v5, %v14302_v34 }
 0x3b3   : > { %12589 = vrcp.f32 %v1510_v42  ;;  %v14546_v51 = vadd.f32 %v14203_v8, %v1319_v15  ;;  %v14549_v45 = vmul.f32 %v14174_v56, %v1279_v53  ;;  %v12578_v11 = vpop.eup %12577  ;;  %v14551_v21 = vpack.c.bf16 %v1882_v38, %v1881_v10 }
 0x3b4   : > { %12591 = vrcp.f32 %v1520_v9  ;;  %v14554_v27 = vadd.f32 %v14203_v8, %v1324_v6  ;;  %v14561_v34 = vsel %vm2135_vm4, %v20097_v29, %v20098_v37  ;;  %v12580_v5 = vpop.eup %12579  ;;  %v14564_v42 = vmul.f32 %v14542_v18, %v1644_v1  ;;  %v20520_v18 = vld [vmem:[#allocation36_spill] sm:$0xff] }
 0x3b5   : > { %20506 = vst [vmem:[#allocation77_spill] sm:$0xff] %v14551_v21  ;;  %20507 = vst [vmem:[#allocation78_spill] sm:$0xff] %v14561_v34  ;;  %v1888_v15 = vmul.f32 %v14506_v0, %v1642_v28  ;;  %12593 = vpow2.f32 %v14455_v2  ;;  %v20508_v9 = vsub.f32 %v14006_v14, %v14144_v20  ;;  %10551 = vmatmul.mubr.msk.bf16.vlgmr.msra.gmra.mrb[8].mxu0 %vm1048_vm3, %v14561_v34  ;;  %v12582_v35 = vpop.eup %12581  ;;  %v2533_v10 = vsel %vm720_vm1, %v2132_v47, 0 }
 0x3b6   : > { %v1639_v60 = vmul.f32 %v12574_v22, %v14326_v31  ;;  %v1640_v53 = vmul.f32 %v12576_v40, %v14333_v59  ;;  %v14576_v39 = vpack.c.bf16 %v1884_v36, %v1883_v7  ;;  %10554 = vmatprep.mubr.msk.bf16.mxu0 %vm13358_vm0, %v20503_v49  ;;  %v12584_v2 = vpop.eup %12583  ;;  %v1887_v14 = vmul.f32 %v14500_v46, %v1641_v55  ;;  %v14589_v31 = vpop.permute.xlu1 %1752 }
 0x3b7   : > { %v1276_v6 = vmul.f32 %v14147_v24, %v20508_v9  ;;  %12595 = vrcp.f32 %v14502_v50  ;;  %v14584_v28 = vmul.f32 -1.442695, %v14546_v51  ;;  %v14587_v38 = vadd.f32 %v14203_v8, %v1321_v32  ;;  %12325 = vmatpush3.bf16.msra.mxu1 %v2533_v10  ;;  %10635 = vmatpush3.bf16.msra.mxu0 %v2533_v10  ;;  %20510 = vst [vmem:[#allocation80_spill] sm:$0xff] %v14589_v31  ;;  %v14603_v32 = vpop.permute.xlu0 %1757 }
 0x3b8   : > { %20509 = vst [vmem:[#allocation79_spill] sm:$0xff] %v14576_v39  ;;  %12597 = vpow2.f32 %v14447_v48  ;;  %v14593_v59 = vshrl.u32 %v14551_v21, 16  ;;  %v14596_v1 = vshll.u32 %v14551_v21, 16  ;;  %v14599_v50 = vmul.f32 -1.442695, %v14554_v27  ;;  %10806 = vmatprep.subr.bf16.mxu1 %v20503_v49  ;;  %10720 = vmatprep.subr.bf16.mxu0 %v20503_v49  ;;  %20513 = vst [vmem:[#allocation83_spill] sm:$0xff] %v14603_v32 }
 0x3b9   : > { %v1629_v22 = vmul.f32 %v12580_v5, %v14292_v17  ;;  %v1630_v7 = vmul.f32 %v12582_v35, %v14296_v61  ;;  %12599 = vpow2.f32 %v14466_v44  ;;  %v1323_v48 = vmul.f32 %v14174_v56, %v1276_v6  ;;  %v12586_v36 = vpop.eup %12585 }
 0x3ba   : > { %20511 = vst [vmem:[#allocation81_spill] sm:$0xff] %v14593_v59  ;;  %20512 = vst [vmem:[#allocation82_spill] sm:$0xff] %v14596_v1  ;;  %v1522_v40 = vadd.f32 1.0, %v12584_v2  ;;  %v1885_v55 = vmul.f32 %v14461_v19, %v1639_v60  ;;  %v1886_v47 = vmul.f32 %v14468_v4, %v1640_v53  ;;  %v14612_v9 = vshrl.u32 %v14576_v39, 16  ;;  %v12588_v10 = vpop.eup %12587  ;;  %v20518_v60 = vld [vmem:[#allocation48_spill] sm:$0xff]  ;;  %v20519_v2 = vld [vmem:[#allocation49_spill] sm:$0xff]  ;;  %v14641_v0 = vpop.permute.xlu1 %1762 }
 0x3bb   : > { %v14614_v29 = vpack.c.bf16 %v1888_v15, %v1887_v14  ;;  %v1525_v37 = vadd.f32 1.0, %v12578_v11  ;;  %v14617_v17 = vshll.u32 %v14576_v39, 16  ;;  %v14620_v61 = vmul.f32 -1.442695, %v14587_v38  ;;  %20522 = vst [vmem:[#allocation36_spill] sm:$0xff] %v14641_v0 }
 0x3bc   : > { %20514 = vst [vmem:[#allocation84_spill] sm:$0xff] %v14612_v9  ;;  %12601 = vpow2.f32 %v14478_v52  ;;  %v20517_v44 = vsub.f32 %v13879_v16, %v14144_v20  ;;  %v1985_v6 = vrot.slane %v14593_v59, 6  ;;  %v1988_v35 = vrot.slane %v14596_v1, 7 }
 0x3bd   : > { %20515 = vst [vmem:[#allocation85_spill] sm:$0xff] %v14614_v29  ;;  %20516 = vst [vmem:[#allocation86_spill] sm:$0xff] %v14617_v17  ;;  %v12590_v15 = vpop.eup %12589  ;;  %v14631_v11 = vmul.f32 %v14531_v12, %v14319_v26  ;;  %v1875_v53 = vmul.f32 %v20518_v60, %v1629_v22  ;;  %v1876_v14 = vmul.f32 %v20519_v2, %v1630_v7  ;;  %12603 = vrcp.f32 %v1522_v40  ;;  %v14655_v7 = vpop.permute.xlu0 %1767 }
 0x3be   : > { %v1283_v5 = vmul.f32 %v14147_v24, %v20517_v44  ;;  %v20521_v52 = vsub.f32 %v20520_v18, %v14144_v20  ;;  %v12592_v44 = vpop.eup %12591  ;;  %v14643_v46 = vpack.c.bf16 %v1886_v47, %v1885_v55  ;;  %v14646_v4 = vadd.f32 %v14203_v8, %v1323_v48  ;;  %20526 = vst [vmem:[#allocation90_spill] sm:$0xff] %v14655_v7  ;;  %v20528_v55 = vld [vmem:[#allocation51_spill] sm:$0xff]  ;;  %v14685_v59 = vpop.permute.xlu1 %1772 }
 0x3bf   : > { %v1994_v26 = vrot.slane %v14612_v9, 6  ;;  %v12594_v12 = vpop.eup %12593  ;;  %v14650_v22 = vshrl.u32 %v14614_v29, 16  ;;  %v14653_v18 = vshll.u32 %v14614_v29, 16  ;;  %v1997_v19 = vrot.slane %v14617_v17, 7  ;;  %v20541_v17 = vld [vmem:[#allocation53_spill] sm:$0xff] }
 0x3c0   : > { %v14639_v16 = vmul.f32 %v14147_v24, %v20521_v52  ;;  %20523 = vst [vmem:[#allocation87_spill] sm:$0xff] %v14643_v46  ;;  %v20527_v52 = vld [vmem:[#allocation50_spill] sm:$0xff]  ;;  %12605 = vrcp.f32 %v1525_v37  ;;  %v1632_v47 = vmul.f32 %v12588_v10, %v20528_v55  ;;  %v1330_v48 = vmul.f32 %v14174_v56, %v1283_v5  ;;  %v20534_v10 = vld [vmem:[#allocation39_spill] sm:$0xff] }
 0x3c1   : > { %20524 = vst [vmem:[#allocation88_spill] sm:$0xff] %v14650_v22  ;;  %20525 = vst [vmem:[#allocation89_spill] sm:$0xff] %v14653_v18  ;;  %v1631_v40 = vmul.f32 %v12586_v36, %v20527_v52  ;;  %v14661_v23 = vor.u32 %v1988_v35, %v1985_v6  ;;  %v12596_v41 = vpop.eup %12595  ;;  %v1633_v25 = vmul.f32 %v12590_v15, %v20530_v13  ;;  %v1524_v9 = vadd.f32 1.0, %v12594_v12  ;;  %v20536_v52 = vld [vmem:[#allocation60_spill] sm:$0xff] }
 0x3c2   : > { %v14664_v2 = vpack.c.bf16 %v1876_v14, %v1875_v53  ;;  %v1998_v60 = vor.u32 %v1997_v19, %v1994_v26  ;;  %v12598_v34 = vpop.eup %12597  ;;  %v14667_v36 = vshrl.u32 %v14643_v46, 16  ;;  %v14670_v37 = vshll.u32 %v14643_v46, 16  ;;  %v20537_v15 = vld [vmem:[#allocation52_spill] sm:$0xff]  ;;  %v20538_v19 = vld [vmem:[#allocation37_spill] sm:$0xff]  ;;  %20542 = vst [vmem:[#allocation39_spill] sm:$0xff] %v14685_v59 }
 0x3c3   : > { %20529 = vst [vmem:[#allocation50_spill] sm:$0xff] %v14661_v23  ;;  %v20535_v5 = vsub.f32 %v20534_v10, %v14144_v20  ;;  %v12600_v35 = vpop.eup %12599  ;;  %v1643_v13 = vmul.f32 %v12592_v44, %v20536_v52  ;;  %v1877_v53 = vmul.f32 %v20537_v15, %v1631_v40  ;;  %12607 = vpow2.f32 %v14491_v3  ;;  %v20540_v12 = vld [vmem:[#allocation56_spill] sm:$0xff]  ;;  %v14690_v40 = vpop.permute.xlu0 %1777  ;;  %v20544_v3 = vld [vmem:[#allocation38_spill] sm:$0xff] }
 0x3c4   : > { %20531 = vst [vmem:[#allocation51_spill] sm:$0xff] %v14664_v2  ;;  %20532 = vst [vmem:[#allocation54_spill] sm:$0xff] %v14667_v36  ;;  %v20539_v14 = vsub.f32 %v20538_v19, %v14144_v20  ;;  %v1634_v55 = vmul.f32 %v12596_v41, %v20540_v12  ;;  %v1878_v1 = vmul.f32 %v20541_v17, %v1632_v47  ;;  %12609 = vpow2.f32 %v14494_v57 }
 0x3c5   : > { %20533 = vst [vmem:[#allocation91_spill] sm:$0xff] %v14670_v37  ;;  %v1285_v6 = vmul.f32 %v14147_v24, %v20535_v5  ;;  %v1999_v44 = vsel %vm1955_vm5, %v14661_v23, %v1998_v60  ;;  %v1527_v10 = vadd.f32 1.0, %v12598_v34  ;;  %20543 = vst [vmem:[#allocation60_spill] sm:$0xff] %v14690_v40  ;;  %v20545_v5 = vsub.f32 %v20544_v3, %v14144_v20 }
 0x3c6   : > { %v1282_v26 = vmul.f32 %v14147_v24, %v20539_v14  ;;  %10657 = vmatmul.mubr.msk.bf16.vlgmr.msra.gmra.mrb[8].mxu1 %vm1048_vm3, %v1999_v44  ;;  %v2159_v41 = vrot.slane %v14664_v2, 7  ;;  %v12602_v47 = vpop.eup %12601  ;;  %12611 = vrcp.f32 %v1524_v9  ;;  %v2003_v34 = vrot.slane %v14667_v36, 6 }
 0x3c7   : > { %v1284_v52 = vmul.f32 %v14147_v24, %v20545_v5  ;;  %v1332_v57 = vmul.f32 %v14174_v56, %v1285_v6  ;;  %10660 = vmatprep.mubr.msk.bf16.mxu1 %vm13358_vm0, %v20503_v49  ;;  %v2006_v19 = vrot.slane %v14670_v37, 7  ;;  %v1889_v14 = vmul.f32 %v14536_v54, %v1643_v13  ;;  %v12604_v5 = vpop.eup %12603  ;;  %v14725_v54 = vpop.permute.xlu1 %1782 }
 0x3c8   : > { %v1529_v12 = vadd.f32 1.0, %v12600_v35  ;;  %v9467_v3 = vmul.f32 -1.442695, %v14646_v4  ;;  %v1329_v44 = vmul.f32 %v14174_v56, %v1282_v26  ;;  %v14706_v17 = vpack.c.bf16 %v1878_v1, %v1877_v53  ;;  %v20550_v26 = vld [vmem:[#allocation57_spill] sm:$0xff]  ;;  %20551 = vst [vmem:[#allocation38_spill] sm:$0xff] %v14725_v54 }
 0x3c9   : > { %12613 = vpow2.f32 %v14509_v62  ;;  %v20547_v9 = vrot.slane %v14520_v30, 1  ;;  %v14714_v15 = vor.u32 %v2006_v19, %v2003_v34  ;;  %v1526_v23 = vadd.f32 1.0, %v12602_v47  ;;  %v20549_v62 = vld [vmem:[#allocation55_spill] sm:$0xff]  ;;  %v14736_v34 = vpop.permute.xlu0 %1787 }
 0x3ca   : > { %20546 = vst [vmem:[#allocation37_spill] sm:$0xff] %v14706_v17  ;;  %12615 = vpow2.f32 %v14584_v28  ;;  %v14718_v35 = vadd.f32 %v14203_v8, %v1330_v48  ;;  %v1331_v13 = vmul.f32 %v14174_v56, %v1284_v52  ;;  %v12606_v1 = vpop.eup %12605  ;;  %v1879_v53 = vmul.f32 %v20549_v62, %v1633_v25  ;;  %v20553_v48 = vld [vmem:[#allocation62_spill] sm:$0xff] }
 0x3cb   : > { %v14712_v6 = vsel %vm2158_vm6, %v20547_v9, %v2159_v41  ;;  %12617 = vrcp.f32 %v1527_v10  ;;  %v1880_v9 = vmul.f32 %v20550_v26, %v1634_v55  ;;  %v14728_v47 = vadd.f32 %v14203_v8, %v1332_v57  ;;  %20554 = vst [vmem:[#allocation62_spill] sm:$0xff] %v14736_v34 }
 0x3cc   : > { %20548 = vst [vmem:[#allocation56_spill] sm:$0xff] %v14712_v6  ;;  %10555 = vmatmul.mubr.msk.bf16.gmra.mrb[12].mxu0 %vm1048_vm3, %v14712_v6  ;;  %v14733_v28 = vpack.c.bf16 %v14564_v42, %v1889_v14  ;;  %v1645_v52 = vmul.f32 %v12604_v5, %v20553_v48  ;;  %12619 = vrcp.f32 %v1529_v12  ;;  %v14739_v25 = vadd.f32 %v14203_v8, %v1329_v44  ;;  %v20555_v42 = vld [vmem:[#allocation42_spill] sm:$0xff] }
 0x3cd   : > { %10558 = vmatprep.mubr.msk.bf16.mxu0 %vm13358_vm0, %v20503_v49  ;;  %v2008_v55 = vsel %vm1955_vm5, %v1998_v60, %v14714_v15  ;;  %v2012_v57 = vrot.slane %v14650_v22, 6  ;;  %v2015_v19 = vrot.slane %v14653_v18, 7  ;;  %v12608_v26 = vpop.eup %12607  ;;  %12621 = vrcp.f32 %v1526_v23  ;;  %v14781_v62 = vpop.permute.xlu0 %1797 }
 0x3ce   : > { %20552 = vst [vmem:[#allocation92_spill] sm:$0xff] %v14733_v28  ;;  %v20556_v14 = vsub.f32 %v20555_v42, %v14144_v20  ;;  %v9474_v5 = vmul.f32 -1.442695, %v14718_v35  ;;  %v14752_v44 = vadd.f32 %v14203_v8, %v1331_v13  ;;  %10661 = vmatmul.mubr.msk.bf16.gmra.mrb[12].mxu1 %vm1048_vm3, %v2008_v55  ;;  %v12610_v60 = vpop.eup %12609  ;;  %v1892_v48 = vmul.f32 %v14603_v32, %v14631_v11 }
 0x3cf   : > { %v14757_v10 = vpack.c.bf16 %v1880_v9, %v1879_v53  ;;  %12623 = vpow2.f32 %v14599_v50  ;;  %v9476_v23 = vmul.f32 -1.442695, %v14728_v47  ;;  %10664 = vmatprep.mubr.msk.bf16.mxu1 %vm13358_vm0, %v20503_v49  ;;  %v14764_v42 = vshrl.u32 %v14733_v28, 16  ;;  %v14772_v53 = vpop.permute.xlu1 %1792  ;;  %20563 = vst [vmem:[#allocation97_spill] sm:$0xff] %v14781_v62 }
 0x3d0   : > { %v1278_v12 = vmul.f32 %v14147_v24, %v20556_v14  ;;  %v1891_v13 = vmul.f32 %v14589_v31, %v1645_v52  ;;  %12625 = vpow2.f32 %v14620_v61  ;;  %v9473_v55 = vmul.f32 -1.442695, %v14739_v25  ;;  %v12612_v14 = vpop.eup %12611  ;;  %20560 = vst [vmem:[#allocation95_spill] sm:$0xff] %v14772_v53 }
 0x3d1   : > { %20557 = vst [vmem:[#allocation42_spill] sm:$0xff] %v14757_v10  ;;  %20558 = vst [vmem:[#allocation93_spill] sm:$0xff] %v14764_v42  ;;  %v14770_v11 = vshll.u32 %v14733_v28, 16  ;;  %12627 = vpow2.f32 %v9467_v3  ;;  %v20561_v50 = vrot.slane %v14706_v17, 7  ;;  %v14779_v32 = vor.u32 %v2015_v19, %v2012_v57 }
 0x3d2   : > { %v14785_v61 = vadd.f32 %v14203_v8, %v14549_v45  ;;  %v1328_v52 = vmul.f32 %v14174_v56, %v14639_v16  ;;  %12629 = vpow2.f32 %v9474_v5  ;;  %v9475_v31 = vmul.f32 -1.442695, %v14752_v44 }
 0x3d3   : > { %20559 = vst [vmem:[#allocation94_spill] sm:$0xff] %v14770_v11  ;;  %v14777_v9 = vsel %vm2158_vm6, %v2159_v41, %v20561_v50  ;;  %v12614_v3 = vpop.eup %12613  ;;  %v20564_v41 = vld [vmem:[#allocation61_spill] sm:$0xff]  ;;  %v1528_v57 = vadd.f32 1.0, %v12610_v60  ;;  %v1325_v19 = vmul.f32 %v14174_v56, %v1278_v12  ;;  %12631 = vpow2.f32 %v9476_v23 }
 0x3d4   : > { %20562 = vst [vmem:[#allocation96_spill] sm:$0xff] %v14777_v9  ;;  %10559 = vmatmul.mubr.msk.bf16.gmra.mrb[16].mxu0 %vm1048_vm3, %v14777_v9  ;;  %v1648_v50 = vmul.f32 %v12606_v1, %v20564_v41  ;;  %v12616_v45 = vpop.eup %12615  ;;  %v14796_v6 = vpack.c.bf16 %v1892_v48, %v1891_v13  ;;  %v1647_v16 = vmul.f32 %v12612_v14, %v14435_v43  ;;  %v1531_v5 = vadd.f32 1.0, %v12608_v26  ;;  %v14812_v26 = vpop.permute.xlu1 %1802 }
 0x3d5   : > { %10562 = vmatprep.mubr.msk.bf16.mxu0 %vm13358_vm0, %v20503_v49  ;;  %12633 = vpow2.f32 %v9473_v55  ;;  %v12618_v18 = vpop.eup %12617  ;;  %v2017_v9 = vsel %vm1955_vm5, %v14714_v15, %v14779_v32  ;;  %v2021_v12 = vrot.slane %v14764_v42, 6  ;;  %v2024_v60 = vrot.slane %v14770_v11, 7  ;;  %20566 = vst [vmem:[#allocation98_spill] sm:$0xff] %v14812_v26  ;;  %v20567_v55 = vld [vmem:[#allocation35_spill] sm:$0xff] }
 0x3d6   : > { %20565 = vst [vmem:[#allocation61_spill] sm:$0xff] %v14796_v6  ;;  %v14805_v23 = vpop.eup %12619  ;;  %v9470_v48 = vmul.f32 -1.442695, %v14785_v61  ;;  %v14809_v13 = vadd.f32 %v14203_v8, %v1328_v52  ;;  %12635 = vpow2.f32 %v9475_v31  ;;  %10665 = vmatmul.mubr.msk.bf16.gmra.mrb[16].mxu1 %vm1048_vm3, %v2017_v9  ;;  %v1533_v43 = vadd.f32 1.0, %v12614_v3  ;;  %v14825_v3 = vpop.permute.xlu0 %1807 }
 0x3d7   : > { %12637 = vrcp.f32 %v1528_v57  ;;  %v14815_v15 = vadd.f32 %v14203_v8, %v1325_v19  ;;  %v20568_v14 = vsub.f32 %v20567_v55, %v14144_v20  ;;  %10668 = vmatprep.mubr.msk.bf16.mxu1 %vm13358_vm0, %v20503_v49  ;;  %v12622_v52 = vpop.eup %12621  ;;  %v1894_v31 = vmul.f32 %v14655_v7, %v1648_v50  ;;  %20569 = vst [vmem:[#allocation35_spill] sm:$0xff] %v14825_v3 }
 0x3d8   : > { %v1893_v9 = vmul.f32 %v14641_v0, %v1647_v16  ;;  %12639 = vrcp.f32 %v1531_v5  ;;  %v1530_v57 = vadd.f32 1.0, %v12616_v45  ;;  %v14828_v19 = vshrl.u32 %v14796_v6, 16  ;;  %v20574_v5 = vld [vmem:[#allocation63_spill] sm:$0xff] }
 0x3d9   : > { %v1280_v41 = vmul.f32 %v14147_v24, %v20568_v14  ;;  %v12624_v1 = vpop.eup %12623  ;;  %v14831_v20 = vshll.u32 %v14796_v6, 16  ;;  %v20572_v24 = vrot.slane %v14757_v10, 7  ;;  %v20573_v55 = vrot.slane %v14706_v17, 7 }
 0x3da   : > { %20570 = vst [vmem:[#allocation99_spill] sm:$0xff] %v14828_v19  ;;  %v2025_v50 = vor.u32 %v2024_v60, %v2021_v12  ;;  %v12626_v7 = vpop.eup %12625  ;;  %12641 = vpow2.f32 %v9470_v48  ;;  %v9472_v16 = vmul.f32 -1.442695, %v14809_v13  ;;  %v1650_v0 = vmul.f32 %v12618_v18, %v20574_v5  ;;  %v14855_v5 = vpop.permute.xlu0 %1817 }
 0x3db   : > { %20571 = vst [vmem:[#allocation100_spill] sm:$0xff] %v14831_v20  ;;  %v2163_v14 = vsel %vm2158_vm6, %v20573_v55, %v20572_v24  ;;  %v12628_v45 = vpop.eup %12627  ;;  %12643 = vrcp.f32 %v1533_v43  ;;  %v9469_v11 = vmul.f32 -1.442695, %v14815_v15  ;;  %v1327_v42 = vmul.f32 %v14174_v56, %v1280_v41  ;;  %v14848_v55 = vpop.permute.xlu1 %1812  ;;  %20577 = vst [vmem:[#allocation102_spill] sm:$0xff] %v14855_v5 }
 0x3dc   : > { %10563 = vmatmul.mubr.msk.bf16.gmra.mrb[20].mxu0 %vm1048_vm3, %v2163_v14  ;;  %v12630_v22 = vpop.eup %12629  ;;  %v14845_v24 = vpack.c.bf16 %v1894_v31, %v1893_v9  ;;  %v1649_v12 = vmul.f32 %v12622_v52, %v14458_v63  ;;  %12645 = vrcp.f32 %v1530_v57  ;;  %v1535_v60 = vadd.f32 1.0, %v12624_v1  ;;  %20576 = vst [vmem:[#allocation101_spill] sm:$0xff] %v14848_v55 }
 0x3dd   : > { %10566 = vmatprep.mubr.msk.bf16.mxu0 %vm13358_vm0, %v20503_v49  ;;  %v12632_v48 = vpop.eup %12631  ;;  %v2026_v18 = vsel %vm1955_vm5, %v14779_v32, %v2025_v50  ;;  %v2164_v43 = vrot.slane %v14551_v21, 7  ;;  %v2030_v56 = vrot.slane %v14828_v19, 6  ;;  %v2033_v41 = vrot.slane %v14831_v20, 7 }
 0x3de   : > { %20575 = vst [vmem:[#allocation63_spill] sm:$0xff] %v14845_v24  ;;  %v1532_v31 = vadd.f32 1.0, %v12626_v7  ;;  %12647 = vpow2.f32 %v9472_v16  ;;  %10669 = vmatmul.mubr.msk.bf16.gmra.mrb[20].mxu1 %vm1048_vm3, %v2026_v18  ;;  %v1896_v63 = vmul.f32 %v14690_v40, %v1650_v0  ;;  %v1534_v1 = vadd.f32 1.0, %v12628_v45 }
 0x3df   : > { %v12634_v14 = vpop.eup %12633  ;;  %12649 = vpow2.f32 %v9469_v11  ;;  %v14860_v52 = vadd.f32 %v14203_v8, %v1327_v42  ;;  %10672 = vmatprep.mubr.msk.bf16.mxu1 %vm13358_vm0, %v20503_v49  ;;  %v14865_v9 = vshrl.u32 %v14845_v24, 16  ;;  %v14868_v57 = vshll.u32 %v14845_v24, 16  ;;  %v14877_v20 = vpop.permute.xlu1 %1822 }
 0x3e0   : > { %v12636_v32 = vpop.eup %12635  ;;  %v1895_v7 = vmul.f32 %v14685_v59, %v1649_v12  ;;  %v1541_v16 = vadd.f32 1.0, %v12630_v22  ;;  %12651 = vrcp.f32 %v1535_v60  ;;  %v1543_v0 = vadd.f32 1.0, %v12632_v48  ;;  %20581 = vst [vmem:[#allocation105_spill] sm:$0xff] %v14877_v20 }
 0x3e1   : > { %20578 = vst [vmem:[#allocation103_spill] sm:$0xff] %v14865_v9  ;;  %20579 = vst [vmem:[#allocation104_spill] sm:$0xff] %v14868_v57  ;;  %v12638_v18 = vpop.eup %12637  ;;  %v20580_v11 = vrot.slane %v14757_v10, 7  ;;  %v2034_v42 = vor.u32 %v2033_v41, %v2030_v56  ;;  %12653 = vrcp.f32 %v1532_v31  ;;  %v1540_v40 = vadd.f32 1.0, %v12634_v14  ;;  %v20583_v56 = vld [vmem:[#allocation69_spill] sm:$0xff]  ;;  %v14885_v14 = vpop.permute.xlu0 %1827 }
 0x3e2   : > { %v12640_v45 = vpop.eup %12639  ;;  %v1652_v21 = vmul.f32 %v14805_v23, %v14450_v33  ;;  %12655 = vrcp.f32 %v1534_v1  ;;  %v9471_v22 = vmul.f32 -1.442695, %v14860_v52  ;;  %v1542_v12 = vadd.f32 1.0, %v12636_v32  ;;  %20584 = vst [vmem:[#allocation69_spill] sm:$0xff] %v14885_v14 }
 0x3e3   : > { %v2165_v8 = vsel %vm2158_vm6, %v20580_v11, %v2164_v43  ;;  %v14882_v48 = vpack.c.bf16 %v1896_v63, %v1895_v7  ;;  %v1651_v41 = vmul.f32 %v12638_v18, %v20583_v56  ;;  %12657 = vrcp.f32 %v1541_v16  ;;  %v3120_v63 = vld [vmem:[#allocation13 + $0xc] sm:$0xf] }
 0x3e4   : > { %10567 = vmatmul.mubr.msk.bf16.gmra.mrb[24].mxu0 %vm1048_vm3, %v2165_v8  ;;  %v12642_v60 = vpop.eup %12641  ;;  %v2166_v31 = vrot.slane %v14576_v39, 7  ;;  %12659 = vrcp.f32 %v1543_v0  ;;  %v2035_v23 = vsel %vm1955_vm5, %v2025_v50, %v2034_v42  ;;  %v2039_v1 = vrot.slane %v14865_v9, 6  ;;  %v14904_v8 = vpop.permute.xlu1 %1832 }
 0x3e5   : > { %10570 = vmatprep.mubr.msk.bf16.mxu0 %vm13358_vm0, %v20503_v49  ;;  %20582 = vst [vmem:[#allocation106_spill] sm:$0xff] %v14882_v48  ;;  %v12644_v33 = vpop.eup %12643  ;;  %v2042_v32 = vrot.slane %v14868_v57, 7  ;;  %12661 = vrcp.f32 %v1540_v40  ;;  %v1898_v16 = vmul.f32 %v14736_v34, %v1652_v21  ;;  %v1897_v18 = vmul.f32 %v14725_v54, %v1651_v41  ;;  %20587 = vst [vmem:[#allocation109_spill] sm:$0xff] %v14904_v8  ;;  %v14909_v21 = vpop.permute.xlu0 %1837 }
 0x3e6   : > { %v12646_v11 = vpop.eup %12645  ;;  %10673 = vmatmul.mubr.msk.bf16.gmra.mrb[24].mxu1 %vm1048_vm3, %v2035_v23  ;;  %12663 = vrcp.f32 %v1542_v12  ;;  %v14899_v0 = vshrl.u32 %v14882_v48, 16  ;;  %v14902_v40 = vshll.u32 %v14882_v48, 16  ;;  %v2167_v12 = vsel %vm2158_vm6, %v2164_v43, %v2166_v31  ;;  %v20588_v23 = vld [vmem:[#allocation68_spill] sm:$0xff] }
 0x3e7   : > { %10676 = vmatprep.mubr.msk.bf16.mxu1 %vm13358_vm0, %v20503_v49  ;;  %12665 = vpow2.f32 %v9471_v22  ;;  %v2043_v56 = vor.u32 %v2042_v32, %v2039_v1  ;;  %v1654_v59 = vmul.f32 %v12640_v45, %v20588_v23  ;;  %v1653_v39 = vmul.f32 %v12646_v11, %v14546_v51  ;;  %20589 = vst [vmem:[#allocation68_spill] sm:$0xff] %v14909_v21 }
 0x3e8   : > { %v14894_v7 = vpop.eup %12647  ;;  %20585 = vst [vmem:[#allocation107_spill] sm:$0xff] %v14899_v0  ;;  %20586 = vst [vmem:[#allocation108_spill] sm:$0xff] %v14902_v40  ;;  %v3125_v22 = vsel %vm720_vm1, %v3120_v63, 0  ;;  %v14916_v54 = vshll.u32 %v14520_v30, 16  ;;  %v14918_v43 = vpack.c.bf16 %v1898_v16, %v1897_v18  ;;  %v1537_v45 = vadd.f32 1.0, %v12642_v60  ;;  %v14935_v32 = vpop.permute.xlu1 %1842 }
 0x3e9   : > { %v12650_v50 = vpop.eup %12649  ;;  %10807 = vmatpush3.bf16.msra.mxu1 %v3125_v22  ;;  %v2044_v1 = vsel %vm1955_vm5, %v2034_v42, %v2043_v56  ;;  %v2048_v11 = vrot.slane %v14899_v0, 6  ;;  %v2051_v63 = vrot.slane %v14902_v40, 7  ;;  %v1900_v23 = vmul.f32 %v14781_v62, %v1654_v59  ;;  %v20591_v22 = vld [vmem:[#allocation70_spill] sm:$0xff] }
 0x3ea   : > { %v12652_v41 = vpop.eup %12651  ;;  %20590 = vst [vmem:[#allocation110_spill] sm:$0xff] %v14918_v43  ;;  %10978 = vmatprep.subr.bf16.mxu1 %v20503_v49  ;;  %v1656_v57 = vmul.f32 %v12644_v33, %v20591_v22  ;;  %v1899_v16 = vmul.f32 %v14772_v53, %v1653_v39  ;;  %v1536_v18 = vadd.f32 1.0, %v12650_v50  ;;  %v14930_v9 = vshrl.u32 %v14664_v2, 16  ;;  %20592 = vst [vmem:[#allocation70_spill] sm:$0xff] %v14935_v32 }
 0x3eb   : > { %v12654_v34 = vpop.eup %12653  ;;  %v14933_v42 = vshll.u32 %v14664_v2, 16  ;;  %v14940_v33 = vshrl.u32 %v14518_v58, 16  ;;  %v14943_v39 = vshrl.u32 %v14520_v30, 16  ;;  %12667 = vrcp.f32 %v1537_v45 }
 0x3ec   : > { %10571 = vmatmul.mubr.msk.bf16.gmra.mrb[28].mxu0 %vm1048_vm3, %v2167_v12  ;;  %v12656_v51 = vpop.eup %12655  ;;  %v14949_v62 = vshrl.u32 %v14918_v43, 16  ;;  %v14952_v53 = vshll.u32 %v14918_v43, 16  ;;  %v20596_v2 = vrot.slane %v14643_v46, 7  ;;  %v2052_v0 = vor.u32 %v2051_v63, %v2048_v11 }
 0x3ed   : > { %10574 = vmatprep.mubr.msk.bf16.mxu0 %vm13358_vm0, %v20503_v49  ;;  %v12658_v12 = vpop.eup %12657  ;;  %v1902_v30 = vmul.f32 %v14825_v3, %v1656_v57  ;;  %v14958_v37 = vpack.c.bf16 %v1900_v23, %v1899_v16  ;;  %v1655_v45 = vmul.f32 %v12654_v34, %v14587_v38  ;;  %12669 = vrcp.f32 %v1536_v18 }
 0x3ee   : > { %10677 = vmatmul.mubr.msk.bf16.gmra.mrb[28].mxu1 %vm1048_vm3, %v2044_v1  ;;  %v12660_v60 = vpop.eup %12659  ;;  %v14946_v1 = vpop.permute.xlu0 %1847  ;;  %20594 = vst [vmem:[#allocation112_spill] sm:$0xff] %v14949_v62  ;;  %20595 = vst [vmem:[#allocation113_spill] sm:$0xff] %v14952_v53  ;;  %v2169_v40 = vsel %vm2158_vm6, %v2166_v31, %v20596_v2  ;;  %v1658_v50 = vmul.f32 %v12652_v41, %v14554_v27  ;;  %v1657_v36 = vmul.f32 %v12656_v51, %v14646_v4 }
 0x3ef   : > { %10680 = vmatprep.mubr.msk.bf16.mxu1 %vm13358_vm0, %v20503_v49  ;;  %v12662_v59 = vpop.eup %12661  ;;  %20593 = vst [vmem:[#allocation111_spill] sm:$0xff] %v14946_v1  ;;  %20597 = vst [vmem:[#allocation114_spill] sm:$0xff] %v14958_v37  ;;  %v1664_v43 = vmul.f32 %v12658_v12, %v14718_v35  ;;  %v1666_v48 = vmul.f32 %v12660_v60, %v14728_v47  ;;  %v2170_v38 = vrot.slane %v14614_v29, 7  ;;  %v14972_v34 = vshll.u32 %v14706_v17, 16  ;;  %v14974_v31 = vpop.permute.xlu1 %1852 }
 0x3f0   : > { %v12664_v22 = vpop.eup %12663  ;;  %v1663_v2 = vmul.f32 %v12662_v59, %v14739_v25  ;;  %20598 = vst [vmem:[#allocation115_spill] sm:$0xff] %v14974_v31  ;;  %v2053_v4 = vsel %vm1955_vm5, %v2043_v56, %v2052_v0  ;;  %v2057_v27 = vrot.slane %v14949_v62, 6  ;;  %v2060_v35 = vrot.slane %v14952_v53, 7 }
 0x3f1   : > { %v12666_v19 = vpop.eup %12665  ;;  %v1665_v57 = vmul.f32 %v12664_v22, %v14752_v44  ;;  %v1959_v47 = vrot.slane %v14930_v9, 6  ;;  %v1539_v25 = vadd.f32 1.0, %v14894_v7  ;;  %v20166_v51 = vrot.slane %v14933_v42, 7 }
 0x3f2   : > { %v1538_v44 = vadd.f32 1.0, %v12666_v19  ;;  %v14982_v41 = vpop.permute.xlu0 %1857  ;;  %v14987_v11 = vshrl.u32 %v14958_v37, 16  ;;  %v14990_v56 = vshll.u32 %v14958_v37, 16  ;;  %v1910_v63 = vmul.f32 %v14946_v1, %v1664_v43 }
 0x3f3   : > { %20599 = vst [vmem:[#allocation116_spill] sm:$0xff] %v14982_v41  ;;  %v1912_v12 = vmul.f32 %v14982_v41, %v1666_v48  ;;  %v1909_v19 = vmul.f32 %v14935_v32, %v1663_v2  ;;  %v1911_v7 = vmul.f32 %v14974_v31, %v1665_v57  ;;  %v15000_v23 = vor.u32 %v20166_v51, %v1959_v47 }
 0x3f4   : > { %10575 = vmatmul.mubr.msk.bf16.gmra.mrb[32].mxu0 %vm1048_vm3, %v2169_v40  ;;  %v1901_v40 = vmul.f32 %v14812_v26, %v1655_v45  ;;  %20600 = vst [vmem:[#allocation117_spill] sm:$0xff] %v14987_v11  ;;  %20601 = vst [vmem:[#allocation118_spill] sm:$0xff] %v14990_v56  ;;  %v20165_v16 = vrot.slane %v14972_v34, 7  ;;  %v1904_v18 = vmul.f32 %v14855_v5, %v1658_v50  ;;  %v20602_v43 = vrot.slane %v14643_v46, 7 }
 0x3f5   : > { %10578 = vmatprep.mubr.msk.bf16.mxu0 %vm13358_vm0, %v20503_v49  ;;  %v1903_v60 = vmul.f32 %v14848_v55, %v1657_v36  ;;  %v2061_v59 = vor.u32 %v2060_v35, %v2057_v27  ;;  %v12668_v22 = vpop.eup %12667  ;;  %v15012_v2 = vshll.u32 %v14518_v58, 16  ;;  %v20167_v57 = vrot.slane %v14943_v39, 1 }
 0x3f6   : > { %10681 = vmatmul.mubr.msk.bf16.gmra.mrb[32].mxu1 %vm1048_vm3, %v2053_v4  ;;  %v2171_v48 = vsel %vm2158_vm6, %v20602_v43, %v2170_v38  ;;  %v15008_v45 = vpack.c.bf16 %v1902_v30, %v1901_v40  ;;  %v15019_v36 = vsel %vm1955_vm5, %v15000_v23, %v20165_v16  ;;  %v2066_v50 = vrot.slane %v14987_v11, 6 }
 0x3f7   : > { %10684 = vmatprep.mubr.msk.bf16.mxu1 %vm13358_vm0, %v20503_v49  ;;  %20604 = vst [vmem:[#allocation120_spill] sm:$0xff] %v15019_v36  ;;  %v2069_v30 = vrot.slane %v14990_v56, 7  ;;  %v12670_v4 = vpop.eup %12669  ;;  %12671 = vrcp.f32 %v1539_v25  ;;  %v15025_v27 = vpack.c.bf16 %v1910_v63, %v1909_v19  ;;  %v15027_v35 = vpack.c.bf16 %v1912_v12, %v1911_v7 }
 0x3f8   : > { %20603 = vst [vmem:[#allocation119_spill] sm:$0xff] %v15008_v45  ;;  %v2736_v47 = vrot.slane %v14940_v33, 1  ;;  %v1660_v40 = vmul.f32 %v12668_v22, %v14785_v61  ;;  %v15031_v43 = vpack.c.bf16 %v1904_v18, %v1903_v60  ;;  %v2172_v16 = vrot.slane %v14733_v28, 7 }
 0x3f9   : > { %20605 = vst [vmem:[#allocation121_spill] sm:$0xff] %v15025_v27  ;;  %20606 = vst [vmem:[#allocation122_spill] sm:$0xff] %v15027_v35  ;;  %v15036_v51 = vshrl.u32 %v15008_v45, 16  ;;  %12673 = vrcp.f32 %v1538_v44  ;;  %v2737_v25 = vrot.slane %v15012_v2, 2  ;;  %v20609_v63 = vrot.slane %v14916_v54, 2 }
 0x3fa   : > { %20607 = vst [vmem:[#allocation123_spill] sm:$0xff] %v15031_v43  ;;  %v15045_v61 = vshll.u32 %v15008_v45, 16  ;;  %v15050_v19 = vshrl.u32 %v14706_v17, 16  ;;  %v15053_v44 = vshrl.u32 %v15025_v27, 16  ;;  %v15056_v7 = vshrl.u32 %v15027_v35, 16 }
 0x3fb   : > { %20608 = vst [vmem:[#allocation124_spill] sm:$0xff] %v15036_v51  ;;  %v2741_v12 = vor.u32 %v20609_v63, %v20167_v57  ;;  %v15058_v18 = vor.u32 %v2737_v25, %v2736_v47  ;;  %v1906_v60 = vmul.f32 %v14885_v14, %v1660_v40  ;;  %v15062_v22 = vshrl.u32 %v15031_v43, 16 }
 0x3fc   : > { %10579 = vmatmul.mubr.msk.bf16.gmra.mrb[36].mxu0 %vm1048_vm3, %v2171_v48  ;;  %v2062_v48 = vsel %vm1955_vm5, %v2052_v0, %v2061_v59  ;;  %20610 = vst [vmem:[#allocation125_spill] sm:$0xff] %v15045_v61  ;;  %v2070_v0 = vor.u32 %v2069_v30, %v2066_v50  ;;  %v2173_v50 = vsel %vm2158_vm6, %v2170_v38, %v2172_v16  ;;  %v15067_v30 = vshll.u32 %v15031_v43, 16 }
 0x3fd   : > { %10582 = vmatprep.mubr.msk.bf16.mxu0 %vm13358_vm0, %v20503_v49  ;;  %20611 = vst [vmem:[#allocation126_spill] sm:$0xff] %v15062_v22  ;;  %v2174_v63 = vrot.slane %v14796_v6, 7  ;;  %v2075_v57 = vrot.slane %v15036_v51, 6  ;;  %v15074_v47 = vsel %vm2735_vm7, %v15058_v18, %v2741_v12  ;;  %v15077_v40 = vshll.u32 %v15025_v27, 16 }
 0x3fe   : > { %10685 = vmatmul.mubr.msk.bf16.gmra.mrb[36].mxu1 %vm1048_vm3, %v2062_v48  ;;  %v1659_v48 = vmul.f32 %v12670_v4, %v14815_v15  ;;  %20612 = vst [vmem:[#allocation127_spill] sm:$0xff] %v15067_v30  ;;  %20613 = vst [vmem:[#allocation128_spill] sm:$0xff] %v15074_v47  ;;  %v2071_v15 = vsel %vm1955_vm5, %v2061_v59, %v2070_v0  ;;  %v2078_v38 = vrot.slane %v15045_v61, 7  ;;  %v15084_v4 = vshll.u32 %v14757_v10, 16 }
 0x3ff   : > { %10688 = vmatprep.mubr.msk.bf16.mxu1 %vm13358_vm0, %v20503_v49  ;;  %20614 = vst [vmem:[#allocation129_spill] sm:$0xff] %v15077_v40  ;;  %v15087_v25 = vshll.u32 %v15027_v35, 16  ;;  %v2798_v12 = vrot.slane %v15056_v7, 7  ;;  %v2801_v41 = vrot.slane %v14940_v33, 7  ;;  %v3116_v59 = vrot.slane %v14943_v39, 7 }
 0x400   : > { %v3656_v31 = vrot.slane %v14933_v42, 1  ;;  %v3658_v1 = vrot.slane %v14972_v34, 1  ;;  %v20189_v6 = vrot.slane %v15084_v4, 1  ;;  %v1905_v28 = vmul.f32 %v14877_v20, %v1659_v48 }
 0x401   : > { %v12672_v32 = vpop.eup %12671  ;;  %v2799_v5 = vor.u32 %v2798_v12, %v15087_v25  ;;  %v2802_v55 = vor.u32 %v2801_v41, %v15012_v2  ;;  %v3117_v3 = vor.u32 %v3116_v59, %v14916_v54  ;;  %v2175_v29 = vsel %vm2158_vm6, %v2172_v16, %v2174_v63 }
 0x402   : > { %v3657_v26 = vor.u32 %v3656_v31, %v14930_v9  ;;  %v3660_v36 = vor.u32 %v3658_v1, %v15050_v19  ;;  %v20620_v48 = vmov 0 }
 0x403   : > { %v15113_v17 = vsel %vm2744_vm8, %v2798_v12, %v2802_v55  ;;  %v15116_v59 = vsel %vm2744_vm8, %v2801_v41, %v3117_v3  ;;  %v15131_v55 = vpack.c.bf16 %v1906_v60, %v1905_v28  ;;  %v20190_v3 = vrot.slane %v14916_v54, 1 }
 0x404   : > { %10583 = vmatmul.mubr.msk.bf16.gmra.mrb[40].mxu0 %vm1048_vm3, %v2173_v50  ;;  %v2795_v50 = vrot.slane %v15053_v44, 7  ;;  %v15119_v31 = vsel %vm1938_vm9, %v3657_v26, %v3658_v1  ;;  %v15124_v61 = vsel %vm1938_vm9, %v3660_v36, %v20189_v6  ;;  %v2176_v1 = vrot.slane %v14845_v24, 7 }
 0x405   : > { %10586 = vmatprep.mubr.msk.bf16.mxu0 %vm13358_vm0, %v20503_v49  ;;  %20616 = vst [vmem:[#allocation131_spill] sm:$0xff] %v15124_v61  ;;  %20617 = vst [vmem:[#allocation132_spill] sm:$0xff] %v15131_v55  ;;  %v2084_v41 = vrot.slane %v15062_v22, 6  ;;  %v15155_v36 = vshll.u32 %v15131_v55, 16  ;;  %v20621_v48 = vsel %vm15159_vm11, 4294967295, %v20620_v48  ;;  %v20195_v6 = vrot.slane %v15012_v2, 1 }
 0x406   : > { %10689 = vmatmul.mubr.msk.bf16.gmra.mrb[40].mxu1 %vm1048_vm3, %v2071_v15  ;;  %v15097_v14 = vor.u32 %v2795_v50, %v15077_v40  ;;  %v12674_v15 = vpop.eup %12673  ;;  %v15110_v46 = vsel %vm2744_vm8, %v2795_v50, %v2799_v5  ;;  %v1662_v5 = vmul.f32 %v12672_v32, %v14809_v13  ;;  %v15152_v32 = vor.u32 %v14943_v39, %v20190_v3 }
 0x407   : > { %10692 = vmatprep.mubr.msk.bf16.mxu1 %vm13358_vm0, %v20503_v49  ;;  %v1661_v16 = vmul.f32 %v12674_v15, %v14860_v52  ;;  %v15147_v52 = vshrl.u32 %v15131_v55, 16  ;;  %20619 = vst [vmem:[#allocation134_spill] sm:$0xff] %v15155_v36  ;;  %20622 = vst [vmem:[#allocation135_spill] sm:$0xff] %v20621_v48  ;;  %v4607_v50 = vrot.slane %v15050_v19, 1  ;;  %v3709_v15 = vrot.slane %v15087_v25, 1 }
 0x408   : > { %20615 = vst [vmem:[#allocation130_spill] sm:$0xff] %v15097_v14  ;;  %v2079_v14 = vor.u32 %v2078_v38, %v2075_v57  ;;  %v2087_v57 = vrot.slane %v15067_v30, 7  ;;  %v1908_v13 = vmul.f32 %v14909_v21, %v1662_v5  ;;  %v20193_v38 = vrot.slane %v15077_v40, 1 }
 0x409   : > { %v1907_v28 = vmul.f32 %v14904_v8, %v1661_v16  ;;  %20618 = vst [vmem:[#allocation133_spill] sm:$0xff] %v15147_v52  ;;  %v2093_v21 = vrot.slane %v15147_v52, 6  ;;  %v2096_v8 = vrot.slane %v15155_v36, 7 }
 0x40a   : > { %v2080_v26 = vsel %vm1955_vm5, %v2070_v0, %v2079_v14  ;;  %v2177_v0 = vsel %vm2158_vm6, %v2174_v63, %v2176_v1  ;;  %v2088_v60 = vor.u32 %v2087_v57, %v2084_v41  ;;  %v20624_v63 = vld [vmem:[#allocation106_spill] sm:$0xff]  ;;  %v3708_v41 = vor.u32 %v20193_v38, %v15053_v44 }
 0x40b   : > { %v15168_v5 = vpack.c.bf16 %v1908_v13, %v1907_v28  ;;  %v2178_v16 = vrot.slane %v20624_v63, 7  ;;  %v4611_v57 = vrot.slane %v15084_v4, 2  ;;  %v20625_v13 = vrot.slane %v14933_v42, 7 }
 0x40c   : > { %10587 = vmatmul.mubr.msk.bf16.gmra.mrb[44].mxu0 %vm1048_vm3, %v2175_v29  ;;  %v15139_v29 = vshrl.u32 %v14757_v10, 16  ;;  %v2089_v3 = vsel %vm1955_vm5, %v2079_v14, %v2088_v60  ;;  %v15191_v38 = vsel %vm1938_vm9, %v3708_v41, %v3709_v15 }
 0x40d   : > { %10590 = vmatprep.mubr.msk.bf16.mxu0 %vm13358_vm0, %v20503_v49  ;;  %20623 = vst [vmem:[#allocation136_spill] sm:$0xff] %v15168_v5  ;;  %v15185_v28 = vsel %vm15159_vm11, %v15152_v32, %v20625_v13  ;;  %20627 = vst [vmem:[#allocation138_spill] sm:$0xff] %v15191_v38  ;;  %v15204_v14 = vshrl.u32 %v15168_v5, 16  ;;  %v15207_v63 = vshll.u32 %v15168_v5, 16 }
 0x40e   : > { %10693 = vmatmul.mubr.msk.bf16.gmra.mrb[44].mxu1 %vm1048_vm3, %v2080_v26  ;;  %v4610_v12 = vrot.slane %v15139_v29, 1  ;;  %v4608_v26 = vrot.slane %v14972_v34, 2  ;;  %20626 = vst [vmem:[#allocation137_spill] sm:$0xff] %v15185_v28 }
 0x40f   : > { %10696 = vmatprep.mubr.msk.bf16.mxu1 %vm13358_vm0, %v20503_v49  ;;  %20630 = vst [vmem:[#allocation141_spill] sm:$0xff] %v15204_v14  ;;  %20631 = vst [vmem:[#allocation142_spill] sm:$0xff] %v15207_v63 }
 0x410   : > { %v4609_v13 = vor.u32 %v4608_v26, %v4607_v50  ;;  %v15201_v28 = vor.u32 %v4611_v57, %v4610_v12  ;;  %v20633_v12 = vld [vmem:[#allocation110_spill] sm:$0xff]  ;;  %v2102_v57 = vrot.slane %v15204_v14, 6 }
 0x411   : > { %v2180_v26 = vrot.slane %v20633_v12, 7  ;;  %v2780_v12 = vrot.slane %v14987_v11, 7 }
 0x412   : > { %20629 = vst [vmem:[#allocation140_spill] sm:$0xff] %v15201_v28  ;;  %v15215_v41 = vsel %vm2735_vm7, %v4609_v13, %v15201_v28  ;;  %v2111_v13 = vrot.slane %v15053_v44, 6 }
 0x413   : > { %20632 = vst [vmem:[#allocation143_spill] sm:$0xff] %v15215_v41 }
 0x414   : > { %10591 = vmatmul.mubr.msk.bf16.gmra.mrb[48].mxu0 %vm1048_vm3, %v2177_v0  ;;  %v3711_v0 = vor.u32 %v3709_v15, %v15056_v7  ;;  %v2179_v15 = vsel %vm2158_vm6, %v2176_v1, %v2178_v16 }
 0x415   : > { %10594 = vmatprep.mubr.msk.bf16.mxu0 %vm13358_vm0, %v20503_v49 }
 0x416   : > { %10697 = vmatmul.mubr.msk.bf16.gmra.mrb[48].mxu1 %vm1048_vm3, %v2089_v3  ;;  %v15197_v20 = vsel %vm1938_vm9, %v3711_v0, %v20195_v6  ;;  %v2097_v3 = vor.u32 %v2096_v8, %v2093_v21  ;;  %v2105_v0 = vrot.slane %v15207_v63, 7  ;;  %v2181_v8 = vsel %vm2158_vm6, %v2178_v16, %v2180_v26 }
 0x417   : > { %20628 = vst [vmem:[#allocation139_spill] sm:$0xff] %v15197_v20  ;;  %10700 = vmatprep.mubr.msk.bf16.mxu1 %vm13358_vm0, %v20503_v49  ;;  %v4670_v16 = vrot.slane %v15053_v44, 1  ;;  %v2184_v44 = vrot.slane %v15008_v45, 7 }
 0x418   : > { %v2098_v50 = vsel %vm1955_vm5, %v2088_v60, %v2097_v3  ;;  %v2106_v21 = vor.u32 %v2105_v0, %v2102_v57  ;;  %v2182_v60 = vrot.slane %v14958_v37, 7  ;;  %v4671_v0 = vrot.slane %v15077_v40, 2  ;;  %v3369_v37 = vld [vmem:[#allocation13 + $0x10] sm:$0xf] }
 0x41a   : > { %v2107_v1 = vsel %vm1955_vm5, %v2097_v3, %v2106_v21  ;;  %v4674_v3 = vrot.slane %v15056_v7, 1 }
 0x41c   : > { %10595 = vmatmul.mubr.msk.bf16.gmra.mrb[52].mxu0 %vm1048_vm3, %v2179_v15  ;;  %v2114_v15 = vrot.slane %v15077_v40, 7 }
 0x41d   : > { %10598 = vmatprep.mubr.msk.bf16.mxu0 %vm13358_vm0, %v20503_v49 }
 0x41e   : > { %10701 = vmatmul.mubr.msk.bf16.gmra.mrb[52].mxu1 %vm1048_vm3, %v2098_v50  ;;  %v2183_v50 = vsel %vm2158_vm6, %v2180_v26, %v2182_v60  ;;  %v2115_v57 = vor.u32 %v2114_v15, %v2111_v13  ;;  %v2120_v26 = vrot.slane %v15056_v7, 6  ;;  %v2123_v13 = vrot.slane %v15087_v25, 7 }
 0x41f   : > { %10704 = vmatprep.mubr.msk.bf16.mxu1 %vm13358_vm0, %v20503_v49 }
 0x420   : > { %v2116_v28 = vsel %vm1955_vm5, %v2106_v21, %v2115_v57  ;;  %v2185_v21 = vsel %vm2158_vm6, %v2182_v60, %v2184_v44  ;;  %v2188_v60 = vrot.slane %v15131_v55, 7 }
 0x424   : > { %10599 = vmatmul.mubr.msk.bf16.gmra.mrb[56].mxu0 %vm1048_vm3, %v2181_v8  ;;  %v4675_v8 = vrot.slane %v15087_v25, 2  ;;  %v2186_v25 = vrot.slane %v15031_v43, 7  ;;  %v20663_v43 = vld [vmem:[#allocation107_spill] sm:$0xff] }
 0x425   : > { %10602 = vmatprep.mubr.msk.bf16.mxu0 %vm13358_vm0, %v20503_v49  ;;  %v2774_v45 = vrot.slane %v20663_v43, 7 }
 0x426   : > { %10705 = vmatmul.mubr.msk.bf16.gmra.mrb[56].mxu1 %vm1048_vm3, %v2107_v1  ;;  %v15243_v1 = vor.u32 %v4671_v0, %v4670_v16  ;;  %v4676_v6 = vor.u32 %v4675_v8, %v4674_v3  ;;  %v2124_v16 = vor.u32 %v2123_v13, %v2120_v26  ;;  %v2189_v0 = vsel %vm2158_vm6, %v2186_v25, %v2188_v60 }
 0x427   : > { %10708 = vmatprep.mubr.msk.bf16.mxu1 %vm13358_vm0, %v20503_v49  ;;  %v20637_v8 = vmov 0  ;;  %v2190_v26 = vrot.slane %v15168_v5, 7 }
 0x428   : > { %20634 = vst [vmem:[#allocation144_spill] sm:$0xff] %v15243_v1  ;;  %v15252_v15 = vsel %vm2735_vm7, %v15243_v1, %v4676_v6  ;;  %v2125_v7 = vsel %vm1955_vm5, %v2115_v57, %v2124_v16  ;;  %v2745_v57 = vrot.slane %v14930_v9, 7  ;;  %v20638_v8 = vsel %vm15285_vm12, 4294967295, %v20637_v8  ;;  %v20656_v1 = vld [vmem:[#allocation93_spill] sm:$0xff] }
 0x429   : > { %20635 = vst [vmem:[#allocation145_spill] sm:$0xff] %v15252_v15  ;;  %20639 = vst [vmem:[#allocation147_spill] sm:$0xff] %v20638_v8  ;;  %v20640_v9 = vrot.slane %v14943_v39, 1  ;;  %v2191_v13 = vsel %vm2158_vm6, %v2188_v60, %v2190_v26  ;;  %v20643_v60 = vld [vmem:[#allocation81_spill] sm:$0xff]  ;;  %v20648_v8 = vld [vmem:[#allocation54_spill] sm:$0xff]  ;;  %v2765_v48 = vrot.slane %v20656_v1, 7 }
 0x42a   : > { %v2746_v3 = vor.u32 %v2745_v57, %v14933_v42  ;;  %v2747_v42 = vrot.slane %v15050_v19, 7  ;;  %v2808_v15 = vld [vmem:[#allocation13 + $0x8] sm:$0xf] }
 0x42c   : > { %10603 = vmatmul.mubr.msk.bf16.gmra.mrb[60].mxu0 %vm1048_vm3, %v2183_v50  ;;  %v15256_v50 = vsel %vm2735_vm7, %v4676_v6, %v15058_v18  ;;  %v2187_v6 = vsel %vm2158_vm6, %v2184_v44, %v2186_v25  ;;  %v2126_v18 = vrot.slane %v15012_v2, 7  ;;  %v15295_v44 = vsel %vm15285_vm12, %v20640_v9, %v2746_v3  ;;  %v20644_v3 = vld [vmem:[#allocation82_spill] sm:$0xff] }
 0x42d   : > { %10606 = vmatprep.mubr.msk.bf16.mxu0 %vm13358_vm0, %v20503_v49  ;;  %20636 = vst [vmem:[#allocation146_spill] sm:$0xff] %v15256_v50  ;;  %20641 = vst [vmem:[#allocation148_spill] sm:$0xff] %v15295_v44  ;;  %v2759_v50 = vrot.slane %v20648_v8, 7 }
 0x42e   : > { %10709 = vmatmul.mubr.msk.bf16.gmra.mrb[60].mxu1 %vm1048_vm3, %v2116_v28  ;;  %v2127_v28 = vsel %vm1955_vm5, %v2124_v16, %v2126_v18  ;;  %v2192_v16 = vrot.slane %v15025_v27, 7 }
 0x42f   : > { %10712 = vmatprep.mubr.msk.bf16.mxu1 %vm13358_vm0, %v20503_v49 }
 0x430   : > { %v2193_v25 = vsel %vm2158_vm6, %v2190_v26, %v2192_v16 }
 0x434   : > { %10607 = vmatmul.mubr.msk.bf16.gmra.mrb[64].mxu0 %vm1048_vm3, %v2185_v21  ;;  %v2748_v21 = vor.u32 %v2747_v42, %v14972_v34 }
 0x435   : > { %10610 = vmatprep.mubr.msk.bf16.mxu0 %vm13358_vm0, %v20503_v49 }
 0x436   : > { %10713 = vmatmul.mubr.msk.bf16.gmra.mrb[64].mxu1 %vm1048_vm3, %v2125_v7  ;;  %v15309_v39 = vsel %vm2744_vm8, %v2745_v57, %v2748_v21  ;;  %v2750_v7 = vrot.slane %v15139_v29, 7  ;;  %v2753_v57 = vrot.slane %v20643_v60, 7 }
 0x437   : > { %10716 = vmatprep.mubr.msk.bf16.mxu1 %vm13358_vm0, %v20503_v49  ;;  %20642 = vst [vmem:[#allocation149_spill] sm:$0xff] %v15309_v39 }
 0x438   : > { %v2754_v9 = vor.u32 %v2753_v57, %v20644_v3 }
 0x43a   : > { %v15337_v26 = vsel %vm2744_vm8, %v2750_v7, %v2754_v9 }
 0x43c   : > { %10611 = vmatmul.mubr.msk.bf16.gmra.mrb[68].mxu0 %vm1048_vm3, %v2187_v6  ;;  %v2751_v6 = vor.u32 %v2750_v7, %v15084_v4 }
 0x43d   : > { %10614 = vmatprep.mubr.msk.bf16.mxu0 %vm13358_vm0, %v20503_v49 }
 0x43e   : > { %10717 = vmatmul.mubr.msk.bf16.gmra.mrb[68].mxu1 %vm1048_vm3, %v2127_v28  ;;  %v15323_v18 = vsel %vm2744_vm8, %v2747_v42, %v2751_v6  ;;  %v2194_v28 = vrot.slane %v15027_v35, 7  ;;  %v2196_v42 = vrot.slane %v14518_v58, 7  ;;  %v20659_v58 = vld [vmem:[#allocation100_spill] sm:$0xff] }
 0x43f   : > { %10808 = vmatprep.mubr.msk.bf16.mxu1 %vm13358_vm0, %v20503_v49 }
 0x444   : > { %10615 = vmatmul.mubr.msk.bf16.gmra.mrb[72].mxu0 %vm1048_vm3, %v2189_v0  ;;  %v2195_v0 = vsel %vm2158_vm6, %v2192_v16, %v2194_v28  ;;  %v2197_v16 = vsel %vm2158_vm6, %v2194_v28, %v2196_v42  ;;  %v2873_v28 = vsel %vm720_vm1, %v2808_v15, 0  ;;  %v20649_v42 = vrot.slane %v14916_v54, 1  ;;  %v20652_v54 = vld [vmem:[#allocation88_spill] sm:$0xff] }
 0x445   : > { %10618 = vmatprep.mubr.msk.bf16.mxu0 %vm13358_vm0, %v20503_v49 }
 0x446   : > { %10809 = vmatmul.mubr.msk.bf16.vlgmr.msra.gmra.mrb[72].mxu1 %vm1048_vm3, %v15295_v44 }
 0x447   : > { %10812 = vmatprep.mubr.msk.bf16.mxu1 %vm13358_vm0, %v20503_v49 }
 0x44c   : > { %10619 = vmatmul.mubr.msk.bf16.gmra.mrb[76].mxu0 %vm1048_vm3, %v2191_v13  ;;  %v20645_v13 = vld [vmem:[#allocation84_spill] sm:$0xff] }
 0x44d   : > { %10622 = vmatprep.mubr.msk.bf16.mxu0 %vm13358_vm0, %v20503_v49  ;;  %v2756_v21 = vrot.slane %v20645_v13, 7 }
 0x44e   : > { %10813 = vmatmul.mubr.msk.bf16.gmra.mrb[76].mxu1 %vm1048_vm3, %v15309_v39 }
 0x44f   : > { %10816 = vmatprep.mubr.msk.bf16.mxu1 %vm13358_vm0, %v20503_v49 }
 0x454   : > { %10623 = vmatmul.mubr.msk.bf16.gmra.mrb[80].mxu0 %vm1048_vm3, %v2193_v25  ;;  %v20646_v25 = vld [vmem:[#allocation86_spill] sm:$0xff] }
 0x455   : > { %10626 = vmatprep.mubr.msk.bf16.mxu0 %vm13358_vm0, %v20503_v49  ;;  %v2757_v6 = vor.u32 %v2756_v21, %v20646_v25 }
 0x456   : > { %10817 = vmatmul.mubr.msk.bf16.gmra.mrb[80].mxu1 %vm1048_vm3, %v15323_v18 }
 0x457   : > { %10820 = vmatprep.mubr.msk.bf16.mxu1 %vm13358_vm0, %v20503_v49  ;;  %v15351_v7 = vsel %vm2744_vm8, %v2753_v57, %v2757_v6 }
 0x45c   : > { %10627 = vmatmul.mubr.msk.bf16.gmra.mrb[84].mxu0 %vm1048_vm3, %v2195_v0  ;;  %v20647_v0 = vrot.slane %v15012_v2, 1 }
 0x45d   : > { %10630 = vmatprep.mubr.msk.bf16.mxu0 %vm13358_vm0, %v20503_v49 }
 0x45e   : > { %10821 = vmatmul.mubr.msk.bf16.gmra.mrb[84].mxu1 %vm1048_vm3, %v15337_v26  ;;  %v1945_v9 = vor.u32 %v20647_v0, %v14940_v33  ;;  %v3716_v33 = vld [vmem:[#allocation13 + $0x14] sm:$0xf]  ;;  %v2762_v0 = vrot.slane %v20652_v54, 7 }
 0x45f   : > { %10824 = vmatprep.mubr.msk.bf16.mxu1 %vm13358_vm0, %v20503_v49  ;;  %v3778_v2 = vsel %vm720_vm1, %v3716_v33, 0  ;;  %v20655_v33 = vrot.slane %v14972_v34, 7 }
 0x460   : > { %v15365_v57 = vsel %vm1938_vm9, %v1945_v9, %v20649_v42  ;;  %10979 = vmatpush3.bf16.msra.mxu1 %v3778_v2  ;;  %v15387_v9 = vsel %vm15159_vm11, %v15152_v32, %v15000_v23  ;;  %v1967_v42 = vrot.slane %v15050_v19, 6  ;;  %v20657_v32 = vld [vmem:[#allocation94_spill] sm:$0xff] }
 0x461   : > { %20650 = vst [vmem:[#allocation150_spill] sm:$0xff] %v15365_v57  ;;  %11150 = vmatprep.subr.bf16.mxu1 %v20503_v49  ;;  %20653 = vst [vmem:[#allocation151_spill] sm:$0xff] %v15387_v9  ;;  %v2766_v41 = vor.u32 %v2765_v48, %v20657_v32 }
 0x462   : > { %v1971_v2 = vor.u32 %v20655_v33, %v1967_v42  ;;  %v20658_v42 = vld [vmem:[#allocation99_spill] sm:$0xff] }
 0x463   : > { %v15414_v34 = vsel %vm2744_vm8, %v2762_v0, %v2766_v41  ;;  %v2768_v33 = vrot.slane %v20658_v42, 7 }
 0x464   : > { %10631 = vmatmul.mubr.msk.bf16.gmra.mrb[88].mxu0 %vm1048_vm3, %v2197_v16  ;;  %v20651_v16 = vld [vmem:[#allocation91_spill] sm:$0xff]  ;;  %v1972_v19 = vsel %vm1955_vm5, %v15000_v23, %v1971_v2 }
 0x465   : > { %10636 = vmatprep.mubr.msk.bf16.mxu0 %vm13358_vm0, %v20503_v49  ;;  %v2760_v6 = vor.u32 %v2759_v50, %v20651_v16  ;;  %v2769_v35 = vor.u32 %v2768_v33, %v20659_v58 }
 0x466   : > { %10825 = vmatmul.mubr.msk.bf16.gmra.mrb[88].mxu1 %vm1048_vm3, %v15351_v7 }
 0x467   : > { %10828 = vmatprep.mubr.msk.bf16.mxu1 %vm13358_vm0, %v20503_v49  ;;  %v15375_v15 = vsel %vm2744_vm8, %v2756_v21, %v2760_v6  ;;  %v15427_v41 = vsel %vm2744_vm8, %v2765_v48, %v2769_v35 }
 0x46c   : > { %10637 = vmatmul.mubr.msk.bf16.vlgmr.msra.gmra.mrb[92].mxu0 %vm1048_vm3, %v15365_v57 }
 0x46d   : > { %10640 = vmatprep.mubr.msk.bf16.mxu0 %vm13358_vm0, %v20503_v49  ;;  %10721 = vmatpush3.bf16.msra.mxu0 %v2873_v28  ;;  %v20654_v28 = vld [vmem:[#allocation89_spill] sm:$0xff] }
 0x46e   : > { %10892 = vmatprep.subr.bf16.mxu0 %v20503_v49  ;;  %10829 = vmatmul.mubr.msk.bf16.gmra.mrb[92].mxu1 %vm1048_vm3, %v15375_v15  ;;  %v2763_v21 = vor.u32 %v2762_v0, %v20654_v28  ;;  %v20660_v0 = vld [vmem:[#allocation103_spill] sm:$0xff] }
 0x46f   : > { %10832 = vmatprep.mubr.msk.bf16.mxu1 %vm13358_vm0, %v20503_v49 }
 0x470   : > { %v15396_v6 = vsel %vm2744_vm8, %v2759_v50, %v2763_v21  ;;  %v1979_v50 = vrot.slane %v15084_v4, 7 }
 0x474   : > { %10641 = vmatmul.mubr.msk.bf16.gmra.mrb[96].mxu0 %vm1048_vm3, %v15387_v9  ;;  %v1976_v9 = vrot.slane %v15139_v29, 6 }
 0x475   : > { %10644 = vmatprep.mubr.msk.bf16.mxu0 %vm13358_vm0, %v20503_v49 }
 0x476   : > { %10833 = vmatmul.mubr.msk.bf16.gmra.mrb[96].mxu1 %vm1048_vm3, %v15396_v6  ;;  %v1980_v21 = vor.u32 %v1979_v50, %v1976_v9  ;;  %v2771_v9 = vrot.slane %v20660_v0, 7  ;;  %v20662_v50 = vld [vmem:[#allocation104_spill] sm:$0xff] }
 0x477   : > { %10836 = vmatprep.mubr.msk.bf16.mxu1 %vm13358_vm0, %v20503_v49 }
 0x478   : > { %v1981_v23 = vsel %vm1955_vm5, %v1971_v2, %v1980_v21  ;;  %v2772_v27 = vor.u32 %v2771_v9, %v20662_v50 }
 0x47a   : > { %v15445_v55 = vsel %vm2744_vm8, %v2768_v33, %v2772_v27  ;;  %v2777_v33 = vrot.slane %v14949_v62, 7 }
 0x47c   : > { %10645 = vmatmul.mubr.msk.bf16.gmra.mrb[100].mxu0 %vm1048_vm3, %v1972_v19  ;;  %v20661_v19 = vld [vmem:[#allocation50_spill] sm:$0xff] }
 0x47d   : > { %10648 = vmatprep.mubr.msk.bf16.mxu0 %vm13358_vm0, %v20503_v49  ;;  %v1990_v2 = vsel %vm1955_vm5, %v1980_v21, %v20661_v19  ;;  %v20664_v21 = vld [vmem:[#allocation108_spill] sm:$0xff] }
 0x47e   : > { %10837 = vmatmul.mubr.msk.bf16.gmra.mrb[100].mxu1 %vm1048_vm3, %v15414_v34  ;;  %v2775_v19 = vor.u32 %v2774_v45, %v20664_v21 }
 0x47f   : > { %10840 = vmatprep.mubr.msk.bf16.mxu1 %vm13358_vm0, %v20503_v49 }
 0x480   : > { %v15460_v27 = vsel %vm2744_vm8, %v2771_v9, %v2775_v19 }
 0x484   : > { %10649 = vmatmul.mubr.msk.bf16.gmra.mrb[104].mxu0 %vm1048_vm3, %v1981_v23 }
 0x485   : > { %10652 = vmatprep.mubr.msk.bf16.mxu0 %vm13358_vm0, %v20503_v49 }
 0x486   : > { %10841 = vmatmul.mubr.msk.bf16.gmra.mrb[104].mxu1 %vm1048_vm3, %v15427_v41 }
 0x487   : > { %10844 = vmatprep.mubr.msk.bf16.mxu1 %vm13358_vm0, %v20503_v49 }
 0x488   : > { %v15437_v23 = vpop.f32.mrb[8].mxu0 }
 0x489   : > { %v10552_v5 = vpop.f32.mrb[9].mxu0 }
 0x48a   : > { %v15442_v35 = vpop.f32.mrb[10].mxu0  ;;  %v3413_v5 = vsel %vm720_vm1, %v3369_v37, 0 }
 0x48b   : > { %v10553_v48 = vpop.f32.mrb[11].mxu0 }
 0x48c   : > { %10653 = vmatmul.mubr.msk.bf16.gmra.mrb[108].mxu0 %vm1048_vm3, %v1990_v2  ;;  %v2778_v2 = vor.u32 %v2777_v33, %v14952_v53 }
 0x48d   : > { %10722 = vmatprep.mubr.msk.bf16.mxu0 %vm13358_vm0, %v20503_v49 }
 0x48e   : > { %10845 = vmatmul.mubr.msk.bf16.gmra.mrb[108].mxu1 %vm1048_vm3, %v15445_v55 }
 0x48f   : > { %10848 = vmatprep.mubr.msk.bf16.mxu1 %vm13358_vm0, %v20503_v49 }
 0x494   : > { %10723 = vmatmul.mubr.msk.bf16.vlgmr.msra.gmra.mrb[112].mxu0 %vm1048_vm3, %v15074_v47  ;;  %v15479_v47 = vsel %vm2744_vm8, %v2774_v45, %v2778_v2 }
 0x495   : > { %10726 = vmatprep.mubr.msk.bf16.mxu0 %vm13358_vm0, %v20503_v49  ;;  %10893 = vmatpush3.bf16.msra.mxu0 %v3413_v5 }
 0x496   : > { %11064 = vmatprep.subr.bf16.mxu0 %v20503_v49  ;;  %10849 = vmatmul.mubr.msk.bf16.gmra.mrb[112].mxu1 %vm1048_vm3, %v15460_v27 }
 0x497   : > { %10852 = vmatprep.mubr.msk.bf16.mxu1 %vm13358_vm0, %v20503_v49 }
 0x499   : > { %v15467_v37 = vpop.f32.mrb[8].mxu1 }
 0x49a   : > { %v10658_v48 = vpop.f32.mrb[9].mxu1 }
 0x49b   : > { %v15472_v5 = vpop.f32.mrb[10].mxu1 }
 0x49c   : > { %10727 = vmatmul.mubr.msk.bf16.gmra.mrb[116].mxu0 %vm1048_vm3, %v15295_v44  ;;  %v10659_v9 = vpop.f32.mrb[11].mxu1 }
 0x49d   : > { %10730 = vmatprep.mubr.msk.bf16.mxu0 %vm13358_vm0, %v20503_v49  ;;  %v2781_v9 = vor.u32 %v2780_v12, %v14990_v56 }
 0x49e   : > { %10853 = vmatmul.mubr.msk.bf16.gmra.mrb[116].mxu1 %vm1048_vm3, %v15479_v47 }
 0x49f   : > { %v15476_v19 = vpop.f32.mrb[12].mxu0  ;;  %10856 = vmatprep.mubr.msk.bf16.mxu1 %vm13358_vm0, %v20503_v49  ;;  %v15500_v38 = vsel %vm2744_vm8, %v2777_v33, %v2781_v9 }
 0x4a0   : > { %v10556_v57 = vpop.f32.mrb[13].mxu0 }
 0x4a1   : > { %v15484_v48 = vpop.f32.mrb[14].mxu0  ;;  %v15488_v24 = vpop.f32.mrb[12].mxu1 }
 0x4a2   : > { %20665 = vst [vmem:[#allocation50_spill] sm:$0xff] %v15484_v48  ;;  %v10557_v44 = vpop.f32.mrb[15].mxu0  ;;  %v10662_v20 = vpop.f32.mrb[13].mxu1 }
 0x4a3   : > { %v15493_v45 = vpop.f32.mrb[14].mxu1  ;;  %v2783_v44 = vrot.slane %v15036_v51, 7 }
 0x4a4   : > { %10731 = vmatmul.mubr.msk.bf16.gmra.mrb[120].mxu0 %vm1048_vm3, %v15309_v39  ;;  %v10663_v57 = vpop.f32.mrb[15].mxu1 }
 0x4a5   : > { %10734 = vmatprep.mubr.msk.bf16.mxu0 %vm13358_vm0, %v20503_v49  ;;  %v20668_v57 = vld [vmem:[#allocation125_spill] sm:$0xff] }
 0x4a6   : > { %10857 = vmatmul.mubr.msk.bf16.gmra.mrb[120].mxu1 %vm1048_vm3, %v15500_v38  ;;  %v2784_v11 = vor.u32 %v2783_v44, %v20668_v57 }
 0x4a7   : > { %v15497_v2 = vpop.f32.mrb[16].mxu0  ;;  %10860 = vmatprep.mubr.msk.bf16.mxu1 %vm13358_vm0, %v20503_v49 }
 0x4a8   : > { %20666 = vst [vmem:[#allocation152_spill] sm:$0xff] %v15497_v2  ;;  %v10560_v40 = vpop.f32.mrb[17].mxu0  ;;  %v15521_v51 = vsel %vm2744_vm8, %v2780_v12, %v2784_v11 }
 0x4a9   : > { %v15505_v20 = vpop.f32.mrb[18].mxu0  ;;  %v15509_v10 = vpop.f32.mrb[16].mxu1 }
 0x4aa   : > { %20667 = vst [vmem:[#allocation153_spill] sm:$0xff] %v15505_v20  ;;  %v10561_v39 = vpop.f32.mrb[19].mxu0  ;;  %v10666_v2 = vpop.f32.mrb[17].mxu1 }
 0x4ab   : > { %v15514_v33 = vpop.f32.mrb[18].mxu1  ;;  %v2786_v39 = vrot.slane %v15062_v22, 7 }
 0x4ac   : > { %10735 = vmatmul.mubr.msk.bf16.gmra.mrb[124].mxu0 %vm1048_vm3, %v15323_v18  ;;  %v10667_v40 = vpop.f32.mrb[19].mxu1 }
 0x4ad   : > { %10738 = vmatprep.mubr.msk.bf16.mxu0 %vm13358_vm0, %v20503_v49  ;;  %v2787_v40 = vor.u32 %v2786_v39, %v15067_v30 }
 0x4ae   : > { %10861 = vmatmul.mubr.msk.bf16.gmra.mrb[124].mxu1 %vm1048_vm3, %v15521_v51 }
 0x4af   : > { %v15518_v9 = vpop.f32.mrb[20].mxu0  ;;  %10864 = vmatprep.mubr.msk.bf16.mxu1 %vm13358_vm0, %v20503_v49  ;;  %v15542_v22 = vsel %vm2744_vm8, %v2783_v44, %v2787_v40 }
 0x4b0   : > { %20669 = vst [vmem:[#allocation154_spill] sm:$0xff] %v15518_v9  ;;  %v10564_v20 = vpop.f32.mrb[21].mxu0 }
 0x4b1   : > { %v15526_v2 = vpop.f32.mrb[22].mxu0  ;;  %v15530_v57 = vpop.f32.mrb[20].mxu1 }
 0x4b2   : > { %20670 = vst [vmem:[#allocation155_spill] sm:$0xff] %v15526_v2  ;;  %v10565_v18 = vpop.f32.mrb[23].mxu0  ;;  %v10670_v9 = vpop.f32.mrb[21].mxu1 }
 0x4b3   : > { %v15535_v11 = vpop.f32.mrb[22].mxu1  ;;  %v2789_v18 = vrot.slane %v15147_v52, 7 }
 0x4b4   : > { %10739 = vmatmul.mubr.msk.bf16.gmra.mrb[128].mxu0 %vm1048_vm3, %v15337_v26  ;;  %v10671_v12 = vpop.f32.mrb[23].mxu1 }
 0x4b5   : > { %10742 = vmatprep.mubr.msk.bf16.mxu0 %vm13358_vm0, %v20503_v49  ;;  %v2790_v12 = vor.u32 %v2789_v18, %v15155_v36 }
 0x4b6   : > { %10865 = vmatmul.mubr.msk.bf16.gmra.mrb[128].mxu1 %vm1048_vm3, %v15542_v22 }
 0x4b7   : > { %v15539_v20 = vpop.f32.mrb[24].mxu0  ;;  %10868 = vmatprep.mubr.msk.bf16.mxu1 %vm13358_vm0, %v20503_v49  ;;  %v15561_v52 = vsel %vm2744_vm8, %v2786_v39, %v2790_v12 }
 0x4b8   : > { %20671 = vst [vmem:[#allocation156_spill] sm:$0xff] %v15539_v20  ;;  %v10568_v2 = vpop.f32.mrb[25].mxu0 }
 0x4b9   : > { %v15547_v9 = vpop.f32.mrb[26].mxu0  ;;  %v15551_v30 = vpop.f32.mrb[24].mxu1 }
 0x4ba   : > { %20672 = vst [vmem:[#allocation157_spill] sm:$0xff] %v15547_v9  ;;  %v10569_v26 = vpop.f32.mrb[27].mxu0  ;;  %v10674_v20 = vpop.f32.mrb[25].mxu1 }
 0x4bb   : > { %v15556_v44 = vpop.f32.mrb[26].mxu1  ;;  %v2792_v26 = vrot.slane %v15204_v14, 7 }
 0x4bc   : > { %10743 = vmatmul.mubr.msk.bf16.gmra.mrb[132].mxu0 %vm1048_vm3, %v15351_v7  ;;  %v10675_v2 = vpop.f32.mrb[27].mxu1 }
 0x4bd   : > { %10746 = vmatprep.mubr.msk.bf16.mxu0 %vm13358_vm0, %v20503_v49  ;;  %v2793_v39 = vor.u32 %v2792_v26, %v15207_v63 }
 0x4be   : > { %10869 = vmatmul.mubr.msk.bf16.gmra.mrb[132].mxu1 %vm1048_vm3, %v15561_v52 }
 0x4bf   : > { %v2343_v40 = vpop.f32.mrb[28].mxu0  ;;  %10872 = vmatprep.mubr.msk.bf16.mxu1 %vm13358_vm0, %v20503_v49 }
 0x4c0   : > { %v15565_v9 = vadd.f32 %v15467_v37, %v2343_v40  ;;  %v10572_v36 = vpop.f32.mrb[29].mxu0 }
 0x4c1   : > { %v2346_v7 = vpop.f32.mrb[30].mxu0  ;;  %v15574_v48 = vpop.f32.mrb[28].mxu1 }
 0x4c2   : > { %20673 = vst [vmem:[#allocation158_spill] sm:$0xff] %v15565_v9  ;;  %v15572_v20 = vadd.f32 %v15472_v5, %v2346_v7  ;;  %v10573_v2 = vpop.f32.mrb[31].mxu0  ;;  %v10678_v12 = vpop.f32.mrb[29].mxu1  ;;  %v15584_v9 = vsel %vm2744_vm8, %v2789_v18, %v2793_v39 }
 0x4c3   : > { %v15579_v36 = vpop.f32.mrb[30].mxu1 }
 0x4c4   : > { %20674 = vst [vmem:[#allocation159_spill] sm:$0xff] %v15572_v20  ;;  %10747 = vmatmul.mubr.msk.bf16.gmra.mrb[136].mxu0 %vm1048_vm3, %v15375_v15  ;;  %v10679_v37 = vpop.f32.mrb[31].mxu1 }
 0x4c5   : > { %10750 = vmatprep.mubr.msk.bf16.mxu0 %vm13358_vm0, %v20503_v49 }
 0x4c6   : > { %10873 = vmatmul.mubr.msk.bf16.gmra.mrb[136].mxu1 %vm1048_vm3, %v15584_v9 }
 0x4c7   : > { %v2351_v40 = vpop.f32.mrb[32].mxu0  ;;  %10876 = vmatprep.mubr.msk.bf16.mxu1 %vm13358_vm0, %v20503_v49 }
 0x4c8   : > { %v15587_v5 = vadd.f32 %v15488_v24, %v2351_v40  ;;  %v10576_v7 = vpop.f32.mrb[33].mxu0  ;;  %v20676_v40 = vld [vmem:[#allocation130_spill] sm:$0xff] }
 0x4c9   : > { %v2354_v2 = vpop.f32.mrb[34].mxu0  ;;  %v15596_v37 = vpop.f32.mrb[32].mxu1  ;;  %v15606_v7 = vsel %vm2744_vm8, %v2792_v26, %v20676_v40 }
 0x4ca   : > { %v15594_v15 = vadd.f32 %v15493_v45, %v2354_v2  ;;  %v10577_v12 = vpop.f32.mrb[35].mxu0  ;;  %v10682_v20 = vpop.f32.mrb[33].mxu1 }
 0x4cb   : > { %v15600_v24 = vpop.f32.mrb[34].mxu1 }
 0x4cc   : > { %20675 = vst [vmem:[#allocation160_spill] sm:$0xff] %v15594_v15  ;;  %10751 = vmatmul.mubr.msk.bf16.gmra.mrb[140].mxu0 %vm1048_vm3, %v15396_v6  ;;  %v10683_v18 = vpop.f32.mrb[35].mxu1 }
 0x4cd   : > { %10754 = vmatprep.mubr.msk.bf16.mxu0 %vm13358_vm0, %v20503_v49 }
 0x4ce   : > { %10877 = vmatmul.mubr.msk.bf16.gmra.mrb[140].mxu1 %vm1048_vm3, %v15606_v7 }
 0x4cf   : > { %v2359_v39 = vpop.f32.mrb[36].mxu0  ;;  %10880 = vmatprep.mubr.msk.bf16.mxu1 %vm13358_vm0, %v20503_v49 }
 0x4d0   : > { %v15609_v45 = vadd.f32 %v15509_v10, %v2359_v39  ;;  %v10580_v2 = vpop.f32.mrb[37].mxu0 }
 0x4d1   : > { %v2362_v20 = vpop.f32.mrb[38].mxu0  ;;  %v15618_v18 = vpop.f32.mrb[36].mxu1 }
 0x4d2   : > { %v15616_v6 = vadd.f32 %v15514_v33, %v2362_v20  ;;  %v10581_v12 = vpop.f32.mrb[39].mxu0  ;;  %v10686_v15 = vpop.f32.mrb[37].mxu1 }
 0x4d3   : > { %v15622_v10 = vpop.f32.mrb[38].mxu1 }
 0x4d4   : > { %10755 = vmatmul.mubr.msk.bf16.gmra.mrb[144].mxu0 %vm1048_vm3, %v15414_v34  ;;  %v10687_v26 = vpop.f32.mrb[39].mxu1 }
 0x4d5   : > { %10758 = vmatprep.mubr.msk.bf16.mxu0 %vm13358_vm0, %v20503_v49 }
 0x4d6   : > { %10881 = vmatmul.mubr.msk.bf16.gmra.mrb[144].mxu1 %vm1048_vm3, %v15110_v46 }
 0x4d7   : > { %v2367_v39 = vpop.f32.mrb[40].mxu0  ;;  %10884 = vmatprep.mubr.msk.bf16.mxu1 %vm13358_vm0, %v20503_v49 }
 0x4d8   : > { %v15627_v40 = vadd.f32 %v15530_v57, %v2367_v39  ;;  %v10584_v2 = vpop.f32.mrb[41].mxu0 }
 0x4d9   : > { %v2370_v33 = vpop.f32.mrb[42].mxu0  ;;  %v15636_v20 = vpop.f32.mrb[40].mxu1 }
 0x4da   : > { %20677 = vst [vmem:[#allocation130_spill] sm:$0xff] %v15627_v40  ;;  %v15634_v34 = vadd.f32 %v15535_v11, %v2370_v33  ;;  %v10585_v15 = vpop.f32.mrb[43].mxu0  ;;  %v10690_v12 = vpop.f32.mrb[41].mxu1 }
 0x4db   : > { %v15640_v57 = vpop.f32.mrb[42].mxu1 }
 0x4dc   : > { %10759 = vmatmul.mubr.msk.bf16.gmra.mrb[148].mxu0 %vm1048_vm3, %v15427_v41  ;;  %v10691_v26 = vpop.f32.mrb[43].mxu1 }
 0x4dd   : > { %10762 = vmatprep.mubr.msk.bf16.mxu0 %vm13358_vm0, %v20503_v49 }
 0x4de   : > { %10885 = vmatmul.mubr.msk.bf16.gmra.mrb[148].mxu1 %vm1048_vm3, %v15113_v17 }
 0x4df   : > { %v2375_v39 = vpop.f32.mrb[44].mxu0  ;;  %10888 = vmatprep.mubr.msk.bf16.mxu1 %vm13358_vm0, %v20503_v49 }
 0x4e0   : > { %v15645_v2 = vadd.f32 %v15551_v30, %v2375_v39  ;;  %v10588_v40 = vpop.f32.mrb[45].mxu0 }
 0x4e1   : > { %v2378_v11 = vpop.f32.mrb[46].mxu0  ;;  %v15654_v15 = vpop.f32.mrb[44].mxu1 }
 0x4e2   : > { %20678 = vst [vmem:[#allocation161_spill] sm:$0xff] %v15645_v2  ;;  %v15652_v41 = vadd.f32 %v15556_v44, %v2378_v11  ;;  %v10589_v33 = vpop.f32.mrb[47].mxu0  ;;  %v10694_v12 = vpop.f32.mrb[45].mxu1 }
 0x4e3   : > { %v15658_v30 = vpop.f32.mrb[46].mxu1 }
 0x4e4   : > { %10763 = vmatmul.mubr.msk.bf16.gmra.mrb[152].mxu0 %vm1048_vm3, %v15445_v55  ;;  %v10695_v40 = vpop.f32.mrb[47].mxu1 }
 0x4e5   : > { %10766 = vmatprep.mubr.msk.bf16.mxu0 %vm13358_vm0, %v20503_v49 }
 0x4e6   : > { %10889 = vmatmul.mubr.msk.bf16.gmra.mrb[152].mxu1 %vm1048_vm3, %v15116_v59 }
 0x4e7   : > { %v2383_v26 = vpop.f32.mrb[48].mxu0  ;;  %10980 = vmatprep.mubr.msk.bf16.mxu1 %vm13358_vm0, %v20503_v49 }
 0x4e8   : > { %v15663_v39 = vadd.f32 %v15574_v48, %v2383_v26  ;;  %v10592_v2 = vpop.f32.mrb[49].mxu0 }
 0x4e9   : > { %v2386_v44 = vpop.f32.mrb[50].mxu0  ;;  %v15672_v33 = vpop.f32.mrb[48].mxu1 }
 0x4ea   : > { %v15670_v55 = vadd.f32 %v15579_v36, %v2386_v44  ;;  %v10593_v11 = vpop.f32.mrb[51].mxu0  ;;  %v10698_v12 = vpop.f32.mrb[49].mxu1 }
 0x4eb   : > { %v15676_v48 = vpop.f32.mrb[50].mxu1 }
 0x4ec   : > { %10767 = vmatmul.mubr.msk.bf16.gmra.mrb[156].mxu0 %vm1048_vm3, %v15460_v27  ;;  %v10699_v59 = vpop.f32.mrb[51].mxu1 }
 0x4ed   : > { %10770 = vmatprep.mubr.msk.bf16.mxu0 %vm13358_vm0, %v20503_v49 }
 0x4ee   : > { %10981 = vmatmul.mubr.msk.bf16.vlgmr.msra.gmra.mrb[156].mxu1 %vm1048_vm3, %v15119_v31 }
 0x4ef   : > { %v2391_v2 = vpop.f32.mrb[52].mxu0  ;;  %10984 = vmatprep.mubr.msk.bf16.mxu1 %vm13358_vm0, %v20503_v49 }
 0x4f0   : > { %v15681_v40 = vadd.f32 %v15596_v37, %v2391_v2  ;;  %v10596_v26 = vpop.f32.mrb[53].mxu0 }
 0x4f1   : > { %v2394_v36 = vpop.f32.mrb[54].mxu0  ;;  %v15690_v11 = vpop.f32.mrb[52].mxu1 }
 0x4f2   : > { %v15688_v27 = vadd.f32 %v15600_v24, %v2394_v36  ;;  %v10597_v44 = vpop.f32.mrb[55].mxu0  ;;  %v10702_v12 = vpop.f32.mrb[53].mxu1 }
 0x4f3   : > { %v15694_v37 = vpop.f32.mrb[54].mxu1  ;;  %v20679_v12 = vrot.slane %v15084_v4, 1 }
 0x4f4   : > { %10771 = vmatmul.mubr.msk.bf16.gmra.mrb[160].mxu0 %vm1048_vm3, %v15479_v47  ;;  %v10703_v31 = vpop.f32.mrb[55].mxu1 }
 0x4f5   : > { %10774 = vmatprep.mubr.msk.bf16.mxu0 %vm13358_vm0, %v20503_v49  ;;  %v3663_v31 = vor.u32 %v20679_v12, %v15139_v29 }
 0x4f6   : > { %10985 = vmatmul.mubr.msk.bf16.gmra.mrb[160].mxu1 %vm1048_vm3, %v15124_v61 }
 0x4f7   : > { %v2399_v59 = vpop.f32.mrb[56].mxu0  ;;  %10988 = vmatprep.mubr.msk.bf16.mxu1 %vm13358_vm0, %v20503_v49 }
 0x4f8   : > { %v15699_v2 = vadd.f32 %v15618_v18, %v2399_v59  ;;  %v10600_v26 = vpop.f32.mrb[57].mxu0 }
 0x4f9   : > { %v2402_v24 = vpop.f32.mrb[58].mxu0  ;;  %v15708_v44 = vpop.f32.mrb[56].mxu1  ;;  %v3664_v26 = vrot.slane %v20644_v3, 1 }
 0x4fa   : > { %v15706_v47 = vadd.f32 %v15622_v10, %v2402_v24  ;;  %v10601_v36 = vpop.f32.mrb[59].mxu0  ;;  %v10706_v18 = vpop.f32.mrb[57].mxu1 }
 0x4fb   : > { %v15715_v59 = vpop.f32.mrb[58].mxu1  ;;  %v15721_v36 = vsel %vm1938_vm9, %v3663_v31, %v3664_v26  ;;  %v3666_v31 = vor.u32 %v3664_v26, %v20643_v60 }
 0x4fc   : > { %10775 = vmatmul.mubr.msk.bf16.gmra.mrb[164].mxu0 %vm1048_vm3, %v15500_v38  ;;  %v10707_v10 = vpop.f32.mrb[59].mxu1  ;;  %20680 = vst [vmem:[#allocation162_spill] sm:$0xff] %v15721_v36 }
 0x4fd   : > { %10778 = vmatprep.mubr.msk.bf16.mxu0 %vm13358_vm0, %v20503_v49 }
 0x4fe   : > { %10989 = vmatmul.mubr.msk.bf16.gmra.mrb[164].mxu1 %vm1048_vm3, %v15721_v36 }
 0x4ff   : > { %v2407_v24 = vpop.f32.mrb[60].mxu0  ;;  %10992 = vmatprep.mubr.msk.bf16.mxu1 %vm13358_vm0, %v20503_v49 }
 0x500   : > { %v15724_v61 = vadd.f32 %v15636_v20, %v2407_v24  ;;  %v10604_v4 = vpop.f32.mrb[61].mxu0  ;;  %v3667_v24 = vrot.slane %v20646_v25, 1 }
 0x501   : > { %v2410_v29 = vpop.f32.mrb[62].mxu0  ;;  %v15733_v18 = vpop.f32.mrb[60].mxu1 }
 0x502   : > { %v15731_v38 = vadd.f32 %v15640_v57, %v2410_v29  ;;  %v10605_v12 = vpop.f32.mrb[63].mxu0  ;;  %v10710_v10 = vpop.f32.mrb[61].mxu1  ;;  %v15744_v57 = vsel %vm1938_vm9, %v3666_v31, %v3667_v24  ;;  %v3669_v31 = vor.u32 %v3667_v24, %v20645_v13 }
 0x503   : > { %v15738_v20 = vpop.f32.mrb[62].mxu1  ;;  %20681 = vst [vmem:[#allocation163_spill] sm:$0xff] %v15744_v57 }
 0x504   : > { %10779 = vmatmul.mubr.msk.bf16.gmra.mrb[168].mxu0 %vm1048_vm3, %v15521_v51  ;;  %v10711_v4 = vpop.f32.mrb[63].mxu1 }
 0x505   : > { %10782 = vmatprep.mubr.msk.bf16.mxu0 %vm13358_vm0, %v20503_v49 }
 0x506   : > { %10993 = vmatmul.mubr.msk.bf16.gmra.mrb[168].mxu1 %vm1048_vm3, %v15744_v57 }
 0x507   : > { %v2415_v3 = vpop.f32.mrb[64].mxu0  ;;  %10996 = vmatprep.mubr.msk.bf16.mxu1 %vm13358_vm0, %v20503_v49 }
 0x508   : > { %v15747_v29 = vadd.f32 %v15654_v15, %v2415_v3  ;;  %v10608_v26 = vpop.f32.mrb[65].mxu0  ;;  %v3670_v15 = vrot.slane %v20651_v16, 1 }
 0x509   : > { %v2418_v51 = vpop.f32.mrb[66].mxu0  ;;  %v15756_v4 = vpop.f32.mrb[64].mxu1 }
 0x50a   : > { %v15754_v12 = vadd.f32 %v15658_v30, %v2418_v51  ;;  %v10609_v10 = vpop.f32.mrb[67].mxu0  ;;  %v10714_v25 = vpop.f32.mrb[65].mxu1  ;;  %v15767_v30 = vsel %vm1938_vm9, %v3669_v31, %v3670_v15  ;;  %v3672_v31 = vor.u32 %v3670_v15, %v20648_v8  ;;  %v20699_v8 = vld [vmem:[#allocation51_spill] sm:$0xff] }
 0x50b   : > { %v15761_v3 = vpop.f32.mrb[66].mxu1  ;;  %20682 = vst [vmem:[#allocation164_spill] sm:$0xff] %v15767_v30 }
 0x50c   : > { %10783 = vmatmul.mubr.msk.bf16.gmra.mrb[172].mxu0 %vm1048_vm3, %v15542_v22  ;;  %v10715_v26 = vpop.f32.mrb[67].mxu1 }
 0x50d   : > { %10786 = vmatprep.mubr.msk.bf16.mxu0 %vm13358_vm0, %v20503_v49 }
 0x50e   : > { %10997 = vmatmul.mubr.msk.bf16.gmra.mrb[172].mxu1 %vm1048_vm3, %v15767_v30 }
 0x50f   : > { %v2423_v60 = vpop.f32.mrb[68].mxu0  ;;  %11000 = vmatprep.mubr.msk.bf16.mxu1 %vm13358_vm0, %v20503_v49 }
 0x510   : > { %v15770_v51 = vadd.f32 %v15672_v33, %v2423_v60  ;;  %v10612_v24 = vpop.f32.mrb[69].mxu0  ;;  %v3673_v33 = vrot.slane %v20654_v28, 1 }
 0x511   : > { %v2426_v22 = vpop.f32.mrb[70].mxu0  ;;  %v15779_v26 = vpop.f32.mrb[68].mxu1  ;;  %v4308_v24 = vld [vmem:[#allocation13 + $0x1c] sm:$0xf] }
 0x512   : > { %20683 = vst [vmem:[#allocation165_spill] sm:$0xff] %v15770_v51  ;;  %v15777_v25 = vadd.f32 %v15676_v48, %v2426_v22  ;;  %v10613_v10 = vpop.f32.mrb[71].mxu0  ;;  %v10718_v16 = vpop.f32.mrb[69].mxu1  ;;  %v4364_v48 = vsel %vm720_vm1, %v4308_v24, 0 }
 0x513   : > { %v2732_v60 = vpop.f32.mrb[70].mxu1  ;;  %v15789_v10 = vsel %vm1938_vm9, %v3672_v31, %v3673_v33  ;;  %11151 = vmatpush3.bf16.msra.mxu1 %v4364_v48  ;;  %v3675_v31 = vor.u32 %v3673_v33, %v20652_v54 }
 0x514   : > { %20684 = vst [vmem:[#allocation166_spill] sm:$0xff] %v15777_v25  ;;  %10787 = vmatmul.mubr.msk.bf16.gmra.mrb[176].mxu0 %vm1048_vm3, %v15561_v52  ;;  %v10719_v13 = vpop.f32.mrb[71].mxu1  ;;  %20685 = vst [vmem:[#allocation167_spill] sm:$0xff] %v15789_v10  ;;  %v20723_v25 = vld [vmem:[#allocation87_spill] sm:$0xff] }
 0x515   : > { %10790 = vmatprep.mubr.msk.bf16.mxu0 %vm13358_vm0, %v20503_v49 }
 0x516   : > { %11001 = vmatmul.mubr.msk.bf16.gmra.mrb[176].mxu1 %vm1048_vm3, %v15789_v10  ;;  %v20710_v10 = vld [vmem:[#allocation124_spill] sm:$0xff] }
 0x517   : > { %v2431_v22 = vpop.f32.mrb[72].mxu0  ;;  %11004 = vmatprep.mubr.msk.bf16.mxu1 %vm13358_vm0, %v20503_v49 }
 0x518   : > { %v15792_v16 = vadd.f32 %v15690_v11, %v2431_v22  ;;  %v10616_v15 = vpop.f32.mrb[73].mxu0  ;;  %v3676_v22 = vrot.slane %v20657_v32, 1 }
 0x519   : > { %v2434_v52 = vpop.f32.mrb[74].mxu0  ;;  %v15801_v24 = vpop.f32.mrb[72].mxu1 }
 0x51a   : > { %20686 = vst [vmem:[#allocation168_spill] sm:$0xff] %v15792_v16  ;;  %v15799_v13 = vadd.f32 %v15694_v37, %v2434_v52  ;;  %v10617_v60 = vpop.f32.mrb[75].mxu0  ;;  %v10810_v11 = vpop.f32.mrb[73].mxu1  ;;  %v15812_v37 = vsel %vm1938_vm9, %v3675_v31, %v3676_v22  ;;  %v3678_v31 = vor.u32 %v3676_v22, %v20656_v1 }
 0x51b   : > { %v15806_v48 = vpop.f32.mrb[74].mxu1  ;;  %20688 = vst [vmem:[#allocation170_spill] sm:$0xff] %v15812_v37 }
 0x51c   : > { %20687 = vst [vmem:[#allocation169_spill] sm:$0xff] %v15799_v13  ;;  %10791 = vmatmul.mubr.msk.bf16.gmra.mrb[180].mxu0 %vm1048_vm3, %v15584_v9  ;;  %v10811_v15 = vpop.f32.mrb[75].mxu1  ;;  %v20722_v13 = vld [vmem:[#allocation133_spill] sm:$0xff] }
 0x51d   : > { %10794 = vmatprep.mubr.msk.bf16.mxu0 %vm13358_vm0, %v20503_v49 }
 0x51e   : > { %11005 = vmatmul.mubr.msk.bf16.gmra.mrb[180].mxu1 %vm1048_vm3, %v15812_v37 }
 0x51f   : > { %v2439_v28 = vpop.f32.mrb[76].mxu0  ;;  %11008 = vmatprep.mubr.msk.bf16.mxu1 %vm13358_vm0, %v20503_v49 }
 0x520   : > { %v15815_v52 = vadd.f32 %v15708_v44, %v2439_v28  ;;  %v10620_v33 = vpop.f32.mrb[77].mxu0 }
 0x521   : > { %v2442_v9 = vpop.f32.mrb[78].mxu0  ;;  %v15824_v15 = vpop.f32.mrb[76].mxu1  ;;  %v3679_v33 = vrot.slane %v20659_v58, 1 }
 0x522   : > { %20689 = vst [vmem:[#allocation171_spill] sm:$0xff] %v15815_v52  ;;  %v15822_v60 = vadd.f32 %v15715_v59, %v2442_v9  ;;  %v10621_v11 = vpop.f32.mrb[79].mxu0  ;;  %v10814_v28 = vpop.f32.mrb[77].mxu1 }
 0x523   : > { %v15829_v44 = vpop.f32.mrb[78].mxu1  ;;  %v15835_v59 = vsel %vm1938_vm9, %v3678_v31, %v3679_v33  ;;  %v3681_v31 = vor.u32 %v3679_v33, %v20658_v42 }
 0x524   : > { %20690 = vst [vmem:[#allocation172_spill] sm:$0xff] %v15822_v60  ;;  %10795 = vmatmul.mubr.msk.bf16.gmra.mrb[184].mxu0 %vm1048_vm3, %v15606_v7  ;;  %v10815_v32 = vpop.f32.mrb[79].mxu1  ;;  %20691 = vst [vmem:[#allocation173_spill] sm:$0xff] %v15835_v59  ;;  %v20717_v60 = vld [vmem:[#allocation79_spill] sm:$0xff] }
 0x525   : > { %10798 = vmatprep.mubr.msk.bf16.mxu0 %vm13358_vm0, %v20503_v49 }
 0x526   : > { %11009 = vmatmul.mubr.msk.bf16.gmra.mrb[184].mxu1 %vm1048_vm3, %v15835_v59  ;;  %v20705_v59 = vld [vmem:[#allocation42_spill] sm:$0xff] }
 0x527   : > { %v2447_v54 = vpop.f32.mrb[80].mxu0  ;;  %11012 = vmatprep.mubr.msk.bf16.mxu1 %vm13358_vm0, %v20503_v49 }
 0x528   : > { %v15838_v9 = vadd.f32 %v15733_v18, %v2447_v54  ;;  %v10624_v22 = vpop.f32.mrb[81].mxu0 }
 0x529   : > { %v2450_v7 = vpop.f32.mrb[82].mxu0  ;;  %v15847_v32 = vpop.f32.mrb[80].mxu1  ;;  %v3682_v22 = vrot.slane %v20662_v50, 1 }
 0x52a   : > { %20692 = vst [vmem:[#allocation174_spill] sm:$0xff] %v15838_v9  ;;  %v15845_v11 = vadd.f32 %v15738_v20, %v2450_v7  ;;  %v10625_v28 = vpop.f32.mrb[83].mxu0  ;;  %v10818_v54 = vpop.f32.mrb[81].mxu1  ;;  %v20716_v9 = vld [vmem:[#allocation126_spill] sm:$0xff] }
 0x52b   : > { %v15852_v18 = vpop.f32.mrb[82].mxu1  ;;  %v15858_v20 = vsel %vm1938_vm9, %v3681_v31, %v3682_v22  ;;  %v3684_v31 = vor.u32 %v3682_v22, %v20660_v0 }
 0x52c   : > { %20693 = vst [vmem:[#allocation175_spill] sm:$0xff] %v15845_v11  ;;  %10799 = vmatmul.mubr.msk.bf16.gmra.mrb[188].mxu0 %vm1048_vm3, %v15110_v46  ;;  %v10819_v58 = vpop.f32.mrb[83].mxu1  ;;  %20694 = vst [vmem:[#allocation176_spill] sm:$0xff] %v15858_v20 }
 0x52d   : > { %10802 = vmatprep.mubr.msk.bf16.mxu0 %vm13358_vm0, %v20503_v49 }
 0x52e   : > { %11013 = vmatmul.mubr.msk.bf16.gmra.mrb[188].mxu1 %vm1048_vm3, %v15858_v20 }
 0x52f   : > { %v2455_v1 = vpop.f32.mrb[84].mxu0  ;;  %11016 = vmatprep.mubr.msk.bf16.mxu1 %vm13358_vm0, %v20503_v49 }
 0x530   : > { %v15861_v7 = vadd.f32 %v15756_v4, %v2455_v1  ;;  %v10628_v33 = vpop.f32.mrb[85].mxu0 }
 0x531   : > { %v2458_v46 = vpop.f32.mrb[86].mxu0  ;;  %v15870_v58 = vpop.f32.mrb[84].mxu1  ;;  %v3685_v33 = vrot.slane %v20664_v21, 1 }
 0x532   : > { %20695 = vst [vmem:[#allocation177_spill] sm:$0xff] %v15861_v7  ;;  %v15868_v28 = vadd.f32 %v15761_v3, %v2458_v46  ;;  %v10629_v54 = vpop.f32.mrb[87].mxu0  ;;  %v10822_v1 = vpop.f32.mrb[85].mxu1  ;;  %v4023_v46 = vld [vmem:[#allocation13 + $0x18] sm:$0xf] }
 0x533   : > { %v15875_v4 = vpop.f32.mrb[86].mxu1  ;;  %v15881_v3 = vsel %vm1938_vm9, %v3684_v31, %v3685_v33  ;;  %v4028_v21 = vsel %vm720_vm1, %v4023_v46, 0  ;;  %v3687_v31 = vor.u32 %v3685_v33, %v20663_v43  ;;  %v20701_v43 = vld [vmem:[#allocation37_spill] sm:$0xff] }
 0x534   : > { %20696 = vst [vmem:[#allocation178_spill] sm:$0xff] %v15868_v28  ;;  %10803 = vmatmul.mubr.msk.bf16.gmra.mrb[192].mxu0 %vm1048_vm3, %v15113_v17  ;;  %v10823_v50 = vpop.f32.mrb[87].mxu1  ;;  %20697 = vst [vmem:[#allocation179_spill] sm:$0xff] %v15881_v3  ;;  %v20711_v7 = vld [vmem:[#allocation77_spill] sm:$0xff] }
 0x535   : > { %10894 = vmatprep.mubr.msk.bf16.mxu0 %vm13358_vm0, %v20503_v49 }
 0x536   : > { %11017 = vmatmul.mubr.msk.bf16.gmra.mrb[192].mxu1 %vm1048_vm3, %v15881_v3  ;;  %v20704_v3 = vld [vmem:[#allocation117_spill] sm:$0xff] }
 0x537   : > { %v2463_v42 = vpop.f32.mrb[88].mxu0  ;;  %11020 = vmatprep.mubr.msk.bf16.mxu1 %vm13358_vm0, %v20503_v49 }
 0x538   : > { %v15884_v54 = vadd.f32 %v15779_v26, %v2463_v42  ;;  %v10632_v22 = vpop.f32.mrb[89].mxu0  ;;  %v3688_v26 = vrot.slane %v14952_v53, 1 }
 0x539   : > { %v2466_v17 = vpop.f32.mrb[90].mxu0  ;;  %v15891_v50 = vpop.f32.mrb[88].mxu1 }
 0x53a   : > { %20698 = vst [vmem:[#allocation180_spill] sm:$0xff] %v15884_v54  ;;  %v10633_v1 = vpop.f32.mrb[91].mxu0  ;;  %v10826_v0 = vpop.f32.mrb[89].mxu1  ;;  %v15903_v17 = vsel %vm1938_vm9, %v3687_v31, %v3688_v26  ;;  %v3690_v31 = vor.u32 %v3688_v26, %v14949_v62 }
 0x53b   : > { %v15896_v42 = vpop.f32.mrb[90].mxu1  ;;  %20700 = vst [vmem:[#allocation51_spill] sm:$0xff] %v15903_v17 }
 0x53c   : > { %10895 = vmatmul.mubr.msk.bf16.vlgmr.msra.gmra.mrb[196].mxu0 %vm1048_vm3, %v20699_v8  ;;  %v10827_v22 = vpop.f32.mrb[91].mxu1 }
 0x53d   : > { %10898 = vmatprep.mubr.msk.bf16.mxu0 %vm13358_vm0, %v20503_v49  ;;  %11065 = vmatpush3.bf16.msra.mxu0 %v4028_v21 }
 0x53e   : > { %11236 = vmatprep.subr.bf16.mxu0 %v20503_v49  ;;  %11021 = vmatmul.mubr.msk.bf16.gmra.mrb[196].mxu1 %vm1048_vm3, %v15903_v17 }
 0x53f   : > { %v2569_v46 = vpop.f32.mrb[92].mxu0  ;;  %11024 = vmatprep.mubr.msk.bf16.mxu1 %vm13358_vm0, %v20503_v49 }
 0x540   : > { %v15906_v0 = vadd.f32 %v2569_v46, %v15437_v23  ;;  %v10638_v33 = vpop.f32.mrb[93].mxu0  ;;  %v3691_v46 = vrot.slane %v14990_v56, 1 }
 0x541   : > { %v2572_v8 = vpop.f32.mrb[94].mxu0  ;;  %v15915_v22 = vpop.f32.mrb[92].mxu1 }
 0x542   : > { %v15913_v21 = vadd.f32 %v2572_v8, %v15442_v35  ;;  %v10639_v1 = vpop.f32.mrb[95].mxu0  ;;  %v10830_v53 = vpop.f32.mrb[93].mxu1  ;;  %v15926_v35 = vsel %vm1938_vm9, %v3690_v31, %v3691_v46  ;;  %v3693_v31 = vor.u32 %v3691_v46, %v20704_v3 }
 0x543   : > { %v15920_v23 = vpop.f32.mrb[94].mxu1  ;;  %20702 = vst [vmem:[#allocation37_spill] sm:$0xff] %v15926_v35  ;;  %v20703_v1 = vld [vmem:[#allocation50_spill] sm:$0xff] }
 0x544   : > { %10899 = vmatmul.mubr.msk.bf16.gmra.mrb[200].mxu0 %vm1048_vm3, %v20701_v43  ;;  %v10831_v33 = vpop.f32.mrb[95].mxu1 }
 0x545   : > { %10902 = vmatprep.mubr.msk.bf16.mxu0 %vm13358_vm0, %v20503_v49 }
 0x546   : > { %11025 = vmatmul.mubr.msk.bf16.gmra.mrb[200].mxu1 %vm1048_vm3, %v15926_v35 }
 0x547   : > { %v2577_v17 = vpop.f32.mrb[96].mxu0  ;;  %11028 = vmatprep.mubr.msk.bf16.mxu1 %vm13358_vm0, %v20503_v49 }
 0x548   : > { %v15929_v8 = vadd.f32 %v2577_v17, %v15476_v19  ;;  %v10642_v26 = vpop.f32.mrb[97].mxu0  ;;  %v20706_v17 = vld [vmem:[#allocation125_spill] sm:$0xff] }
 0x549   : > { %v2580_v53 = vpop.f32.mrb[98].mxu0  ;;  %v15938_v33 = vpop.f32.mrb[96].mxu1  ;;  %v3694_v26 = vrot.slane %v20706_v17, 1  ;;  %v20709_v17 = vld [vmem:[#allocation153_spill] sm:$0xff] }
 0x54a   : > { %v15936_v56 = vadd.f32 %v2580_v53, %v20703_v1  ;;  %v10643_v62 = vpop.f32.mrb[99].mxu0  ;;  %v10834_v20 = vpop.f32.mrb[97].mxu1 }
 0x54b   : > { %v15943_v19 = vpop.f32.mrb[98].mxu1  ;;  %v15949_v53 = vsel %vm1938_vm9, %v3693_v31, %v3694_v26  ;;  %v20708_v62 = vld [vmem:[#allocation152_spill] sm:$0xff]  ;;  %v3696_v31 = vor.u32 %v3694_v26, %v20710_v10 }
 0x54c   : > { %10903 = vmatmul.mubr.msk.bf16.gmra.mrb[204].mxu0 %vm1048_vm3, %v20705_v59  ;;  %v10835_v35 = vpop.f32.mrb[99].mxu1  ;;  %20707 = vst [vmem:[#allocation50_spill] sm:$0xff] %v15949_v53 }
 0x54d   : > { %10906 = vmatprep.mubr.msk.bf16.mxu0 %vm13358_vm0, %v20503_v49 }
 0x54e   : > { %11029 = vmatmul.mubr.msk.bf16.gmra.mrb[204].mxu1 %vm1048_vm3, %v15949_v53 }
 0x54f   : > { %v2585_v37 = vpop.f32.mrb[100].mxu0  ;;  %11032 = vmatprep.mubr.msk.bf16.mxu1 %vm13358_vm0, %v20503_v49 }
 0x550   : > { %v15952_v1 = vadd.f32 %v2585_v37, %v20708_v62  ;;  %v10646_v46 = vpop.f32.mrb[101].mxu0  ;;  %v20712_v62 = vld [vmem:[#allocation127_spill] sm:$0xff] }
 0x551   : > { %v2588_v20 = vpop.f32.mrb[102].mxu0  ;;  %v15961_v35 = vpop.f32.mrb[100].mxu1  ;;  %v3697_v46 = vrot.slane %v20712_v62, 1  ;;  %v20715_v62 = vld [vmem:[#allocation155_spill] sm:$0xff] }
 0x552   : > { %v15959_v3 = vadd.f32 %v2588_v20, %v20709_v17  ;;  %v10647_v54 = vpop.f32.mrb[103].mxu0  ;;  %v10838_v28 = vpop.f32.mrb[101].mxu1 }
 0x553   : > { %v15966_v37 = vpop.f32.mrb[102].mxu1  ;;  %v15972_v17 = vsel %vm1938_vm9, %v3696_v31, %v3697_v46  ;;  %v20714_v54 = vld [vmem:[#allocation154_spill] sm:$0xff]  ;;  %v3699_v31 = vor.u32 %v3697_v46, %v20716_v9 }
 0x554   : > { %10907 = vmatmul.mubr.msk.bf16.gmra.mrb[208].mxu0 %vm1048_vm3, %v20711_v7  ;;  %v10839_v53 = vpop.f32.mrb[103].mxu1  ;;  %20713 = vst [vmem:[#allocation42_spill] sm:$0xff] %v15972_v17 }
 0x555   : > { %10910 = vmatprep.mubr.msk.bf16.mxu0 %vm13358_vm0, %v20503_v49 }
 0x556   : > { %11033 = vmatmul.mubr.msk.bf16.gmra.mrb[208].mxu1 %vm1048_vm3, %v15972_v17 }
 0x557   : > { %v2593_v30 = vpop.f32.mrb[104].mxu0  ;;  %11036 = vmatprep.mubr.msk.bf16.mxu1 %vm13358_vm0, %v20503_v49 }
 0x558   : > { %v15975_v20 = vadd.f32 %v2593_v30, %v20714_v54  ;;  %v10650_v26 = vpop.f32.mrb[105].mxu0  ;;  %v20718_v54 = vld [vmem:[#allocation134_spill] sm:$0xff] }
 0x559   : > { %v2596_v28 = vpop.f32.mrb[106].mxu0  ;;  %v15984_v53 = vpop.f32.mrb[104].mxu1  ;;  %v3700_v26 = vrot.slane %v20718_v54, 1  ;;  %v20721_v54 = vld [vmem:[#allocation157_spill] sm:$0xff] }
 0x55a   : > { %v15982_v10 = vadd.f32 %v2596_v28, %v20715_v62  ;;  %v10651_v11 = vpop.f32.mrb[107].mxu0  ;;  %v10842_v57 = vpop.f32.mrb[105].mxu1 }
 0x55b   : > { %v15989_v30 = vpop.f32.mrb[106].mxu1  ;;  %v15995_v62 = vsel %vm1938_vm9, %v3699_v31, %v3700_v26  ;;  %v20720_v11 = vld [vmem:[#allocation156_spill] sm:$0xff]  ;;  %v3702_v31 = vor.u32 %v3700_v26, %v20722_v13 }
 0x55c   : > { %10911 = vmatmul.mubr.msk.bf16.gmra.mrb[212].mxu0 %vm1048_vm3, %v20717_v60  ;;  %v10843_v17 = vpop.f32.mrb[107].mxu1  ;;  %20719 = vst [vmem:[#allocation152_spill] sm:$0xff] %v15995_v62 }
 0x55d   : > { %10914 = vmatprep.mubr.msk.bf16.mxu0 %vm13358_vm0, %v20503_v49 }
 0x55e   : > { %11037 = vmatmul.mubr.msk.bf16.gmra.mrb[212].mxu1 %vm1048_vm3, %v15995_v62 }
 0x55f   : > { %v2601_v52 = vpop.f32.mrb[108].mxu0  ;;  %11040 = vmatprep.mubr.msk.bf16.mxu1 %vm13358_vm0, %v20503_v49 }
 0x560   : > { %v15998_v28 = vadd.f32 %v2601_v52, %v20720_v11  ;;  %v10654_v46 = vpop.f32.mrb[109].mxu0  ;;  %v3703_v11 = vrot.slane %v15207_v63, 1 }
 0x561   : > { %v2604_v57 = vpop.f32.mrb[110].mxu0  ;;  %v16007_v17 = vpop.f32.mrb[108].mxu1 }
 0x562   : > { %v16005_v9 = vadd.f32 %v2604_v57, %v20721_v54  ;;  %v10655_v36 = vpop.f32.mrb[111].mxu0  ;;  %v10846_v16 = vpop.f32.mrb[109].mxu1  ;;  %v16018_v54 = vsel %vm1938_vm9, %v3702_v31, %v3703_v11  ;;  %v3705_v31 = vor.u32 %v3703_v11, %v15204_v14 }
 0x563   : > { %v16012_v52 = vpop.f32.mrb[110].mxu1  ;;  %20724 = vst [vmem:[#allocation153_spill] sm:$0xff] %v16018_v54 }
 0x564   : > { %10915 = vmatmul.mubr.msk.bf16.gmra.mrb[216].mxu0 %vm1048_vm3, %v20723_v25  ;;  %v10847_v46 = vpop.f32.mrb[111].mxu1 }
 0x565   : > { %10918 = vmatprep.mubr.msk.bf16.mxu0 %vm13358_vm0, %v20503_v49 }
 0x566   : > { %11041 = vmatmul.mubr.msk.bf16.gmra.mrb[216].mxu1 %vm1048_vm3, %v16018_v54  ;;  %v20731_v54 = vld [vmem:[#allocation61_spill] sm:$0xff] }
 0x567   : > { %v2909_v62 = vpop.f32.mrb[112].mxu0  ;;  %11044 = vmatprep.mubr.msk.bf16.mxu1 %vm13358_vm0, %v20503_v49 }
 0x568   : > { %v3075_v36 = vadd.f32 %v2909_v62, %v15906_v0  ;;  %v10724_v57 = vpop.f32.mrb[113].mxu0  ;;  %v20725_v0 = vld [vmem:[#allocation85_spill] sm:$0xff] }
 0x569   : > { %v2912_v16 = vpop.f32.mrb[114].mxu0  ;;  %v16029_v46 = vpop.f32.mrb[112].mxu1 }
 0x56a   : > { %v3076_v26 = vadd.f32 %v2912_v16, %v15913_v21  ;;  %v10725_v63 = vpop.f32.mrb[115].mxu0  ;;  %v16027_v13 = vadd.f32 %v15801_v24, %v3075_v36  ;;  %v10850_v51 = vpop.f32.mrb[113].mxu1  ;;  %v20726_v24 = vld [vmem:[#allocation129_spill] sm:$0xff] }
 0x56b   : > { %v16037_v57 = vpop.f32.mrb[114].mxu1  ;;  %v20727_v36 = vrot.slane %v20726_v24, 1 }
 0x56c   : > { %10919 = vmatmul.mubr.msk.bf16.gmra.mrb[220].mxu0 %vm1048_vm3, %v20725_v0  ;;  %v16035_v62 = vadd.f32 %v15806_v48, %v3076_v26  ;;  %v10851_v63 = vpop.f32.mrb[115].mxu1 }
 0x56d   : > { %10922 = vmatprep.mubr.msk.bf16.mxu0 %vm13358_vm0, %v20503_v49  ;;  %v16044_v16 = vsel %vm1938_vm9, %v3705_v31, %v20727_v36  ;;  %v20729_v36 = vld [vmem:[#allocation92_spill] sm:$0xff] }
 0x56e   : > { %20728 = vst [vmem:[#allocation77_spill] sm:$0xff] %v16044_v16  ;;  %11045 = vmatmul.mubr.msk.bf16.gmra.mrb[220].mxu1 %vm1048_vm3, %v16044_v16 }
 0x56f   : > { %v2917_v21 = vpop.f32.mrb[116].mxu0  ;;  %11048 = vmatprep.mubr.msk.bf16.mxu1 %vm13358_vm0, %v20503_v49 }
 0x570   : > { %v3077_v51 = vadd.f32 %v2917_v21, %v15929_v8  ;;  %v10728_v11 = vpop.f32.mrb[117].mxu0 }
 0x571   : > { %v2920_v48 = vpop.f32.mrb[118].mxu0  ;;  %v16055_v24 = vpop.f32.mrb[116].mxu1 }
 0x572   : > { %v3078_v26 = vadd.f32 %v2920_v48, %v15936_v56  ;;  %v10729_v14 = vpop.f32.mrb[119].mxu0  ;;  %v16053_v63 = vadd.f32 %v15824_v15, %v3077_v51  ;;  %v10854_v31 = vpop.f32.mrb[117].mxu1  ;;  %v20730_v51 = vld [vmem:[#allocation138_spill] sm:$0xff] }
 0x573   : > { %v16062_v21 = vpop.f32.mrb[118].mxu1 }
 0x574   : > { %10923 = vmatmul.mubr.msk.bf16.gmra.mrb[224].mxu0 %vm1048_vm3, %v20729_v36  ;;  %v16060_v8 = vadd.f32 %v15829_v44, %v3078_v26  ;;  %v10855_v11 = vpop.f32.mrb[119].mxu1 }
 0x575   : > { %10926 = vmatprep.mubr.msk.bf16.mxu0 %vm13358_vm0, %v20503_v49 }
 0x576   : > { %11049 = vmatmul.mubr.msk.bf16.gmra.mrb[224].mxu1 %vm1048_vm3, %v20730_v51 }
 0x577   : > { %v2925_v56 = vpop.f32.mrb[120].mxu0  ;;  %11052 = vmatprep.mubr.msk.bf16.mxu1 %vm13358_vm0, %v20503_v49 }
 0x578   : > { %v3079_v14 = vadd.f32 %v2925_v56, %v15952_v1  ;;  %v10732_v15 = vpop.f32.mrb[121].mxu0 }
 0x579   : > { %v2928_v48 = vpop.f32.mrb[122].mxu0  ;;  %v16075_v16 = vpop.f32.mrb[120].mxu1 }
 0x57a   : > { %v3080_v44 = vadd.f32 %v2928_v48, %v15959_v3  ;;  %v10733_v26 = vpop.f32.mrb[123].mxu0  ;;  %v16073_v31 = vadd.f32 %v15847_v32, %v3079_v14  ;;  %v10858_v11 = vpop.f32.mrb[121].mxu1  ;;  %v20733_v14 = vld [vmem:[#allocation139_spill] sm:$0xff] }
 0x57b   : > { %v16082_v56 = vpop.f32.mrb[122].mxu1 }
 0x57c   : > { %10927 = vmatmul.mubr.msk.bf16.gmra.mrb[228].mxu0 %vm1048_vm3, %v20731_v54  ;;  %v16080_v1 = vadd.f32 %v15852_v18, %v3080_v44  ;;  %v10859_v15 = vpop.f32.mrb[123].mxu1 }
 0x57d   : > { %10930 = vmatprep.mubr.msk.bf16.mxu0 %vm13358_vm0, %v20503_v49 }
 0x57e   : > { %20732 = vst [vmem:[#allocation154_spill] sm:$0xff] %v16080_v1  ;;  %11053 = vmatmul.mubr.msk.bf16.gmra.mrb[228].mxu1 %vm1048_vm3, %v20733_v14  ;;  %v20735_v1 = vld [vmem:[#allocation63_spill] sm:$0xff] }
 0x57f   : > { %v2933_v3 = vpop.f32.mrb[124].mxu0  ;;  %11056 = vmatprep.mubr.msk.bf16.mxu1 %vm13358_vm0, %v20503_v49 }
 0x580   : > { %v3081_v48 = vadd.f32 %v2933_v3, %v15975_v20  ;;  %v10736_v32 = vpop.f32.mrb[125].mxu0 }
 0x581   : > { %v2936_v26 = vpop.f32.mrb[126].mxu0  ;;  %v16095_v51 = vpop.f32.mrb[124].mxu1 }
 0x582   : > { %v3082_v18 = vadd.f32 %v2936_v26, %v15982_v10  ;;  %v10737_v44 = vpop.f32.mrb[127].mxu0  ;;  %v16093_v11 = vadd.f32 %v15870_v58, %v3081_v48  ;;  %v10862_v15 = vpop.f32.mrb[125].mxu1  ;;  %v20737_v48 = vld [vmem:[#allocation150_spill] sm:$0xff] }
 0x583   : > { %v16102_v3 = vpop.f32.mrb[126].mxu1 }
 0x584   : > { %20734 = vst [vmem:[#allocation155_spill] sm:$0xff] %v16093_v11  ;;  %10931 = vmatmul.mubr.msk.bf16.gmra.mrb[232].mxu0 %vm1048_vm3, %v20735_v1  ;;  %v16100_v20 = vadd.f32 %v15875_v4, %v3082_v18  ;;  %v10863_v32 = vpop.f32.mrb[127].mxu1 }
 0x585   : > { %10934 = vmatprep.mubr.msk.bf16.mxu0 %vm13358_vm0, %v20503_v49 }
 0x586   : > { %20736 = vst [vmem:[#allocation79_spill] sm:$0xff] %v16100_v20  ;;  %11057 = vmatmul.mubr.msk.bf16.gmra.mrb[232].mxu1 %vm1048_vm3, %v20737_v48  ;;  %v20739_v20 = vld [vmem:[#allocation106_spill] sm:$0xff]  ;;  %v20743_v48 = vld [vmem:[#allocation159_spill] sm:$0xff] }
 0x587   : > { %v2941_v10 = vpop.f32.mrb[128].mxu0  ;;  %11060 = vmatprep.mubr.msk.bf16.mxu1 %vm13358_vm0, %v20503_v49 }
 0x588   : > { %v3083_v26 = vadd.f32 %v2941_v10, %v15998_v28  ;;  %v10740_v58 = vpop.f32.mrb[129].mxu0 }
 0x589   : > { %v2944_v44 = vpop.f32.mrb[130].mxu0  ;;  %v16115_v14 = vpop.f32.mrb[128].mxu1 }
 0x58a   : > { %v3084_v4 = vadd.f32 %v2944_v44, %v16005_v9  ;;  %v10741_v18 = vpop.f32.mrb[131].mxu0  ;;  %v16113_v15 = vadd.f32 %v15891_v50, %v3083_v26  ;;  %v10866_v32 = vpop.f32.mrb[129].mxu1  ;;  %v20741_v44 = vld [vmem:[#allocation158_spill] sm:$0xff]  ;;  %v20742_v26 = vld [vmem:[#allocation137_spill] sm:$0xff] }
 0x58b   : > { %v16122_v10 = vpop.f32.mrb[130].mxu1 }
 0x58c   : > { %20738 = vst [vmem:[#allocation156_spill] sm:$0xff] %v16113_v15  ;;  %10935 = vmatmul.mubr.msk.bf16.gmra.mrb[236].mxu0 %vm1048_vm3, %v20739_v20  ;;  %v16120_v28 = vadd.f32 %v15896_v42, %v3084_v4  ;;  %v10867_v58 = vpop.f32.mrb[131].mxu1 }
 0x58d   : > { %10938 = vmatprep.mubr.msk.bf16.mxu0 %vm13358_vm0, %v20503_v49  ;;  %v4271_v58 = vrot.slane %v20701_v43, 1 }
 0x58e   : > { %20740 = vst [vmem:[#allocation157_spill] sm:$0xff] %v16120_v28  ;;  %11061 = vmatmul.mubr.msk.bf16.gmra.mrb[236].mxu1 %vm1048_vm3, %v20742_v26 }
 0x58f   : > { %v2949_v9 = vpop.f32.mrb[132].mxu0  ;;  %11152 = vmatprep.mubr.msk.bf16.mxu1 %vm13358_vm0, %v20503_v49 }
 0x590   : > { %v3085_v18 = vadd.f32 %v2949_v9, %v20741_v44  ;;  %v10744_v50 = vpop.f32.mrb[133].mxu0  ;;  %v4272_v9 = vrot.slane %v20705_v59, 1 }
 0x591   : > { %v2952_v32 = vpop.f32.mrb[134].mxu0  ;;  %v16135_v15 = vpop.f32.mrb[132].mxu1  ;;  %v20745_v50 = vld [vmem:[#allocation110_spill] sm:$0xff] }
 0x592   : > { %v3086_v42 = vadd.f32 %v2952_v32, %v20743_v48  ;;  %v10745_v4 = vpop.f32.mrb[135].mxu0  ;;  %v16133_v28 = vadd.f32 %v15915_v22, %v3085_v18  ;;  %v10870_v44 = vpop.f32.mrb[133].mxu1  ;;  %v4273_v18 = vsel %vm2135_vm4, %v4271_v58, %v4272_v9 }
 0x593   : > { %v16144_v11 = vpop.f32.mrb[134].mxu1 }
 0x594   : > { %20744 = vst [vmem:[#allocation87_spill] sm:$0xff] %v16133_v28  ;;  %10939 = vmatmul.mubr.msk.bf16.gmra.mrb[240].mxu0 %vm1048_vm3, %v20745_v50  ;;  %v16142_v26 = vadd.f32 %v15920_v23, %v3086_v42  ;;  %v10871_v22 = vpop.f32.mrb[135].mxu1  ;;  %v20747_v23 = vld [vmem:[#allocation160_spill] sm:$0xff]  ;;  %v20748_v28 = vld [vmem:[#allocation114_spill] sm:$0xff] }
 0x595   : > { %10942 = vmatprep.mubr.msk.bf16.mxu0 %vm13358_vm0, %v20503_v49  ;;  %v4274_v22 = vrot.slane %v20711_v7, 1 }
 0x596   : > { %20746 = vst [vmem:[#allocation85_spill] sm:$0xff] %v16142_v26  ;;  %11153 = vmatmul.mubr.msk.bf16.vlgmr.msra.gmra.mrb[240].mxu1 %vm1048_vm3, %v4273_v18 }
 0x597   : > { %v2957_v48 = vpop.f32.mrb[136].mxu0  ;;  %11156 = vmatprep.mubr.msk.bf16.mxu1 %vm13358_vm0, %v20503_v49 }
 0x598   : > { %v3087_v43 = vadd.f32 %v2957_v48, %v15587_v5  ;;  %v10748_v32 = vpop.f32.mrb[137].mxu0 }
 0x599   : > { %v2960_v59 = vpop.f32.mrb[138].mxu0  ;;  %v16157_v26 = vpop.f32.mrb[136].mxu1 }
 0x59a   : > { %v3088_v42 = vadd.f32 %v2960_v59, %v20747_v23  ;;  %v10749_v4 = vpop.f32.mrb[139].mxu0  ;;  %v16155_v44 = vadd.f32 %v15938_v33, %v3087_v43  ;;  %v10874_v58 = vpop.f32.mrb[137].mxu1  ;;  %v4275_v33 = vsel %vm2135_vm4, %v4272_v9, %v4274_v22 }
 0x59b   : > { %v16165_v48 = vpop.f32.mrb[138].mxu1  ;;  %v4276_v58 = vrot.slane %v20717_v60, 1 }
 0x59c   : > { %10943 = vmatmul.mubr.msk.bf16.gmra.mrb[244].mxu0 %vm1048_vm3, %v20748_v28  ;;  %v16163_v5 = vadd.f32 %v15943_v19, %v3088_v42  ;;  %v10875_v18 = vpop.f32.mrb[139].mxu1 }
 0x59d   : > { %10946 = vmatprep.mubr.msk.bf16.mxu0 %vm13358_vm0, %v20503_v49  ;;  %v20749_v18 = vld [vmem:[#allocation119_spill] sm:$0xff] }
 0x59e   : > { %11157 = vmatmul.mubr.msk.bf16.gmra.mrb[244].mxu1 %vm1048_vm3, %v4275_v33 }
 0x59f   : > { %v2965_v32 = vpop.f32.mrb[140].mxu0  ;;  %11160 = vmatprep.mubr.msk.bf16.mxu1 %vm13358_vm0, %v20503_v49 }
 0x5a0   : > { %v3089_v43 = vadd.f32 %v2965_v32, %v15609_v45  ;;  %v10752_v59 = vpop.f32.mrb[141].mxu0 }
 0x5a1   : > { %v2968_v7 = vpop.f32.mrb[142].mxu0  ;;  %v16178_v4 = vpop.f32.mrb[140].mxu1 }
 0x5a2   : > { %v3090_v19 = vadd.f32 %v2968_v7, %v15616_v6  ;;  %v10753_v23 = vpop.f32.mrb[143].mxu0  ;;  %v16176_v42 = vadd.f32 %v15961_v35, %v3089_v43  ;;  %v10878_v9 = vpop.f32.mrb[141].mxu1  ;;  %v4277_v35 = vsel %vm2135_vm4, %v4274_v22, %v4276_v58  ;;  %v20751_v43 = vld [vmem:[#allocation130_spill] sm:$0xff] }
 0x5a3   : > { %v16186_v32 = vpop.f32.mrb[142].mxu1 }
 0x5a4   : > { %10947 = vmatmul.mubr.msk.bf16.gmra.mrb[248].mxu0 %vm1048_vm3, %v20749_v18  ;;  %v16184_v45 = vadd.f32 %v15966_v37, %v3090_v19  ;;  %v10879_v6 = vpop.f32.mrb[143].mxu1 }
 0x5a5   : > { %10950 = vmatprep.mubr.msk.bf16.mxu0 %vm13358_vm0, %v20503_v49  ;;  %v4278_v6 = vrot.slane %v20723_v25, 1 }
 0x5a6   : > { %20750 = vst [vmem:[#allocation129_spill] sm:$0xff] %v16184_v45  ;;  %11161 = vmatmul.mubr.msk.bf16.gmra.mrb[248].mxu1 %vm1048_vm3, %v4277_v35  ;;  %v20752_v45 = vld [vmem:[#allocation123_spill] sm:$0xff] }
 0x5a7   : > { %v2973_v33 = vpop.f32.mrb[144].mxu0  ;;  %11164 = vmatprep.mubr.msk.bf16.mxu1 %vm13358_vm0, %v20503_v49 }
 0x5a8   : > { %v3091_v59 = vadd.f32 %v2973_v33, %v20751_v43  ;;  %v10756_v7 = vpop.f32.mrb[145].mxu0 }
 0x5a9   : > { %v2976_v60 = vpop.f32.mrb[146].mxu0  ;;  %v16199_v9 = vpop.f32.mrb[144].mxu1 }
 0x5aa   : > { %v3092_v37 = vadd.f32 %v2976_v60, %v15634_v34  ;;  %v10757_v19 = vpop.f32.mrb[147].mxu0  ;;  %v16197_v23 = vadd.f32 %v15984_v53, %v3091_v59  ;;  %v10882_v22 = vpop.f32.mrb[145].mxu1  ;;  %v4279_v53 = vsel %vm2135_vm4, %v4276_v58, %v4278_v6  ;;  %v20754_v59 = vld [vmem:[#allocation161_spill] sm:$0xff] }
 0x5ab   : > { %v16207_v35 = vpop.f32.mrb[146].mxu1  ;;  %v4280_v22 = vrot.slane %v20725_v0, 1 }
 0x5ac   : > { %10951 = vmatmul.mubr.msk.bf16.gmra.mrb[252].mxu0 %vm1048_vm3, %v20752_v45  ;;  %v16205_v33 = vadd.f32 %v15989_v30, %v3092_v37  ;;  %v10883_v34 = vpop.f32.mrb[147].mxu1 }
 0x5ad   : > { %10954 = vmatprep.mubr.msk.bf16.mxu0 %vm13358_vm0, %v20503_v49 }
 0x5ae   : > { %20753 = vst [vmem:[#allocation92_spill] sm:$0xff] %v16205_v33  ;;  %11165 = vmatmul.mubr.msk.bf16.gmra.mrb[252].mxu1 %vm1048_vm3, %v4279_v53  ;;  %v20755_v33 = vld [vmem:[#allocation132_spill] sm:$0xff] }
 0x5af   : > { %v2981_v43 = vpop.f32.mrb[148].mxu0  ;;  %11168 = vmatprep.mubr.msk.bf16.mxu1 %vm13358_vm0, %v20503_v49 }
 0x5b0   : > { %v3093_v7 = vadd.f32 %v2981_v43, %v20754_v59  ;;  %v10760_v60 = vpop.f32.mrb[149].mxu0 }
 0x5b1   : > { %v2984_v25 = vpop.f32.mrb[150].mxu0  ;;  %v16221_v34 = vpop.f32.mrb[148].mxu1 }
 0x5b2   : > { %v3094_v30 = vadd.f32 %v2984_v25, %v15652_v41  ;;  %v10761_v37 = vpop.f32.mrb[151].mxu0  ;;  %v16218_v19 = vadd.f32 %v16007_v17, %v3093_v7  ;;  %v10886_v58 = vpop.f32.mrb[149].mxu1  ;;  %v4281_v17 = vsel %vm2135_vm4, %v4278_v6, %v4280_v22  ;;  %v4282_v6 = vrot.slane %v20729_v36, 1 }
 0x5b3   : > { %v16228_v53 = vpop.f32.mrb[150].mxu1 }
 0x5b4   : > { %10955 = vmatmul.mubr.msk.bf16.gmra.mrb[0].mxu0 %vm1048_vm3, %v20755_v33  ;;  %v16226_v43 = vadd.f32 %v16012_v52, %v3094_v30  ;;  %v10887_v41 = vpop.f32.mrb[151].mxu1 }
 0x5b5   : > { %10958 = vmatprep.mubr.msk.bf16.mxu0 %vm13358_vm0, %v20503_v49  ;;  %v20756_v41 = vld [vmem:[#allocation136_spill] sm:$0xff] }
 0x5b6   : > { %11169 = vmatmul.mubr.msk.bf16.gmra.mrb[0].mxu1 %vm1048_vm3, %v4281_v17 }
 0x5b7   : > { %v2989_v59 = vpop.f32.mrb[152].mxu0  ;;  %11172 = vmatprep.mubr.msk.bf16.mxu1 %vm13358_vm0, %v20503_v49 }
 0x5b8   : > { %v3095_v0 = vadd.f32 %v2989_v59, %v15663_v39  ;;  %v10764_v7 = vpop.f32.mrb[153].mxu0 }
 0x5b9   : > { %v2992_v60 = vpop.f32.mrb[154].mxu0  ;;  %v16241_v37 = vpop.f32.mrb[152].mxu1 }
 0x5ba   : > { %v3096_v52 = vadd.f32 %v2992_v60, %v15670_v55  ;;  %v10765_v25 = vpop.f32.mrb[155].mxu0  ;;  %v16239_v30 = vadd.f32 %v16029_v46, %v3095_v0  ;;  %v10890_v58 = vpop.f32.mrb[153].mxu1  ;;  %v4283_v46 = vsel %vm2135_vm4, %v4280_v22, %v4282_v6  ;;  %v20757_v22 = vld [vmem:[#allocation121_spill] sm:$0xff] }
 0x5bb   : > { %v3324_v17 = vpop.f32.mrb[154].mxu1  ;;  %v4284_v25 = vrot.slane %v20731_v54, 1 }
 0x5bc   : > { %10959 = vmatmul.mubr.msk.bf16.gmra.mrb[4].mxu0 %vm1048_vm3, %v20756_v41  ;;  %v16247_v39 = vadd.f32 %v16037_v57, %v3096_v52  ;;  %v10891_v55 = vpop.f32.mrb[155].mxu1 }
 0x5bd   : > { %10962 = vmatprep.mubr.msk.bf16.mxu0 %vm13358_vm0, %v20503_v49 }
 0x5be   : > { %11173 = vmatmul.mubr.msk.bf16.gmra.mrb[4].mxu1 %vm1048_vm3, %v4283_v46 }
 0x5bf   : > { %v2997_v59 = vpop.f32.mrb[156].mxu0  ;;  %11176 = vmatprep.mubr.msk.bf16.mxu1 %vm13358_vm0, %v20503_v49 }
 0x5c0   : > { %v3097_v0 = vadd.f32 %v2997_v59, %v15681_v40  ;;  %v10768_v7 = vpop.f32.mrb[157].mxu0 }
 0x5c1   : > { %v3000_v36 = vpop.f32.mrb[158].mxu0  ;;  %v16261_v58 = vpop.f32.mrb[156].mxu1 }
 0x5c2   : > { %v3098_v57 = vadd.f32 %v3000_v36, %v15688_v27  ;;  %v10769_v60 = vpop.f32.mrb[159].mxu0  ;;  %v16258_v52 = vadd.f32 %v16055_v24, %v3097_v0  ;;  %v10982_v40 = vpop.f32.mrb[157].mxu1  ;;  %v4285_v24 = vsel %vm2135_vm4, %v4282_v6, %v4284_v25  ;;  %v20758_v6 = vld [vmem:[#allocation122_spill] sm:$0xff] }
 0x5c3   : > { %v16268_v55 = vpop.f32.mrb[158].mxu1 }
 0x5c4   : > { %10963 = vmatmul.mubr.msk.bf16.gmra.mrb[8].mxu0 %vm1048_vm3, %v20757_v22  ;;  %v16266_v17 = vadd.f32 %v16062_v21, %v3098_v57  ;;  %v10983_v27 = vpop.f32.mrb[159].mxu1  ;;  %v4286_v57 = vrot.slane %v20735_v1, 1 }
 0x5c5   : > { %10966 = vmatprep.mubr.msk.bf16.mxu0 %vm13358_vm0, %v20503_v49 }
 0x5c6   : > { %11177 = vmatmul.mubr.msk.bf16.gmra.mrb[8].mxu1 %vm1048_vm3, %v4285_v24 }
 0x5c7   : > { %v3005_v59 = vpop.f32.mrb[160].mxu0  ;;  %11180 = vmatprep.mubr.msk.bf16.mxu1 %vm13358_vm0, %v20503_v49 }
 0x5c8   : > { %v3099_v54 = vadd.f32 %v3005_v59, %v15699_v2  ;;  %v10772_v46 = vpop.f32.mrb[161].mxu0 }
 0x5c9   : > { %v3008_v0 = vpop.f32.mrb[162].mxu0  ;;  %v16282_v60 = vpop.f32.mrb[160].mxu1 }
 0x5ca   : > { %v3100_v21 = vadd.f32 %v3008_v0, %v15706_v47  ;;  %v10773_v7 = vpop.f32.mrb[163].mxu0  ;;  %v16279_v36 = vadd.f32 %v16075_v16, %v3099_v54  ;;  %v10986_v2 = vpop.f32.mrb[161].mxu1  ;;  %v4287_v16 = vsel %vm2135_vm4, %v4284_v25, %v4286_v57  ;;  %v20759_v25 = vld [vmem:[#allocation73_spill] sm:$0xff] }
 0x5cb   : > { %v16289_v27 = vpop.f32.mrb[162].mxu1 }
 0x5cc   : > { %10967 = vmatmul.mubr.msk.bf16.gmra.mrb[12].mxu0 %vm1048_vm3, %v20758_v6  ;;  %v16287_v40 = vadd.f32 %v16082_v56, %v3100_v21  ;;  %v10987_v47 = vpop.f32.mrb[163].mxu1  ;;  %v4288_v21 = vrot.slane %v20739_v20, 1 }
 0x5cd   : > { %10970 = vmatprep.mubr.msk.bf16.mxu0 %vm13358_vm0, %v20503_v49 }
 0x5ce   : > { %11181 = vmatmul.mubr.msk.bf16.gmra.mrb[12].mxu1 %vm1048_vm3, %v4287_v16 }
 0x5cf   : > { %v3013_v59 = vpop.f32.mrb[164].mxu0  ;;  %11184 = vmatprep.mubr.msk.bf16.mxu1 %vm13358_vm0, %v20503_v49 }
 0x5d0   : > { %v3101_v1 = vadd.f32 %v3013_v59, %v15724_v61  ;;  %v10776_v24 = vpop.f32.mrb[165].mxu0 }
 0x5d1   : > { %v3016_v54 = vpop.f32.mrb[166].mxu0  ;;  %v16303_v7 = vpop.f32.mrb[164].mxu1 }
 0x5d2   : > { %v3102_v56 = vadd.f32 %v3016_v54, %v15731_v38  ;;  %v10777_v46 = vpop.f32.mrb[167].mxu0  ;;  %v16300_v0 = vadd.f32 %v16095_v51, %v3101_v1  ;;  %v10990_v61 = vpop.f32.mrb[165].mxu1  ;;  %v4289_v51 = vsel %vm2135_vm4, %v4286_v57, %v4288_v21  ;;  %v20760_v57 = vld [vmem:[#allocation74_spill] sm:$0xff] }
 0x5d3   : > { %v16310_v47 = vpop.f32.mrb[166].mxu1 }
 0x5d4   : > { %10971 = vmatmul.mubr.msk.bf16.gmra.mrb[16].mxu0 %vm1048_vm3, %v20759_v25  ;;  %v16308_v2 = vadd.f32 %v16102_v3, %v3102_v56  ;;  %v10991_v38 = vpop.f32.mrb[167].mxu1  ;;  %v4290_v56 = vrot.slane %v20745_v50, 1  ;;  %v20761_v50 = vld [vmem:[#allocation165_spill] sm:$0xff] }
 0x5d5   : > { %10974 = vmatprep.mubr.msk.bf16.mxu0 %vm13358_vm0, %v20503_v49 }
 0x5d6   : > { %11185 = vmatmul.mubr.msk.bf16.gmra.mrb[16].mxu1 %vm1048_vm3, %v4289_v51  ;;  %v4680_v51 = vld [vmem:[#allocation13 + $0x20] sm:$0xf] }
 0x5d7   : > { %v3021_v59 = vpop.f32.mrb[168].mxu0  ;;  %11188 = vmatprep.mubr.msk.bf16.mxu1 %vm13358_vm0, %v20503_v49 }
 0x5d8   : > { %v3103_v20 = vadd.f32 %v3021_v59, %v15747_v29  ;;  %v10780_v16 = vpop.f32.mrb[169].mxu0 }
 0x5d9   : > { %v3024_v1 = vpop.f32.mrb[170].mxu0  ;;  %v16324_v46 = vpop.f32.mrb[168].mxu1 }
 0x5da   : > { %v3104_v3 = vadd.f32 %v3024_v1, %v15754_v12  ;;  %v10781_v24 = vpop.f32.mrb[171].mxu0  ;;  %v16321_v54 = vadd.f32 %v16115_v14, %v3103_v20  ;;  %v10994_v29 = vpop.f32.mrb[169].mxu1  ;;  %v4291_v14 = vsel %vm2135_vm4, %v4288_v21, %v4290_v56  ;;  %v4292_v21 = vrot.slane %v20748_v28, 1 }
 0x5db   : > { %v16331_v38 = vpop.f32.mrb[170].mxu1 }
 0x5dc   : > { %10975 = vmatmul.mubr.msk.bf16.gmra.mrb[20].mxu0 %vm1048_vm3, %v20760_v57  ;;  %v16329_v61 = vadd.f32 %v16122_v10, %v3104_v3  ;;  %v10995_v12 = vpop.f32.mrb[171].mxu1  ;;  %v20762_v10 = vld [vmem:[#allocation166_spill] sm:$0xff]  ;;  %v4736_v57 = vsel %vm720_vm1, %v4680_v51, 0  ;;  %v4293_v28 = vsel %vm2135_vm4, %v4290_v56, %v4292_v21 }
 0x5dd   : > { %11066 = vmatprep.mubr.msk.bf16.mxu0 %vm13358_vm0, %v20503_v49 }
 0x5de   : > { %11189 = vmatmul.mubr.msk.bf16.gmra.mrb[20].mxu1 %vm1048_vm3, %v4291_v14 }
 0x5df   : > { %v3029_v59 = vpop.f32.mrb[172].mxu0  ;;  %11192 = vmatprep.mubr.msk.bf16.mxu1 %vm13358_vm0, %v20503_v49 }
 0x5e0   : > { %v3105_v20 = vadd.f32 %v3029_v59, %v20761_v50  ;;  %v10784_v16 = vpop.f32.mrb[173].mxu0  ;;  %v20763_v50 = vld [vmem:[#allocation131_spill] sm:$0xff] }
 0x5e1   : > { %v3032_v1 = vpop.f32.mrb[174].mxu0  ;;  %v16346_v12 = vpop.f32.mrb[172].mxu1 }
 0x5e2   : > { %v3106_v3 = vadd.f32 %v3032_v1, %v20762_v10  ;;  %v10785_v24 = vpop.f32.mrb[175].mxu0  ;;  %v16343_v29 = vadd.f32 %v16135_v15, %v3105_v20  ;;  %v10998_v59 = vpop.f32.mrb[173].mxu1  ;;  %v20765_v20 = vld [vmem:[#allocation168_spill] sm:$0xff] }
 0x5e3   : > { %v16353_v16 = vpop.f32.mrb[174].mxu1 }
 0x5e4   : > { %11067 = vmatmul.mubr.msk.bf16.vlgmr.msra.gmra.mrb[24].mxu0 %vm1048_vm3, %v20763_v50  ;;  %v16351_v14 = vadd.f32 %v16144_v11, %v3106_v3  ;;  %v10999_v51 = vpop.f32.mrb[175].mxu1  ;;  %v20766_v11 = vld [vmem:[#allocation169_spill] sm:$0xff]  ;;  %v4294_v50 = vrot.slane %v20749_v18, 1 }
 0x5e5   : > { %11070 = vmatprep.mubr.msk.bf16.mxu0 %vm13358_vm0, %v20503_v49  ;;  %11237 = vmatpush3.bf16.msra.mxu0 %v4736_v57 }
 0x5e6   : > { %20764 = vst [vmem:[#allocation61_spill] sm:$0xff] %v16351_v14  ;;  %11460 = vmatprep.subr.bf16.mxu0 %v20503_v49  ;;  %11193 = vmatmul.mubr.msk.bf16.gmra.mrb[24].mxu1 %vm1048_vm3, %v4293_v28  ;;  %v20767_v14 = vld [vmem:[#allocation162_spill] sm:$0xff] }
 0x5e7   : > { %v3037_v15 = vpop.f32.mrb[176].mxu0  ;;  %11196 = vmatprep.mubr.msk.bf16.mxu1 %vm13358_vm0, %v20503_v49 }
 0x5e8   : > { %v3107_v1 = vadd.f32 %v3037_v15, %v20765_v20  ;;  %v10788_v10 = vpop.f32.mrb[177].mxu0 }
 0x5e9   : > { %v3040_v24 = vpop.f32.mrb[178].mxu0  ;;  %v16368_v51 = vpop.f32.mrb[176].mxu1 }
 0x5ea   : > { %v3108_v3 = vadd.f32 %v3040_v24, %v20766_v11  ;;  %v10789_v59 = vpop.f32.mrb[179].mxu0  ;;  %v16365_v57 = vadd.f32 %v16157_v26, %v3107_v1  ;;  %v11002_v56 = vpop.f32.mrb[177].mxu1  ;;  %v4295_v26 = vsel %vm2135_vm4, %v4292_v21, %v4294_v50  ;;  %v20769_v1 = vld [vmem:[#allocation171_spill] sm:$0xff] }
 0x5eb   : > { %v16375_v28 = vpop.f32.mrb[178].mxu1  ;;  %v4296_v56 = vrot.slane %v20752_v45, 1 }
 0x5ec   : > { %11071 = vmatmul.mubr.msk.bf16.gmra.mrb[28].mxu0 %vm1048_vm3, %v20767_v14  ;;  %v16373_v15 = vadd.f32 %v16165_v48, %v3108_v3  ;;  %v11003_v20 = vpop.f32.mrb[179].mxu1  ;;  %v20770_v48 = vld [vmem:[#allocation172_spill] sm:$0xff] }
 0x5ed   : > { %11074 = vmatprep.mubr.msk.bf16.mxu0 %vm13358_vm0, %v20503_v49 }
 0x5ee   : > { %20768 = vst [vmem:[#allocation63_spill] sm:$0xff] %v16373_v15  ;;  %11197 = vmatmul.mubr.msk.bf16.gmra.mrb[28].mxu1 %vm1048_vm3, %v4295_v26  ;;  %v20771_v15 = vld [vmem:[#allocation163_spill] sm:$0xff] }
 0x5ef   : > { %v3045_v10 = vpop.f32.mrb[180].mxu0  ;;  %11200 = vmatprep.mubr.msk.bf16.mxu1 %vm13358_vm0, %v20503_v49 }
 0x5f0   : > { %v3109_v18 = vadd.f32 %v3045_v10, %v20769_v1  ;;  %v10792_v24 = vpop.f32.mrb[181].mxu0 }
 0x5f1   : > { %v3048_v11 = vpop.f32.mrb[182].mxu0  ;;  %v16389_v20 = vpop.f32.mrb[180].mxu1 }
 0x5f2   : > { %v3110_v14 = vadd.f32 %v3048_v11, %v20770_v48  ;;  %v10793_v3 = vpop.f32.mrb[183].mxu0  ;;  %v16386_v59 = vadd.f32 %v16178_v4, %v3109_v18  ;;  %v11006_v21 = vpop.f32.mrb[181].mxu1  ;;  %v4297_v4 = vsel %vm2135_vm4, %v4294_v50, %v4296_v56  ;;  %v20773_v18 = vld [vmem:[#allocation174_spill] sm:$0xff] }
 0x5f3   : > { %v16396_v26 = vpop.f32.mrb[182].mxu1  ;;  %v4298_v21 = vrot.slane %v20755_v33, 1 }
 0x5f4   : > { %11075 = vmatmul.mubr.msk.bf16.gmra.mrb[32].mxu0 %vm1048_vm3, %v20771_v15  ;;  %v16394_v10 = vadd.f32 %v16186_v32, %v3110_v14  ;;  %v11007_v1 = vpop.f32.mrb[183].mxu1  ;;  %v20774_v32 = vld [vmem:[#allocation175_spill] sm:$0xff] }
 0x5f5   : > { %11078 = vmatprep.mubr.msk.bf16.mxu0 %vm13358_vm0, %v20503_v49 }
 0x5f6   : > { %20772 = vst [vmem:[#allocation106_spill] sm:$0xff] %v16394_v10  ;;  %11201 = vmatmul.mubr.msk.bf16.gmra.mrb[32].mxu1 %vm1048_vm3, %v4297_v4  ;;  %v20775_v10 = vld [vmem:[#allocation164_spill] sm:$0xff] }
 0x5f7   : > { %v3053_v24 = vpop.f32.mrb[184].mxu0  ;;  %11204 = vmatprep.mubr.msk.bf16.mxu1 %vm13358_vm0, %v20503_v49 }
 0x5f8   : > { %v3111_v45 = vadd.f32 %v3053_v24, %v20773_v18  ;;  %v10796_v11 = vpop.f32.mrb[185].mxu0 }
 0x5f9   : > { %v3056_v48 = vpop.f32.mrb[186].mxu0  ;;  %v16410_v1 = vpop.f32.mrb[184].mxu1 }
 0x5fa   : > { %v3112_v15 = vadd.f32 %v3056_v48, %v20774_v32  ;;  %v10797_v14 = vpop.f32.mrb[187].mxu0  ;;  %v16407_v3 = vadd.f32 %v16199_v9, %v3111_v45  ;;  %v11010_v50 = vpop.f32.mrb[185].mxu1  ;;  %v4299_v9 = vsel %vm2135_vm4, %v4296_v56, %v4298_v21  ;;  %v20777_v45 = vld [vmem:[#allocation177_spill] sm:$0xff] }
 0x5fb   : > { %v16417_v4 = vpop.f32.mrb[186].mxu1  ;;  %v4300_v50 = vrot.slane %v20756_v41, 1 }
 0x5fc   : > { %11079 = vmatmul.mubr.msk.bf16.gmra.mrb[36].mxu0 %vm1048_vm3, %v20775_v10  ;;  %v16415_v24 = vadd.f32 %v16207_v35, %v3112_v15  ;;  %v11011_v18 = vpop.f32.mrb[187].mxu1  ;;  %v20778_v35 = vld [vmem:[#allocation178_spill] sm:$0xff] }
 0x5fd   : > { %11082 = vmatprep.mubr.msk.bf16.mxu0 %vm13358_vm0, %v20503_v49 }
 0x5fe   : > { %20776 = vst [vmem:[#allocation158_spill] sm:$0xff] %v16415_v24  ;;  %11205 = vmatmul.mubr.msk.bf16.gmra.mrb[36].mxu1 %vm1048_vm3, %v4299_v9  ;;  %v20779_v24 = vld [vmem:[#allocation167_spill] sm:$0xff] }
 0x5ff   : > { %v3061_v11 = vpop.f32.mrb[188].mxu0  ;;  %11208 = vmatprep.mubr.msk.bf16.mxu1 %vm13358_vm0, %v20503_v49 }
 0x600   : > { %v3113_v33 = vadd.f32 %v3061_v11, %v20777_v45  ;;  %v10800_v48 = vpop.f32.mrb[189].mxu0 }
 0x601   : > { %v3064_v32 = vpop.f32.mrb[190].mxu0  ;;  %v16431_v18 = vpop.f32.mrb[188].mxu1 }
 0x602   : > { %v3114_v10 = vadd.f32 %v3064_v32, %v20778_v35  ;;  %v10801_v15 = vpop.f32.mrb[191].mxu0  ;;  %v16428_v14 = vadd.f32 %v16221_v34, %v3113_v33  ;;  %v11014_v56 = vpop.f32.mrb[189].mxu1  ;;  %v4301_v34 = vsel %vm2135_vm4, %v4298_v21, %v4300_v50  ;;  %v20780_v33 = vld [vmem:[#allocation180_spill] sm:$0xff] }
 0x603   : > { %v16438_v9 = vpop.f32.mrb[190].mxu1 }
 0x604   : > { %11083 = vmatmul.mubr.msk.bf16.gmra.mrb[40].mxu0 %vm1048_vm3, %v20779_v24  ;;  %v16436_v11 = vadd.f32 %v16228_v53, %v3114_v10  ;;  %v11015_v45 = vpop.f32.mrb[191].mxu1  ;;  %v4302_v10 = vrot.slane %v20757_v22, 1 }
 0x605   : > { %11086 = vmatprep.mubr.msk.bf16.mxu0 %vm13358_vm0, %v20503_v49  ;;  %v20781_v45 = vld [vmem:[#allocation170_spill] sm:$0xff] }
 0x606   : > { %11209 = vmatmul.mubr.msk.bf16.gmra.mrb[40].mxu1 %vm1048_vm3, %v4301_v34 }
 0x607   : > { %v3069_v48 = vpop.f32.mrb[192].mxu0  ;;  %11212 = vmatprep.mubr.msk.bf16.mxu1 %vm13358_vm0, %v20503_v49 }
 0x608   : > { %v3115_v41 = vadd.f32 %v3069_v48, %v20780_v33  ;;  %v10804_v32 = vpop.f32.mrb[193].mxu0  ;;  %v4303_v33 = vsel %vm2135_vm4, %v4300_v50, %v4302_v10 }
 0x609   : > { %v3072_v35 = vpop.f32.mrb[194].mxu0  ;;  %v16451_v15 = vpop.f32.mrb[192].mxu1 }
 0x60a   : > { %v10805_v53 = vpop.f32.mrb[195].mxu0  ;;  %v16448_v24 = vadd.f32 %v16241_v37, %v3115_v41  ;;  %v11018_v56 = vpop.f32.mrb[193].mxu1 }
 0x60b   : > { %v16455_v21 = vpop.f32.mrb[194].mxu1  ;;  %v4304_v56 = vrot.slane %v20758_v6, 1 }
 0x60c   : > { %11087 = vmatmul.mubr.msk.bf16.gmra.mrb[44].mxu0 %vm1048_vm3, %v20781_v45  ;;  %v11019_v48 = vpop.f32.mrb[195].mxu1 }
 0x60d   : > { %11090 = vmatprep.mubr.msk.bf16.mxu0 %vm13358_vm0, %v20503_v49  ;;  %v20782_v48 = vld [vmem:[#allocation173_spill] sm:$0xff] }
 0x60e   : > { %11213 = vmatmul.mubr.msk.bf16.gmra.mrb[44].mxu1 %vm1048_vm3, %v4303_v33 }
 0x60f   : > { %v3449_v34 = vpop.f32.mrb[196].mxu0  ;;  %11216 = vmatprep.mubr.msk.bf16.mxu1 %vm13358_vm0, %v20503_v49 }
 0x610   : > { %v3615_v37 = vadd.f32 %v3449_v34, %v16027_v13  ;;  %v10896_v41 = vpop.f32.mrb[197].mxu0 }
 0x611   : > { %v3452_v22 = vpop.f32.mrb[198].mxu0  ;;  %v16469_v45 = vpop.f32.mrb[196].mxu1 }
 0x612   : > { %v3616_v32 = vadd.f32 %v3452_v22, %v16035_v62  ;;  %v10897_v35 = vpop.f32.mrb[199].mxu0  ;;  %v16466_v53 = vadd.f32 %v16261_v58, %v3615_v37  ;;  %v11022_v50 = vpop.f32.mrb[197].mxu1  ;;  %v4305_v58 = vsel %vm2135_vm4, %v4302_v10, %v4304_v56 }
 0x613   : > { %v16476_v34 = vpop.f32.mrb[198].mxu1 }
 0x614   : > { %11091 = vmatmul.mubr.msk.bf16.gmra.mrb[48].mxu0 %vm1048_vm3, %v20782_v48  ;;  %v16474_v13 = vadd.f32 %v16268_v55, %v3616_v32  ;;  %v11023_v62 = vpop.f32.mrb[199].mxu1  ;;  %v20783_v48 = vld [vmem:[#allocation176_spill] sm:$0xff] }
 0x615   : > { %11094 = vmatprep.mubr.msk.bf16.mxu0 %vm13358_vm0, %v20503_v49 }
 0x616   : > { %11217 = vmatmul.mubr.msk.bf16.gmra.mrb[48].mxu1 %vm1048_vm3, %v4305_v58 }
 0x617   : > { %v3457_v33 = vpop.f32.mrb[200].mxu0  ;;  %11220 = vmatprep.mubr.msk.bf16.mxu1 %vm13358_vm0, %v20503_v49 }
 0x618   : > { %v3617_v6 = vadd.f32 %v3457_v33, %v16053_v63  ;;  %v10900_v37 = vpop.f32.mrb[201].mxu0 }
 0x619   : > { %v3460_v41 = vpop.f32.mrb[202].mxu0  ;;  %v16489_v35 = vpop.f32.mrb[200].mxu1 }
 0x61a   : > { %v3618_v55 = vadd.f32 %v3460_v41, %v16060_v8  ;;  %v10901_v22 = vpop.f32.mrb[203].mxu0  ;;  %v16487_v32 = vadd.f32 %v16282_v60, %v3617_v6  ;;  %v11026_v50 = vpop.f32.mrb[201].mxu1  ;;  %v20784_v8 = vrot.slane %v20759_v25, 1 }
 0x61b   : > { %v16496_v10 = vpop.f32.mrb[202].mxu1 }
 0x61c   : > { %11095 = vmatmul.mubr.msk.bf16.gmra.mrb[52].mxu0 %vm1048_vm3, %v20783_v48  ;;  %v16494_v63 = vadd.f32 %v16289_v27, %v3618_v55  ;;  %v11027_v62 = vpop.f32.mrb[203].mxu1  ;;  %v4306_v60 = vsel %vm2135_vm4, %v4304_v56, %v20784_v8  ;;  %v20785_v27 = vld [vmem:[#allocation154_spill] sm:$0xff]  ;;  %v20786_v56 = vld [vmem:[#allocation179_spill] sm:$0xff] }
 0x61d   : > { %11098 = vmatprep.mubr.msk.bf16.mxu0 %vm13358_vm0, %v20503_v49 }
 0x61e   : > { %11221 = vmatmul.mubr.msk.bf16.gmra.mrb[52].mxu1 %vm1048_vm3, %v4306_v60  ;;  %v20787_v60 = vld [vmem:[#allocation155_spill] sm:$0xff] }
 0x61f   : > { %v3465_v33 = vpop.f32.mrb[204].mxu0  ;;  %11224 = vmatprep.mubr.msk.bf16.mxu1 %vm13358_vm0, %v20503_v49 }
 0x620   : > { %v3619_v58 = vadd.f32 %v3465_v33, %v16073_v31  ;;  %v10904_v6 = vpop.f32.mrb[205].mxu0 }
 0x621   : > { %v3468_v37 = vpop.f32.mrb[206].mxu0  ;;  %v16511_v50 = vpop.f32.mrb[204].mxu1 }
 0x622   : > { %v3620_v41 = vadd.f32 %v3468_v37, %v20785_v27  ;;  %v10905_v55 = vpop.f32.mrb[207].mxu0  ;;  %v16509_v22 = vadd.f32 %v16303_v7, %v3619_v58  ;;  %v11030_v25 = vpop.f32.mrb[205].mxu1  ;;  %v20788_v58 = vld [vmem:[#allocation78_spill] sm:$0xff]  ;;  %v20789_v37 = vld [vmem:[#allocation79_spill] sm:$0xff] }
 0x623   : > { %v16518_v48 = vpop.f32.mrb[206].mxu1 }
 0x624   : > { %11099 = vmatmul.mubr.msk.bf16.gmra.mrb[56].mxu0 %vm1048_vm3, %v20786_v56  ;;  %v16516_v31 = vadd.f32 %v16310_v47, %v3620_v41  ;;  %v11031_v62 = vpop.f32.mrb[207].mxu1  ;;  %v20791_v56 = vld [vmem:[#allocation51_spill] sm:$0xff] }
 0x625   : > { %11102 = vmatprep.mubr.msk.bf16.mxu0 %vm13358_vm0, %v20503_v49 }
 0x626   : > { %11225 = vmatmul.mubr.msk.bf16.gmra.mrb[56].mxu1 %vm1048_vm3, %v20788_v58  ;;  %v20793_v58 = vld [vmem:[#allocation156_spill] sm:$0xff] }
 0x627   : > { %v3473_v8 = vpop.f32.mrb[208].mxu0  ;;  %11228 = vmatprep.mubr.msk.bf16.mxu1 %vm13358_vm0, %v20503_v49 }
 0x628   : > { %v3621_v33 = vadd.f32 %v3473_v8, %v20787_v60  ;;  %v10908_v7 = vpop.f32.mrb[209].mxu0 }
 0x629   : > { %v3476_v6 = vpop.f32.mrb[210].mxu0  ;;  %v16531_v55 = vpop.f32.mrb[208].mxu1 }
 0x62a   : > { %v3622_v47 = vadd.f32 %v3476_v6, %v20789_v37  ;;  %v10909_v27 = vpop.f32.mrb[211].mxu0  ;;  %v16529_v41 = vadd.f32 %v16324_v46, %v3621_v33  ;;  %v11034_v25 = vpop.f32.mrb[209].mxu1  ;;  %v20794_v33 = vld [vmem:[#allocation56_spill] sm:$0xff] }
 0x62b   : > { %v16538_v8 = vpop.f32.mrb[210].mxu1  ;;  %v20795_v27 = vld [vmem:[#allocation157_spill] sm:$0xff] }
 0x62c   : > { %20790 = vst [vmem:[#allocation137_spill] sm:$0xff] %v16529_v41  ;;  %11103 = vmatmul.mubr.msk.bf16.gmra.mrb[60].mxu0 %vm1048_vm3, %v20791_v56  ;;  %v16536_v62 = vadd.f32 %v16331_v38, %v3622_v47  ;;  %v11035_v60 = vpop.f32.mrb[211].mxu1 }
 0x62d   : > { %11106 = vmatprep.mubr.msk.bf16.mxu0 %vm13358_vm0, %v20503_v49 }
 0x62e   : > { %20792 = vst [vmem:[#allocation159_spill] sm:$0xff] %v16536_v62  ;;  %11229 = vmatmul.mubr.msk.bf16.gmra.mrb[60].mxu1 %vm1048_vm3, %v20794_v33  ;;  %v20797_v62 = vld [vmem:[#allocation37_spill] sm:$0xff] }
 0x62f   : > { %v3481_v7 = vpop.f32.mrb[212].mxu0  ;;  %11232 = vmatprep.mubr.msk.bf16.mxu1 %vm13358_vm0, %v20503_v49 }
 0x630   : > { %v3623_v6 = vadd.f32 %v3481_v7, %v20793_v58  ;;  %v10912_v46 = vpop.f32.mrb[213].mxu0 }
 0x631   : > { %v3484_v37 = vpop.f32.mrb[214].mxu0  ;;  %v16551_v56 = vpop.f32.mrb[212].mxu1 }
 0x632   : > { %v3624_v38 = vadd.f32 %v3484_v37, %v20795_v27  ;;  %v10913_v47 = vpop.f32.mrb[215].mxu0  ;;  %v16549_v25 = vadd.f32 %v16346_v12, %v3623_v6  ;;  %v11038_v60 = vpop.f32.mrb[213].mxu1  ;;  %v20799_v37 = vld [vmem:[#allocation87_spill] sm:$0xff]  ;;  %v20800_v6 = vld [vmem:[#allocation96_spill] sm:$0xff] }
 0x633   : > { %v16558_v58 = vpop.f32.mrb[214].mxu1  ;;  %v20801_v60 = vld [vmem:[#allocation40_spill] sm:$0xff] }
 0x634   : > { %20796 = vst [vmem:[#allocation110_spill] sm:$0xff] %v16549_v25  ;;  %11107 = vmatmul.mubr.msk.bf16.gmra.mrb[64].mxu0 %vm1048_vm3, %v20797_v62  ;;  %v16556_v7 = vadd.f32 %v16353_v16, %v3624_v38  ;;  %v11039_v46 = vpop.f32.mrb[215].mxu1  ;;  %v20802_v62 = vld [vmem:[#allocation85_spill] sm:$0xff] }
 0x635   : > { %11110 = vmatprep.mubr.msk.bf16.mxu0 %vm13358_vm0, %v20503_v49  ;;  %v20803_v46 = vld [vmem:[#allocation50_spill] sm:$0xff] }
 0x636   : > { %20798 = vst [vmem:[#allocation160_spill] sm:$0xff] %v16556_v7  ;;  %11233 = vmatmul.mubr.msk.bf16.gmra.mrb[64].mxu1 %vm1048_vm3, %v20800_v6 }
 0x637   : > { %v3489_v33 = vpop.f32.mrb[216].mxu0  ;;  %5096 = vmatprep.mubr.f32.mxu1 %v20801_v60 }
 0x638   : > { %v3625_v27 = vadd.f32 %v3489_v33, %v20799_v37  ;;  %v10916_v12 = vpop.f32.mrb[217].mxu0 }
 0x639   : > { %v3492_v47 = vpop.f32.mrb[218].mxu0  ;;  %v16570_v7 = vpop.f32.mrb[216].mxu1 }
 0x63a   : > { %v3626_v25 = vadd.f32 %v3492_v47, %v20802_v62  ;;  %v10917_v16 = vpop.f32.mrb[219].mxu0  ;;  %v16568_v38 = vadd.f32 %v16368_v51, %v3625_v27  ;;  %v11042_v41 = vpop.f32.mrb[217].mxu1 }
 0x63b   : > { %v16577_v37 = vpop.f32.mrb[218].mxu1 }
 0x63c   : > { %11111 = vmatmul.mubr.msk.bf16.gmra.mrb[68].mxu0 %vm1048_vm3, %v20803_v46  ;;  %v16575_v33 = vadd.f32 %v16375_v28, %v3626_v25  ;;  %v11043_v12 = vpop.f32.mrb[219].mxu1  ;;  %v20804_v25 = vld [vmem:[#allocation42_spill] sm:$0xff] }
 0x63d   : > { %11114 = vmatprep.mubr.msk.bf16.mxu0 %vm13358_vm0, %v20503_v49 }
 0x63f   : > { %v3497_v6 = vpop.f32.mrb[220].mxu0 }
 0x640   : > { %v3627_v47 = vadd.f32 %v3497_v6, %v16155_v44  ;;  %v10920_v51 = vpop.f32.mrb[221].mxu0 }
 0x641   : > { %v3500_v27 = vpop.f32.mrb[222].mxu0  ;;  %v16586_v46 = vpop.f32.mrb[220].mxu1  ;;  %v20806_v51 = vld [vmem:[#allocation129_spill] sm:$0xff] }
 0x642   : > { %v3628_v62 = vadd.f32 %v3500_v27, %v16163_v5  ;;  %v10921_v41 = vpop.f32.mrb[223].mxu0  ;;  %v16584_v16 = vadd.f32 %v16389_v20, %v3627_v47  ;;  %v11046_v28 = vpop.f32.mrb[221].mxu1 }
 0x643   : > { %v16593_v12 = vpop.f32.mrb[222].mxu1 }
 0x644   : > { %11115 = vmatmul.mubr.msk.bf16.gmra.mrb[72].mxu0 %vm1048_vm3, %v20804_v25  ;;  %v16591_v60 = vadd.f32 %v16396_v26, %v3628_v62  ;;  %v11047_v44 = vpop.f32.mrb[223].mxu1  ;;  %v20807_v62 = vld [vmem:[#allocation152_spill] sm:$0xff] }
 0x645   : > { %11118 = vmatprep.mubr.msk.bf16.mxu0 %vm13358_vm0, %v20503_v49 }
 0x646   : > { %20805 = vst [vmem:[#allocation114_spill] sm:$0xff] %v16591_v60 }
 0x647   : > { %v3505_v5 = vpop.f32.mrb[224].mxu0 }
 0x648   : > { %v3629_v6 = vadd.f32 %v3505_v5, %v16176_v42  ;;  %v10924_v20 = vpop.f32.mrb[225].mxu0 }
 0x649   : > { %v3508_v47 = vpop.f32.mrb[226].mxu0  ;;  %v16602_v25 = vpop.f32.mrb[224].mxu1 }
 0x64a   : > { %v3630_v27 = vadd.f32 %v3508_v47, %v20806_v51  ;;  %v10925_v41 = vpop.f32.mrb[227].mxu0  ;;  %v16600_v28 = vadd.f32 %v16410_v1, %v3629_v6  ;;  %v11050_v26 = vpop.f32.mrb[225].mxu1  ;;  %v20809_v47 = vld [vmem:[#allocation92_spill] sm:$0xff] }
 0x64b   : > { %v16609_v44 = vpop.f32.mrb[226].mxu1 }
 0x64c   : > { %11119 = vmatmul.mubr.msk.bf16.gmra.mrb[76].mxu0 %vm1048_vm3, %v20807_v62  ;;  %v16607_v60 = vadd.f32 %v16417_v4, %v3630_v27  ;;  %v11051_v42 = vpop.f32.mrb[227].mxu1  ;;  %v20810_v27 = vld [vmem:[#allocation153_spill] sm:$0xff] }
 0x64d   : > { %11122 = vmatprep.mubr.msk.bf16.mxu0 %vm13358_vm0, %v20503_v49 }
 0x64e   : > { %20808 = vst [vmem:[#allocation119_spill] sm:$0xff] %v16607_v60 }
 0x64f   : > { %v3513_v5 = vpop.f32.mrb[228].mxu0 }
 0x650   : > { %v3631_v20 = vadd.f32 %v3513_v5, %v16197_v23  ;;  %v10928_v1 = vpop.f32.mrb[229].mxu0 }
 0x651   : > { %v3516_v6 = vpop.f32.mrb[230].mxu0  ;;  %v16618_v62 = vpop.f32.mrb[228].mxu1 }
 0x652   : > { %v3632_v51 = vadd.f32 %v3516_v6, %v20809_v47  ;;  %v10929_v41 = vpop.f32.mrb[231].mxu0  ;;  %v16616_v26 = vadd.f32 %v16431_v18, %v3631_v20  ;;  %v11054_v4 = vpop.f32.mrb[229].mxu1 }
 0x653   : > { %v16625_v42 = vpop.f32.mrb[230].mxu1 }
 0x654   : > { %11123 = vmatmul.mubr.msk.bf16.gmra.mrb[80].mxu0 %vm1048_vm3, %v20810_v27  ;;  %v16623_v60 = vadd.f32 %v16438_v9, %v3632_v51  ;;  %v11055_v23 = vpop.f32.mrb[231].mxu1  ;;  %v20811_v51 = vld [vmem:[#allocation77_spill] sm:$0xff] }
 0x655   : > { %11126 = vmatprep.mubr.msk.bf16.mxu0 %vm13358_vm0, %v20503_v49 }
 0x657   : > { %v3521_v5 = vpop.f32.mrb[232].mxu0 }
 0x658   : > { %v3633_v1 = vadd.f32 %v3521_v5, %v16218_v19  ;;  %v10932_v18 = vpop.f32.mrb[233].mxu0 }
 0x659   : > { %v3524_v20 = vpop.f32.mrb[234].mxu0  ;;  %v16634_v4 = vpop.f32.mrb[232].mxu1 }
 0x65a   : > { %v3634_v6 = vadd.f32 %v3524_v20, %v16226_v43  ;;  %v10933_v47 = vpop.f32.mrb[235].mxu0  ;;  %v16632_v41 = vadd.f32 %v16451_v15, %v3633_v1  ;;  %v11058_v9 = vpop.f32.mrb[233].mxu1 }
 0x65b   : > { %v16641_v23 = vpop.f32.mrb[234].mxu1 }
 0x65c   : > { %11127 = vmatmul.mubr.msk.bf16.gmra.mrb[84].mxu0 %vm1048_vm3, %v20811_v51  ;;  %v16639_v27 = vadd.f32 %v16455_v21, %v3634_v6  ;;  %v11059_v19 = vpop.f32.mrb[235].mxu1  ;;  %v20812_v6 = vld [vmem:[#allocation138_spill] sm:$0xff] }
 0x65d   : > { %11130 = vmatprep.mubr.msk.bf16.mxu0 %vm13358_vm0, %v20503_v49 }
 0x65f   : > { %v3529_v43 = vpop.f32.mrb[236].mxu0 }
 0x660   : > { %v3635_v5 = vadd.f32 %v3529_v43, %v16239_v30  ;;  %v10936_v15 = vpop.f32.mrb[237].mxu0 }
 0x661   : > { %v3532_v1 = vpop.f32.mrb[238].mxu0  ;;  %v16650_v9 = vpop.f32.mrb[236].mxu1 }
 0x662   : > { %v3636_v18 = vadd.f32 %v3532_v1, %v16247_v39  ;;  %v10937_v20 = vpop.f32.mrb[239].mxu0  ;;  %v16648_v47 = vadd.f32 %v16469_v45, %v3635_v5  ;;  %v11062_v21 = vpop.f32.mrb[237].mxu1 }
 0x663   : > { %v3977_v19 = vpop.f32.mrb[238].mxu1 }
 0x664   : > { %11131 = vmatmul.mubr.msk.bf16.gmra.mrb[88].mxu0 %vm1048_vm3, %v20812_v6  ;;  %v16655_v51 = vadd.f32 %v16476_v34, %v3636_v18  ;;  %v11063_v30 = vpop.f32.mrb[239].mxu1  ;;  %v20813_v34 = vld [vmem:[#allocation139_spill] sm:$0xff] }
 0x665   : > { %11134 = vmatprep.mubr.msk.bf16.mxu0 %vm13358_vm0, %v20503_v49 }
 0x667   : > { %v3537_v43 = vpop.f32.mrb[240].mxu0 }
 0x668   : > { %v3637_v39 = vadd.f32 %v3537_v43, %v16258_v52  ;;  %v10940_v15 = vpop.f32.mrb[241].mxu0 }
 0x669   : > { %v3540_v45 = vpop.f32.mrb[242].mxu0  ;;  %v16664_v21 = vpop.f32.mrb[240].mxu1 }
 0x66a   : > { %v3638_v5 = vadd.f32 %v3540_v45, %v16266_v17  ;;  %v10941_v1 = vpop.f32.mrb[243].mxu0  ;;  %v16662_v20 = vadd.f32 %v16489_v35, %v3637_v39  ;;  %v11154_v18 = vpop.f32.mrb[241].mxu1 }
 0x66b   : > { %v16671_v19 = vpop.f32.mrb[242].mxu1 }
 0x66c   : > { %11135 = vmatmul.mubr.msk.bf16.gmra.mrb[92].mxu0 %vm1048_vm3, %v20813_v34  ;;  %v16669_v6 = vadd.f32 %v16496_v10, %v3638_v5  ;;  %v11155_v52 = vpop.f32.mrb[243].mxu1  ;;  %v20814_v10 = vld [vmem:[#allocation150_spill] sm:$0xff] }
 0x66d   : > { %11138 = vmatprep.mubr.msk.bf16.mxu0 %vm13358_vm0, %v20503_v49 }
 0x66f   : > { %v3545_v17 = vpop.f32.mrb[244].mxu0 }
 0x670   : > { %v3639_v30 = vadd.f32 %v3545_v17, %v16279_v36  ;;  %v10944_v35 = vpop.f32.mrb[245].mxu0 }
 0x671   : > { %v3548_v43 = vpop.f32.mrb[246].mxu0  ;;  %v16680_v1 = vpop.f32.mrb[244].mxu1 }
 0x672   : > { %v3640_v39 = vadd.f32 %v3548_v43, %v16287_v40  ;;  %v10945_v15 = vpop.f32.mrb[247].mxu0  ;;  %v16678_v45 = vadd.f32 %v16511_v50, %v3639_v30  ;;  %v11158_v5 = vpop.f32.mrb[245].mxu1 }
 0x673   : > { %v16687_v18 = vpop.f32.mrb[246].mxu1 }
 0x674   : > { %11139 = vmatmul.mubr.msk.bf16.gmra.mrb[96].mxu0 %vm1048_vm3, %v20814_v10  ;;  %v16685_v34 = vadd.f32 %v16518_v48, %v3640_v39  ;;  %v11159_v36 = vpop.f32.mrb[247].mxu1  ;;  %v20816_v48 = vld [vmem:[#allocation151_spill] sm:$0xff] }
 0x675   : > { %11142 = vmatprep.mubr.msk.bf16.mxu0 %vm13358_vm0, %v20503_v49 }
 0x677   : > { %v3553_v40 = vpop.f32.mrb[248].mxu0 }
 0x678   : > { %v3641_v52 = vadd.f32 %v3553_v40, %v16300_v0  ;;  %v10948_v50 = vpop.f32.mrb[249].mxu0 }
 0x679   : > { %v3556_v17 = vpop.f32.mrb[250].mxu0  ;;  %v16696_v15 = vpop.f32.mrb[248].mxu1 }
 0x67a   : > { %v3642_v30 = vadd.f32 %v3556_v17, %v16308_v2  ;;  %v10949_v35 = vpop.f32.mrb[251].mxu0  ;;  %v16694_v43 = vadd.f32 %v16531_v55, %v3641_v52  ;;  %v11162_v39 = vpop.f32.mrb[249].mxu1 }
 0x67b   : > { %v16703_v5 = vpop.f32.mrb[250].mxu1 }
 0x67c   : > { %20815 = vst [vmem:[#allocation130_spill] sm:$0xff] %v16694_v43  ;;  %11143 = vmatmul.mubr.msk.bf16.gmra.mrb[100].mxu0 %vm1048_vm3, %v20816_v48  ;;  %v16701_v10 = vadd.f32 %v16538_v8, %v3642_v30  ;;  %v11163_v0 = vpop.f32.mrb[251].mxu1  ;;  %v20819_v8 = vld [vmem:[#allocation120_spill] sm:$0xff] }
 0x67d   : > { %11146 = vmatprep.mubr.msk.bf16.mxu0 %vm13358_vm0, %v20503_v49 }
 0x67e   : > { %20817 = vst [vmem:[#allocation123_spill] sm:$0xff] %v16701_v10  ;;  %v20825_v10 = vld [vmem:[#allocation143_spill] sm:$0xff] }
 0x67f   : > { %v3561_v2 = vpop.f32.mrb[252].mxu0 }
 0x680   : > { %v3643_v36 = vadd.f32 %v3561_v2, %v16321_v54  ;;  %v10952_v55 = vpop.f32.mrb[253].mxu0 }
 0x681   : > { %v3564_v40 = vpop.f32.mrb[254].mxu0  ;;  %v16712_v35 = vpop.f32.mrb[252].mxu1 }
 0x682   : > { %v3644_v52 = vadd.f32 %v3564_v40, %v16329_v61  ;;  %v10953_v50 = vpop.f32.mrb[255].mxu0  ;;  %v16710_v17 = vadd.f32 %v16551_v56, %v3643_v36  ;;  %v11166_v30 = vpop.f32.mrb[253].mxu1  ;;  %v20821_v36 = vld [vmem:[#allocation61_spill] sm:$0xff] }
 0x683   : > { %v16719_v39 = vpop.f32.mrb[254].mxu1  ;;  %v20824_v30 = vld [vmem:[#allocation82_spill] sm:$0xff] }
 0x684   : > { %20818 = vst [vmem:[#allocation161_spill] sm:$0xff] %v16710_v17  ;;  %11147 = vmatmul.mubr.msk.bf16.gmra.mrb[104].mxu0 %vm1048_vm3, %v20819_v8  ;;  %v16717_v48 = vadd.f32 %v16558_v58, %v3644_v52  ;;  %v11167_v54 = vpop.f32.mrb[255].mxu1  ;;  %v20823_v58 = vld [vmem:[#allocation81_spill] sm:$0xff] }
 0x685   : > { %11238 = vmatprep.mubr.msk.bf16.mxu0 %vm13358_vm0, %v20503_v49  ;;  %v4614_v52 = vrot.slane %v20823_v58, 1 }
 0x686   : > { %20820 = vst [vmem:[#allocation132_spill] sm:$0xff] %v16717_v48  ;;  %v4615_v48 = vrot.slane %v20824_v30, 2 }
 0x687   : > { %v3569_v61 = vpop.f32.mrb[0].mxu0 }
 0x688   : > { %v3645_v0 = vadd.f32 %v3569_v61, %v16343_v29  ;;  %v10956_v56 = vpop.f32.mrb[1].mxu0 }
 0x689   : > { %v3572_v2 = vpop.f32.mrb[2].mxu0  ;;  %v16728_v8 = vpop.f32.mrb[0].mxu1 }
 0x68a   : > { %v3646_v55 = vadd.f32 %v3572_v2, %v20821_v36  ;;  %v10957_v40 = vpop.f32.mrb[3].mxu0  ;;  %v16726_v50 = vadd.f32 %v16570_v7, %v3645_v0  ;;  %v11170_v17 = vpop.f32.mrb[1].mxu1  ;;  %v4616_v0 = vor.u32 %v4615_v48, %v4614_v52 }
 0x68b   : > { %v16737_v54 = vpop.f32.mrb[2].mxu1  ;;  %v20827_v40 = vld [vmem:[#allocation63_spill] sm:$0xff] }
 0x68c   : > { %20822 = vst [vmem:[#allocation136_spill] sm:$0xff] %v16726_v50  ;;  %11239 = vmatmul.mubr.msk.bf16.vlgmr.msra.gmra.mrb[108].mxu0 %vm1048_vm3, %v20825_v10  ;;  %v16735_v29 = vadd.f32 %v16577_v37, %v3646_v55  ;;  %v11171_v7 = vpop.f32.mrb[3].mxu1  ;;  %v20829_v55 = vld [vmem:[#allocation140_spill] sm:$0xff] }
 0x68d   : > { %11242 = vmatprep.mubr.msk.bf16.mxu0 %vm13358_vm0, %v20503_v49  ;;  %v4617_v30 = vsel %vm2735_vm7, %v20829_v55, %v4616_v0  ;;  %v20831_v7 = vld [vmem:[#allocation86_spill] sm:$0xff] }
 0x68e   : > { %20826 = vst [vmem:[#allocation121_spill] sm:$0xff] %v16735_v29  ;;  %v20830_v29 = vld [vmem:[#allocation84_spill] sm:$0xff]  ;;  %v4619_v43 = vrot.slane %v20831_v7, 2  ;;  %v20834_v7 = vld [vmem:[#allocation54_spill] sm:$0xff] }
 0x68f   : > { %v3577_v61 = vpop.f32.mrb[4].mxu0  ;;  %v4618_v50 = vrot.slane %v20830_v29, 1 }
 0x690   : > { %v3647_v56 = vadd.f32 %v3577_v61, %v16365_v57  ;;  %v10960_v2 = vpop.f32.mrb[5].mxu0 }
 0x691   : > { %v3580_v36 = vpop.f32.mrb[6].mxu0  ;;  %v16746_v37 = vpop.f32.mrb[4].mxu1 }
 0x692   : > { %v3648_v17 = vadd.f32 %v3580_v36, %v20827_v40  ;;  %v10961_v58 = vpop.f32.mrb[7].mxu0  ;;  %v16744_v10 = vadd.f32 %v16586_v46, %v3647_v56  ;;  %v11174_v48 = vpop.f32.mrb[5].mxu1  ;;  %v4620_v56 = vor.u32 %v4619_v43, %v4618_v50  ;;  %v20833_v40 = vld [vmem:[#allocation106_spill] sm:$0xff] }
 0x693   : > { %v16756_v52 = vpop.f32.mrb[6].mxu1  ;;  %v4622_v48 = vrot.slane %v20834_v7, 1  ;;  %v20839_v7 = vld [vmem:[#allocation89_spill] sm:$0xff] }
 0x694   : > { %20828 = vst [vmem:[#allocation122_spill] sm:$0xff] %v16744_v10  ;;  %11243 = vmatmul.mubr.msk.bf16.gmra.mrb[112].mxu0 %vm1048_vm3, %v4617_v30  ;;  %v16754_v57 = vadd.f32 %v16593_v12, %v3648_v17  ;;  %v11175_v46 = vpop.f32.mrb[7].mxu1  ;;  %v4621_v17 = vsel %vm2735_vm7, %v4616_v0, %v4620_v56 }
 0x695   : > { %11246 = vmatprep.mubr.msk.bf16.mxu0 %vm13358_vm0, %v20503_v49 }
 0x696   : > { %20832 = vst [vmem:[#allocation73_spill] sm:$0xff] %v16754_v57  ;;  %v20835_v57 = vld [vmem:[#allocation91_spill] sm:$0xff] }
 0x697   : > { %v3585_v61 = vpop.f32.mrb[8].mxu0  ;;  %v4623_v46 = vrot.slane %v20835_v57, 2 }
 0x698   : > { %v3649_v2 = vadd.f32 %v3585_v61, %v16386_v59  ;;  %v10964_v36 = vpop.f32.mrb[9].mxu0 }
 0x699   : > { %v3588_v29 = vpop.f32.mrb[10].mxu0  ;;  %v16765_v12 = vpop.f32.mrb[8].mxu1  ;;  %v4624_v61 = vor.u32 %v4623_v46, %v4622_v48 }
 0x69a   : > { %v3650_v58 = vadd.f32 %v3588_v29, %v20833_v40  ;;  %v10965_v55 = vpop.f32.mrb[11].mxu0  ;;  %v16763_v30 = vadd.f32 %v16602_v25, %v3649_v2  ;;  %v11178_v10 = vpop.f32.mrb[9].mxu1  ;;  %v20837_v29 = vld [vmem:[#allocation158_spill] sm:$0xff] }
 0x69b   : > { %v16774_v43 = vpop.f32.mrb[10].mxu1  ;;  %v20838_v55 = vld [vmem:[#allocation88_spill] sm:$0xff] }
 0x69c   : > { %11247 = vmatmul.mubr.msk.bf16.gmra.mrb[116].mxu0 %vm1048_vm3, %v4621_v17  ;;  %v16772_v59 = vadd.f32 %v16609_v44, %v3650_v58  ;;  %v11179_v25 = vpop.f32.mrb[11].mxu1  ;;  %v4625_v58 = vsel %vm2735_vm7, %v4620_v56, %v4624_v61  ;;  %v4626_v17 = vrot.slane %v20838_v55, 1  ;;  %v20841_v55 = vld [vmem:[#allocation94_spill] sm:$0xff] }
 0x69d   : > { %11250 = vmatprep.mubr.msk.bf16.mxu0 %vm13358_vm0, %v20503_v49  ;;  %v4627_v25 = vrot.slane %v20839_v7, 2  ;;  %v4631_v7 = vrot.slane %v20841_v55, 2 }
 0x69e   : > { %20836 = vst [vmem:[#allocation74_spill] sm:$0xff] %v16772_v59 }
 0x69f   : > { %v3593_v50 = vpop.f32.mrb[12].mxu0 }
 0x6a0   : > { %v3651_v0 = vadd.f32 %v3593_v50, %v16407_v3  ;;  %v10968_v2 = vpop.f32.mrb[13].mxu0  ;;  %v4628_v50 = vor.u32 %v4627_v25, %v4626_v17 }
 0x6a1   : > { %v3596_v36 = vpop.f32.mrb[14].mxu0  ;;  %v16783_v44 = vpop.f32.mrb[12].mxu1 }
 0x6a2   : > { %v3652_v57 = vadd.f32 %v3596_v36, %v20837_v29  ;;  %v10969_v10 = vpop.f32.mrb[15].mxu0  ;;  %v16781_v40 = vadd.f32 %v16618_v62, %v3651_v0  ;;  %v11182_v59 = vpop.f32.mrb[13].mxu1 }
 0x6a3   : > { %v16792_v48 = vpop.f32.mrb[14].mxu1  ;;  %v20840_v10 = vld [vmem:[#allocation93_spill] sm:$0xff] }
 0x6a4   : > { %11251 = vmatmul.mubr.msk.bf16.gmra.mrb[120].mxu0 %vm1048_vm3, %v4625_v58  ;;  %v16790_v3 = vadd.f32 %v16625_v42, %v3652_v57  ;;  %v11183_v62 = vpop.f32.mrb[15].mxu1  ;;  %v4629_v57 = vsel %vm2735_vm7, %v4624_v61, %v4628_v50  ;;  %v4630_v58 = vrot.slane %v20840_v10, 1  ;;  %v20844_v10 = vld [vmem:[#allocation100_spill] sm:$0xff] }
 0x6a5   : > { %11254 = vmatprep.mubr.msk.bf16.mxu0 %vm13358_vm0, %v20503_v49  ;;  %v4635_v55 = vrot.slane %v20844_v10, 2 }
 0x6a6   : > { %v4632_v25 = vor.u32 %v4631_v7, %v4630_v58 }
 0x6a7   : > { %v3601_v46 = vpop.f32.mrb[16].mxu0 }
 0x6a8   : > { %v3653_v56 = vadd.f32 %v3601_v46, %v16428_v14  ;;  %v10972_v0 = vpop.f32.mrb[17].mxu0 }
 0x6a9   : > { %v3604_v2 = vpop.f32.mrb[18].mxu0  ;;  %v16801_v42 = vpop.f32.mrb[16].mxu1 }
 0x6aa   : > { %v3654_v36 = vadd.f32 %v3604_v2, %v16436_v11  ;;  %v10973_v59 = vpop.f32.mrb[19].mxu0  ;;  %v16799_v29 = vadd.f32 %v16634_v4, %v3653_v56  ;;  %v11186_v62 = vpop.f32.mrb[17].mxu1 }
 0x6ab   : > { %v16810_v17 = vpop.f32.mrb[18].mxu1 }
 0x6ac   : > { %11255 = vmatmul.mubr.msk.bf16.gmra.mrb[124].mxu0 %vm1048_vm3, %v4629_v57  ;;  %v16808_v14 = vadd.f32 %v16641_v23, %v3654_v36  ;;  %v11187_v11 = vpop.f32.mrb[19].mxu1  ;;  %v4633_v23 = vsel %vm2735_vm7, %v4628_v50, %v4632_v25  ;;  %v20843_v36 = vld [vmem:[#allocation99_spill] sm:$0xff] }
 0x6ad   : > { %11258 = vmatprep.mubr.msk.bf16.mxu0 %vm13358_vm0, %v20503_v49  ;;  %v4634_v57 = vrot.slane %v20843_v36, 1  ;;  %v20845_v36 = vld [vmem:[#allocation103_spill] sm:$0xff] }
 0x6ae   : > { %v4638_v10 = vrot.slane %v20845_v36, 1  ;;  %v20848_v36 = vld [vmem:[#allocation108_spill] sm:$0xff] }
 0x6af   : > { %v3609_v4 = vpop.f32.mrb[20].mxu0 }
 0x6b0   : > { %v3655_v61 = vadd.f32 %v3609_v4, %v16448_v24  ;;  %v10976_v46 = vpop.f32.mrb[21].mxu0 }
 0x6b1   : > { %v3612_v56 = vpop.f32.mrb[22].mxu0  ;;  %v16818_v59 = vpop.f32.mrb[20].mxu1 }
 0x6b2   : > { %v10977_v0 = vpop.f32.mrb[23].mxu0  ;;  %v16816_v2 = vadd.f32 %v16650_v9, %v3655_v61  ;;  %v11190_v62 = vpop.f32.mrb[21].mxu1  ;;  %v4636_v9 = vor.u32 %v4635_v55, %v4634_v57 }
 0x6b3   : > { %v16824_v58 = vpop.f32.mrb[22].mxu1  ;;  %v20846_v62 = vld [vmem:[#allocation104_spill] sm:$0xff] }
 0x6b4   : > { %20842 = vst [vmem:[#allocation165_spill] sm:$0xff] %v16816_v2  ;;  %11259 = vmatmul.mubr.msk.bf16.gmra.mrb[128].mxu0 %vm1048_vm3, %v4633_v23  ;;  %v11191_v24 = vpop.f32.mrb[23].mxu1  ;;  %v4637_v23 = vsel %vm2735_vm7, %v4632_v25, %v4636_v9 }
 0x6b5   : > { %11262 = vmatprep.mubr.msk.bf16.mxu0 %vm13358_vm0, %v20503_v49  ;;  %v4639_v24 = vrot.slane %v20846_v62, 2  ;;  %v4643_v62 = vrot.slane %v20848_v36, 2  ;;  %v20851_v36 = vld [vmem:[#allocation113_spill] sm:$0xff] }
 0x6b7   : > { %v4064_v7 = vpop.f32.mrb[24].mxu0  ;;  %v4640_v55 = vor.u32 %v4639_v24, %v4638_v10 }
 0x6b8   : > { %v4230_v11 = vadd.f32 %v4064_v7, %v16466_v53  ;;  %v11068_v4 = vpop.f32.mrb[25].mxu0 }
 0x6b9   : > { %v4067_v61 = vpop.f32.mrb[26].mxu0  ;;  %v16833_v0 = vpop.f32.mrb[24].mxu1 }
 0x6ba   : > { %v4231_v50 = vadd.f32 %v4067_v61, %v16474_v13  ;;  %v11069_v46 = vpop.f32.mrb[27].mxu0  ;;  %v16831_v56 = vadd.f32 %v16664_v21, %v4230_v11  ;;  %v11194_v2 = vpop.f32.mrb[25].mxu1 }
 0x6bb   : > { %v16842_v57 = vpop.f32.mrb[26].mxu1  ;;  %v20847_v46 = vld [vmem:[#allocation107_spill] sm:$0xff] }
 0x6bc   : > { %11263 = vmatmul.mubr.msk.bf16.gmra.mrb[132].mxu0 %vm1048_vm3, %v4637_v23  ;;  %v16840_v53 = vadd.f32 %v16671_v19, %v4231_v50  ;;  %v11195_v13 = vpop.f32.mrb[27].mxu1  ;;  %v4641_v50 = vsel %vm2735_vm7, %v4636_v9, %v4640_v55  ;;  %v4642_v23 = vrot.slane %v20847_v46, 1 }
 0x6bd   : > { %11266 = vmatprep.mubr.msk.bf16.mxu0 %vm13358_vm0, %v20503_v49 }
 0x6be   : > { %v4644_v24 = vor.u32 %v4643_v62, %v4642_v23 }
 0x6bf   : > { %v4072_v21 = vpop.f32.mrb[28].mxu0 }
 0x6c0   : > { %v4232_v25 = vadd.f32 %v4072_v21, %v16487_v32  ;;  %v11072_v7 = vpop.f32.mrb[29].mxu0 }
 0x6c1   : > { %v4075_v11 = vpop.f32.mrb[30].mxu0  ;;  %v16851_v19 = vpop.f32.mrb[28].mxu1 }
 0x6c2   : > { %v4233_v4 = vadd.f32 %v4075_v11, %v16494_v63  ;;  %v11073_v2 = vpop.f32.mrb[31].mxu0  ;;  %v16849_v61 = vadd.f32 %v16680_v1, %v4232_v25  ;;  %v11198_v13 = vpop.f32.mrb[29].mxu1 }
 0x6c3   : > { %v16860_v10 = vpop.f32.mrb[30].mxu1  ;;  %v4647_v13 = vrot.slane %v20851_v36, 2  ;;  %v20856_v36 = vld [vmem:[#allocation117_spill] sm:$0xff] }
 0x6c4   : > { %11267 = vmatmul.mubr.msk.bf16.gmra.mrb[136].mxu0 %vm1048_vm3, %v4641_v50  ;;  %v16858_v32 = vadd.f32 %v16687_v18, %v4233_v4  ;;  %v11199_v63 = vpop.f32.mrb[31].mxu1  ;;  %v4645_v4 = vsel %vm2735_vm7, %v4640_v55, %v4644_v24  ;;  %v20850_v50 = vld [vmem:[#allocation112_spill] sm:$0xff] }
 0x6c5   : > { %11270 = vmatprep.mubr.msk.bf16.mxu0 %vm13358_vm0, %v20503_v49  ;;  %v4646_v46 = vrot.slane %v20850_v50, 1 }
 0x6c7   : > { %v4080_v1 = vpop.f32.mrb[32].mxu0  ;;  %v4648_v62 = vor.u32 %v4647_v13, %v4646_v46 }
 0x6c8   : > { %v4234_v9 = vadd.f32 %v4080_v1, %v16509_v22  ;;  %v11076_v21 = vpop.f32.mrb[33].mxu0  ;;  %v20853_v1 = vld [vmem:[#allocation137_spill] sm:$0xff] }
 0x6c9   : > { %v4083_v25 = vpop.f32.mrb[34].mxu0  ;;  %v16869_v18 = vpop.f32.mrb[32].mxu1 }
 0x6ca   : > { %v4235_v7 = vadd.f32 %v4083_v25, %v16516_v31  ;;  %v11077_v11 = vpop.f32.mrb[35].mxu0  ;;  %v16867_v2 = vadd.f32 %v16696_v15, %v4234_v9  ;;  %v11202_v63 = vpop.f32.mrb[33].mxu1  ;;  %v20854_v25 = vld [vmem:[#allocation159_spill] sm:$0xff] }
 0x6cb   : > { %v16878_v23 = vpop.f32.mrb[34].mxu1  ;;  %v4650_v63 = vrot.slane %v20856_v36, 1 }
 0x6cc   : > { %20849 = vst [vmem:[#allocation166_spill] sm:$0xff] %v16867_v2  ;;  %11271 = vmatmul.mubr.msk.bf16.gmra.mrb[140].mxu0 %vm1048_vm3, %v4645_v4  ;;  %v16876_v22 = vadd.f32 %v16703_v5, %v4235_v7  ;;  %v11203_v31 = vpop.f32.mrb[35].mxu1  ;;  %v4649_v7 = vsel %vm2735_vm7, %v4644_v24, %v4648_v62 }
 0x6cd   : > { %11274 = vmatprep.mubr.msk.bf16.mxu0 %vm13358_vm0, %v20503_v49 }
 0x6ce   : > { %20852 = vst [vmem:[#allocation131_spill] sm:$0xff] %v16876_v22  ;;  %v20857_v22 = vld [vmem:[#allocation118_spill] sm:$0xff] }
 0x6cf   : > { %v4088_v15 = vpop.f32.mrb[36].mxu0  ;;  %v4651_v31 = vrot.slane %v20857_v22, 2 }
 0x6d0   : > { %v4236_v55 = vadd.f32 %v4088_v15, %v20853_v1  ;;  %v11080_v9 = vpop.f32.mrb[37].mxu0 }
 0x6d1   : > { %v4091_v21 = vpop.f32.mrb[38].mxu0  ;;  %v16887_v5 = vpop.f32.mrb[36].mxu1  ;;  %v4652_v1 = vor.u32 %v4651_v31, %v4650_v63 }
 0x6d2   : > { %v4237_v11 = vadd.f32 %v4091_v21, %v20854_v25  ;;  %v11081_v50 = vpop.f32.mrb[39].mxu0  ;;  %v16885_v4 = vadd.f32 %v16712_v35, %v4236_v55  ;;  %v11206_v2 = vpop.f32.mrb[37].mxu1  ;;  %v20859_v55 = vld [vmem:[#allocation110_spill] sm:$0xff]  ;;  %v20860_v25 = vld [vmem:[#allocation160_spill] sm:$0xff] }
 0x6d3   : > { %v16896_v13 = vpop.f32.mrb[38].mxu1 }
 0x6d4   : > { %20855 = vst [vmem:[#allocation168_spill] sm:$0xff] %v16885_v4  ;;  %11275 = vmatmul.mubr.msk.bf16.gmra.mrb[144].mxu0 %vm1048_vm3, %v4649_v7  ;;  %v16894_v46 = vadd.f32 %v16719_v39, %v4237_v11  ;;  %v11207_v35 = vpop.f32.mrb[39].mxu1  ;;  %v4653_v11 = vsel %vm2735_vm7, %v4648_v62, %v4652_v1  ;;  %v20861_v7 = vld [vmem:[#allocation124_spill] sm:$0xff] }
 0x6d5   : > { %11278 = vmatprep.mubr.msk.bf16.mxu0 %vm13358_vm0, %v20503_v49  ;;  %v4654_v36 = vrot.slane %v20861_v7, 1 }
 0x6d6   : > { %20858 = vst [vmem:[#allocation169_spill] sm:$0xff] %v16894_v46  ;;  %v20862_v46 = vld [vmem:[#allocation125_spill] sm:$0xff] }
 0x6d7   : > { %v4096_v15 = vpop.f32.mrb[40].mxu0  ;;  %v4655_v35 = vrot.slane %v20862_v46, 2 }
 0x6d8   : > { %v4238_v24 = vadd.f32 %v4096_v15, %v20859_v55  ;;  %v11084_v9 = vpop.f32.mrb[41].mxu0 }
 0x6d9   : > { %v4099_v21 = vpop.f32.mrb[42].mxu0  ;;  %v16905_v39 = vpop.f32.mrb[40].mxu1  ;;  %v4656_v55 = vor.u32 %v4655_v35, %v4654_v36 }
 0x6da   : > { %v4239_v22 = vadd.f32 %v4099_v21, %v20860_v25  ;;  %v11085_v2 = vpop.f32.mrb[43].mxu0  ;;  %v16903_v50 = vadd.f32 %v16728_v8, %v4238_v24  ;;  %v11210_v4 = vpop.f32.mrb[41].mxu1 }
 0x6db   : > { %v16914_v31 = vpop.f32.mrb[42].mxu1  ;;  %v4657_v25 = vsel %vm2735_vm7, %v4652_v1, %v4656_v55 }
 0x6dc   : > { %11279 = vmatmul.mubr.msk.bf16.gmra.mrb[148].mxu0 %vm1048_vm3, %v4653_v11  ;;  %v16912_v63 = vadd.f32 %v16737_v54, %v4239_v22  ;;  %v11211_v8 = vpop.f32.mrb[43].mxu1  ;;  %v20863_v22 = vld [vmem:[#allocation126_spill] sm:$0xff]  ;;  %v20864_v11 = vld [vmem:[#allocation127_spill] sm:$0xff] }
 0x6dd   : > { %11282 = vmatprep.mubr.msk.bf16.mxu0 %vm13358_vm0, %v20503_v49  ;;  %v4658_v2 = vrot.slane %v20863_v22, 1  ;;  %v4659_v7 = vrot.slane %v20864_v11, 2  ;;  %v20867_v22 = vld [vmem:[#allocation133_spill] sm:$0xff] }
 0x6de   : > { %v4662_v11 = vrot.slane %v20867_v22, 1 }
 0x6df   : > { %v4104_v15 = vpop.f32.mrb[44].mxu0  ;;  %v4660_v35 = vor.u32 %v4659_v7, %v4658_v2 }
 0x6e0   : > { %v4240_v62 = vadd.f32 %v4104_v15, %v16568_v38  ;;  %v11088_v24 = vpop.f32.mrb[45].mxu0 }
 0x6e1   : > { %v4107_v9 = vpop.f32.mrb[46].mxu0  ;;  %v16923_v54 = vpop.f32.mrb[44].mxu1  ;;  %v20866_v24 = vld [vmem:[#allocation114_spill] sm:$0xff] }
 0x6e2   : > { %v4241_v46 = vadd.f32 %v4107_v9, %v16575_v33  ;;  %v11089_v4 = vpop.f32.mrb[47].mxu0  ;;  %v16921_v21 = vadd.f32 %v16746_v37, %v4240_v62  ;;  %v11214_v8 = vpop.f32.mrb[45].mxu1 }
 0x6e3   : > { %v16932_v36 = vpop.f32.mrb[46].mxu1  ;;  %v20868_v8 = vld [vmem:[#allocation134_spill] sm:$0xff] }
 0x6e4   : > { %11283 = vmatmul.mubr.msk.bf16.gmra.mrb[152].mxu0 %vm1048_vm3, %v4657_v25  ;;  %v16930_v38 = vadd.f32 %v16756_v52, %v4241_v46  ;;  %v11215_v33 = vpop.f32.mrb[47].mxu1  ;;  %v4661_v46 = vsel %vm2735_vm7, %v4656_v55, %v4660_v35 }
 0x6e5   : > { %11286 = vmatprep.mubr.msk.bf16.mxu0 %vm13358_vm0, %v20503_v49  ;;  %v4663_v33 = vrot.slane %v20868_v8, 2  ;;  %v20872_v8 = vld [vmem:[#allocation142_spill] sm:$0xff] }
 0x6e6   : > { %20865 = vst [vmem:[#allocation162_spill] sm:$0xff] %v16930_v38 }
 0x6e7   : > { %v4112_v37 = vpop.f32.mrb[48].mxu0 }
 0x6e8   : > { %v4242_v1 = vadd.f32 %v4112_v37, %v16584_v16  ;;  %v11092_v15 = vpop.f32.mrb[49].mxu0  ;;  %v4664_v37 = vor.u32 %v4663_v33, %v4662_v11 }
 0x6e9   : > { %v4115_v62 = vpop.f32.mrb[50].mxu0  ;;  %v16941_v52 = vpop.f32.mrb[48].mxu1 }
 0x6ea   : > { %v4243_v9 = vadd.f32 %v4115_v62, %v20866_v24  ;;  %v11093_v4 = vpop.f32.mrb[51].mxu0  ;;  %v16939_v25 = vadd.f32 %v16765_v12, %v4242_v1  ;;  %v11218_v38 = vpop.f32.mrb[49].mxu1  ;;  %v20870_v62 = vld [vmem:[#allocation119_spill] sm:$0xff] }
 0x6eb   : > { %v16950_v2 = vpop.f32.mrb[50].mxu1 }
 0x6ec   : > { %11287 = vmatmul.mubr.msk.bf16.gmra.mrb[156].mxu0 %vm1048_vm3, %v4661_v46  ;;  %v16948_v16 = vadd.f32 %v16774_v43, %v4243_v9  ;;  %v11219_v12 = vpop.f32.mrb[51].mxu1  ;;  %v4665_v9 = vsel %vm2735_vm7, %v4660_v35, %v4664_v37  ;;  %v20871_v46 = vld [vmem:[#allocation141_spill] sm:$0xff] }
 0x6ed   : > { %11290 = vmatprep.mubr.msk.bf16.mxu0 %vm13358_vm0, %v20503_v49  ;;  %v4666_v22 = vrot.slane %v20871_v46, 1  ;;  %v4667_v12 = vrot.slane %v20872_v8, 2 }
 0x6ee   : > { %20869 = vst [vmem:[#allocation171_spill] sm:$0xff] %v16948_v16 }
 0x6ef   : > { %v4120_v7 = vpop.f32.mrb[52].mxu0 }
 0x6f0   : > { %v4244_v55 = vadd.f32 %v4120_v7, %v16600_v28  ;;  %v11096_v1 = vpop.f32.mrb[53].mxu0  ;;  %v4668_v7 = vor.u32 %v4667_v12, %v4666_v22 }
 0x6f1   : > { %v4123_v15 = vpop.f32.mrb[54].mxu0  ;;  %v16959_v43 = vpop.f32.mrb[52].mxu1 }
 0x6f2   : > { %v4245_v24 = vadd.f32 %v4123_v15, %v20870_v62  ;;  %v11097_v38 = vpop.f32.mrb[55].mxu0  ;;  %v16957_v4 = vadd.f32 %v16783_v44, %v4244_v55  ;;  %v11222_v16 = vpop.f32.mrb[53].mxu1 }
 0x6f3   : > { %v16968_v11 = vpop.f32.mrb[54].mxu1 }
 0x6f4   : > { %11291 = vmatmul.mubr.msk.bf16.gmra.mrb[160].mxu0 %vm1048_vm3, %v4665_v9  ;;  %v16966_v28 = vadd.f32 %v16792_v48, %v4245_v24  ;;  %v11223_v44 = vpop.f32.mrb[55].mxu1  ;;  %v4669_v24 = vsel %vm2735_vm7, %v4664_v37, %v4668_v7 }
 0x6f5   : > { %11294 = vmatprep.mubr.msk.bf16.mxu0 %vm13358_vm0, %v20503_v49 }
 0x6f7   : > { %v4128_v33 = vpop.f32.mrb[56].mxu0 }
 0x6f8   : > { %v4246_v35 = vadd.f32 %v4128_v33, %v16616_v26  ;;  %v11100_v55 = vpop.f32.mrb[57].mxu0 }
 0x6f9   : > { %v4131_v1 = vpop.f32.mrb[58].mxu0  ;;  %v16977_v48 = vpop.f32.mrb[56].mxu1 }
 0x6fa   : > { %v4247_v15 = vadd.f32 %v4131_v1, %v16623_v60  ;;  %v11101_v16 = vpop.f32.mrb[59].mxu0  ;;  %v16975_v62 = vadd.f32 %v16801_v42, %v4246_v35  ;;  %v11226_v38 = vpop.f32.mrb[57].mxu1 }
 0x6fb   : > { %v16984_v46 = vpop.f32.mrb[58].mxu1 }
 0x6fc   : > { %11295 = vmatmul.mubr.msk.bf16.gmra.mrb[164].mxu0 %vm1048_vm3, %v4669_v24  ;;  %v16982_v9 = vadd.f32 %v16810_v17, %v4247_v15  ;;  %v11227_v60 = vpop.f32.mrb[59].mxu1  ;;  %v20873_v17 = vld [vmem:[#allocation144_spill] sm:$0xff] }
 0x6fd   : > { %11298 = vmatprep.mubr.msk.bf16.mxu0 %vm13358_vm0, %v20503_v49  ;;  %v4673_v35 = vsel %vm2735_vm7, %v4668_v7, %v20873_v17 }
 0x6ff   : > { %v4136_v26 = vpop.f32.mrb[60].mxu0 }
 0x700   : > { %v4248_v42 = vadd.f32 %v4136_v26, %v16632_v41  ;;  %v11104_v22 = vpop.f32.mrb[61].mxu0 }
 0x701   : > { %v4139_v8 = vpop.f32.mrb[62].mxu0  ;;  %v16993_v33 = vpop.f32.mrb[60].mxu1 }
 0x702   : > { %v4249_v12 = vadd.f32 %v4139_v8, %v16639_v27  ;;  %v11105_v37 = vpop.f32.mrb[63].mxu0  ;;  %v16991_v44 = vadd.f32 %v16818_v59, %v4248_v42  ;;  %v11230_v55 = vpop.f32.mrb[61].mxu1  ;;  %v20874_v42 = vld [vmem:[#allocation145_spill] sm:$0xff] }
 0x703   : > { %v17001_v41 = vpop.f32.mrb[62].mxu1 }
 0x704   : > { %11299 = vmatmul.mubr.msk.bf16.gmra.mrb[168].mxu0 %vm1048_vm3, %v4673_v35  ;;  %v16999_v1 = vadd.f32 %v16824_v58, %v4249_v12  ;;  %v11231_v27 = vpop.f32.mrb[63].mxu1 }
 0x705   : > { %11302 = vmatprep.mubr.msk.bf16.mxu0 %vm13358_vm0, %v20503_v49  ;;  %v20875_v27 = vld [vmem:[#allocation146_spill] sm:$0xff] }
 0x707   : > { %v4144_v15 = vpop.f32.mrb[64].mxu0 }
 0x708   : > { %v4250_v59 = vadd.f32 %v4144_v15, %v16648_v47  ;;  %v11108_v16 = vpop.f32.mrb[65].mxu0 }
 0x709   : > { %v4147_v24 = vpop.f32.mrb[66].mxu0  ;;  %v17010_v26 = vpop.f32.mrb[64].mxu1 }
 0x70a   : > { %v4251_v38 = vadd.f32 %v4147_v24, %v16655_v51  ;;  %v11109_v7 = vpop.f32.mrb[67].mxu0  ;;  %v17008_v60 = vadd.f32 %v16833_v0, %v4250_v59  ;;  %v11234_v58 = vpop.f32.mrb[65].mxu1 }
 0x70b   : > { %v4563_v8 = vpop.f32.mrb[66].mxu1  ;;  %v20877_v58 = vld [vmem:[#allocation130_spill] sm:$0xff] }
 0x70c   : > { %11303 = vmatmul.mubr.msk.bf16.gmra.mrb[172].mxu0 %vm1048_vm3, %v20874_v42  ;;  %v17015_v22 = vadd.f32 %v16842_v57, %v4251_v38  ;;  %v11235_v47 = vpop.f32.mrb[67].mxu1  ;;  %v20876_v38 = vld [vmem:[#allocation128_spill] sm:$0xff] }
 0x70d   : > { %11306 = vmatprep.mubr.msk.bf16.mxu0 %vm13358_vm0, %v20503_v49  ;;  %v20878_v47 = vld [vmem:[#allocation123_spill] sm:$0xff] }
 0x70f   : > { %v4152_v12 = vpop.f32.mrb[68].mxu0 }
 0x710   : > { %v4252_v51 = vadd.f32 %v4152_v12, %v16662_v20  ;;  %v11112_v37 = vpop.f32.mrb[69].mxu0 }
 0x711   : > { %v4155_v0 = vpop.f32.mrb[70].mxu0 }
 0x712   : > { %v4253_v17 = vadd.f32 %v4155_v0, %v16669_v6  ;;  %v11113_v35 = vpop.f32.mrb[71].mxu0  ;;  %v17022_v55 = vadd.f32 %v16851_v19, %v4252_v51  ;;  %v20879_v51 = vld [vmem:[#allocation148_spill] sm:$0xff]  ;;  %v20880_v0 = vld [vmem:[#allocation161_spill] sm:$0xff] }
 0x714   : > { %11307 = vmatmul.mubr.msk.bf16.gmra.mrb[176].mxu0 %vm1048_vm3, %v20875_v27  ;;  %v17027_v57 = vadd.f32 %v16860_v10, %v4253_v17 }
 0x715   : > { %11310 = vmatprep.mubr.msk.bf16.mxu0 %vm13358_vm0, %v20503_v49 }
 0x717   : > { %v4160_v15 = vpop.f32.mrb[72].mxu0 }
 0x718   : > { %v4254_v20 = vadd.f32 %v4160_v15, %v16678_v45  ;;  %v11116_v59 = vpop.f32.mrb[73].mxu0  ;;  %v20881_v15 = vld [vmem:[#allocation132_spill] sm:$0xff] }
 0x719   : > { %v4163_v16 = vpop.f32.mrb[74].mxu0 }
 0x71a   : > { %v4255_v6 = vadd.f32 %v4163_v16, %v16685_v34  ;;  %v11117_v24 = vpop.f32.mrb[75].mxu0  ;;  %v17034_v19 = vadd.f32 %v16869_v18, %v4254_v20  ;;  %v20882_v16 = vld [vmem:[#allocation149_spill] sm:$0xff] }
 0x71b   : > { %v20883_v24 = vld [vmem:[#allocation136_spill] sm:$0xff] }
 0x71c   : > { %11311 = vmatmul.mubr.msk.bf16.gmra.mrb[180].mxu0 %vm1048_vm3, %v20876_v38  ;;  %v17039_v10 = vadd.f32 %v16878_v23, %v4255_v6 }
 0x71d   : > { %11314 = vmatprep.mubr.msk.bf16.mxu0 %vm13358_vm0, %v20503_v49 }
 0x71f   : > { %v4168_v7 = vpop.f32.mrb[76].mxu0 }
 0x720   : > { %v4256_v45 = vadd.f32 %v4168_v7, %v20877_v58  ;;  %v11120_v42 = vpop.f32.mrb[77].mxu0 }
 0x721   : > { %v4171_v8 = vpop.f32.mrb[78].mxu0 }
 0x722   : > { %v4257_v34 = vadd.f32 %v4171_v8, %v20878_v47  ;;  %v11121_v12 = vpop.f32.mrb[79].mxu0  ;;  %v17046_v18 = vadd.f32 %v16887_v5, %v4256_v45  ;;  %v20884_v45 = vld [vmem:[#allocation121_spill] sm:$0xff] }
 0x724   : > { %11315 = vmatmul.mubr.msk.bf16.gmra.mrb[184].mxu0 %vm1048_vm3, %v20879_v51  ;;  %v17051_v23 = vadd.f32 %v16896_v13, %v4257_v34 }
 0x725   : > { %11318 = vmatprep.mubr.msk.bf16.mxu0 %vm13358_vm0, %v20503_v49 }
 0x727   : > { %v4176_v37 = vpop.f32.mrb[80].mxu0 }
 0x728   : > { %v4258_v17 = vadd.f32 %v4176_v37, %v20880_v0  ;;  %v11124_v35 = vpop.f32.mrb[81].mxu0  ;;  %v20886_v0 = vld [vmem:[#allocation73_spill] sm:$0xff] }
 0x729   : > { %v4179_v27 = vpop.f32.mrb[82].mxu0 }
 0x72a   : > { %v4259_v20 = vadd.f32 %v4179_v27, %v20881_v15  ;;  %v11125_v59 = vpop.f32.mrb[83].mxu0  ;;  %v17058_v5 = vadd.f32 %v16905_v39, %v4258_v17 }
 0x72c   : > { %11319 = vmatmul.mubr.msk.bf16.gmra.mrb[188].mxu0 %vm1048_vm3, %v20882_v16  ;;  %v17063_v13 = vadd.f32 %v16914_v31, %v4259_v20  ;;  %v20885_v31 = vld [vmem:[#allocation122_spill] sm:$0xff] }
 0x72d   : > { %11462 = vmatprep.mubr.msk.bf16.mxu0 %vm13358_vm0, %v20503_v49  ;;  %v20887_v16 = vld [vmem:[#allocation74_spill] sm:$0xff] }
 0x72f   : > { %v4184_v6 = vpop.f32.mrb[84].mxu0 }
 0x730   : > { %v4260_v38 = vadd.f32 %v4184_v6, %v20883_v24  ;;  %v11128_v7 = vpop.f32.mrb[85].mxu0 }
 0x731   : > { %v4187_v58 = vpop.f32.mrb[86].mxu0 }
 0x732   : > { %v4261_v42 = vadd.f32 %v4187_v58, %v20884_v45  ;;  %v11129_v8 = vpop.f32.mrb[87].mxu0  ;;  %v17070_v39 = vadd.f32 %v16923_v54, %v4260_v38 }
 0x734   : > { %v17073_v47 = vadd.f32 %v16932_v36, %v4261_v42 }
 0x737   : > { %v4192_v34 = vpop.f32.mrb[88].mxu0 }
 0x738   : > { %v4262_v12 = vadd.f32 %v4192_v34, %v20885_v31  ;;  %v11132_v51 = vpop.f32.mrb[89].mxu0 }
 0x739   : > { %v4195_v37 = vpop.f32.mrb[90].mxu0 }
 0x73a   : > { %v4263_v17 = vadd.f32 %v4195_v37, %v20886_v0  ;;  %v11133_v35 = vpop.f32.mrb[91].mxu0  ;;  %v17078_v27 = vadd.f32 %v16941_v52, %v4262_v12 }
 0x73c   : > { %v17081_v15 = vadd.f32 %v16950_v2, %v4263_v17 }
 0x73f   : > { %v4200_v20 = vpop.f32.mrb[92].mxu0 }
 0x740   : > { %v4264_v54 = vadd.f32 %v4200_v20, %v16763_v30  ;;  %v11136_v59 = vpop.f32.mrb[93].mxu0 }
 0x741   : > { %v4203_v36 = vpop.f32.mrb[94].mxu0 }
 0x742   : > { %v4265_v6 = vadd.f32 %v4203_v36, %v20887_v16  ;;  %v11137_v24 = vpop.f32.mrb[95].mxu0  ;;  %v17086_v38 = vadd.f32 %v16959_v43, %v4264_v54 }
 0x744   : > { %v17089_v7 = vadd.f32 %v16968_v11, %v4265_v6 }
 0x747   : > { %v4208_v58 = vpop.f32.mrb[96].mxu0 }
 0x748   : > { %v4266_v52 = vadd.f32 %v4208_v58, %v16781_v40  ;;  %v11140_v45 = vpop.f32.mrb[97].mxu0 }
 0x749   : > { %v4211_v2 = vpop.f32.mrb[98].mxu0 }
 0x74a   : > { %v4267_v42 = vadd.f32 %v4211_v2, %v16790_v3  ;;  %v11141_v8 = vpop.f32.mrb[99].mxu0  ;;  %v17094_v30 = vadd.f32 %v16977_v48, %v4266_v52  ;;  %v20888_v48 = vld [vmem:[#allocation165_spill] sm:$0xff] }
 0x74c   : > { %v17097_v34 = vadd.f32 %v16984_v46, %v4267_v42 }
 0x74f   : > { %v4216_v31 = vpop.f32.mrb[100].mxu0 }
 0x750   : > { %v4268_v43 = vadd.f32 %v4216_v31, %v16799_v29  ;;  %v11144_v12 = vpop.f32.mrb[101].mxu0  ;;  %v20890_v31 = vld [vmem:[#allocation131_spill] sm:$0xff] }
 0x751   : > { %v4219_v11 = vpop.f32.mrb[102].mxu0 }
 0x752   : > { %v4269_v51 = vadd.f32 %v4219_v11, %v16808_v14  ;;  %v11145_v37 = vpop.f32.mrb[103].mxu0  ;;  %v17102_v40 = vadd.f32 %v16993_v33, %v4268_v43  ;;  %v20891_v11 = vld [vmem:[#allocation168_spill] sm:$0xff] }
 0x754   : > { %v17105_v3 = vadd.f32 %v17001_v41, %v4269_v51 }
 0x757   : > { %v4224_v0 = vpop.f32.mrb[104].mxu0 }
 0x758   : > { %v4270_v17 = vadd.f32 %v4224_v0, %v20888_v48  ;;  %v11148_v35 = vpop.f32.mrb[105].mxu0  ;;  %v20892_v0 = vld [vmem:[#allocation169_spill] sm:$0xff] }
 0x759   : > { %v4227_v46 = vpop.f32.mrb[106].mxu0 }
 0x75a   : > { %v11149_v20 = vpop.f32.mrb[107].mxu0  ;;  %v17109_v54 = vadd.f32 %v17010_v26, %v4270_v17  ;;  %v20889_v26 = vld [vmem:[#allocation166_spill] sm:$0xff] }
 0x75f   : > { %v4772_v29 = vpop.f32.mrb[108].mxu0 }
 0x760   : > { %v4938_v59 = vadd.f32 %v4772_v29, %v16831_v56  ;;  %v11240_v14 = vpop.f32.mrb[109].mxu0 }
 0x761   : > { %v4775_v36 = vpop.f32.mrb[110].mxu0 }
 0x762   : > { %v4939_v33 = vadd.f32 %v4775_v36, %v16840_v53  ;;  %v11241_v16 = vpop.f32.mrb[111].mxu0 }
 0x767   : > { %v4780_v6 = vpop.f32.mrb[112].mxu0 }
 0x768   : > { %v17114_v41 = vadd.f32 %v4780_v6, %v16849_v61  ;;  %v11244_v24 = vpop.f32.mrb[113].mxu0 }
 0x769   : > { %v4783_v58 = vpop.f32.mrb[114].mxu0 }
 0x76a   : > { %v4941_v52 = vadd.f32 %v4783_v58, %v16858_v32  ;;  %v11245_v45 = vpop.f32.mrb[115].mxu0  ;;  %v20893_v58 = vld [vmem:[#allocation162_spill] sm:$0xff] }
 0x76f   : > { %v4788_v2 = vpop.f32.mrb[116].mxu0 }
 0x770   : > { %v17118_v42 = vadd.f32 %v4788_v2, %v20889_v26  ;;  %v11248_v8 = vpop.f32.mrb[117].mxu0 }
 0x771   : > { %v4791_v56 = vpop.f32.mrb[118].mxu0 }
 0x772   : > { %v17121_v43 = vadd.f32 %v4791_v56, %v20890_v31  ;;  %v11249_v53 = vpop.f32.mrb[119].mxu0  ;;  %v20894_v31 = vld [vmem:[#allocation171_spill] sm:$0xff] }
 0x777   : > { %v4796_v12 = vpop.f32.mrb[120].mxu0 }
 0x778   : > { %v17124_v51 = vadd.f32 %v4796_v12, %v20891_v11  ;;  %v11252_v61 = vpop.f32.mrb[121].mxu0 }
 0x779   : > { %v4799_v37 = vpop.f32.mrb[122].mxu0 }
 0x77a   : > { %v17127_v48 = vadd.f32 %v4799_v37, %v20892_v0  ;;  %v11253_v32 = vpop.f32.mrb[123].mxu0 }
 0x77f   : > { %v4804_v17 = vpop.f32.mrb[124].mxu0 }
 0x780   : > { %v17130_v35 = vadd.f32 %v4804_v17, %v16903_v50  ;;  %v11256_v46 = vpop.f32.mrb[125].mxu0 }
 0x781   : > { %v4807_v20 = vpop.f32.mrb[126].mxu0 }
 0x782   : > { %v17133_v29 = vadd.f32 %v4807_v20, %v16912_v63  ;;  %v11257_v14 = vpop.f32.mrb[127].mxu0  ;;  %v17154_v20 = vld [vmem:[#allocation14] ss:$0 sm:$0xff] }
 0x787   : > { %v4812_v36 = vpop.f32.mrb[128].mxu0 }
 0x788   : > { %v17136_v16 = vadd.f32 %v4812_v36, %v16921_v21  ;;  %v11260_v6 = vpop.f32.mrb[129].mxu0 }
 0x789   : > { %v4815_v24 = vpop.f32.mrb[130].mxu0  ;;  %v17158_v6 = vadd.f32 %v17154_v20, %v4939_v33 }
 0x78a   : > { %v17139_v45 = vadd.f32 %v4815_v24, %v20893_v58  ;;  %v11261_v2 = vpop.f32.mrb[131].mxu0  ;;  %v17167_v24 = vadd.f32 %v17154_v20, %v4938_v59 }
 0x78f   : > { %v4820_v26 = vpop.f32.mrb[132].mxu0 }
 0x790   : > { %v17142_v50 = vadd.f32 %v4820_v26, %v16939_v25  ;;  %v11264_v8 = vpop.f32.mrb[133].mxu0 }
 0x791   : > { %v4823_v56 = vpop.f32.mrb[134].mxu0 }
 0x792   : > { %v17145_v63 = vadd.f32 %v4823_v56, %v20894_v31  ;;  %v11265_v53 = vpop.f32.mrb[135].mxu0  ;;  %v17176_v31 = vadd.f32 %v17154_v20, %v4941_v52 }
 0x797   : > { %v4828_v12 = vpop.f32.mrb[136].mxu0 }
 0x798   : > { %v17148_v21 = vadd.f32 %v4828_v12, %v16957_v4  ;;  %v11268_v11 = vpop.f32.mrb[137].mxu0  ;;  %v17186_v12 = vadd.f32 %v17154_v20, %v17114_v41  ;;  %v17196_v41 = vadd.f32 %v17154_v20, %v17121_v43 }
 0x799   : > { %v4831_v61 = vpop.f32.mrb[138].mxu0 }
 0x79a   : > { %v17151_v37 = vadd.f32 %v4831_v61, %v16966_v28  ;;  %v11269_v0 = vpop.f32.mrb[139].mxu0 }
 0x79f   : > { %v4836_v32 = vpop.f32.mrb[140].mxu0 }
 0x7a0   : > { %v4954_v25 = vadd.f32 %v4836_v32, %v16975_v62  ;;  %v11272_v17 = vpop.f32.mrb[141].mxu0 }
 0x7a1   : > { %v4839_v46 = vpop.f32.mrb[142].mxu0 }
 0x7a2   : > { %v4955_v14 = vadd.f32 %v4839_v46, %v16982_v9  ;;  %v11273_v36 = vpop.f32.mrb[143].mxu0  ;;  %v17161_v4 = vadd.f32 %v17154_v20, %v4954_v25  ;;  %v12238_v9 = vpack.c.bf16 %v17158_v6, %v17167_v24 }
 0x7a4   : > { %v17164_v28 = vadd.f32 %v17154_v20, %v4955_v14 }
 0x7a6   : > { %v12236_v62 = vpack.c.bf16 %v17164_v28, %v17161_v4 }
 0x7a7   : > { %v4844_v58 = vpop.f32.mrb[144].mxu0 }
 0x7a8   : > { %v4956_v2 = vadd.f32 %v4844_v58, %v16991_v44  ;;  %v11276_v33 = vpop.f32.mrb[145].mxu0  ;;  %12237 = vmatprep.subr.bf16.mxu1 %v12236_v62 }
 0x7a9   : > { %v4847_v26 = vpop.f32.mrb[146].mxu0  ;;  %12239 = vmatpush3.bf16.msra.mxu1 %v12238_v9 }
 0x7aa   : > { %v4957_v8 = vadd.f32 %v4847_v26, %v16999_v1  ;;  %v11277_v56 = vpop.f32.mrb[147].mxu0  ;;  %v17179_v59 = vadd.f32 %v17154_v20, %v4956_v2  ;;  %v12242_v1 = vpack.c.bf16 %v17176_v31, %v17186_v12 }
 0x7ac   : > { %v17182_v53 = vadd.f32 %v17154_v20, %v4957_v8 }
 0x7ae   : > { %v12240_v44 = vpack.c.bf16 %v17182_v53, %v17179_v59 }
 0x7af   : > { %v4852_v11 = vpop.f32.mrb[148].mxu0 }
 0x7b0   : > { %v4958_v52 = vadd.f32 %v4852_v11, %v17008_v60  ;;  %v11280_v61 = vpop.f32.mrb[149].mxu0  ;;  %12241 = vmatprep.subr.bf16.mxu1 %v12240_v44  ;;  %v17206_v60 = vadd.f32 %v17154_v20, %v17118_v42  ;;  %v17216_v42 = vadd.f32 %v17154_v20, %v17127_v48 }
 0x7b1   : > { %v4855_v0 = vpop.f32.mrb[150].mxu0  ;;  %12243 = vmatpush3.bf16.msra.mxu1 %v12242_v1 }
 0x7b2   : > { %v4959_v32 = vadd.f32 %v4855_v0, %v17015_v22  ;;  %v11281_v25 = vpop.f32.mrb[151].mxu0  ;;  %v17199_v17 = vadd.f32 %v17154_v20, %v4958_v52  ;;  %v12246_v22 = vpack.c.bf16 %v17196_v41, %v17206_v60 }
 0x7b4   : > { %v17202_v46 = vadd.f32 %v17154_v20, %v4959_v32 }
 0x7b6   : > { %v12244_v14 = vpack.c.bf16 %v17202_v46, %v17199_v17 }
 0x7b7   : > { %v4860_v36 = vpop.f32.mrb[152].mxu0 }
 0x7b8   : > { %v4960_v43 = vadd.f32 %v4860_v36, %v17022_v55  ;;  %v11284_v62 = vpop.f32.mrb[153].mxu0  ;;  %12245 = vmatprep.subr.bf16.mxu1 %v12244_v14  ;;  %v17226_v55 = vadd.f32 %v17154_v20, %v17124_v51  ;;  %v17236_v51 = vadd.f32 %v17154_v20, %v17133_v29 }
 0x7b9   : > { %v4863_v58 = vpop.f32.mrb[154].mxu0  ;;  %12247 = vmatpush3.bf16.msra.mxu1 %v12246_v22 }
 0x7ba   : > { %v4961_v9 = vadd.f32 %v4863_v58, %v17027_v57  ;;  %v11285_v2 = vpop.f32.mrb[155].mxu0  ;;  %v17219_v33 = vadd.f32 %v17154_v20, %v4960_v43  ;;  %v12250_v57 = vpack.c.bf16 %v17216_v42, %v17226_v55 }
 0x7bc   : > { %v17222_v26 = vadd.f32 %v17154_v20, %v4961_v9 }
 0x7be   : > { %v12248_v8 = vpack.c.bf16 %v17222_v26, %v17219_v33 }
 0x7bf   : > { %v4868_v56 = vpop.f32.mrb[156].mxu0 }
 0x7c0   : > { %v4962_v48 = vadd.f32 %v4868_v56, %v17034_v19  ;;  %v11288_v44 = vpop.f32.mrb[157].mxu0  ;;  %12249 = vmatprep.subr.bf16.mxu1 %v12248_v8  ;;  %v17246_v19 = vadd.f32 %v17154_v20, %v17130_v35  ;;  %v17256_v35 = vadd.f32 %v17154_v20, %v17139_v45 }
 0x7c1   : > { %v4871_v11 = vpop.f32.mrb[158].mxu0  ;;  %12251 = vmatpush3.bf16.msra.mxu1 %v12250_v57 }
 0x7c2   : > { %v4963_v1 = vadd.f32 %v4871_v11, %v17039_v10  ;;  %v11289_v52 = vpop.f32.mrb[159].mxu0  ;;  %v17239_v61 = vadd.f32 %v17154_v20, %v4962_v48  ;;  %v12254_v10 = vpack.c.bf16 %v17236_v51, %v17246_v19 }
 0x7c4   : > { %v17242_v0 = vadd.f32 %v17154_v20, %v4963_v1 }
 0x7c6   : > { %v12252_v32 = vpack.c.bf16 %v17242_v0, %v17239_v61 }
 0x7c7   : > { %v4876_v25 = vpop.f32.mrb[160].mxu0 }
 0x7c8   : > { %v4964_v29 = vadd.f32 %v4876_v25, %v17046_v18  ;;  %v11292_v14 = vpop.f32.mrb[161].mxu0  ;;  %12253 = vmatprep.subr.bf16.mxu1 %v12252_v32  ;;  %v17266_v18 = vadd.f32 %v17154_v20, %v17136_v16  ;;  %v17276_v16 = vadd.f32 %v17154_v20, %v17145_v63 }
 0x7c9   : > { %v4879_v36 = vpop.f32.mrb[162].mxu0  ;;  %12255 = vmatpush3.bf16.msra.mxu1 %v12254_v10 }
 0x7ca   : > { %v4965_v22 = vadd.f32 %v4879_v36, %v17051_v23  ;;  %v11293_v43 = vpop.f32.mrb[163].mxu0  ;;  %v17259_v62 = vadd.f32 %v17154_v20, %v4964_v29  ;;  %v12258_v23 = vpack.c.bf16 %v17256_v35, %v17266_v18 }
 0x7cc   : > { %v17262_v58 = vadd.f32 %v17154_v20, %v4965_v22 }
 0x7ce   : > { %v12256_v9 = vpack.c.bf16 %v17262_v58, %v17259_v62 }
 0x7cf   : > { %v4884_v2 = vpop.f32.mrb[164].mxu0 }
 0x7d0   : > { %v4966_v45 = vadd.f32 %v4884_v2, %v17058_v5  ;;  %v11296_v8 = vpop.f32.mrb[165].mxu0  ;;  %12257 = vmatprep.subr.bf16.mxu1 %v12256_v9  ;;  %v17286_v5 = vadd.f32 %v17154_v20, %v17142_v50  ;;  %v17296_v50 = vadd.f32 %v17154_v20, %v17151_v37 }
 0x7d1   : > { %v4887_v56 = vpop.f32.mrb[166].mxu0  ;;  %12259 = vmatpush3.bf16.msra.mxu1 %v12258_v23  ;;  %v20895_v8 = vmov 0.0|0.0  }
 0x7d2   : > { %v4967_v57 = vadd.f32 %v4887_v56, %v17063_v13  ;;  %v11297_v48 = vpop.f32.mrb[167].mxu0  ;;  %v17279_v44 = vadd.f32 %v17154_v20, %v4966_v45  ;;  %v12262_v13 = vpack.c.bf16 %v17276_v16, %v17286_v5 }
 0x7d4   : > { %v17282_v11 = vadd.f32 %v17154_v20, %v4967_v57  ;;  %v20896_v57 = vld [vmem:[#allocation44_spill] sm:$0xff] }
 0x7d6   : > { %v12260_v1 = vpack.c.bf16 %v17282_v11, %v17279_v44 }
 0x7d7   : > { %v4892_v52 = vpop.f32.mrb[168].mxu0 }
 0x7d8   : > { %v4968_v63 = vadd.f32 %v4892_v52, %v17070_v39  ;;  %v11300_v32 = vpop.f32.mrb[169].mxu0  ;;  %12261 = vmatprep.subr.bf16.mxu1 %v12260_v1  ;;  %v17306_v39 = vadd.f32 %v17154_v20, %v17148_v21 }
 0x7d9   : > { %v4895_v25 = vpop.f32.mrb[170].mxu0  ;;  %12263 = vmatpush3.bf16.msra.mxu1 %v12262_v13 }
 0x7da   : > { %v4969_v10 = vadd.f32 %v4895_v25, %v17073_v47  ;;  %v11301_v29 = vpop.f32.mrb[171].mxu0  ;;  %v17299_v14 = vadd.f32 %v17154_v20, %v4968_v63  ;;  %v12266_v47 = vpack.c.bf16 %v17296_v50, %v17306_v39 }
 0x7dc   : > { %v17302_v36 = vadd.f32 %v17154_v20, %v4969_v10 }
 0x7de   : > { %v12264_v22 = vpack.c.bf16 %v17302_v36, %v17299_v14 }
 0x7df   : > { %v4900_v43 = vpop.f32.mrb[172].mxu0 }
 0x7e0   : > { %v4970_v37 = vadd.f32 %v4900_v43, %v17078_v27  ;;  %v11304_v9 = vpop.f32.mrb[173].mxu0  ;;  %12265 = vmatprep.subr.bf16.mxu1 %v12264_v22 }
 0x7e1   : > { %v4903_v2 = vpop.f32.mrb[174].mxu0  ;;  %12267 = vmatpush3.bf16.msra.mxu1 %v12266_v47 }
 0x7e2   : > { %v4971_v23 = vadd.f32 %v4903_v2, %v17081_v15  ;;  %v11305_v45 = vpop.f32.mrb[175].mxu0  ;;  %12268 = vmatprep.subr.bf16.mxu1 %v20895_v8  ;;  %v17316_v21 = vadd.f32 %v17154_v20, %v4970_v37 }
 0x7e4   : > { %v17319_v56 = vadd.f32 %v17154_v20, %v4971_v23  ;;  %5097 = vmatmul.mubr.f32.vlgmr.msra.gmra.mrb[68].mxu1 %v20896_v57 }
 0x7e5   : > { %11340 = vmatprep.mubr.msk.f32.mxu1 %vm13358_vm0, %v20503_v49 }
 0x7e6   : > { %v12269_v27 = vpack.c.bf16 %v17319_v56, %v17316_v21 }
 0x7e7   : > { %v4908_v48 = vpop.f32.mrb[176].mxu0 }
 0x7e8   : > { %v4972_v15 = vadd.f32 %v4908_v48, %v17086_v38  ;;  %v11308_v1 = vpop.f32.mrb[177].mxu0  ;;  %12270 = vmatpush3.bf16.msra.mxu1 %v12269_v27 }
 0x7e9   : > { %v4911_v52 = vpop.f32.mrb[178].mxu0  ;;  %12271 = vmatprep.subr.bf16.mxu1 %v20895_v8 }
 0x7ea   : > { %v4973_v13 = vadd.f32 %v4911_v52, %v17089_v7  ;;  %v11309_v63 = vpop.f32.mrb[179].mxu0  ;;  %v17330_v32 = vadd.f32 %v17154_v20, %v4972_v15 }
 0x7ec   : > { %v17333_v25 = vadd.f32 %v17154_v20, %v4973_v13 }
 0x7ee   : > { %v12272_v10 = vpack.c.bf16 %v17333_v25, %v17330_v32 }
 0x7ef   : > { %v4916_v29 = vpop.f32.mrb[180].mxu0 }
 0x7f0   : > { %v4974_v38 = vadd.f32 %v4916_v29, %v17094_v30  ;;  %v11312_v22 = vpop.f32.mrb[181].mxu0  ;;  %12273 = vmatpush3.bf16.msra.mxu1 %v12272_v10 }
 0x7f1   : > { %v4919_v43 = vpop.f32.mrb[182].mxu0  ;;  %12274 = vmatprep.subr.bf16.mxu1 %v20895_v8  ;;  %v5191_v22 = vmul.f32 %v17182_v53, %v17182_v53 }
 0x7f2   : > { %v4975_v7 = vadd.f32 %v4919_v43, %v17097_v34  ;;  %v11313_v47 = vpop.f32.mrb[183].mxu0  ;;  %v17341_v37 = vadd.f32 %v17154_v20, %v4974_v38  ;;  %v5188_v38 = vmul.f32 %v17161_v4, %v17161_v4 }
 0x7f4   : > { %v17344_v9 = vadd.f32 %v17154_v20, %v4975_v7 }
 0x7f6   : > { %v12275_v2 = vpack.c.bf16 %v17344_v9, %v17341_v37 }
 0x7f7   : > { %v4924_v23 = vpop.f32.mrb[184].mxu0 }
 0x7f8   : > { %v4976_v30 = vadd.f32 %v4924_v23, %v17102_v40  ;;  %v11316_v45 = vpop.f32.mrb[185].mxu0  ;;  %12276 = vmatpush3.bf16.msra.mxu1 %v12275_v2  ;;  %v5189_v40 = vmul.f32 %v17164_v28, %v17164_v28  ;;  %v5190_v2 = vmul.f32 %v17179_v59, %v17179_v59 }
 0x7f9   : > { %v4927_v27 = vpop.f32.mrb[186].mxu0  ;;  %12277 = vmatprep.subr.bf16.mxu1 %v20895_v8  ;;  %v20897_v45 = vld [vmem:[#allocation41_spill] sm:$0xff] }
 0x7fa   : > { %v4977_v34 = vadd.f32 %v4927_v27, %v17105_v3  ;;  %v11317_v48 = vpop.f32.mrb[187].mxu0  ;;  %v17352_v15 = vadd.f32 %v17154_v20, %v4976_v30  ;;  %v5173_v3 = vmul.f32 %v17158_v6, %v17158_v6  ;;  %v12280_v47 = vpack.c.bf16 %v5189_v40, %v5188_v38 }
 0x7fb   : > { %v5175_v30 = vmul.f32 %v17176_v31, %v17176_v31  ;;  %v5193_v27 = vmul.f32 %v17202_v46, %v17202_v46  ;;  %v20898_v48 = vld [vmem:[#allocation40_spill] sm:$0xff]  ;;  %v5177_v40 = vmul.f32 %v17196_v41, %v17196_v41 }
 0x7fc   : > { %v17355_v1 = vadd.f32 %v17154_v20, %v4977_v34  ;;  %v5174_v34 = vmul.f32 %v17186_v12, %v17186_v12 }
 0x7fe   : > { %v12278_v52 = vpack.c.bf16 %v17355_v1, %v17352_v15 }
 0x7ff   : > { %v4932_v13 = vpop.f32.mrb[188].mxu0 }
 0x800   : > { %v4978_v63 = vadd.f32 %v4932_v13, %v17109_v54  ;;  %v11320_v10 = vpop.f32.mrb[189].mxu0  ;;  %12279 = vmatpush3.bf16.msra.mxu1 %v12278_v52  ;;  %v5172_v54 = vmul.f32 %v17167_v24, %v17167_v24  ;;  %v5192_v52 = vmul.f32 %v17199_v17, %v17199_v17  ;;  %v12286_v13 = vpack.c.bf16 %v5175_v30, %v5174_v34 }
 0x801   : > { %v4935_v29 = vpop.f32.mrb[190].mxu0  ;;  %11338 = vmatprep.subr.mxu1 %v20503_v49  ;;  %v5195_v10 = vmul.f32 %v17222_v26, %v17222_v26  ;;  %v5181_v30 = vmul.f32 %v17236_v51, %v17236_v51  ;;  %v5180_v34 = vmul.f32 %v17246_v19, %v17246_v19 }
 0x802   : > { %v17370_v43 = vadd.f32 %v17154_v20, %v4978_v63  ;;  %v11321_v7 = vpop.f32.mrb[191].mxu0  ;;  %v12282_v23 = vpack.c.bf16 %v5173_v3, %v5172_v54  ;;  %v12284_v20 = vpack.c.bf16 %v5191_v22, %v5190_v2  ;;  %v12288_v63 = vpack.c.bf16 %v5193_v27, %v5192_v52 }
 0x803   : > { %v5176_v3 = vmul.f32 %v17206_v60, %v17206_v60  ;;  %v5194_v29 = vmul.f32 %v17219_v33, %v17219_v33  ;;  %v5179_v22 = vmul.f32 %v17216_v42, %v17216_v42  ;;  %v5197_v54 = vmul.f32 %v17242_v0, %v17242_v0 }
 0x804   : > { %11339 = vmatpush3.msk.msra.mxu1 %vm720_vm1, %v17370_v43  ;;  %v5196_v2 = vmul.f32 %v17239_v61, %v17239_v61  ;;  %v5199_v27 = vmul.f32 %v17262_v58, %v17262_v58  ;;  %v12298_v52 = vpack.c.bf16 %v5181_v30, %v5180_v34  ;;  %v5205_v34 = vmul.f32 %v17319_v56, %v17319_v56 }
 0x805   : > { %11341 = vmatmul.mubr.msk.f32.vlgmr.msra.gmra.mrb[70].mxu1 %vm717_vm2, %v20897_v45  ;;  %12281 = vmatprep.subr.bf16.mxu1 %v12280_v47  ;;  %v12290_v38 = vpack.c.bf16 %v5177_v40, %v5176_v3  ;;  %v12292_v7 = vpack.c.bf16 %v5195_v10, %v5194_v29  ;;  %v5178_v47 = vmul.f32 %v17226_v55, %v17226_v55 }
 0x806   : > { %12283 = vmatpush3.bf16.msra.mxu1 %v12282_v23  ;;  %5280 = vmatprep.mubr.f32.mxu1 %v20898_v48  ;;  %v5198_v48 = vmul.f32 %v17259_v62, %v17259_v62  ;;  %v5182_v10 = vmul.f32 %v17266_v18, %v17266_v18  ;;  %v5200_v3 = vmul.f32 %v17279_v44, %v17279_v44 }
 0x807   : > { %12285 = vmatprep.subr.bf16.mxu1 %v12284_v20  ;;  %v12294_v23 = vpack.c.bf16 %v5179_v22, %v5178_v47  ;;  %v12296_v20 = vpack.c.bf16 %v5197_v54, %v5196_v2  ;;  %v5184_v54 = vmul.f32 %v17286_v5, %v17286_v5  ;;  %v5202_v47 = vmul.f32 %v17299_v14, %v17299_v14 }
 0x808   : > { %v12300_v40 = vpack.c.bf16 %v5199_v27, %v5198_v48  ;;  %v5204_v48 = vmul.f32 %v17316_v21, %v17316_v21 }
 0x80a   : > { %12287 = vmatpush3.bf16.msra.mxu1 %v12286_v13  ;;  %v5183_v13 = vmul.f32 %v17256_v35, %v17256_v35 }
 0x80b   : > { %12289 = vmatprep.subr.bf16.mxu1 %v12288_v63  ;;  %v5201_v63 = vmul.f32 %v17282_v11, %v17282_v11 }
 0x80c   : > { %v12302_v29 = vpack.c.bf16 %v5183_v13, %v5182_v10  ;;  %v5207_v13 = vmul.f32 %v17333_v25, %v17333_v25  ;;  %v5209_v10 = vmul.f32 %v17344_v9, %v17344_v9 }
 0x80d   : > { %v12304_v22 = vpack.c.bf16 %v5201_v63, %v5200_v3  ;;  %v5208_v3 = vmul.f32 %v17341_v37, %v17341_v37 }
 0x80e   : > { %12291 = vmatpush3.bf16.msra.mxu1 %v12290_v38  ;;  %v5185_v38 = vmul.f32 %v17276_v16, %v17276_v16 }
 0x80f   : > { %12293 = vmatprep.subr.bf16.mxu1 %v12292_v7  ;;  %v5203_v7 = vmul.f32 %v17302_v36, %v17302_v36 }
 0x810   : > { %v12306_v2 = vpack.c.bf16 %v5185_v38, %v5184_v54  ;;  %v5210_v38 = vmul.f32 %v17352_v15, %v17352_v15  ;;  %v5026_v54 = vld [vmem:[#allocation16] sm:$0xff] }
 0x811   : > { %v12308_v30 = vpack.c.bf16 %v5203_v7, %v5202_v47  ;;  %v5212_v7 = vmul.f32 %v17370_v43, %v17370_v43 }
 0x812   : > { %12295 = vmatpush3.bf16.msra.mxu1 %v12294_v23  ;;  %v5187_v23 = vmul.f32 %v17296_v50, %v17296_v50 }
 0x813   : > { %12297 = vmatprep.subr.bf16.mxu1 %v12296_v20  ;;  %v5186_v20 = vmul.f32 %v17306_v39, %v17306_v39 }
 0x815   : > { %v12310_v27 = vpack.c.bf16 %v5187_v23, %v5186_v20 }
 0x816   : > { %12299 = vmatpush3.bf16.msra.mxu1 %v12298_v52  ;;  %v12313_v52 = vpack.c.bf16 %v5205_v34, %v5204_v48 }
 0x817   : > { %12301 = vmatprep.subr.bf16.mxu1 %v12300_v40  ;;  %v5206_v40 = vmul.f32 %v17330_v32, %v17330_v32 }
 0x819   : > { %v12316_v63 = vpack.c.bf16 %v5207_v13, %v5206_v40 }
 0x81a   : > { %12303 = vmatpush3.bf16.msra.mxu1 %v12302_v29  ;;  %v5211_v29 = vmul.f32 %v17355_v1, %v17355_v1 }
 0x81b   : > { %12305 = vmatprep.subr.bf16.mxu1 %v12304_v22 }
 0x81c   : > { %v12322_v22 = vpack.c.bf16 %v5211_v29, %v5210_v38  ;;  %v20899_v38 = vld [vmem:[#allocation43_spill] sm:$0xff] }
 0x81e   : > { %12307 = vmatpush3.bf16.msra.mxu1 %v12306_v2 }
 0x81f   : > { %12309 = vmatprep.subr.bf16.mxu1 %v12308_v30 }
 0x822   : > { %12311 = vmatpush3.bf16.msra.mxu1 %v12310_v27 }
 0x823   : > { %12312 = vmatprep.subr.bf16.mxu1 %v20895_v8 }
 0x825   : > { %5281 = vmatmul.mubr.f32.vlgmr.msra.gmra.mrb[72].mxu1 %v20896_v57  ;;  %v12319_v57 = vpack.c.bf16 %v5209_v10, %v5208_v3 }
 0x826   : > { %12314 = vmatpush3.bf16.msra.mxu1 %v12313_v52  ;;  %11361 = vmatprep.mubr.msk.f32.mxu1 %vm13358_vm0, %v20503_v49 }
 0x827   : > { %12315 = vmatprep.subr.bf16.mxu1 %v20895_v8 }
 0x82a   : > { %12317 = vmatpush3.bf16.msra.mxu1 %v12316_v63 }
 0x82b   : > { %12318 = vmatprep.subr.bf16.mxu1 %v20895_v8 }
 0x82e   : > { %12320 = vmatpush3.bf16.msra.mxu1 %v12319_v57 }
 0x82f   : > { %12321 = vmatprep.subr.bf16.mxu1 %v20895_v8 }
 0x832   : > { %12323 = vmatpush3.bf16.msra.mxu1 %v12322_v22 }
 0x833   : > { %11359 = vmatprep.subr.mxu1 %v20503_v49 }
 0x836   : > { %11360 = vmatpush3.msk.msra.mxu1 %vm720_vm1, %v5212_v7 }
 0x837   : > { %11362 = vmatmul.mubr.msk.f32.vlgmr.msra.gmra.mrb[74].mxu1 %vm717_vm2, %v20897_v45  ;;  %11364 = vmatprep.subr.mxu1 %v20503_v49 }
 0x838   : > { %11366 = vmatprep.mubr.msk.f32.mxu1 %vm13358_vm0, %v20503_v49  ;;  %11365 = vmatpush3.msra.mxu1 %v5026_v54 }
 0x839   : > { %11369 = vmatprep.subr.mxu1 %v20503_v49 }
 0x8b7   : > { %v10236_v8 = vpop.f32.mrb[68].mxu1 }
 0x8b8   : > { %v10237_v47 = vpop.f32.mrb[69].mxu1 }
 0x8b9   : > { %v10238_v2 = vadd.f32 %v10237_v47, %v10236_v8 }
 0x8d8   : > { %v5168_v23 = vpop.f32.mrb[70].mxu1 }
 0x8d9   : > { %v5169_v30 = vadd.f32 %v10238_v2, %v5168_v23  ;;  %v11342_v20 = vpop.f32.mrb[71].mxu1 }
 0x8db   : > { %11367 = vmatmul.mubr.msk.f32.vlgmr.msra.gmra.mrb[76].mxu1 %vm1048_vm3, %v5169_v30 }
 0x8dc   : > { %11370 = vmatpush3.msra.mxu1 %v5026_v54  ;;  %11371 = vmatprep.mubr.msk.f32.mxu1 %vm13358_vm0, %v20503_v49 }
 0x8dd   : > { %11374 = vmatprep.subr.bf16.mxu1 %v20503_v49 }
 0x8f8   : > { %v10281_v45 = vpop.f32.mrb[72].mxu1 }
 0x8f9   : > { %v10282_v27 = vpop.f32.mrb[73].mxu1 }
 0x8fa   : > { %v10283_v34 = vadd.f32 %v10282_v27, %v10281_v45 }
 0x90a   : > { %v5352_v48 = vpop.f32.mrb[74].mxu1 }
 0x90b   : > { %v5353_v52 = vadd.f32 %v10283_v34, %v5352_v48  ;;  %v11363_v13 = vpop.f32.mrb[75].mxu1 }
 0x90d   : > { %11372 = vmatmul.mubr.msk.f32.vlgmr.msra.gmra.mrb[78].mxu1 %vm1048_vm3, %v5353_v52 }
 0x90e   : > { %11376 = vmatprep.mubr.msk.bf16.mxu1 %vm13358_vm0, %v20503_v49 }
 0x9ae   : > { %v5425_v40 = vpop.f32.mrb[76].mxu1 }
 0x9af   : > { %v11368_v63 = vpop.f32.mrb[77].mxu1  ;;  %v5502_v10 = vmul.f32 %v5425_v40, %v5425_v40  ;;  %v17474_v22 = vrot.slane %v5425_v40, %v20899_v38 }
 0x9b1   : > { %v5510_v54 = vsub.f32 %v17167_v24, %v17474_v22  ;;  %v5511_v8 = vsub.f32 %v17158_v6, %v17474_v22  ;;  %v5512_v47 = vsub.f32 %v17186_v12, %v17474_v22  ;;  %v5513_v2 = vsub.f32 %v17176_v31, %v17474_v22 }
 0x9b2   : > { %v5514_v23 = vsub.f32 %v17206_v60, %v17474_v22  ;;  %v5515_v30 = vsub.f32 %v17196_v41, %v17474_v22  ;;  %v5516_v20 = vsub.f32 %v17226_v55, %v17474_v22  ;;  %v5517_v24 = vsub.f32 %v17216_v42, %v17474_v22 }
 0x9b3   : > { %v5518_v6 = vsub.f32 %v17246_v19, %v17474_v22  ;;  %v5519_v12 = vsub.f32 %v17236_v51, %v17474_v22  ;;  %v5520_v31 = vsub.f32 %v17266_v18, %v17474_v22  ;;  %v5521_v60 = vsub.f32 %v17256_v35, %v17474_v22 }
 0x9b4   : > { %v5522_v41 = vsub.f32 %v17286_v5, %v17474_v22  ;;  %v5523_v55 = vsub.f32 %v17276_v16, %v17474_v22  ;;  %v5524_v42 = vsub.f32 %v17306_v39, %v17474_v22  ;;  %v5525_v19 = vsub.f32 %v17296_v50, %v17474_v22 }
 0x9b5   : > { %v5526_v51 = vsub.f32 %v17161_v4, %v17474_v22  ;;  %v5527_v18 = vsub.f32 %v17164_v28, %v17474_v22  ;;  %v5528_v35 = vsub.f32 %v17179_v59, %v17474_v22  ;;  %v5529_v5 = vsub.f32 %v17182_v53, %v17474_v22 }
 0x9b6   : > { %v5530_v16 = vsub.f32 %v17199_v17, %v17474_v22  ;;  %v5531_v39 = vsub.f32 %v17202_v46, %v17474_v22  ;;  %v5532_v50 = vsub.f32 %v17219_v33, %v17474_v22  ;;  %v5533_v4 = vsub.f32 %v17222_v26, %v17474_v22 }
 0x9b7   : > { %v5534_v28 = vsub.f32 %v17239_v61, %v17474_v22  ;;  %v5535_v59 = vsub.f32 %v17242_v0, %v17474_v22  ;;  %v5536_v53 = vsub.f32 %v17259_v62, %v17474_v22  ;;  %v5537_v17 = vsub.f32 %v17262_v58, %v17474_v22 }
 0x9b8   : > { %v5538_v46 = vsub.f32 %v17279_v44, %v17474_v22  ;;  %v5539_v33 = vsub.f32 %v17282_v11, %v17474_v22  ;;  %v5540_v26 = vsub.f32 %v17299_v14, %v17474_v22  ;;  %v5541_v61 = vsub.f32 %v17302_v36, %v17474_v22 }
 0x9b9   : > { %v5542_v0 = vsub.f32 %v17316_v21, %v17474_v22  ;;  %v5543_v62 = vsub.f32 %v17319_v56, %v17474_v22  ;;  %v5544_v58 = vsub.f32 %v17330_v32, %v17474_v22  ;;  %v5545_v44 = vsub.f32 %v17333_v25, %v17474_v22 }
 0x9ba   : > { %v5546_v11 = vsub.f32 %v17341_v37, %v17474_v22  ;;  %v5547_v36 = vsub.f32 %v17344_v9, %v17474_v22  ;;  %v5548_v21 = vsub.f32 %v17352_v15, %v17474_v22  ;;  %v5549_v56 = vsub.f32 %v17355_v1, %v17474_v22 }
 0x9bb   : > { %v5550_v32 = vsub.f32 %v17370_v43, %v17474_v22 }
 0x9e0   : > { %v5498_v3 = vpop.f32.mrb[78].mxu1 }
 0x9e1   : > { %v5503_v57 = vsub.f32 %v5498_v3, %v5502_v10  ;;  %v11373_v29 = vpop.f32.mrb[79].mxu1 }
 0x9e3   : > { %v5504_v7 = vadd.f32 1e-05, %v5503_v57 }
 0x9e5   : > { %12675 = vrsqrt.f32 %v5504_v7 }
 0x9ef   : > { %v12676_v45 = vpop.eup %12675 }
 0x9f0   : > { %v5554_v14 = vrot.slane %v12676_v45, %v20899_v38 }
 0x9f2   : > { %v5555_v27 = vmul.f32 %v5554_v14, %v5510_v54  ;;  %v5556_v34 = vmul.f32 %v5554_v14, %v5511_v8  ;;  %v5557_v25 = vmul.f32 %v5554_v14, %v5512_v47  ;;  %v5558_v48 = vmul.f32 %v5554_v14, %v5513_v2 }
 0x9f3   : > { %v5559_v52 = vmul.f32 %v5554_v14, %v5514_v23  ;;  %v17559_v37 = vmul.f32 %v5554_v14, %v5515_v30  ;;  %v17561_v13 = vmul.f32 %v5554_v14, %v5516_v20  ;;  %v17563_v40 = vmul.f32 %v5554_v14, %v5517_v24 }
 0x9f4   : > { %v17565_v9 = vmul.f32 %v5554_v14, %v5518_v6  ;;  %v17567_v15 = vmul.f32 %v5554_v14, %v5519_v12  ;;  %v17569_v63 = vmul.f32 %v5554_v14, %v5520_v31  ;;  %v17571_v1 = vmul.f32 %v5554_v14, %v5521_v60 }
 0x9f5   : > { %v17573_v43 = vmul.f32 %v5554_v14, %v5522_v41  ;;  %v17575_v10 = vmul.f32 %v5554_v14, %v5523_v55  ;;  %v5569_v3 = vmul.f32 %v5554_v14, %v5524_v42  ;;  %v5570_v57 = vmul.f32 %v5554_v14, %v5525_v19 }
 0x9f6   : > { %v5571_v29 = vmul.f32 %v5554_v14, %v5526_v51  ;;  %v5572_v38 = vmul.f32 %v5554_v14, %v5527_v18  ;;  %v5573_v22 = vmul.f32 %v5554_v14, %v5528_v35  ;;  %v5574_v7 = vmul.f32 %v5554_v14, %v5529_v5  ;;  %v17577_v51 = vld [vmem:[#allocation17] ss:$0 sm:$0xff] }
 0x9f7   : > { %v5575_v54 = vmul.f32 %v5554_v14, %v5530_v16  ;;  %v5576_v8 = vmul.f32 %v5554_v14, %v5531_v39  ;;  %v5577_v47 = vmul.f32 %v5554_v14, %v5532_v50  ;;  %v5578_v2 = vmul.f32 %v5554_v14, %v5533_v4 }
 0x9f8   : > { %v5579_v23 = vmul.f32 %v5554_v14, %v5534_v28  ;;  %v5580_v30 = vmul.f32 %v5554_v14, %v5535_v59  ;;  %v5581_v20 = vmul.f32 %v5554_v14, %v5536_v53  ;;  %v5582_v24 = vmul.f32 %v5554_v14, %v5537_v17 }
 0x9f9   : > { %v5583_v6 = vmul.f32 %v5554_v14, %v5538_v46  ;;  %v5584_v12 = vmul.f32 %v5554_v14, %v5539_v33  ;;  %v5585_v31 = vmul.f32 %v5554_v14, %v5540_v26  ;;  %v5586_v60 = vmul.f32 %v5554_v14, %v5541_v61 }
 0x9fa   : > { %v5587_v41 = vmul.f32 %v5554_v14, %v5542_v0  ;;  %v5588_v55 = vmul.f32 %v5554_v14, %v5543_v62  ;;  %v5589_v42 = vmul.f32 %v5554_v14, %v5544_v58  ;;  %v5590_v19 = vmul.f32 %v5554_v14, %v5545_v44 }
 0x9fb   : > { %v5591_v18 = vmul.f32 %v5554_v14, %v5546_v11  ;;  %v5592_v35 = vmul.f32 %v5554_v14, %v5547_v36  ;;  %v17579_v5 = vmul.f32 %v5554_v14, %v5548_v21  ;;  %v17581_v16 = vmul.f32 %v5554_v14, %v5549_v56 }
 0x9fc   : > { %v17583_v39 = vmul.f32 %v5554_v14, %v5550_v32  ;;  %v5602_v50 = vmul.f32 %v17577_v51, %v5555_v27  ;;  %v5603_v4 = vmul.f32 %v17577_v51, %v5556_v34  ;;  %v5604_v28 = vmul.f32 %v17577_v51, %v5557_v25 }
 0x9fd   : > { %v5605_v59 = vmul.f32 %v17577_v51, %v5558_v48  ;;  %v5606_v53 = vmul.f32 %v17577_v51, %v5559_v52  ;;  %v5616_v17 = vmul.f32 %v17577_v51, %v5569_v3  ;;  %v5617_v46 = vmul.f32 %v17577_v51, %v5570_v57  ;;  %v17611_v3 = vld [vmem:[#allocation19] ss:$0 sm:$0xff] }
 0x9fe   : > { %v5618_v33 = vmul.f32 %v17577_v51, %v5571_v29  ;;  %v5619_v45 = vmul.f32 %v17577_v51, %v5572_v38  ;;  %v5620_v26 = vmul.f32 %v17577_v51, %v5573_v22  ;;  %v5621_v61 = vmul.f32 %v17577_v51, %v5574_v7 }
 0x9ff   : > { %v5622_v0 = vmul.f32 %v17577_v51, %v5575_v54  ;;  %v5623_v62 = vmul.f32 %v17577_v51, %v5576_v8  ;;  %v5624_v58 = vmul.f32 %v17577_v51, %v5577_v47  ;;  %v5625_v44 = vmul.f32 %v17577_v51, %v5578_v2 }
 0xa00   : > { %v5626_v11 = vmul.f32 %v17577_v51, %v5579_v23  ;;  %v5627_v14 = vmul.f32 %v17577_v51, %v5580_v30  ;;  %v5628_v36 = vmul.f32 %v17577_v51, %v5581_v20  ;;  %v5629_v21 = vmul.f32 %v17577_v51, %v5582_v24 }
 0xa01   : > { %v5630_v56 = vmul.f32 %v17577_v51, %v5583_v6  ;;  %v5631_v32 = vmul.f32 %v17577_v51, %v5584_v12  ;;  %v5632_v27 = vmul.f32 %v17577_v51, %v5585_v31  ;;  %v5633_v34 = vmul.f32 %v17577_v51, %v5586_v60 }
 0xa02   : > { %v5634_v25 = vmul.f32 %v17577_v51, %v5587_v41  ;;  %v5635_v48 = vmul.f32 %v17577_v51, %v5588_v55  ;;  %v5636_v52 = vmul.f32 %v17577_v51, %v5589_v42  ;;  %v5607_v57 = vmul.f32 %v17577_v51, %v17559_v37 }
 0xa03   : > { %v5637_v29 = vmul.f32 %v17577_v51, %v5590_v19  ;;  %v5638_v38 = vmul.f32 %v17577_v51, %v5591_v18  ;;  %v5639_v22 = vmul.f32 %v17577_v51, %v5592_v35  ;;  %v5608_v7 = vmul.f32 %v17577_v51, %v17561_v13 }
 0xa04   : > { %v5609_v54 = vmul.f32 %v17577_v51, %v17563_v40  ;;  %v5610_v8 = vmul.f32 %v17577_v51, %v17565_v9  ;;  %v5611_v47 = vmul.f32 %v17577_v51, %v17567_v15  ;;  %v17627_v37 = vadd.f32 %v17611_v3, %v5602_v50 }
 0xa05   : > { %v17630_v2 = vadd.f32 %v17611_v3, %v5603_v4  ;;  %v17633_v23 = vadd.f32 %v17611_v3, %v5604_v28  ;;  %v17636_v13 = vadd.f32 %v17611_v3, %v5605_v59  ;;  %v17639_v40 = vadd.f32 %v17611_v3, %v5606_v53 }
 0xa06   : > { %v17642_v9 = vadd.f32 %v17611_v3, %v5607_v57  ;;  %v17645_v15 = vadd.f32 %v17611_v3, %v5616_v17  ;;  %v17648_v30 = vadd.f32 %v17611_v3, %v5617_v46  ;;  %v17651_v20 = vadd.f32 %v17611_v3, %v5618_v33 }
 0xa07   : > { %v17654_v24 = vadd.f32 %v17611_v3, %v5619_v45  ;;  %v17657_v6 = vadd.f32 %v17611_v3, %v5620_v26  ;;  %v17660_v12 = vadd.f32 %v17611_v3, %v5621_v61  ;;  %v17663_v31 = vadd.f32 %v17611_v3, %v5622_v0 }
 0xa08   : > { %v17666_v60 = vadd.f32 %v17611_v3, %v5623_v62  ;;  %v17669_v41 = vadd.f32 %v17611_v3, %v5624_v58  ;;  %v17672_v55 = vadd.f32 %v17611_v3, %v5625_v44  ;;  %v17675_v42 = vadd.f32 %v17611_v3, %v5626_v11 }
 0xa09   : > { %v17678_v19 = vadd.f32 %v17611_v3, %v5627_v14  ;;  %v17681_v18 = vadd.f32 %v17611_v3, %v5628_v36  ;;  %v17684_v35 = vadd.f32 %v17611_v3, %v5629_v21  ;;  %v17687_v50 = vadd.f32 %v17611_v3, %v5630_v56 }
 0xa0a   : > { %20900 = vst [vmem:[#allocation172_spill] sm:$0xff] %v17669_v41  ;;  %20901 = vst [vmem:[#allocation163_spill] sm:$0xff] %v17672_v55  ;;  %v17690_v4 = vadd.f32 %v17611_v3, %v5631_v32  ;;  %v17693_v28 = vadd.f32 %v17611_v3, %v5632_v27  ;;  %v17696_v59 = vadd.f32 %v17611_v3, %v5633_v34  ;;  %v9678_v58 = vmul.f32 -1.442695, %v17627_v37 }
 0xa0b   : > { %20902 = vst [vmem:[#allocation174_spill] sm:$0xff] %v17675_v42  ;;  %20903 = vst [vmem:[#allocation175_spill] sm:$0xff] %v17678_v19  ;;  %v17699_v53 = vadd.f32 %v17611_v3, %v5634_v25  ;;  %v17702_v17 = vadd.f32 %v17611_v3, %v5635_v48  ;;  %v17705_v46 = vadd.f32 %v17611_v3, %v5636_v52  ;;  %v9679_v11 = vmul.f32 -1.442695, %v17630_v2 }
 0xa0c   : > { %20904 = vst [vmem:[#allocation164_spill] sm:$0xff] %v17681_v18  ;;  %20905 = vst [vmem:[#allocation177_spill] sm:$0xff] %v17684_v35  ;;  %v17708_v33 = vadd.f32 %v17611_v3, %v5637_v29  ;;  %v17711_v45 = vadd.f32 %v17611_v3, %v5638_v38  ;;  %v17714_v26 = vadd.f32 %v17611_v3, %v5639_v22  ;;  %v9680_v14 = vmul.f32 -1.442695, %v17633_v23 }
 0xa0d   : > { %20906 = vst [vmem:[#allocation178_spill] sm:$0xff] %v17687_v50  ;;  %20907 = vst [vmem:[#allocation167_spill] sm:$0xff] %v17690_v4  ;;  %v5612_v61 = vmul.f32 %v17577_v51, %v17569_v63  ;;  %v5613_v0 = vmul.f32 %v17577_v51, %v17571_v1  ;;  %v17721_v62 = vadd.f32 %v17611_v3, %v5608_v7  ;;  %v9681_v36 = vmul.f32 -1.442695, %v17636_v13 }
 0xa0e   : > { %20908 = vst [vmem:[#allocation180_spill] sm:$0xff] %v17693_v28  ;;  %20909 = vst [vmem:[#allocation170_spill] sm:$0xff] %v17696_v59  ;;  %v17725_v44 = vadd.f32 %v17611_v3, %v5609_v54  ;;  %v5614_v63 = vmul.f32 %v17577_v51, %v17573_v43  ;;  %v17733_v21 = vadd.f32 %v17611_v3, %v5610_v8  ;;  %12677 = vpow2.f32 %v9678_v58 }
 0xa0f   : > { %20910 = vst [vmem:[#allocation173_spill] sm:$0xff] %v17699_v53  ;;  %20911 = vst [vmem:[#allocation176_spill] sm:$0xff] %v17702_v17  ;;  %v9682_v1 = vmul.f32 -1.442695, %v17639_v40  ;;  %v5615_v56 = vmul.f32 %v17577_v51, %v17575_v10  ;;  %v17739_v32 = vadd.f32 %v17611_v3, %v5611_v47  ;;  %12679 = vpow2.f32 %v9679_v11 }
 0xa10   : > { %20912 = vst [vmem:[#allocation154_spill] sm:$0xff] %v17705_v46  ;;  %20913 = vst [vmem:[#allocation179_spill] sm:$0xff] %v17708_v33  ;;  %v9683_v27 = vmul.f32 -1.442695, %v17642_v9  ;;  %v17743_v34 = vadd.f32 %v17611_v3, %v5612_v61  ;;  %12681 = vpow2.f32 %v9680_v14  ;;  %v9684_v43 = vmul.f32 -1.442695, %v17721_v62 }
 0xa11   : > { %20914 = vst [vmem:[#allocation155_spill] sm:$0xff] %v17711_v45  ;;  %20915 = vst [vmem:[#allocation78_spill] sm:$0xff] %v17714_v26  ;;  %v17747_v25 = vadd.f32 %v17611_v3, %v5613_v0  ;;  %12683 = vpow2.f32 %v9681_v36  ;;  %v9685_v48 = vmul.f32 -1.442695, %v17725_v44  ;;  %v17751_v10 = vadd.f32 %v17611_v3, %v5614_v63  ;;  %v6298_v61 = vld [vmem:[#allocation20 + $0x4] sm:$0xf] }
 0xa12   : > { %12685 = vpow2.f32 %v9682_v1  ;;  %v9686_v52 = vmul.f32 -1.442695, %v17733_v21  ;;  %v17755_v57 = vadd.f32 %v17611_v3, %v5615_v56  ;;  %v9687_v29 = vmul.f32 -1.442695, %v17739_v32  ;;  %v6230_v0 = vld [vmem:[#allocation20] sm:$0xf] }
 0xa13   : > { %12687 = vpow2.f32 %v9683_v27  ;;  %v9688_v38 = vmul.f32 -1.442695, %v17743_v34  ;;  %v9689_v22 = vmul.f32 -1.442695, %v17747_v25  ;;  %v9690_v7 = vmul.f32 -1.442695, %v17751_v10 }
 0xa14   : > { %12689 = vpow2.f32 %v9684_v43  ;;  %v9691_v54 = vmul.f32 -1.442695, %v17755_v57  ;;  %v9692_v47 = vmul.f32 -1.442695, %v17645_v15  ;;  %v9693_v11 = vmul.f32 -1.442695, %v17648_v30 }
 0xa15   : > { %12691 = vpow2.f32 %v9685_v48  ;;  %v9694_v36 = vmul.f32 -1.442695, %v17651_v20  ;;  %v9695_v1 = vmul.f32 -1.442695, %v17654_v24  ;;  %v6362_v56 = vsel %vm720_vm1, %v6298_v61, 0 }
 0xa16   : > { %12693 = vpow2.f32 %v9686_v52  ;;  %v6628_v27 = vsel %vm720_vm1, %v6230_v0, 0  ;;  %v9696_v48 = vmul.f32 -1.442695, %v17657_v6  ;;  %11375 = vmatpush3.bf16.msra.mxu1 %v6362_v56  ;;  %v9700_v61 = vmul.f32 -1.442695, %v17669_v41 }
 0xa17   : > { %12695 = vpow2.f32 %v9687_v29  ;;  %11461 = vmatpush3.bf16.msra.mxu0 %v6628_v27  ;;  %v9697_v29 = vmul.f32 -1.442695, %v17660_v12  ;;  %11546 = vmatprep.subr.bf16.mxu1 %v20503_v49 }
 0xa18   : > { %v17762_v8 = vpop.eup %12677  ;;  %12697 = vpow2.f32 %v9688_v38  ;;  %11632 = vmatprep.subr.bf16.mxu0 %v20503_v49 }
 0xa19   : > { %v17765_v58 = vpop.eup %12679  ;;  %12699 = vpow2.f32 %v9689_v22  ;;  %v9698_v22 = vmul.f32 -1.442695, %v17663_v31 }
 0xa1a   : > { %v17768_v14 = vpop.eup %12681  ;;  %12701 = vpow2.f32 %v9690_v7 }
 0xa1b   : > { %v17771_v63 = vpop.eup %12683  ;;  %12703 = vpow2.f32 %v9691_v54  ;;  %v9699_v54 = vmul.f32 -1.442695, %v17666_v60 }
 0xa1c   : > { %v17776_v43 = vpop.eup %12685  ;;  %12705 = vpow2.f32 %v9692_v47 }
 0xa1d   : > { %v17779_v52 = vpop.eup %12687  ;;  %12707 = vpow2.f32 %v9693_v11  ;;  %v9701_v11 = vmul.f32 -1.442695, %v17672_v55 }
 0xa1e   : > { %v17784_v38 = vpop.eup %12689  ;;  %12709 = vpow2.f32 %v9694_v36  ;;  %v9702_v36 = vmul.f32 -1.442695, %v17675_v42 }
 0xa1f   : > { %v17787_v7 = vpop.eup %12691  ;;  %12711 = vpow2.f32 %v9695_v1  ;;  %v9703_v1 = vmul.f32 -1.442695, %v17678_v19 }
 0xa20   : > { %v17790_v47 = vpop.eup %12693  ;;  %12713 = vpow2.f32 %v9696_v48  ;;  %v9704_v48 = vmul.f32 -1.442695, %v17681_v18 }
 0xa21   : > { %v17793_v0 = vpop.eup %12695  ;;  %12715 = vpow2.f32 %v9697_v29  ;;  %v9705_v29 = vmul.f32 -1.442695, %v17684_v35 }
 0xa22   : > { %v17796_v56 = vpop.eup %12697  ;;  %12717 = vpow2.f32 %v9698_v22  ;;  %v9706_v22 = vmul.f32 -1.442695, %v17687_v50  ;;  %v9709_v50 = vmul.f32 -1.442695, %v17696_v59 }
 0xa23   : > { %v17799_v27 = vpop.eup %12699  ;;  %12719 = vpow2.f32 %v9699_v54  ;;  %v9707_v54 = vmul.f32 -1.442695, %v17690_v4  ;;  %v9710_v4 = vmul.f32 -1.442695, %v17699_v53 }
 0xa24   : > { %v17802_v49 = vpop.eup %12701  ;;  %12721 = vpow2.f32 %v9700_v61  ;;  %v5640_v61 = vmul.f32 %v17577_v51, %v17579_v5 }
 0xa25   : > { %v17805_v41 = vpop.eup %12703  ;;  %12723 = vpow2.f32 %v9701_v11  ;;  %v9708_v11 = vmul.f32 -1.442695, %v17693_v28 }
 0xa26   : > { %v17808_v55 = vpop.eup %12705  ;;  %12725 = vpow2.f32 %v9702_v36  ;;  %v5641_v36 = vmul.f32 %v17577_v51, %v17581_v16  ;;  %v17835_v16 = vadd.f32 %v17611_v3, %v5640_v61  ;;  %v9714_v61 = vmul.f32 -1.442695, %v17711_v45 }
 0xa27   : > { %v17811_v42 = vpop.eup %12707  ;;  %12727 = vpow2.f32 %v9703_v1  ;;  %v5642_v1 = vmul.f32 %v17577_v51, %v17583_v39  ;;  %v9713_v39 = vmul.f32 -1.442695, %v17708_v33 }
 0xa28   : > { %v17814_v19 = vpop.eup %12709  ;;  %12729 = vpow2.f32 %v9704_v48  ;;  %v9711_v48 = vmul.f32 -1.442695, %v17702_v17  ;;  %20916 = vst [vmem:[#allocation79_spill] sm:$0xff] %v17835_v16  ;;  %v17841_v51 = vadd.f32 %v17611_v3, %v5641_v36 }
 0xa29   : > { %v17819_v18 = vpop.eup %12711  ;;  %12731 = vpow2.f32 %v9705_v29  ;;  %v9712_v29 = vmul.f32 -1.442695, %v17705_v46 }
 0xa2a   : > { %v17824_v35 = vpop.eup %12713  ;;  %12733 = vpow2.f32 %v9706_v22  ;;  %20917 = vst [vmem:[#allocation51_spill] sm:$0xff] %v17841_v51  ;;  %v9717_v33 = vmul.f32 -1.442695, %v17841_v51 }
 0xa2b   : > { %v17829_v5 = vpop.eup %12715  ;;  %12735 = vpow2.f32 %v9707_v54  ;;  %v17847_v54 = vadd.f32 %v17611_v3, %v5642_v1  ;;  %v5813_v1 = vadd.f32 1.0, %v17762_v8 }
 0xa2c   : > { %v17832_v28 = vpop.eup %12717  ;;  %12737 = vpow2.f32 %v9708_v11  ;;  %v9715_v11 = vmul.f32 -1.442695, %v17714_v26  ;;  %v5814_v26 = vadd.f32 1.0, %v17765_v58 }
 0xa2d   : > { %v17838_v59 = vpop.eup %12719  ;;  %12739 = vpow2.f32 %v9709_v50  ;;  %20918 = vst [vmem:[#allocation156_spill] sm:$0xff] %v17847_v54  ;;  %v9716_v50 = vmul.f32 -1.442695, %v17835_v16  ;;  %v9718_v3 = vmul.f32 -1.442695, %v17847_v54 }
 0xa2e   : > { %v17844_v22 = vpop.eup %12721  ;;  %12741 = vpow2.f32 %v9710_v4 }
 0xa2f   : > { %v17850_v17 = vpop.eup %12723  ;;  %12743 = vpow2.f32 %v9711_v48  ;;  %v5835_v16 = vadd.f32 1.0, %v17844_v22 }
 0xa30   : > { %v17853_v46 = vpop.eup %12725  ;;  %12745 = vpow2.f32 %v9712_v29  ;;  %v5815_v29 = vadd.f32 1.0, %v17768_v14 }
 0xa31   : > { %v12728_v36 = vpop.eup %12727  ;;  %12747 = vpow2.f32 %v9713_v39 }
 0xa32   : > { %v12730_v53 = vpop.eup %12729  ;;  %12749 = vpow2.f32 %v9714_v61  ;;  %v5816_v61 = vadd.f32 1.0, %v17771_v63 }
 0xa33   : > { %v12732_v4 = vpop.eup %12731  ;;  %12751 = vpow2.f32 %v9715_v11  ;;  %v5817_v11 = vadd.f32 1.0, %v17776_v43  ;;  %v5821_v43 = vadd.f32 1.0, %v17790_v47  ;;  %v5827_v47 = vadd.f32 1.0, %v17808_v55 }
 0xa34   : > { %v12734_v48 = vpop.eup %12733  ;;  %12753 = vpow2.f32 %v9716_v50  ;;  %v5818_v50 = vadd.f32 1.0, %v17779_v52  ;;  %v5822_v52 = vadd.f32 1.0, %v17793_v0  ;;  %v5828_v0 = vadd.f32 1.0, %v17811_v42 }
 0xa35   : > { %v17860_v45 = vpop.eup %12735  ;;  %12755 = vpow2.f32 %v9717_v33  ;;  %v5819_v33 = vadd.f32 1.0, %v17784_v38  ;;  %v5823_v38 = vadd.f32 1.0, %v17796_v56  ;;  %v5830_v56 = vadd.f32 1.0, %v17819_v18 }
 0xa36   : > { %v17863_v39 = vpop.eup %12737  ;;  %12757 = vpow2.f32 %v9718_v3  ;;  %v5820_v3 = vadd.f32 1.0, %v17787_v7  ;;  %v5825_v7 = vadd.f32 1.0, %v17802_v49  ;;  %v5832_v49 = vadd.f32 1.0, %v17829_v5 }
 0xa37   : > { %v17866_v51 = vpop.eup %12739  ;;  %12759 = vrcp.f32 %v5813_v1  ;;  %v17906_v42 = vadd.f32 1.0, %v17850_v17  ;;  %v17909_v18 = vadd.f32 1.0, %v17853_v46  ;;  %v17914_v5 = vadd.f32 1.0, %v12730_v53  ;;  %v20921_v53 = vld [vmem:[#allocation49_spill] sm:$0xff] }
 0xa38   : > { %v17869_v8 = vpop.eup %12741  ;;  %12761 = vrcp.f32 %v5814_v26  ;;  %v17919_v22 = vadd.f32 1.0, %v12734_v48 }
 0xa39   : > { %v17872_v58 = vpop.eup %12743  ;;  %12763 = vrcp.f32 %v5815_v29  ;;  %v5824_v29 = vadd.f32 1.0, %v17799_v27 }
 0xa3a   : > { %v17875_v14 = vpop.eup %12745  ;;  %12765 = vrcp.f32 %v5816_v61  ;;  %v5826_v61 = vadd.f32 1.0, %v17805_v41  ;;  %v5833_v41 = vadd.f32 1.0, %v17832_v28 }
 0xa3b   : > { %v17878_v63 = vpop.eup %12747  ;;  %12767 = vrcp.f32 %v5817_v11 }
 0xa3c   : > { %v17881_v1 = vpop.eup %12749  ;;  %12769 = vrcp.f32 %v5818_v50  ;;  %v5829_v50 = vadd.f32 1.0, %v17814_v19 }
 0xa3d   : > { %v17884_v26 = vpop.eup %12751  ;;  %12771 = vrcp.f32 %v5819_v33  ;;  %v5831_v33 = vadd.f32 1.0, %v17824_v35 }
 0xa3e   : > { %v17888_v54 = vpop.eup %12753  ;;  %12773 = vrcp.f32 %v5820_v3  ;;  %v5834_v3 = vadd.f32 1.0, %v17838_v59 }
 0xa3f   : > { %v17893_v11 = vpop.eup %12755  ;;  %12775 = vrcp.f32 %v5821_v43  ;;  %v17911_v43 = vadd.f32 1.0, %v12728_v36 }
 0xa40   : > { %v17898_v27 = vpop.eup %12757  ;;  %12777 = vrcp.f32 %v5822_v52  ;;  %v17916_v52 = vadd.f32 1.0, %v12732_v4 }
 0xa41   : > { %20919 = vst [vmem:[#allocation56_spill] sm:$0xff] %v17898_v27  ;;  %v12760_v55 = vpop.eup %12759  ;;  %12779 = vrcp.f32 %v5823_v38  ;;  %v20920_v38 = vld [vmem:[#allocation48_spill] sm:$0xff] }
 0xa42   : > { %v12762_v19 = vpop.eup %12761  ;;  %12781 = vrcp.f32 %v5824_v29  ;;  %v5936_v35 = vmul.f32 %v12760_v55, %v17627_v37  ;;  %v17924_v29 = vadd.f32 1.0, %v17860_v45  ;;  %v20923_v45 = vld [vmem:[#allocation53_spill] sm:$0xff] }
 0xa43   : > { %v12764_v28 = vpop.eup %12763  ;;  %12783 = vrcp.f32 %v5825_v7  ;;  %v5937_v59 = vmul.f32 %v12762_v19, %v17630_v2  ;;  %v17929_v2 = vadd.f32 1.0, %v17863_v39 }
 0xa44   : > { %v12766_v17 = vpop.eup %12765  ;;  %12785 = vrcp.f32 %v5826_v61  ;;  %v5938_v46 = vmul.f32 %v12764_v28, %v17633_v23  ;;  %v5977_v36 = vmul.f32 %v5936_v35, %v20920_v38  ;;  %v20922_v61 = vld [vmem:[#allocation52_spill] sm:$0xff]  ;;  %v17938_v28 = vadd.f32 1.0, %v17866_v51 }
 0xa45   : > { %v12768_v27 = vpop.eup %12767  ;;  %12787 = vrcp.f32 %v5827_v47  ;;  %v5939_v37 = vmul.f32 %v12766_v17, %v17636_v13  ;;  %v5978_v4 = vmul.f32 %v5937_v59, %v20921_v53  ;;  %v17947_v38 = vadd.f32 1.0, %v17869_v8 }
 0xa46   : > { %v12770_v7 = vpop.eup %12769  ;;  %12789 = vrcp.f32 %v5828_v0  ;;  %v5940_v48 = vmul.f32 %v12768_v27, %v17639_v40  ;;  %v5979_v23 = vmul.f32 %v5938_v46, %v20922_v61  ;;  %v20925_v0 = vld [vmem:[#allocation55_spill] sm:$0xff] }
 0xa47   : > { %v12772_v55 = vpop.eup %12771  ;;  %12791 = vrcp.f32 %v5829_v50  ;;  %v5941_v19 = vmul.f32 %v12770_v7, %v17642_v9  ;;  %v5980_v35 = vmul.f32 %v5939_v37, %v20923_v45  ;;  %v17935_v47 = vpack.c.bf16 %v5978_v4, %v5977_v36  ;;  %v20926_v50 = vld [vmem:[#allocation57_spill] sm:$0xff] }
 0xa48   : > { %v12774_v13 = vpop.eup %12773  ;;  %12793 = vrcp.f32 %v5830_v56  ;;  %v5942_v39 = vmul.f32 %v12772_v55, %v17721_v62  ;;  %v5981_v59 = vmul.f32 %v5940_v48, %v20925_v0  ;;  %v20928_v56 = vld [vmem:[#allocation58_spill] sm:$0xff]  ;;  %v5846_v7 = vadd.f32 1.0, %v17872_v58  ;;  %v20931_v48 = vld [vmem:[#allocation64_spill] sm:$0xff] }
 0xa49   : > { %20924 = vst [vmem:[#allocation157_spill] sm:$0xff] %v17935_v47  ;;  %v12776_v40 = vpop.eup %12775  ;;  %12795 = vrcp.f32 %v5831_v33  ;;  %v5943_v27 = vmul.f32 %v12774_v13, %v17725_v44  ;;  %v5982_v17 = vmul.f32 %v5941_v19, %v20926_v50  ;;  %v17944_v9 = vpack.c.bf16 %v5980_v35, %v5979_v23  ;;  %v20929_v33 = vld [vmem:[#allocation59_spill] sm:$0xff]  ;;  %v20932_v23 = vld [vmem:[#allocation65_spill] sm:$0xff] }
 0xa4a   : > { %v12778_v46 = vpop.eup %12777  ;;  %12797 = vrcp.f32 %v5832_v49  ;;  %v5944_v51 = vmul.f32 %v12776_v40, %v17733_v21  ;;  %v5983_v36 = vmul.f32 %v5942_v39, %v20928_v56  ;;  %v5847_v19 = vadd.f32 1.0, %v17875_v14  ;;  %v20935_v35 = vld [vmem:[#allocation67_spill] sm:$0xff]  ;;  %v20938_v40 = vld [vmem:[#allocation72_spill] sm:$0xff] }
 0xa4b   : > { %20927 = vst [vmem:[#allocation37_spill] sm:$0xff] %v17944_v9  ;;  %v12780_v62 = vpop.eup %12779  ;;  %12799 = vrcp.f32 %v5833_v41  ;;  %v5945_v37 = vmul.f32 %v12778_v46, %v17739_v32  ;;  %v5984_v53 = vmul.f32 %v5943_v27, %v20929_v33  ;;  %v17953_v44 = vpack.c.bf16 %v5982_v17, %v5981_v59  ;;  %v20944_v33 = vld [vmem:[#allocation83_spill] sm:$0xff] }
 0xa4c   : > { %v12782_v4 = vpop.eup %12781  ;;  %12801 = vrcp.f32 %v5834_v3  ;;  %v5946_v8 = vmul.f32 %v12780_v62, %v17743_v34  ;;  %v5985_v49 = vmul.f32 %v5944_v51, %v20931_v48  ;;  %v20934_v3 = vld [vmem:[#allocation66_spill] sm:$0xff]  ;;  %v5848_v0 = vadd.f32 1.0, %v17878_v63  ;;  %v20941_v51 = vld [vmem:[#allocation76_spill] sm:$0xff] }
 0xa4d   : > { %20930 = vst [vmem:[#allocation87_spill] sm:$0xff] %v17953_v44  ;;  %v12784_v61 = vpop.eup %12783  ;;  %12803 = vrcp.f32 %v5835_v16  ;;  %v5947_v21 = vmul.f32 %v12782_v4, %v17747_v25  ;;  %v5986_v41 = vmul.f32 %v5945_v37, %v20932_v23  ;;  %v17960_v55 = vpack.c.bf16 %v5984_v53, %v5983_v36 }
 0xa4e   : > { %v12786_v32 = vpop.eup %12785  ;;  %12805 = vrcp.f32 %v17906_v42  ;;  %v5948_v58 = vmul.f32 %v12784_v61, %v17751_v10  ;;  %v5987_v45 = vmul.f32 %v5946_v8, %v20934_v3  ;;  %v20937_v42 = vld [vmem:[#allocation71_spill] sm:$0xff]  ;;  %v5849_v17 = vadd.f32 1.0, %v17881_v1 }
 0xa4f   : > { %20933 = vst [vmem:[#allocation96_spill] sm:$0xff] %v17960_v55  ;;  %v12788_v34 = vpop.eup %12787  ;;  %12807 = vrcp.f32 %v17909_v18  ;;  %v5949_v16 = vmul.f32 %v12786_v32, %v17755_v57  ;;  %v5988_v25 = vmul.f32 %v5947_v21, %v20935_v35  ;;  %v17969_v13 = vpack.c.bf16 %v5986_v41, %v5985_v49  ;;  %v20947_v49 = vld [vmem:[#allocation90_spill] sm:$0xff] }
 0xa50   : > { %v12790_v39 = vpop.eup %12789  ;;  %12809 = vrcp.f32 %v17911_v43  ;;  %v5950_v14 = vmul.f32 %v12788_v34, %v17645_v15  ;;  %v5989_v10 = vmul.f32 %v5948_v58, %v20937_v42  ;;  %v20940_v43 = vld [vmem:[#allocation75_spill] sm:$0xff]  ;;  %v5850_v62 = vadd.f32 1.0, %v17884_v26 }
 0xa51   : > { %20936 = vst [vmem:[#allocation85_spill] sm:$0xff] %v17969_v13  ;;  %v12792_v59 = vpop.eup %12791  ;;  %12811 = vrcp.f32 %v17914_v5  ;;  %v5951_v18 = vmul.f32 %v12790_v39, %v17648_v30  ;;  %v5990_v57 = vmul.f32 %v5949_v16, %v20938_v40  ;;  %v17978_v27 = vpack.c.bf16 %v5988_v25, %v5987_v45  ;;  %v20951_v58 = vld [vmem:[#allocation163_spill] sm:$0xff]  ;;  %v20952_v45 = vld [vmem:[#allocation60_spill] sm:$0xff]  ;;  %v20955_v25 = vld [vmem:[#allocation174_spill] sm:$0xff] }
 0xa52   : > { %v12794_v50 = vpop.eup %12793  ;;  %12813 = vrcp.f32 %v17916_v52  ;;  %v5952_v63 = vmul.f32 %v12792_v59, %v17651_v20  ;;  %v5991_v15 = vmul.f32 %v5950_v14, %v20940_v43  ;;  %v20943_v52 = vld [vmem:[#allocation80_spill] sm:$0xff]  ;;  %v5851_v8 = vadd.f32 1.0, %v17888_v54  ;;  %v20957_v42 = vld [vmem:[#allocation175_spill] sm:$0xff]  ;;  %v20958_v59 = vld [vmem:[#allocation62_spill] sm:$0xff] }
 0xa53   : > { %20939 = vst [vmem:[#allocation50_spill] sm:$0xff] %v17978_v27  ;;  %v12796_v46 = vpop.eup %12795  ;;  %12815 = vrcp.f32 %v17919_v22  ;;  %v5953_v5 = vmul.f32 %v12794_v50, %v17654_v24  ;;  %v5992_v30 = vmul.f32 %v5951_v18, %v20941_v51  ;;  %v17987_v56 = vpack.c.bf16 %v5990_v57, %v5989_v10  ;;  %v20949_v54 = vld [vmem:[#allocation172_spill] sm:$0xff] }
 0xa54   : > { %v12798_v36 = vpop.eup %12797  ;;  %12817 = vrcp.f32 %v17924_v29  ;;  %v5954_v1 = vmul.f32 %v12796_v46, %v17657_v6  ;;  %v5993_v20 = vmul.f32 %v5952_v63, %v20943_v52  ;;  %v20946_v29 = vld [vmem:[#allocation36_spill] sm:$0xff]  ;;  %v5852_v23 = vadd.f32 1.0, %v17893_v11  ;;  %v20956_v11 = vld [vmem:[#allocation38_spill] sm:$0xff]  ;;  %v20961_v63 = vld [vmem:[#allocation95_spill] sm:$0xff] }
 0xa55   : > { %20942 = vst [vmem:[#allocation42_spill] sm:$0xff] %v17987_v56  ;;  %v12800_v37 = vpop.eup %12799  ;;  %12819 = vrcp.f32 %v17929_v2  ;;  %v5955_v22 = vmul.f32 %v12798_v36, %v17660_v12  ;;  %v5994_v24 = vmul.f32 %v5953_v5, %v20944_v33  ;;  %v17996_v53 = vpack.c.bf16 %v5992_v30, %v5991_v15  ;;  %v20954_v16 = vld [vmem:[#allocation56_spill] sm:$0xff]  ;;  %v20963_v5 = vld [vmem:[#allocation97_spill] sm:$0xff]  ;;  %v20964_v36 = vld [vmem:[#allocation178_spill] sm:$0xff] }
 0xa56   : > { %v12802_v4 = vpop.eup %12801  ;;  %12821 = vrcp.f32 %v17938_v28  ;;  %v5956_v26 = vmul.f32 %v12800_v37, %v17663_v31  ;;  %v5995_v6 = vmul.f32 %v5954_v1, %v20946_v29  ;;  %v20950_v28 = vld [vmem:[#allocation39_spill] sm:$0xff]  ;;  %v5853_v35 = vadd.f32 1.0, %v20954_v16  ;;  %v20960_v57 = vld [vmem:[#allocation164_spill] sm:$0xff]  ;;  %v20965_v52 = vld [vmem:[#allocation98_spill] sm:$0xff] }
 0xa57   : > { %20945 = vst [vmem:[#allocation129_spill] sm:$0xff] %v17996_v53  ;;  %v12804_v48 = vpop.eup %12803  ;;  %12823 = vrcp.f32 %v17947_v38  ;;  %v5957_v2 = vmul.f32 %v12802_v4, %v17666_v60  ;;  %v5996_v12 = vmul.f32 %v5955_v22, %v20947_v49  ;;  %v18005_v61 = vpack.c.bf16 %v5994_v24, %v5993_v20  ;;  %v20967_v33 = vld [vmem:[#allocation35_spill] sm:$0xff]  ;;  %v20970_v49 = vld [vmem:[#allocation170_spill] sm:$0xff] }
 0xa58   : > { %v12806_v21 = vpop.eup %12805  ;;  %12825 = vrcp.f32 %v5846_v7  ;;  %v5958_v41 = vmul.f32 %v12804_v48, %v20949_v54  ;;  %v5997_v32 = vmul.f32 %v5956_v26, %v20950_v28  ;;  %v20968_v26 = vld [vmem:[#allocation180_spill] sm:$0xff]  ;;  %v20972_v28 = vld [vmem:[#allocation173_spill] sm:$0xff] }
 0xa59   : > { %20948 = vst [vmem:[#allocation152_spill] sm:$0xff] %v18005_v61  ;;  %v12808_v31 = vpop.eup %12807  ;;  %12827 = vrcp.f32 %v5847_v19  ;;  %v5959_v3 = vmul.f32 %v12806_v21, %v20951_v58  ;;  %v5998_v38 = vmul.f32 %v5957_v2, %v20952_v45  ;;  %v18012_v34 = vpack.c.bf16 %v5996_v12, %v5995_v6  ;;  %v20969_v6 = vld [vmem:[#allocation101_spill] sm:$0xff]  ;;  %v20971_v21 = vld [vmem:[#allocation102_spill] sm:$0xff]  ;;  %v20974_v45 = vld [vmem:[#allocation176_spill] sm:$0xff] }
 0xa5a   : > { %v12810_v60 = vpop.eup %12809  ;;  %12829 = vrcp.f32 %v5848_v0  ;;  %v5960_v39 = vmul.f32 %v12808_v31, %v20955_v25  ;;  %v5999_v7 = vmul.f32 %v5958_v41, %v20956_v11  ;;  %v20962_v0 = vld [vmem:[#allocation177_spill] sm:$0xff] }
 0xa5b   : > { %20953 = vst [vmem:[#allocation92_spill] sm:$0xff] %v18012_v34  ;;  %v12812_v14 = vpop.eup %12811  ;;  %12831 = vrcp.f32 %v5849_v17  ;;  %v5961_v10 = vmul.f32 %v12810_v60, %v20957_v42  ;;  %v6000_v19 = vmul.f32 %v5959_v3, %v20958_v59  ;;  %v18019_v18 = vpack.c.bf16 %v5998_v38, %v5997_v32  ;;  %v20973_v31 = vld [vmem:[#allocation105_spill] sm:$0xff] }
 0xa5c   : > { %v12814_v40 = vpop.eup %12813  ;;  %12833 = vrcp.f32 %v5850_v62  ;;  %v5962_v50 = vmul.f32 %v12812_v14, %v20960_v57  ;;  %v6001_v43 = vmul.f32 %v5960_v39, %v20961_v63  ;;  %v20966_v62 = vld [vmem:[#allocation167_spill] sm:$0xff]  ;;  %v20975_v60 = vld [vmem:[#allocation69_spill] sm:$0xff]  ;;  %v20976_v39 = vld [vmem:[#allocation154_spill] sm:$0xff] }
 0xa5d   : > { %20959 = vst [vmem:[#allocation153_spill] sm:$0xff] %v18019_v18  ;;  %v12816_v15 = vpop.eup %12815  ;;  %12835 = vrcp.f32 %v5851_v8  ;;  %v5963_v46 = vmul.f32 %v12814_v40, %v20962_v0  ;;  %v6002_v51 = vmul.f32 %v5961_v10, %v20963_v5  ;;  %v18025_v30 = vpack.c.bf16 %v6000_v19, %v5999_v7  ;;  %v20977_v7 = vld [vmem:[#allocation109_spill] sm:$0xff]  ;;  %v20978_v10 = vld [vmem:[#allocation179_spill] sm:$0xff]  ;;  %v20979_v19 = vld [vmem:[#allocation68_spill] sm:$0xff] }
 0xa5e   : > { %v12818_v17 = vpop.eup %12817  ;;  %12837 = vrcp.f32 %v5852_v23  ;;  %v5964_v1 = vmul.f32 %v12816_v15, %v20964_v36  ;;  %v6003_v20 = vmul.f32 %v5962_v50, %v20965_v52  ;;  %v20981_v63 = vld [vmem:[#allocation155_spill] sm:$0xff]  ;;  %v20982_v15 = vld [vmem:[#allocation70_spill] sm:$0xff] }
 0xa5f   : > { %v12820_v37 = vpop.eup %12819  ;;  %12839 = vrcp.f32 %v5853_v35  ;;  %v5965_v22 = vmul.f32 %v12818_v17, %v20966_v62  ;;  %v6004_v24 = vmul.f32 %v5963_v46, %v20967_v33  ;;  %v18031_v4 = vpack.c.bf16 %v6002_v51, %v6001_v43  ;;  %v20983_v5 = vld [vmem:[#allocation78_spill] sm:$0xff]  ;;  %v20984_v17 = vld [vmem:[#allocation111_spill] sm:$0xff] }
 0xa60   : > { %v12822_v8 = vpop.eup %12821  ;;  %v5966_v29 = vmul.f32 %v12820_v37, %v20968_v26  ;;  %v6005_v48 = vmul.f32 %v5964_v1, %v20969_v6  ;;  %v20987_v62 = vld [vmem:[#allocation115_spill] sm:$0xff]  ;;  %v20989_v26 = vld [vmem:[#allocation116_spill] sm:$0xff] }
 0xa61   : > { %v12824_v2 = vpop.eup %12823  ;;  %v5967_v12 = vmul.f32 %v12822_v8, %v20970_v49  ;;  %v6006_v23 = vmul.f32 %v5965_v22, %v20971_v21  ;;  %v18037_v54 = vpack.c.bf16 %v6004_v24, %v6003_v20  ;;  %v20986_v20 = vld [vmem:[#allocation79_spill] sm:$0xff]  ;;  %v20992_v49 = vld [vmem:[#allocation45_spill] sm:$0xff] }
 0xa62   : > { %v12826_v41 = vpop.eup %12825  ;;  %v5968_v32 = vmul.f32 %v12824_v2, %v20972_v28  ;;  %v6007_v58 = vmul.f32 %v5966_v29, %v20973_v31  ;;  %v20988_v24 = vld [vmem:[#allocation51_spill] sm:$0xff]  ;;  %v20995_v28 = vld [vmem:[#allocation46_spill] sm:$0xff] }
 0xa63   : > { %v12828_v3 = vpop.eup %12827  ;;  %v5969_v38 = vmul.f32 %v12826_v41, %v20974_v45  ;;  %v6008_v16 = vmul.f32 %v5967_v12, %v20975_v60  ;;  %v18043_v35 = vpack.c.bf16 %v6006_v23, %v6005_v48  ;;  %v20991_v48 = vld [vmem:[#allocation156_spill] sm:$0xff]  ;;  %v20993_v21 = vld [vmem:[#allocation47_spill] sm:$0xff] }
 0xa64   : > { %v12830_v25 = vpop.eup %12829  ;;  %v5970_v11 = vmul.f32 %v12828_v3, %v20976_v39  ;;  %v6009_v14 = vmul.f32 %v5968_v32, %v20977_v7  ;;  %v18086_v39 = vshrl.u32 %v17935_v47, 16 }
 0xa65   : > { %v12832_v42 = vpop.eup %12831  ;;  %v5971_v59 = vmul.f32 %v12830_v25, %v20978_v10  ;;  %v6010_v40 = vmul.f32 %v5969_v38, %v20979_v19  ;;  %v18049_v57 = vpack.c.bf16 %v6008_v16, %v6007_v58  ;;  %v21000_v10 = vmov 0.0  }
 0xa66   : > { %v12834_v50 = vpop.eup %12833  ;;  %v5972_v43 = vmul.f32 %v12832_v42, %v20981_v63  ;;  %v6011_v0 = vmul.f32 %v5970_v11, %v20982_v15  ;;  %v18089_v11 = vshll.u32 %v17935_v47, 16  ;;  %v6059_v19 = vrot.slane %v18086_v39, 6 }
 0xa67   : > { %20980 = vst [vmem:[#allocation77_spill] sm:$0xff] %v18049_v57  ;;  %v12836_v46 = vpop.eup %12835  ;;  %v5973_v51 = vmul.f32 %v12834_v50, %v20983_v5  ;;  %v6012_v36 = vmul.f32 %v5971_v59, %v20984_v17  ;;  %v18055_v1 = vpack.c.bf16 %v6010_v40, %v6009_v14  ;;  %v6255_v50 = vrot.slane %v17935_v47, 7  ;;  %v6900_v5 = vld [vmem:[#allocation20 + $0x8] sm:$0xf] }
 0xa68   : > { %v12838_v52 = vpop.eup %12837  ;;  %v5974_v37 = vmul.f32 %v12836_v46, %v20986_v20  ;;  %v6013_v22 = vmul.f32 %v5972_v43, %v20987_v62  ;;  %20998 = vst [vmem:[#allocation61_spill] sm:$0xff] %v18089_v11  ;;  %v20301_v40 = vrot.slane %v18089_v11, 7  ;;  %v18128_v46 = vshll.u32 %v17944_v9, 16 }
 0xa69   : > { %20985 = vst [vmem:[#allocation138_spill] sm:$0xff] %v18055_v1  ;;  %v12840_v33 = vpop.eup %12839  ;;  %v5975_v8 = vmul.f32 %v12838_v52, %v20988_v24  ;;  %v6014_v29 = vmul.f32 %v5973_v51, %v20989_v26  ;;  %v18061_v6 = vpack.c.bf16 %v6012_v36, %v6011_v0  ;;  %v18125_v0 = vshrl.u32 %v17944_v9, 16 }
 0xa6a   : > { %v5976_v2 = vmul.f32 %v12840_v33, %v20991_v48  ;;  %v6015_v12 = vmul.f32 %v5974_v37, %v20992_v49  ;;  %v18122_v15 = vor.u32 %v20301_v40, %v6059_v19  ;;  %21005 = vst [vmem:[#allocation84_spill] sm:$0xff] %v18128_v46  ;;  %v6965_v17 = vsel %vm720_vm1, %v6900_v5, 0 }
 0xa6b   : > { %20990 = vst [vmem:[#allocation139_spill] sm:$0xff] %v18061_v6  ;;  %v6016_v23 = vmul.f32 %v5975_v8, %v20993_v21  ;;  %v18066_v41 = vpack.c.bf16 %v6014_v29, %v6013_v22  ;;  %21004 = vst [vmem:[#allocation140_spill] sm:$0xff] %v18125_v0  ;;  %v6067_v20 = vrot.slane %v18125_v0, 6  ;;  %v20299_v37 = vrot.slane %v18128_v46, 7 }
 0xa6c   : > { %v6017_v32 = vmul.f32 %v5976_v2, %v20995_v28  ;;  %21003 = vst [vmem:[#allocation63_spill] sm:$0xff] %v18122_v15  ;;  %v6256_v62 = vrot.slane %v17944_v9, 7  ;;  %v18155_v33 = vshrl.u32 %v17953_v44, 16  ;;  %v18158_v24 = vshll.u32 %v17953_v44, 16 }
 0xa6d   : > { %20994 = vst [vmem:[#allocation150_spill] sm:$0xff] %v18066_v41  ;;  %v18069_v31 = vpack.c.bf16 %v6016_v23, %v6015_v12  ;;  %v6071_v22 = vor.u32 %v20299_v37, %v6067_v20  ;;  %v6258_v2 = vrot.slane %v17953_v44, 7  ;;  %v18176_v49 = vshrl.u32 %v17960_v55, 16 }
 0xa6e   : > { %v18071_v58 = vpack.c.bf16 %v6017_v32, %v6017_v32  ;;  %21009 = vst [vmem:[#allocation54_spill] sm:$0xff] %v18155_v33  ;;  %21010 = vst [vmem:[#allocation91_spill] sm:$0xff] %v18158_v24  ;;  %v18161_v8 = vsel %vm2158_vm6, %v6255_v50, %v6256_v62  ;;  %v6076_v29 = vrot.slane %v18155_v33, 6  ;;  %v6079_v48 = vrot.slane %v18158_v24, 7 }
 0xa6f   : > { %20996 = vst [vmem:[#allocation151_spill] sm:$0xff] %v18069_v31  ;;  %v18074_v3 = vshll.u32 %v18069_v31, 16  ;;  %v20300_v45 = vrot.slane %v18069_v31, 1  ;;  %v18082_v16 = vshrl.u32 %v18069_v31, 16  ;;  %21011 = vst [vmem:[#allocation158_spill] sm:$0xff] %v18161_v8  ;;  %v6072_v26 = vsel %vm1955_vm5, %v18122_v15, %v6071_v22 }
 0xa70   : > { %20997 = vst [vmem:[#allocation120_spill] sm:$0xff] %v18071_v58  ;;  %v18078_v38 = vshll.u32 %v18071_v58, 16  ;;  %v6234_v60 = vrot.slane %v18071_v58, 1  ;;  %v18115_v63 = vshrl.u32 %v18071_v58, 16  ;;  %21012 = vst [vmem:[#allocation88_spill] sm:$0xff] %v18176_v49  ;;  %v18179_v12 = vshll.u32 %v17960_v55, 16 }
 0xa71   : > { %v20303_v25 = vrot.slane %v18074_v3, 1  ;;  %v6080_v21 = vor.u32 %v6079_v48, %v6076_v29  ;;  %v6259_v23 = vsel %vm2158_vm6, %v6256_v62, %v6258_v2  ;;  %v6085_v28 = vrot.slane %v18176_v49, 6 }
 0xa72   : > { %v18094_v7 = vsel %vm2135_vm4, %v20300_v45, %v6234_v60  ;;  %v6050_v42 = vrot.slane %v18078_v38, 1  ;;  %v18131_v51 = vsel %vm2158_vm6, %v6234_v60, %v6255_v50  ;;  %21013 = vst [vmem:[#allocation89_spill] sm:$0xff] %v18179_v12  ;;  %v6088_v32 = vrot.slane %v18179_v12, 7 }
 0xa73   : > { %20999 = vst [vmem:[#allocation81_spill] sm:$0xff] %v18094_v7  ;;  %11377 = vmatmul.mubr.msk.bf16.vlgmr.msra.gmra.mrb[80].mxu1 %vm1048_vm3, %v18094_v7  ;;  %v6046_v14 = vor.u32 %v20303_v25, %v18082_v16  ;;  %21006 = vst [vmem:[#allocation86_spill] sm:$0xff] %v18131_v51  ;;  %v20302_v60 = vrot.slane %v18115_v63, 1  ;;  %v18193_v19 = vshll.u32 %v17969_v13, 16  ;;  %v6260_v50 = vrot.slane %v17960_v55, 7 }
 0xa74   : > { %11380 = vmatprep.mubr.msk.bf16.mxu1 %vm13358_vm0, %v21000_v10  ;;  %v18118_v43 = vor.u32 %v18115_v63, %v6050_v42  ;;  %11547 = vmatpush3.bf16.msra.mxu1 %v6965_v17  ;;  %v6830_v5 = vrot.slane %v18082_v16, 1  ;;  %v6831_v17 = vrot.slane %v18074_v3, 2  ;;  %v6834_v20 = vrot.slane %v18078_v38, 2  ;;  %v7212_v7 = vld [vmem:[#allocation20 + $0xc] sm:$0xf] }
 0xa75   : > { %v18105_v59 = vsel %vm1938_vm9, %v6046_v14, %v6050_v42  ;;  %11718 = vmatprep.subr.bf16.mxu1 %v21000_v10  ;;  %v6081_v14 = vsel %vm1955_vm5, %v6071_v22, %v6080_v21  ;;  %v18190_v42 = vshrl.u32 %v17969_v13, 16  ;;  %21015 = vst [vmem:[#allocation94_spill] sm:$0xff] %v18193_v19  ;;  %v6089_v62 = vor.u32 %v6088_v32, %v6085_v28 }
 0xa76   : > { %21001 = vst [vmem:[#allocation82_spill] sm:$0xff] %v18105_v59  ;;  %11463 = vmatmul.mubr.msk.bf16.vlgmr.msra.gmra.mrb[192].mxu0 %vm1048_vm3, %v18105_v59  ;;  %21002 = vst [vmem:[#allocation143_spill] sm:$0xff] %v18118_v43  ;;  %v18142_v52 = vsel %vm15159_vm11, %v18118_v43, %v18122_v15  ;;  %v18204_v29 = vor.u32 %v6831_v17, %v6830_v5  ;;  %v6835_v48 = vor.u32 %v6834_v20, %v20302_v60 }
 0xa77   : > { %11466 = vmatprep.mubr.msk.bf16.mxu0 %vm13358_vm0, %v21000_v10  ;;  %21008 = vst [vmem:[#allocation106_spill] sm:$0xff] %v18142_v52  ;;  %21014 = vst [vmem:[#allocation93_spill] sm:$0xff] %v18190_v42  ;;  %v6094_v22 = vrot.slane %v18190_v42, 6  ;;  %v6262_v28 = vrot.slane %v17969_v13, 7  ;;  %v18218_v32 = vshrl.u32 %v17978_v27, 16  ;;  %v18221_v5 = vshll.u32 %v17978_v27, 16 }
 0xa78   : > { %v6090_v17 = vsel %vm1955_vm5, %v6080_v21, %v6089_v62  ;;  %v18226_v20 = vshrl.u32 %v18037_v54, 16  ;;  %v18237_v37 = vshrl.u32 %v18055_v1, 16  ;;  %v18247_v40 = vshll.u32 %v18037_v54, 16 }
 0xa79   : > { %21017 = vst [vmem:[#allocation100_spill] sm:$0xff] %v18218_v32  ;;  %21018 = vst [vmem:[#allocation103_spill] sm:$0xff] %v18221_v5  ;;  %v6263_v21 = vsel %vm2158_vm6, %v6260_v50, %v6262_v28  ;;  %v18250_v60 = vshll.u32 %v18043_v35, 16  ;;  %v18253_v25 = vshrl.u32 %v18066_v41, 16  ;;  %v7217_v58 = vsel %vm720_vm1, %v7212_v7, 0 }
 0xa7a   : > { %v6876_v15 = vrot.slane %v18226_v20, 7  ;;  %v6885_v43 = vrot.slane %v18237_v37, 7  ;;  %11633 = vmatpush3.bf16.msra.mxu0 %v7217_v58  ;;  %v6894_v47 = vrot.slane %v18082_v16, 7  ;;  %v6264_v7 = vrot.slane %v17978_v27, 7 }
 0xa7b   : > { %11381 = vmatmul.mubr.msk.bf16.gmra.mrb[84].mxu1 %vm1048_vm3, %v18131_v51  ;;  %v6891_v9 = vrot.slane %v18253_v25, 7  ;;  %11804 = vmatprep.subr.bf16.mxu0 %v21000_v10  ;;  %v18310_v42 = vshll.u32 %v17987_v56, 16 }
 0xa7c   : > { %11384 = vmatprep.mubr.msk.bf16.mxu1 %vm13358_vm0, %v21000_v10  ;;  %v18276_v59 = vor.u32 %v6876_v15, %v18247_v40 }
 0xa7d   : > { %21025 = vst [vmem:[#allocation159_spill] sm:$0xff] %v18310_v42 }
 0xa7e   : > { %11467 = vmatmul.mubr.msk.bf16.gmra.mrb[196].mxu0 %vm1048_vm3, %v18142_v52  ;;  %v18268_v52 = vshll.u32 %v18066_v41, 16  ;;  %21019 = vst [vmem:[#allocation104_spill] sm:$0xff] %v18276_v59 }
 0xa7f   : > { %11470 = vmatprep.mubr.msk.bf16.mxu0 %vm13358_vm0, %v21000_v10 }
 0xa83   : > { %11385 = vmatmul.mubr.msk.bf16.gmra.mrb[88].mxu1 %vm1048_vm3, %v18161_v8  ;;  %v18259_v8 = vshll.u32 %v18055_v1, 16 }
 0xa84   : > { %11388 = vmatprep.mubr.msk.bf16.mxu1 %vm13358_vm0, %v21000_v10 }
 0xa85   : > { %v6886_v44 = vor.u32 %v6885_v43, %v18259_v8 }
 0xa86   : > { %11471 = vmatmul.mubr.msk.bf16.gmra.mrb[200].mxu0 %vm1048_vm3, %v6072_v26  ;;  %v6097_v26 = vrot.slane %v18193_v19, 7  ;;  %v18307_v19 = vshrl.u32 %v17987_v56, 16 }
 0xa87   : > { %11474 = vmatprep.mubr.msk.bf16.mxu0 %vm13358_vm0, %v21000_v10 }
 0xa88   : > { %21024 = vst [vmem:[#allocation137_spill] sm:$0xff] %v18307_v19 }
 0xa8b   : > { %11389 = vmatmul.mubr.msk.bf16.gmra.mrb[92].mxu1 %vm1048_vm3, %v6259_v23  ;;  %v6261_v23 = vsel %vm2158_vm6, %v6258_v2, %v6260_v50  ;;  %v6098_v2 = vor.u32 %v6097_v26, %v6094_v22  ;;  %v6103_v22 = vrot.slane %v18218_v32, 6  ;;  %v6106_v26 = vrot.slane %v18221_v5, 7 }
 0xa8c   : > { %11392 = vmatprep.mubr.msk.bf16.mxu1 %vm13358_vm0, %v21000_v10  ;;  %v18256_v50 = vshll.u32 %v18049_v57, 16  ;;  %v7208_v32 = vrot.slane %v18115_v63, 7 }
 0xa8d   : > { %v6099_v45 = vsel %vm1955_vm5, %v6089_v62, %v6098_v2  ;;  %v18265_v62 = vshll.u32 %v18061_v6, 16 }
 0xa8e   : > { %11475 = vmatmul.mubr.msk.bf16.gmra.mrb[204].mxu0 %vm1048_vm3, %v6081_v14  ;;  %v18212_v14 = vsel %vm2735_vm7, %v18204_v29, %v6835_v48  ;;  %v18229_v48 = vshrl.u32 %v18043_v35, 16 }
 0xa8f   : > { %11478 = vmatprep.mubr.msk.bf16.mxu0 %vm13358_vm0, %v21000_v10  ;;  %21016 = vst [vmem:[#allocation99_spill] sm:$0xff] %v18212_v14 }
 0xa90   : > { %v6879_v51 = vrot.slane %v18229_v48, 7 }
 0xa93   : > { %11393 = vmatmul.mubr.msk.bf16.gmra.mrb[96].mxu1 %vm1048_vm3, %v6261_v23  ;;  %v18234_v23 = vshrl.u32 %v18049_v57, 16 }
 0xa94   : > { %11396 = vmatprep.mubr.msk.bf16.mxu1 %vm13358_vm0, %v21000_v10 }
 0xa95   : > { %v6882_v36 = vrot.slane %v18234_v23, 7 }
 0xa96   : > { %11479 = vmatmul.mubr.msk.bf16.gmra.mrb[208].mxu0 %vm1048_vm3, %v6090_v17  ;;  %v18243_v17 = vshrl.u32 %v18061_v6, 16 }
 0xa97   : > { %11482 = vmatprep.mubr.msk.bf16.mxu0 %vm13358_vm0, %v21000_v10  ;;  %v6883_v55 = vor.u32 %v6882_v36, %v18256_v50  ;;  %v18298_v16 = vsel %vm2744_vm8, %v6882_v36, %v6886_v44 }
 0xa98   : > { %v6888_v13 = vrot.slane %v18243_v17, 7  ;;  %21022 = vst [vmem:[#allocation112_spill] sm:$0xff] %v18298_v16  ;;  %v7801_v16 = vrot.slane %v18268_v52, 1 }
 0xa99   : > { %v18295_v58 = vsel %vm2744_vm8, %v6879_v51, %v6883_v55 }
 0xa9a   : > { %v6889_v59 = vor.u32 %v6888_v13, %v18265_v62  ;;  %21021 = vst [vmem:[#allocation108_spill] sm:$0xff] %v18295_v58 }
 0xa9b   : > { %11397 = vmatmul.mubr.msk.bf16.gmra.mrb[100].mxu1 %vm1048_vm3, %v6263_v21  ;;  %v6880_v21 = vor.u32 %v6879_v51, %v18250_v60  ;;  %v6265_v51 = vsel %vm2158_vm6, %v6262_v28, %v6264_v7  ;;  %v18339_v28 = vshll.u32 %v17996_v53, 16 }
 0xa9c   : > { %11400 = vmatprep.mubr.msk.bf16.mxu1 %vm13358_vm0, %v21000_v10  ;;  %v18303_v27 = vsel %vm2744_vm8, %v6885_v43, %v6889_v59  ;;  %v6266_v43 = vrot.slane %v17987_v56, 7 }
 0xa9d   : > { %v18287_v5 = vsel %vm2744_vm8, %v6876_v15, %v6880_v21  ;;  %v6895_v15 = vor.u32 %v6894_v47, %v18074_v3  ;;  %v6107_v21 = vor.u32 %v6106_v26, %v6103_v22  ;;  %21023 = vst [vmem:[#allocation113_spill] sm:$0xff] %v18303_v27  ;;  %21030 = vst [vmem:[#allocation124_spill] sm:$0xff] %v18339_v28  ;;  %v7786_v22 = vrot.slane %v18247_v40, 1 }
 0xa9e   : > { %11483 = vmatmul.mubr.msk.bf16.gmra.mrb[212].mxu0 %vm1048_vm3, %v6099_v45  ;;  %21020 = vst [vmem:[#allocation107_spill] sm:$0xff] %v18287_v5  ;;  %v6892_v45 = vor.u32 %v6891_v9, %v18268_v52  ;;  %v7209_v5 = vor.u32 %v7208_v32, %v18078_v38  ;;  %v18326_v38 = vshll.u32 %v18031_v4, 16  ;;  %v18342_v32 = vshrl.u32 %v18031_v4, 16 }
 0xa9f   : > { %11486 = vmatprep.mubr.msk.bf16.mxu0 %vm13358_vm0, %v21000_v10  ;;  %v18316_v44 = vsel %vm2744_vm8, %v6891_v9, %v6895_v15  ;;  %v6108_v59 = vsel %vm1955_vm5, %v6098_v2, %v6107_v21  ;;  %v6115_v9 = vrot.slane %v18310_v42, 7  ;;  %v7789_v26 = vrot.slane %v18250_v60, 1 }
 0xaa0   : > { %v18313_v55 = vsel %vm2744_vm8, %v6888_v13, %v6892_v45  ;;  %21027 = vst [vmem:[#allocation118_spill] sm:$0xff] %v18316_v44  ;;  %v18320_v36 = vsel %vm2744_vm8, %v6894_v47, %v7209_v5  ;;  %v6112_v13 = vrot.slane %v18307_v19, 6  ;;  %v18336_v47 = vshrl.u32 %v17996_v53, 16 }
 0xaa1   : > { %21026 = vst [vmem:[#allocation117_spill] sm:$0xff] %v18313_v55  ;;  %21028 = vst [vmem:[#allocation110_spill] sm:$0xff] %v18320_v36  ;;  %v20335_v5 = vrot.slane %v18326_v38, 1  ;;  %v6267_v45 = vsel %vm2158_vm6, %v6264_v7, %v6266_v43  ;;  %v6124_v56 = vrot.slane %v18339_v28, 7  ;;  %v7795_v36 = vrot.slane %v18259_v8, 1 }
 0xaa2   : > { %21029 = vst [vmem:[#allocation160_spill] sm:$0xff] %v18336_v47  ;;  %v6116_v2 = vor.u32 %v6115_v9, %v6112_v13  ;;  %v7788_v13 = vor.u32 %v7786_v22, %v18226_v20  ;;  %v7791_v9 = vor.u32 %v7789_v26, %v18229_v48 }
 0xaa3   : > { %11401 = vmatmul.mubr.msk.bf16.gmra.mrb[104].mxu1 %vm1048_vm3, %v6265_v51  ;;  %v7785_v15 = vor.u32 %v20335_v5, %v18342_v32  ;;  %v7792_v51 = vrot.slane %v18256_v50, 1 }
 0xaa4   : > { %11404 = vmatprep.mubr.msk.bf16.mxu1 %vm13358_vm0, %v21000_v10  ;;  %v6117_v44 = vsel %vm1955_vm5, %v6107_v21, %v6116_v2  ;;  %v18367_v55 = vsel %vm1938_vm9, %v7788_v13, %v7789_v26  ;;  %v7803_v21 = vor.u32 %v7801_v16, %v18253_v25  ;;  %v18390_v13 = vshrl.u32 %v18005_v61, 16 }
 0xaa5   : > { %v18360_v7 = vsel %vm1938_vm9, %v7785_v15, %v7786_v22  ;;  %v7794_v5 = vor.u32 %v7792_v51, %v18234_v23  ;;  %21032 = vst [vmem:[#allocation126_spill] sm:$0xff] %v18367_v55  ;;  %v18370_v27 = vsel %vm1938_vm9, %v7791_v9, %v7792_v51  ;;  %v6268_v22 = vrot.slane %v17996_v53, 7 }
 0xaa6   : > { %11487 = vmatmul.mubr.msk.bf16.gmra.mrb[216].mxu0 %vm1048_vm3, %v6108_v59  ;;  %v6121_v59 = vrot.slane %v18336_v47, 6  ;;  %21031 = vst [vmem:[#allocation125_spill] sm:$0xff] %v18360_v7  ;;  %21033 = vst [vmem:[#allocation127_spill] sm:$0xff] %v18370_v27  ;;  %v7797_v7 = vor.u32 %v7795_v36, %v18237_v37  ;;  %v8751_v27 = vrot.slane %v18250_v60, 2 }
 0xaa7   : > { %11490 = vmatprep.mubr.msk.bf16.mxu0 %vm13358_vm0, %v21000_v10  ;;  %v18376_v15 = vsel %vm1938_vm9, %v7794_v5, %v7795_v36  ;;  %21037 = vst [vmem:[#allocation119_spill] sm:$0xff] %v18390_v13  ;;  %v18393_v5 = vshll.u32 %v18005_v61, 16  ;;  %v21039_v36 = vrot.slane %v18074_v3, 1 }
 0xaa8   : > { %21034 = vst [vmem:[#allocation114_spill] sm:$0xff] %v18376_v15  ;;  %v6269_v15 = vsel %vm2158_vm6, %v6266_v43, %v6268_v22  ;;  %v18412_v43 = vshrl.u32 %v18012_v34, 16 }
 0xaa9   : > { %21038 = vst [vmem:[#allocation141_spill] sm:$0xff] %v18393_v5  ;;  %v18398_v9 = vsel %vm1938_vm9, %v7803_v21, %v21039_v36 }
 0xaaa   : > { %21040 = vst [vmem:[#allocation142_spill] sm:$0xff] %v18398_v9  ;;  %21041 = vst [vmem:[#allocation144_spill] sm:$0xff] %v18412_v43  ;;  %v6139_v21 = vrot.slane %v18412_v43, 6  ;;  %v8743_v9 = vrot.slane %v18326_v38, 2  ;;  %v18472_v43 = vshll.u32 %v18025_v30, 16 }
 0xaab   : > { %11405 = vmatmul.mubr.msk.bf16.gmra.mrb[108].mxu1 %vm1048_vm3, %v6267_v45  ;;  %v7798_v45 = vrot.slane %v18265_v62, 1 }
 0xaac   : > { %11408 = vmatprep.mubr.msk.bf16.mxu1 %vm13358_vm0, %v21000_v10  ;;  %21049 = vst [vmem:[#allocation132_spill] sm:$0xff] %v18472_v43 }
 0xaad   : > { %v7800_v58 = vor.u32 %v7798_v45, %v18243_v17  ;;  %v18384_v26 = vsel %vm1938_vm9, %v7797_v7, %v7798_v45  ;;  %v18415_v45 = vshll.u32 %v18012_v34, 16 }
 0xaae   : > { %11491 = vmatmul.mubr.msk.bf16.gmra.mrb[220].mxu0 %vm1048_vm3, %v6117_v44  ;;  %21035 = vst [vmem:[#allocation133_spill] sm:$0xff] %v18384_v26  ;;  %v6125_v44 = vor.u32 %v6124_v56, %v6121_v59  ;;  %v6270_v59 = vrot.slane %v18005_v61, 7  ;;  %v8747_v26 = vrot.slane %v18247_v40, 2  ;;  %v18453_v61 = vshrl.u32 %v18025_v30, 16 }
 0xaaf   : > { %11494 = vmatprep.mubr.msk.bf16.mxu0 %vm13358_vm0, %v21000_v10  ;;  %v18387_v51 = vsel %vm1938_vm9, %v7800_v58, %v7801_v16  ;;  %v6130_v58 = vrot.slane %v18390_v13, 6  ;;  %v6133_v16 = vrot.slane %v18393_v5, 7  ;;  %21042 = vst [vmem:[#allocation145_spill] sm:$0xff] %v18415_v45  ;;  %v6142_v36 = vrot.slane %v18415_v45, 7 }
 0xab0   : > { %21036 = vst [vmem:[#allocation134_spill] sm:$0xff] %v18387_v51  ;;  %v6126_v56 = vsel %vm1955_vm5, %v6116_v2, %v6125_v44  ;;  %v6271_v2 = vsel %vm2158_vm6, %v6268_v22, %v6270_v59  ;;  %v18429_v22 = vshrl.u32 %v18019_v18, 16  ;;  %v8746_v51 = vrot.slane %v18226_v20, 1  ;;  %21046 = vst [vmem:[#allocation123_spill] sm:$0xff] %v18453_v61 }
 0xab1   : > { %v6134_v7 = vor.u32 %v6133_v16, %v6130_v58  ;;  %v6143_v58 = vor.u32 %v6142_v36, %v6139_v21  ;;  %v18432_v16 = vshll.u32 %v18019_v18, 16 }
 0xab2   : > { %21043 = vst [vmem:[#allocation146_spill] sm:$0xff] %v18429_v22  ;;  %v6148_v21 = vrot.slane %v18429_v22, 6  ;;  %v8767_v22 = vrot.slane %v18268_v52, 2 }
 0xab3   : > { %11409 = vmatmul.mubr.msk.bf16.gmra.mrb[112].mxu1 %vm1048_vm3, %v6269_v15  ;;  %v6135_v15 = vsel %vm1955_vm5, %v6125_v44, %v6134_v7  ;;  %21044 = vst [vmem:[#allocation128_spill] sm:$0xff] %v18432_v16  ;;  %v6144_v55 = vsel %vm1955_vm5, %v6134_v7, %v6143_v58 }
 0xab4   : > { %11412 = vmatprep.mubr.msk.bf16.mxu1 %vm13358_vm0, %v21000_v10 }
 0xab6   : > { %11495 = vmatmul.mubr.msk.bf16.gmra.mrb[224].mxu0 %vm1048_vm3, %v6126_v56  ;;  %v6272_v56 = vrot.slane %v18012_v34, 7  ;;  %v8754_v34 = vrot.slane %v18234_v23, 1 }
 0xab7   : > { %11498 = vmatprep.mubr.msk.bf16.mxu0 %vm13358_vm0, %v21000_v10 }
 0xab8   : > { %v6273_v44 = vsel %vm2158_vm6, %v6270_v59, %v6272_v56  ;;  %v8750_v59 = vrot.slane %v18229_v48, 1 }
 0xaba   : > { %v8752_v53 = vor.u32 %v8751_v27, %v8750_v59  ;;  %v8766_v59 = vrot.slane %v18253_v25, 1 }
 0xabb   : > { %11413 = vmatmul.mubr.msk.bf16.gmra.mrb[116].mxu1 %vm1048_vm3, %v6271_v2  ;;  %v8742_v2 = vrot.slane %v18342_v32, 1 }
 0xabc   : > { %11416 = vmatprep.mubr.msk.bf16.mxu1 %vm13358_vm0, %v21000_v10  ;;  %v8768_v28 = vor.u32 %v8767_v22, %v8766_v59  ;;  %v6160_v22 = vrot.slane %v18472_v43, 7 }
 0xabd   : > { %v18444_v36 = vor.u32 %v8743_v9, %v8742_v2  ;;  %v8755_v9 = vrot.slane %v18256_v50, 2  ;;  %v8758_v2 = vrot.slane %v18237_v37, 1 }
 0xabe   : > { %11499 = vmatmul.mubr.msk.bf16.gmra.mrb[228].mxu0 %vm1048_vm3, %v6135_v15  ;;  %v6274_v15 = vrot.slane %v18019_v18, 7  ;;  %v8748_v18 = vor.u32 %v8747_v26, %v8746_v51  ;;  %v8759_v26 = vrot.slane %v18259_v8, 2  ;;  %v8762_v51 = vrot.slane %v18243_v17, 1 }
 0xabf   : > { %11502 = vmatprep.mubr.msk.bf16.mxu0 %vm13358_vm0, %v21000_v10  ;;  %21045 = vst [vmem:[#allocation130_spill] sm:$0xff] %v18444_v36  ;;  %v8756_v27 = vor.u32 %v8755_v9, %v8754_v34 }
 0xac0   : > { %v18461_v7 = vsel %vm2735_vm7, %v18444_v36, %v8748_v18  ;;  %v8760_v36 = vor.u32 %v8759_v26, %v8758_v2  ;;  %v6275_v5 = vsel %vm2158_vm6, %v6272_v56, %v6274_v15  ;;  %v18492_v56 = vsel %vm2735_vm7, %v8768_v28, %v18204_v29 }
 0xac1   : > { %21047 = vst [vmem:[#allocation148_spill] sm:$0xff] %v18461_v7  ;;  %v18476_v13 = vsel %vm2735_vm7, %v8752_v53, %v8756_v27  ;;  %21054 = vst [vmem:[#allocation73_spill] sm:$0xff] %v18492_v56  ;;  %v6278_v2 = vrot.slane %v18031_v4, 7  ;;  %v6175_v26 = vrot.slane %v18226_v20, 6  ;;  %v6184_v20 = vrot.slane %v18229_v48, 6 }
 0xac2   : > { %21050 = vst [vmem:[#allocation149_spill] sm:$0xff] %v18476_v13  ;;  %v18480_v34 = vsel %vm2735_vm7, %v8756_v27, %v8760_v36  ;;  %v6193_v48 = vrot.slane %v18234_v23, 6  ;;  %v6202_v23 = vrot.slane %v18237_v37, 6  ;;  %v6211_v37 = vrot.slane %v18243_v17, 6 }
 0xac3   : > { %11417 = vmatmul.mubr.msk.bf16.gmra.mrb[120].mxu1 %vm1048_vm3, %v6273_v44  ;;  %v6151_v44 = vrot.slane %v18432_v16, 7  ;;  %v18467_v16 = vsel %vm2735_vm7, %v8748_v18, %v8752_v53  ;;  %21051 = vst [vmem:[#allocation136_spill] sm:$0xff] %v18480_v34  ;;  %v6220_v17 = vrot.slane %v18253_v25, 6  ;;  %v6292_v25 = vrot.slane %v18069_v31, 7  ;;  %v21072_v31 = vld [vmem:[#allocation108_spill] sm:$0xff] }
 0xac4   : > { %11420 = vmatprep.mubr.msk.bf16.mxu1 %vm13358_vm0, %v21000_v10  ;;  %21048 = vst [vmem:[#allocation161_spill] sm:$0xff] %v18467_v16  ;;  %v6870_v56 = vrot.slane %v18453_v61, 7 }
 0xac5   : > { %v6152_v45 = vor.u32 %v6151_v44, %v6148_v21 }
 0xac6   : > { %11503 = vmatmul.mubr.msk.bf16.gmra.mrb[232].mxu0 %vm1048_vm3, %v6144_v55  ;;  %v8763_v55 = vrot.slane %v18265_v62, 2 }
 0xac7   : > { %11506 = vmatprep.mubr.msk.bf16.mxu0 %vm13358_vm0, %v21000_v10  ;;  %v6153_v53 = vsel %vm1955_vm5, %v6143_v58, %v6152_v45  ;;  %v6169_v58 = vrot.slane %v18326_v38, 7 }
 0xac8   : > { %v8764_v7 = vor.u32 %v8763_v55, %v8762_v51  ;;  %v6178_v51 = vrot.slane %v18247_v40, 7  ;;  %v6280_v55 = vrot.slane %v18037_v54, 7  ;;  %v6187_v40 = vrot.slane %v18250_v60, 7 }
 0xac9   : > { %v6196_v60 = vrot.slane %v18256_v50, 7  ;;  %v6205_v50 = vrot.slane %v18259_v8, 7  ;;  %v6214_v8 = vrot.slane %v18265_v62, 7  ;;  %v6223_v62 = vrot.slane %v18268_v52, 7 }
 0xaca   : > { %v18483_v18 = vsel %vm2735_vm7, %v8760_v36, %v8764_v7  ;;  %v18488_v21 = vsel %vm2735_vm7, %v8764_v7, %v8768_v28  ;;  %v6276_v36 = vrot.slane %v18025_v30, 7  ;;  %v6166_v28 = vrot.slane %v18342_v32, 6 }
 0xacb   : > { %11421 = vmatmul.mubr.msk.bf16.gmra.mrb[124].mxu1 %vm1048_vm3, %v6275_v5  ;;  %21052 = vst [vmem:[#allocation121_spill] sm:$0xff] %v18483_v18  ;;  %21053 = vst [vmem:[#allocation122_spill] sm:$0xff] %v18488_v21  ;;  %v6157_v5 = vrot.slane %v18453_v61, 6  ;;  %v6179_v27 = vor.u32 %v6178_v51, %v6175_v26  ;;  %v6281_v59 = vsel %vm2158_vm6, %v6278_v2, %v6280_v55  ;;  %v6288_v26 = vrot.slane %v18061_v6, 7  ;;  %v21075_v6 = vld [vmem:[#allocation112_spill] sm:$0xff] }
 0xacc   : > { %11424 = vmatprep.mubr.msk.bf16.mxu1 %vm13358_vm0, %v21000_v10  ;;  %v6277_v9 = vsel %vm2158_vm6, %v6274_v15, %v6276_v36  ;;  %v6170_v7 = vor.u32 %v6169_v58, %v6166_v28  ;;  %v6279_v15 = vsel %vm2158_vm6, %v6276_v36, %v6278_v2  ;;  %v6286_v2 = vrot.slane %v18055_v1, 7 }
 0xacd   : > { %v6161_v44 = vor.u32 %v6160_v22, %v6157_v5  ;;  %v6282_v5 = vrot.slane %v18043_v35, 7  ;;  %v6188_v22 = vor.u32 %v6187_v40, %v6184_v20  ;;  %v6215_v51 = vor.u32 %v6214_v8, %v6211_v37  ;;  %v21059_v37 = vld [vmem:[#allocation93_spill] sm:$0xff] }
 0xace   : > { %11507 = vmatmul.mubr.msk.bf16.gmra.mrb[236].mxu0 %vm1048_vm3, %v6153_v53  ;;  %v6180_v53 = vsel %vm1955_vm5, %v6170_v7, %v6179_v27  ;;  %v6849_v8 = vrot.slane %v21059_v37, 7  ;;  %v6873_v18 = vrot.slane %v18342_v32, 7 }
 0xacf   : > { %11510 = vmatprep.mubr.msk.bf16.mxu0 %vm13358_vm0, %v21000_v10  ;;  %v6162_v29 = vsel %vm1955_vm5, %v6152_v45, %v6161_v44  ;;  %v6171_v45 = vsel %vm1955_vm5, %v6161_v44, %v6170_v7  ;;  %v6283_v36 = vsel %vm2158_vm6, %v6280_v55, %v6282_v5  ;;  %v6189_v44 = vsel %vm1955_vm5, %v6179_v27, %v6188_v22 }
 0xad0   : > { %v6206_v7 = vor.u32 %v6205_v50, %v6202_v23  ;;  %v6289_v55 = vsel %vm2158_vm6, %v6286_v2, %v6288_v26  ;;  %v6843_v23 = vrot.slane %v18155_v33, 7 }
 0xad2   : > { %v6216_v27 = vsel %vm1955_vm5, %v6206_v7, %v6215_v51  ;;  %v6844_v50 = vor.u32 %v6843_v23, %v18158_v24 }
 0xad3   : > { %11425 = vmatmul.mubr.msk.bf16.gmra.mrb[128].mxu1 %vm1048_vm3, %v6277_v9  ;;  %v6284_v9 = vrot.slane %v18049_v57, 7 }
 0xad4   : > { %11428 = vmatprep.mubr.msk.bf16.mxu1 %vm13358_vm0, %v21000_v10 }
 0xad5   : > { %v6285_v28 = vsel %vm2158_vm6, %v6282_v5, %v6284_v9  ;;  %v6226_v5 = vrot.slane %v18074_v3, 7  ;;  %v21055_v3 = vrot.slane %v18115_v63, 1 }
 0xad6   : > { %11511 = vmatmul.mubr.msk.bf16.gmra.mrb[240].mxu0 %vm1048_vm3, %v6162_v29  ;;  %v6197_v29 = vor.u32 %v6196_v60, %v6193_v48 }
 0xad7   : > { %11514 = vmatprep.mubr.msk.bf16.mxu0 %vm13358_vm0, %v21000_v10 }
 0xad8   : > { %v6198_v58 = vsel %vm1955_vm5, %v6188_v22, %v6197_v29 }
 0xadb   : > { %11429 = vmatmul.mubr.msk.bf16.gmra.mrb[132].mxu1 %vm1048_vm3, %v6279_v15  ;;  %v6287_v15 = vsel %vm2158_vm6, %v6284_v9, %v6286_v2 }
 0xadc   : > { %11432 = vmatprep.mubr.msk.bf16.mxu1 %vm13358_vm0, %v21000_v10 }
 0xade   : > { %11515 = vmatmul.mubr.msk.bf16.gmra.mrb[244].mxu0 %vm1048_vm3, %v6171_v45  ;;  %v6207_v45 = vsel %vm1955_vm5, %v6197_v29, %v6206_v7  ;;  %v6846_v7 = vrot.slane %v18176_v49, 7 }
 0xadf   : > { %11518 = vmatprep.mubr.msk.bf16.mxu0 %vm13358_vm0, %v21000_v10 }
 0xae3   : > { %11433 = vmatmul.mubr.msk.bf16.gmra.mrb[136].mxu1 %vm1048_vm3, %v6281_v59  ;;  %v6290_v59 = vrot.slane %v18066_v41, 7 }
 0xae4   : > { %11436 = vmatprep.mubr.msk.bf16.mxu1 %vm13358_vm0, %v21000_v10 }
 0xae5   : > { %v6291_v20 = vsel %vm2158_vm6, %v6288_v26, %v6290_v59  ;;  %v6293_v52 = vsel %vm2158_vm6, %v6290_v59, %v6292_v25  ;;  %v21060_v26 = vld [vmem:[#allocation94_spill] sm:$0xff] }
 0xae6   : > { %11519 = vmatmul.mubr.msk.bf16.gmra.mrb[248].mxu0 %vm1048_vm3, %v6180_v53  ;;  %v6224_v53 = vor.u32 %v6223_v62, %v6220_v17  ;;  %v21062_v62 = vld [vmem:[#allocation103_spill] sm:$0xff] }
 0xae7   : > { %11522 = vmatprep.mubr.msk.bf16.mxu0 %vm13358_vm0, %v21000_v10 }
 0xae8   : > { %v6225_v40 = vsel %vm1955_vm5, %v6215_v51, %v6224_v53  ;;  %v6227_v22 = vsel %vm1955_vm5, %v6224_v53, %v6226_v5  ;;  %v6850_v51 = vor.u32 %v6849_v8, %v21060_v26  ;;  %v7808_v53 = vld [vmem:[#allocation20 + $0x14] sm:$0xf] }
 0xae9   : > { %v7870_v25 = vsel %vm720_vm1, %v7808_v53, 0 }
 0xaeb   : > { %11437 = vmatmul.mubr.msk.bf16.gmra.mrb[140].mxu1 %vm1048_vm3, %v6283_v36  ;;  %v6838_v36 = vrot.slane %v18086_v39, 7 }
 0xaec   : > { %11440 = vmatprep.mubr.msk.bf16.mxu1 %vm13358_vm0, %v21000_v10 }
 0xaed   : > { %v6839_v48 = vor.u32 %v6838_v36, %v18089_v11 }
 0xaee   : > { %11523 = vmatmul.mubr.msk.bf16.gmra.mrb[252].mxu0 %vm1048_vm3, %v6189_v44  ;;  %v7461_v44 = vld [vmem:[#allocation20 + $0x10] sm:$0xf] }
 0xaef   : > { %11526 = vmatprep.mubr.msk.bf16.mxu0 %vm13358_vm0, %v21000_v10  ;;  %v7505_v60 = vsel %vm720_vm1, %v7461_v44, 0  ;;  %v18607_v29 = vsel %vm15285_vm12, %v21055_v3, %v6839_v48 }
 0xaf0   : > { %21057 = vst [vmem:[#allocation74_spill] sm:$0xff] %v18607_v29 }
 0xaf3   : > { %11441 = vmatmul.mubr.msk.bf16.gmra.mrb[144].mxu1 %vm1048_vm3, %v6285_v28  ;;  %v6840_v28 = vrot.slane %v18125_v0, 7 }
 0xaf4   : > { %11444 = vmatprep.mubr.msk.bf16.mxu1 %vm13358_vm0, %v21000_v10 }
 0xaf5   : > { %v6845_v2 = vsel %vm2744_vm8, %v6840_v28, %v6844_v50  ;;  %v6858_v50 = vrot.slane %v18336_v47, 7 }
 0xaf6   : > { %11527 = vmatmul.mubr.msk.bf16.gmra.mrb[0].mxu0 %vm1048_vm3, %v6198_v58  ;;  %v6841_v58 = vor.u32 %v6840_v28, %v18128_v46 }
 0xaf7   : > { %11530 = vmatprep.mubr.msk.bf16.mxu0 %vm13358_vm0, %v21000_v10 }
 0xaf8   : > { %v18621_v63 = vsel %vm2744_vm8, %v6838_v36, %v6841_v58 }
 0xaf9   : > { %21058 = vst [vmem:[#allocation165_spill] sm:$0xff] %v18621_v63 }
 0xafb   : > { %11445 = vmatmul.mubr.msk.bf16.gmra.mrb[148].mxu1 %vm1048_vm3, %v6287_v15  ;;  %v6847_v15 = vor.u32 %v6846_v7, %v18179_v12 }
 0xafc   : > { %11448 = vmatprep.mubr.msk.bf16.mxu1 %vm13358_vm0, %v21000_v10 }
 0xafe   : > { %11531 = vmatmul.mubr.msk.bf16.gmra.mrb[4].mxu0 %vm1048_vm3, %v6207_v45  ;;  %v6848_v45 = vsel %vm2744_vm8, %v6843_v23, %v6847_v15 }
 0xaff   : > { %11534 = vmatprep.mubr.msk.bf16.mxu0 %vm13358_vm0, %v21000_v10 }
 0xb03   : > { %11449 = vmatmul.mubr.msk.bf16.gmra.mrb[152].mxu1 %vm1048_vm3, %v6289_v55  ;;  %v6851_v55 = vsel %vm2744_vm8, %v6846_v7, %v6850_v51  ;;  %v21063_v51 = vld [vmem:[#allocation124_spill] sm:$0xff] }
 0xb04   : > { %11452 = vmatprep.mubr.msk.bf16.mxu1 %vm13358_vm0, %v21000_v10 }
 0xb06   : > { %11535 = vmatmul.mubr.msk.bf16.gmra.mrb[8].mxu0 %vm1048_vm3, %v6216_v27  ;;  %v21061_v27 = vld [vmem:[#allocation100_spill] sm:$0xff] }
 0xb07   : > { %11538 = vmatprep.mubr.msk.bf16.mxu0 %vm13358_vm0, %v21000_v10  ;;  %v6852_v17 = vrot.slane %v21061_v27, 7 }
 0xb09   : > { %v6853_v59 = vor.u32 %v6852_v17, %v21062_v62 }
 0xb0b   : > { %11453 = vmatmul.mubr.msk.bf16.gmra.mrb[156].mxu1 %vm1048_vm3, %v6291_v20  ;;  %v6854_v20 = vsel %vm2744_vm8, %v6849_v8, %v6853_v59 }
 0xb0c   : > { %11456 = vmatprep.mubr.msk.bf16.mxu1 %vm13358_vm0, %v21000_v10 }
 0xb0e   : > { %11539 = vmatmul.mubr.msk.bf16.gmra.mrb[12].mxu0 %vm1048_vm3, %v6225_v40  ;;  %v6855_v40 = vrot.slane %v18307_v19, 7 }
 0xb0f   : > { %11542 = vmatprep.mubr.msk.bf16.mxu0 %vm13358_vm0, %v21000_v10 }
 0xb10   : > { %v6856_v48 = vor.u32 %v6855_v40, %v18310_v42 }
 0xb12   : > { %v6857_v23 = vsel %vm2744_vm8, %v6852_v17, %v6856_v48 }
 0xb13   : > { %11457 = vmatmul.mubr.msk.bf16.gmra.mrb[160].mxu1 %vm1048_vm3, %v6293_v52 }
 0xb14   : > { %11548 = vmatprep.mubr.msk.bf16.mxu1 %vm13358_vm0, %v21000_v10 }
 0xb16   : > { %11543 = vmatmul.mubr.msk.bf16.gmra.mrb[16].mxu0 %vm1048_vm3, %v6227_v22 }
 0xb17   : > { %11634 = vmatprep.mubr.msk.bf16.mxu0 %vm13358_vm0, %v21000_v10 }
 0xb1b   : > { %11549 = vmatmul.mubr.msk.bf16.vlgmr.msra.gmra.mrb[164].mxu1 %vm1048_vm3, %v18212_v14 }
 0xb1c   : > { %11552 = vmatprep.mubr.msk.bf16.mxu1 %vm13358_vm0, %v21000_v10  ;;  %11719 = vmatpush3.bf16.msra.mxu1 %v7505_v60 }
 0xb1d   : > { %11890 = vmatprep.subr.bf16.mxu1 %v21000_v10 }
 0xb1e   : > { %11635 = vmatmul.mubr.msk.bf16.vlgmr.msra.gmra.mrb[20].mxu0 %vm1048_vm3, %v18607_v29 }
 0xb1f   : > { %11638 = vmatprep.mubr.msk.bf16.mxu0 %vm13358_vm0, %v21000_v10  ;;  %11805 = vmatpush3.bf16.msra.mxu0 %v7870_v25 }
 0xb20   : > { %11976 = vmatprep.subr.bf16.mxu0 %v21000_v10 }
 0xb23   : > { %11553 = vmatmul.mubr.msk.bf16.gmra.mrb[168].mxu1 %vm1048_vm3, %v18607_v29 }
 0xb24   : > { %11556 = vmatprep.mubr.msk.bf16.mxu1 %vm13358_vm0, %v21000_v10 }
 0xb26   : > { %11639 = vmatmul.mubr.msk.bf16.gmra.mrb[24].mxu0 %vm1048_vm3, %v18621_v63 }
 0xb27   : > { %11642 = vmatprep.mubr.msk.bf16.mxu0 %vm13358_vm0, %v21000_v10 }
 0xb2b   : > { %11557 = vmatmul.mubr.msk.bf16.gmra.mrb[172].mxu1 %vm1048_vm3, %v18621_v63 }
 0xb2c   : > { %11560 = vmatprep.mubr.msk.bf16.mxu1 %vm13358_vm0, %v21000_v10 }
 0xb2e   : > { %11643 = vmatmul.mubr.msk.bf16.gmra.mrb[28].mxu0 %vm1048_vm3, %v6845_v2 }
 0xb2f   : > { %11646 = vmatprep.mubr.msk.bf16.mxu0 %vm13358_vm0, %v21000_v10 }
 0xb33   : > { %11561 = vmatmul.mubr.msk.bf16.gmra.mrb[176].mxu1 %vm1048_vm3, %v6845_v2 }
 0xb34   : > { %11564 = vmatprep.mubr.msk.bf16.mxu1 %vm13358_vm0, %v21000_v10 }
 0xb36   : > { %11647 = vmatmul.mubr.msk.bf16.gmra.mrb[32].mxu0 %vm1048_vm3, %v6848_v45 }
 0xb37   : > { %11650 = vmatprep.mubr.msk.bf16.mxu0 %vm13358_vm0, %v21000_v10 }
 0xb3b   : > { %11565 = vmatmul.mubr.msk.bf16.gmra.mrb[180].mxu1 %vm1048_vm3, %v6848_v45 }
 0xb3c   : > { %11568 = vmatprep.mubr.msk.bf16.mxu1 %vm13358_vm0, %v21000_v10 }
 0xb3e   : > { %11651 = vmatmul.mubr.msk.bf16.gmra.mrb[36].mxu0 %vm1048_vm3, %v6851_v55 }
 0xb3f   : > { %11654 = vmatprep.mubr.msk.bf16.mxu0 %vm13358_vm0, %v21000_v10 }
 0xb43   : > { %11569 = vmatmul.mubr.msk.bf16.gmra.mrb[184].mxu1 %vm1048_vm3, %v6851_v55  ;;  %v6859_v55 = vor.u32 %v6858_v50, %v21063_v51 }
 0xb44   : > { %11572 = vmatprep.mubr.msk.bf16.mxu1 %vm13358_vm0, %v21000_v10 }
 0xb46   : > { %v6398_v52 = vpop.f32.mrb[80].mxu1  ;;  %11655 = vmatmul.mubr.msk.bf16.gmra.mrb[40].mxu0 %vm1048_vm3, %v6854_v20 }
 0xb47   : > { %v11378_v5 = vpop.f32.mrb[81].mxu1  ;;  %11658 = vmatprep.mubr.msk.bf16.mxu0 %vm13358_vm0, %v21000_v10 }
 0xb48   : > { %v6401_v22 = vpop.f32.mrb[82].mxu1  ;;  %v21064_v5 = vld [vmem:[#allocation119_spill] sm:$0xff] }
 0xb49   : > { %v11379_v36 = vpop.f32.mrb[83].mxu1  ;;  %v6664_v44 = vpop.f32.mrb[192].mxu0 }
 0xb4a   : > { %v18668_v60 = vadd.f32 %v6664_v44, %v6398_v52  ;;  %v11464_v3 = vpop.f32.mrb[193].mxu0  ;;  %v6860_v52 = vsel %vm2744_vm8, %v6855_v40, %v6859_v55  ;;  %v21066_v55 = vld [vmem:[#allocation144_spill] sm:$0xff] }
 0xb4b   : > { %11573 = vmatmul.mubr.msk.bf16.gmra.mrb[188].mxu1 %vm1048_vm3, %v6854_v20  ;;  %v6667_v9 = vpop.f32.mrb[194].mxu0 }
 0xb4c   : > { %v18671_v28 = vadd.f32 %v6667_v9, %v6401_v22  ;;  %v11465_v58 = vpop.f32.mrb[195].mxu0  ;;  %11576 = vmatprep.mubr.msk.bf16.mxu1 %vm13358_vm0, %v21000_v10  ;;  %v6861_v22 = vrot.slane %v21064_v5, 7 }
 0xb4d   : > { %v21065_v58 = vld [vmem:[#allocation141_spill] sm:$0xff] }
 0xb4e   : > { %v6406_v2 = vpop.f32.mrb[84].mxu1  ;;  %11659 = vmatmul.mubr.msk.bf16.gmra.mrb[44].mxu0 %vm1048_vm3, %v6857_v23 }
 0xb4f   : > { %v11382_v7 = vpop.f32.mrb[85].mxu1  ;;  %11662 = vmatprep.mubr.msk.bf16.mxu0 %vm13358_vm0, %v21000_v10 }
 0xb50   : > { %v6409_v15 = vpop.f32.mrb[86].mxu1 }
 0xb51   : > { %v11383_v45 = vpop.f32.mrb[87].mxu1  ;;  %v6672_v8 = vpop.f32.mrb[196].mxu0 }
 0xb52   : > { %v18681_v59 = vadd.f32 %v6672_v8, %v6406_v2  ;;  %v11468_v53 = vpop.f32.mrb[197].mxu0 }
 0xb53   : > { %11577 = vmatmul.mubr.msk.bf16.gmra.mrb[192].mxu1 %vm1048_vm3, %v6857_v23  ;;  %v6675_v17 = vpop.f32.mrb[198].mxu0  ;;  %v6862_v23 = vor.u32 %v6861_v22, %v21065_v58  ;;  %v6864_v53 = vrot.slane %v21066_v55, 7 }
 0xb54   : > { %v18684_v20 = vadd.f32 %v6675_v17, %v6409_v15  ;;  %v11469_v25 = vpop.f32.mrb[199].mxu0  ;;  %11580 = vmatprep.mubr.msk.bf16.mxu1 %vm13358_vm0, %v21000_v10 }
 0xb55   : > { %v6863_v8 = vsel %vm2744_vm8, %v6858_v50, %v6862_v23 }
 0xb56   : > { %v6414_v36 = vpop.f32.mrb[88].mxu1  ;;  %11663 = vmatmul.mubr.msk.bf16.gmra.mrb[48].mxu0 %vm1048_vm3, %v6860_v52 }
 0xb57   : > { %v11386_v44 = vpop.f32.mrb[89].mxu1  ;;  %11666 = vmatprep.mubr.msk.bf16.mxu0 %vm13358_vm0, %v21000_v10 }
 0xb58   : > { %v6417_v48 = vpop.f32.mrb[90].mxu1 }
 0xb59   : > { %v11387_v3 = vpop.f32.mrb[91].mxu1  ;;  %v6680_v9 = vpop.f32.mrb[200].mxu0 }
 0xb5a   : > { %v18694_v2 = vadd.f32 %v6680_v9, %v6414_v36  ;;  %v11472_v7 = vpop.f32.mrb[201].mxu0 }
 0xb5b   : > { %11581 = vmatmul.mubr.msk.bf16.gmra.mrb[196].mxu1 %vm1048_vm3, %v6860_v52  ;;  %v6683_v40 = vpop.f32.mrb[202].mxu0 }
 0xb5c   : > { %v18697_v15 = vadd.f32 %v6683_v40, %v6417_v48  ;;  %v11473_v45 = vpop.f32.mrb[203].mxu0  ;;  %11584 = vmatprep.mubr.msk.bf16.mxu1 %vm13358_vm0, %v21000_v10  ;;  %v21067_v48 = vld [vmem:[#allocation145_spill] sm:$0xff] }
 0xb5d   : > { %v6865_v3 = vor.u32 %v6864_v53, %v21067_v48 }
 0xb5e   : > { %v6422_v17 = vpop.f32.mrb[92].mxu1  ;;  %11667 = vmatmul.mubr.msk.bf16.gmra.mrb[52].mxu0 %vm1048_vm3, %v6863_v8 }
 0xb5f   : > { %v11390_v25 = vpop.f32.mrb[93].mxu1  ;;  %11670 = vmatprep.mubr.msk.bf16.mxu0 %vm13358_vm0, %v21000_v10  ;;  %v6866_v45 = vsel %vm2744_vm8, %v6861_v22, %v6865_v3 }
 0xb60   : > { %v6425_v36 = vpop.f32.mrb[94].mxu1  ;;  %v21068_v25 = vld [vmem:[#allocation146_spill] sm:$0xff] }
 0xb61   : > { %v11391_v52 = vpop.f32.mrb[95].mxu1  ;;  %v6688_v44 = vpop.f32.mrb[204].mxu0  ;;  %v6867_v63 = vrot.slane %v21068_v25, 7 }
 0xb62   : > { %v18707_v9 = vadd.f32 %v6688_v44, %v6422_v17  ;;  %v11476_v7 = vpop.f32.mrb[205].mxu0 }
 0xb63   : > { %11585 = vmatmul.mubr.msk.bf16.gmra.mrb[200].mxu1 %vm1048_vm3, %v6863_v8  ;;  %v6691_v50 = vpop.f32.mrb[206].mxu0 }
 0xb64   : > { %v18710_v23 = vadd.f32 %v6691_v50, %v6425_v36  ;;  %v11477_v40 = vpop.f32.mrb[207].mxu0  ;;  %11588 = vmatprep.mubr.msk.bf16.mxu1 %vm13358_vm0, %v21000_v10  ;;  %v21069_v36 = vld [vmem:[#allocation128_spill] sm:$0xff] }
 0xb65   : > { %v6868_v7 = vor.u32 %v6867_v63, %v21069_v36 }
 0xb66   : > { %v6430_v52 = vpop.f32.mrb[96].mxu1  ;;  %11671 = vmatmul.mubr.msk.bf16.gmra.mrb[56].mxu0 %vm1048_vm3, %v6866_v45 }
 0xb67   : > { %v11394_v29 = vpop.f32.mrb[97].mxu1  ;;  %11674 = vmatprep.mubr.msk.bf16.mxu0 %vm13358_vm0, %v21000_v10 }
 0xb68   : > { %v6433_v17 = vpop.f32.mrb[98].mxu1  ;;  %v6869_v29 = vsel %vm2744_vm8, %v6864_v53, %v6868_v7 }
 0xb69   : > { %v11395_v8 = vpop.f32.mrb[99].mxu1  ;;  %v6696_v44 = vpop.f32.mrb[208].mxu0 }
 0xb6a   : > { %v18720_v50 = vadd.f32 %v6696_v44, %v6430_v52  ;;  %v11480_v40 = vpop.f32.mrb[209].mxu0 }
 0xb6b   : > { %11589 = vmatmul.mubr.msk.bf16.gmra.mrb[204].mxu1 %vm1048_vm3, %v6866_v45  ;;  %v6699_v22 = vpop.f32.mrb[210].mxu0 }
 0xb6c   : > { %v18723_v3 = vadd.f32 %v6699_v22, %v6433_v17  ;;  %v11481_v14 = vpop.f32.mrb[211].mxu0  ;;  %11592 = vmatprep.mubr.msk.bf16.mxu1 %vm13358_vm0, %v21000_v10  ;;  %v6871_v17 = vor.u32 %v6870_v56, %v18472_v43 }
 0xb6e   : > { %v6438_v8 = vpop.f32.mrb[100].mxu1  ;;  %11675 = vmatmul.mubr.msk.bf16.gmra.mrb[60].mxu0 %vm1048_vm3, %v6869_v29 }
 0xb6f   : > { %v11398_v21 = vpop.f32.mrb[101].mxu1  ;;  %11678 = vmatprep.mubr.msk.bf16.mxu0 %vm13358_vm0, %v21000_v10 }
 0xb70   : > { %v6441_v52 = vpop.f32.mrb[102].mxu1  ;;  %v6872_v21 = vsel %vm2744_vm8, %v6867_v63, %v6871_v17 }
 0xb71   : > { %v11399_v45 = vpop.f32.mrb[103].mxu1  ;;  %v6704_v44 = vpop.f32.mrb[212].mxu0 }
 0xb72   : > { %v18733_v14 = vadd.f32 %v6704_v44, %v6438_v8  ;;  %v11484_v40 = vpop.f32.mrb[213].mxu0 }
 0xb73   : > { %11593 = vmatmul.mubr.msk.bf16.gmra.mrb[208].mxu1 %vm1048_vm3, %v6869_v29  ;;  %v6707_v53 = vpop.f32.mrb[214].mxu0 }
 0xb74   : > { %v18736_v7 = vadd.f32 %v6707_v53, %v6441_v52  ;;  %v11485_v22 = vpop.f32.mrb[215].mxu0  ;;  %11596 = vmatprep.mubr.msk.bf16.mxu1 %vm13358_vm0, %v21000_v10  ;;  %v6874_v52 = vor.u32 %v6873_v18, %v18326_v38 }
 0xb76   : > { %v6446_v45 = vpop.f32.mrb[104].mxu1  ;;  %11679 = vmatmul.mubr.msk.bf16.gmra.mrb[64].mxu0 %vm1048_vm3, %v6872_v21 }
 0xb77   : > { %v11402_v34 = vpop.f32.mrb[105].mxu1  ;;  %11682 = vmatprep.mubr.msk.bf16.mxu0 %vm13358_vm0, %v21000_v10 }
 0xb78   : > { %v6449_v8 = vpop.f32.mrb[106].mxu1  ;;  %v6875_v34 = vsel %vm2744_vm8, %v6870_v56, %v6874_v52  ;;  %v21070_v56 = vld [vmem:[#allocation104_spill] sm:$0xff] }
 0xb79   : > { %v11403_v29 = vpop.f32.mrb[107].mxu1  ;;  %v6712_v44 = vpop.f32.mrb[216].mxu0  ;;  %v6878_v52 = vsel %vm2744_vm8, %v6873_v18, %v21070_v56  ;;  %v21071_v56 = vld [vmem:[#allocation107_spill] sm:$0xff] }
 0xb7a   : > { %v18746_v40 = vadd.f32 %v6712_v44, %v6446_v45  ;;  %v11488_v53 = vpop.f32.mrb[217].mxu0 }
 0xb7b   : > { %11597 = vmatmul.mubr.msk.bf16.gmra.mrb[212].mxu1 %vm1048_vm3, %v6872_v21  ;;  %v6715_v63 = vpop.f32.mrb[218].mxu0 }
 0xb7c   : > { %v18749_v17 = vadd.f32 %v6715_v63, %v6449_v8  ;;  %v11489_v32 = vpop.f32.mrb[219].mxu0  ;;  %11600 = vmatprep.mubr.msk.bf16.mxu1 %vm13358_vm0, %v21000_v10 }
 0xb7e   : > { %v6454_v22 = vpop.f32.mrb[108].mxu1  ;;  %11683 = vmatmul.mubr.msk.bf16.gmra.mrb[68].mxu0 %vm1048_vm3, %v6875_v34 }
 0xb7f   : > { %v11406_v29 = vpop.f32.mrb[109].mxu1  ;;  %11686 = vmatprep.mubr.msk.bf16.mxu0 %vm13358_vm0, %v21000_v10 }
 0xb80   : > { %v6457_v45 = vpop.f32.mrb[110].mxu1 }
 0xb81   : > { %v11407_v44 = vpop.f32.mrb[111].mxu1  ;;  %v6720_v53 = vpop.f32.mrb[220].mxu0 }
 0xb82   : > { %v18757_v21 = vadd.f32 %v6720_v53, %v6454_v22  ;;  %v11492_v8 = vpop.f32.mrb[221].mxu0 }
 0xb83   : > { %11601 = vmatmul.mubr.msk.bf16.gmra.mrb[216].mxu1 %vm1048_vm3, %v6875_v34  ;;  %v6723_v63 = vpop.f32.mrb[222].mxu0 }
 0xb84   : > { %v18760_v32 = vadd.f32 %v6723_v63, %v6457_v45  ;;  %v11493_v13 = vpop.f32.mrb[223].mxu0  ;;  %11604 = vmatprep.mubr.msk.bf16.mxu1 %vm13358_vm0, %v21000_v10 }
 0xb86   : > { %v6462_v29 = vpop.f32.mrb[112].mxu1  ;;  %11687 = vmatmul.mubr.msk.bf16.gmra.mrb[72].mxu0 %vm1048_vm3, %v6878_v52 }
 0xb87   : > { %v11410_v44 = vpop.f32.mrb[113].mxu1  ;;  %11690 = vmatprep.mubr.msk.bf16.mxu0 %vm13358_vm0, %v21000_v10 }
 0xb88   : > { %v6465_v22 = vpop.f32.mrb[114].mxu1 }
 0xb89   : > { %v11411_v53 = vpop.f32.mrb[115].mxu1  ;;  %v6728_v34 = vpop.f32.mrb[224].mxu0 }
 0xb8a   : > { %v18769_v8 = vadd.f32 %v6728_v34, %v6462_v29  ;;  %v11496_v45 = vpop.f32.mrb[225].mxu0 }
 0xb8b   : > { %11605 = vmatmul.mubr.msk.bf16.gmra.mrb[220].mxu1 %vm1048_vm3, %v6878_v52  ;;  %v6731_v13 = vpop.f32.mrb[226].mxu0 }
 0xb8c   : > { %v18772_v63 = vadd.f32 %v6731_v13, %v6465_v22  ;;  %v11497_v16 = vpop.f32.mrb[227].mxu0  ;;  %11608 = vmatprep.mubr.msk.bf16.mxu1 %vm13358_vm0, %v21000_v10 }
 0xb8e   : > { %v6470_v18 = vpop.f32.mrb[116].mxu1  ;;  %11691 = vmatmul.mubr.msk.bf16.gmra.mrb[76].mxu0 %vm1048_vm3, %v21071_v56 }
 0xb8f   : > { %v11414_v44 = vpop.f32.mrb[117].mxu1  ;;  %11694 = vmatprep.mubr.msk.bf16.mxu0 %vm13358_vm0, %v21000_v10 }
 0xb90   : > { %v6473_v29 = vpop.f32.mrb[118].mxu1 }
 0xb91   : > { %v11415_v53 = vpop.f32.mrb[119].mxu1  ;;  %v6736_v34 = vpop.f32.mrb[228].mxu0 }
 0xb92   : > { %v18780_v45 = vadd.f32 %v6736_v34, %v6470_v18  ;;  %v11500_v52 = vpop.f32.mrb[229].mxu0 }
 0xb93   : > { %11609 = vmatmul.mubr.msk.bf16.gmra.mrb[224].mxu1 %vm1048_vm3, %v21071_v56  ;;  %v6739_v16 = vpop.f32.mrb[230].mxu0 }
 0xb94   : > { %v18784_v22 = vadd.f32 %v6739_v16, %v6473_v29  ;;  %v11501_v13 = vpop.f32.mrb[231].mxu0  ;;  %11612 = vmatprep.mubr.msk.bf16.mxu1 %vm13358_vm0, %v21000_v10 }
 0xb96   : > { %v6478_v44 = vpop.f32.mrb[120].mxu1  ;;  %11695 = vmatmul.mubr.msk.bf16.gmra.mrb[80].mxu0 %vm1048_vm3, %v21072_v31 }
 0xb97   : > { %v11418_v41 = vpop.f32.mrb[121].mxu1  ;;  %11698 = vmatprep.mubr.msk.bf16.mxu0 %vm13358_vm0, %v21000_v10 }
 0xb98   : > { %v6481_v18 = vpop.f32.mrb[122].mxu1 }
 0xb99   : > { %v11419_v53 = vpop.f32.mrb[123].mxu1  ;;  %v6744_v34 = vpop.f32.mrb[232].mxu0 }
 0xb9a   : > { %v18792_v52 = vadd.f32 %v6744_v34, %v6478_v44  ;;  %v11504_v56 = vpop.f32.mrb[233].mxu0 }
 0xb9b   : > { %11613 = vmatmul.mubr.msk.bf16.gmra.mrb[228].mxu1 %vm1048_vm3, %v21072_v31  ;;  %v6747_v29 = vpop.f32.mrb[234].mxu0 }
 0xb9c   : > { %21073 = vst [vmem:[#allocation166_spill] sm:$0xff] %v18792_v52  ;;  %v18796_v16 = vadd.f32 %v6747_v29, %v6481_v18  ;;  %v11505_v13 = vpop.f32.mrb[235].mxu0  ;;  %11616 = vmatprep.mubr.msk.bf16.mxu1 %vm13358_vm0, %v21000_v10 }
 0xb9e   : > { %21074 = vst [vmem:[#allocation131_spill] sm:$0xff] %v18796_v16  ;;  %v6486_v41 = vpop.f32.mrb[124].mxu1  ;;  %11699 = vmatmul.mubr.msk.bf16.gmra.mrb[84].mxu0 %vm1048_vm3, %v21075_v6  ;;  %v21078_v16 = vld [vmem:[#allocation113_spill] sm:$0xff] }
 0xb9f   : > { %v11422_v1 = vpop.f32.mrb[125].mxu1  ;;  %11702 = vmatprep.mubr.msk.bf16.mxu0 %vm13358_vm0, %v21000_v10 }
 0xba0   : > { %v6489_v44 = vpop.f32.mrb[126].mxu1 }
 0xba1   : > { %v11423_v53 = vpop.f32.mrb[127].mxu1  ;;  %v6752_v34 = vpop.f32.mrb[236].mxu0 }
 0xba2   : > { %v18804_v56 = vadd.f32 %v6752_v34, %v6486_v41  ;;  %v11508_v31 = vpop.f32.mrb[237].mxu0 }
 0xba3   : > { %11617 = vmatmul.mubr.msk.bf16.gmra.mrb[232].mxu1 %vm1048_vm3, %v21075_v6  ;;  %v6755_v18 = vpop.f32.mrb[238].mxu0 }
 0xba4   : > { %21076 = vst [vmem:[#allocation168_spill] sm:$0xff] %v18804_v56  ;;  %v18808_v29 = vadd.f32 %v6755_v18, %v6489_v44  ;;  %v11509_v13 = vpop.f32.mrb[239].mxu0  ;;  %11620 = vmatprep.mubr.msk.bf16.mxu1 %vm13358_vm0, %v21000_v10 }
 0xba6   : > { %21077 = vst [vmem:[#allocation169_spill] sm:$0xff] %v18808_v29  ;;  %v6494_v1 = vpop.f32.mrb[128].mxu1  ;;  %11703 = vmatmul.mubr.msk.bf16.gmra.mrb[88].mxu0 %vm1048_vm3, %v21078_v16  ;;  %v21081_v29 = vld [vmem:[#allocation117_spill] sm:$0xff] }
 0xba7   : > { %v11426_v52 = vpop.f32.mrb[129].mxu1  ;;  %11706 = vmatprep.mubr.msk.bf16.mxu0 %vm13358_vm0, %v21000_v10 }
 0xba8   : > { %v6497_v41 = vpop.f32.mrb[130].mxu1 }
 0xba9   : > { %v11427_v53 = vpop.f32.mrb[131].mxu1  ;;  %v6760_v34 = vpop.f32.mrb[240].mxu0 }
 0xbaa   : > { %v18816_v31 = vadd.f32 %v6760_v34, %v6494_v1  ;;  %v11512_v6 = vpop.f32.mrb[241].mxu0 }
 0xbab   : > { %11621 = vmatmul.mubr.msk.bf16.gmra.mrb[236].mxu1 %vm1048_vm3, %v21078_v16  ;;  %v6763_v44 = vpop.f32.mrb[242].mxu0 }
 0xbac   : > { %21079 = vst [vmem:[#allocation162_spill] sm:$0xff] %v18816_v31  ;;  %v18820_v18 = vadd.f32 %v6763_v44, %v6497_v41  ;;  %v11513_v13 = vpop.f32.mrb[243].mxu0  ;;  %11624 = vmatprep.mubr.msk.bf16.mxu1 %vm13358_vm0, %v21000_v10 }
 0xbae   : > { %21080 = vst [vmem:[#allocation171_spill] sm:$0xff] %v18820_v18  ;;  %v6502_v52 = vpop.f32.mrb[132].mxu1  ;;  %11707 = vmatmul.mubr.msk.bf16.gmra.mrb[92].mxu0 %vm1048_vm3, %v21081_v29  ;;  %v21084_v18 = vld [vmem:[#allocation118_spill] sm:$0xff] }
 0xbaf   : > { %v11430_v56 = vpop.f32.mrb[133].mxu1  ;;  %11710 = vmatprep.mubr.msk.bf16.mxu0 %vm13358_vm0, %v21000_v10 }
 0xbb0   : > { %v6505_v1 = vpop.f32.mrb[134].mxu1 }
 0xbb1   : > { %v11431_v53 = vpop.f32.mrb[135].mxu1  ;;  %v6768_v34 = vpop.f32.mrb[244].mxu0 }
 0xbb2   : > { %v18828_v6 = vadd.f32 %v6768_v34, %v6502_v52  ;;  %v11516_v16 = vpop.f32.mrb[245].mxu0 }
 0xbb3   : > { %11625 = vmatmul.mubr.msk.bf16.gmra.mrb[240].mxu1 %vm1048_vm3, %v21081_v29  ;;  %v6771_v41 = vpop.f32.mrb[246].mxu0 }
 0xbb4   : > { %21082 = vst [vmem:[#allocation44_spill] sm:$0xff] %v18828_v6  ;;  %v18832_v44 = vadd.f32 %v6771_v41, %v6505_v1  ;;  %v11517_v13 = vpop.f32.mrb[247].mxu0  ;;  %11628 = vmatprep.mubr.msk.bf16.mxu1 %vm13358_vm0, %v21000_v10  ;;  %v21087_v6 = vld [vmem:[#allocation110_spill] sm:$0xff] }
 0xbb6   : > { %21083 = vst [vmem:[#allocation41_spill] sm:$0xff] %v18832_v44  ;;  %v6510_v56 = vpop.f32.mrb[136].mxu1  ;;  %11711 = vmatmul.mubr.msk.bf16.gmra.mrb[96].mxu0 %vm1048_vm3, %v21084_v18 }
 0xbb7   : > { %v11434_v31 = vpop.f32.mrb[137].mxu1  ;;  %11714 = vmatprep.mubr.msk.bf16.mxu0 %vm13358_vm0, %v21000_v10 }
 0xbb8   : > { %v6513_v52 = vpop.f32.mrb[138].mxu1  ;;  %v7748_v31 = vrot.slane %v18089_v11, 1  ;;  %v21088_v11 = vld [vmem:[#allocation157_spill] sm:$0xff] }
 0xbb9   : > { %v11435_v53 = vpop.f32.mrb[139].mxu1  ;;  %v6776_v34 = vpop.f32.mrb[248].mxu0 }
 0xbba   : > { %v18840_v16 = vadd.f32 %v6776_v34, %v6510_v56  ;;  %v11520_v29 = vpop.f32.mrb[249].mxu0  ;;  %v8115_v53 = vld [vmem:[#allocation20 + $0x18] sm:$0xf] }
 0xbbb   : > { %11629 = vmatmul.mubr.msk.bf16.gmra.mrb[244].mxu1 %vm1048_vm3, %v21084_v18  ;;  %v6779_v1 = vpop.f32.mrb[250].mxu0 }
 0xbbc   : > { %21085 = vst [vmem:[#allocation40_spill] sm:$0xff] %v18840_v16  ;;  %v18844_v41 = vadd.f32 %v6779_v1, %v6513_v52  ;;  %v11521_v13 = vpop.f32.mrb[251].mxu0  ;;  %11720 = vmatprep.mubr.msk.bf16.mxu1 %vm13358_vm0, %v21000_v10  ;;  %v7749_v52 = vor.u32 %v7748_v31, %v18086_v39  ;;  %v8120_v1 = vsel %vm720_vm1, %v8115_v53, 0 }
 0xbbe   : > { %21086 = vst [vmem:[#allocation43_spill] sm:$0xff] %v18844_v41  ;;  %v6518_v44 = vpop.f32.mrb[140].mxu1  ;;  %11715 = vmatmul.mubr.msk.bf16.gmra.mrb[100].mxu0 %vm1048_vm3, %v21087_v6  ;;  %v7750_v6 = vrot.slane %v18128_v46, 1 }
 0xbbf   : > { %v11438_v56 = vpop.f32.mrb[141].mxu1  ;;  %11806 = vmatprep.mubr.msk.bf16.mxu0 %vm13358_vm0, %v21000_v10 }
 0xbc0   : > { %v6521_v34 = vpop.f32.mrb[142].mxu1  ;;  %v7751_v39 = vsel %vm1938_vm9, %v7749_v52, %v7750_v6  ;;  %v7753_v52 = vrot.slane %v18158_v24, 1  ;;  %v21092_v24 = vld [vmem:[#allocation87_spill] sm:$0xff] }
 0xbc1   : > { %v11439_v18 = vpop.f32.mrb[143].mxu1  ;;  %v6784_v29 = vpop.f32.mrb[252].mxu0 }
 0xbc2   : > { %v18855_v13 = vadd.f32 %v6784_v29, %v6518_v44  ;;  %v11524_v41 = vpop.f32.mrb[253].mxu0  ;;  %v21089_v18 = vld [vmem:[#allocation37_spill] sm:$0xff] }
 0xbc3   : > { %11721 = vmatmul.mubr.msk.bf16.vlgmr.msra.gmra.mrb[248].mxu1 %vm1048_vm3, %v21088_v11  ;;  %v6787_v16 = vpop.f32.mrb[254].mxu0 }
 0xbc4   : > { %v18860_v56 = vadd.f32 %v6787_v16, %v6521_v34  ;;  %v11525_v57 = vpop.f32.mrb[255].mxu0  ;;  %11724 = vmatprep.mubr.msk.bf16.mxu1 %vm13358_vm0, %v21000_v10  ;;  %11891 = vmatpush3.bf16.msra.mxu1 %v8120_v1 }
 0xbc5   : > { %12062 = vmatprep.subr.bf16.mxu1 %v21000_v10  ;;  %v7752_v57 = vor.u32 %v7750_v6, %v18125_v0  ;;  %v7756_v0 = vrot.slane %v18179_v12, 1  ;;  %v21095_v12 = vld [vmem:[#allocation96_spill] sm:$0xff] }
 0xbc6   : > { %v6526_v44 = vpop.f32.mrb[144].mxu1  ;;  %11807 = vmatmul.mubr.msk.bf16.vlgmr.msra.gmra.mrb[104].mxu0 %vm1048_vm3, %v7751_v39 }
 0xbc7   : > { %v11442_v41 = vpop.f32.mrb[145].mxu1  ;;  %11810 = vmatprep.mubr.msk.bf16.mxu0 %vm13358_vm0, %v21000_v10 }
 0xbc8   : > { %v6529_v11 = vpop.f32.mrb[146].mxu1  ;;  %v18880_v41 = vsel %vm1938_vm9, %v7752_v57, %v7753_v52 }
 0xbc9   : > { %v11443_v31 = vpop.f32.mrb[147].mxu1  ;;  %v6792_v16 = vpop.f32.mrb[0].mxu0 }
 0xbca   : > { %v18870_v53 = vadd.f32 %v6792_v16, %v6526_v44  ;;  %v11528_v34 = vpop.f32.mrb[1].mxu0 }
 0xbcb   : > { %11725 = vmatmul.mubr.msk.bf16.gmra.mrb[252].mxu1 %vm1048_vm3, %v21089_v18  ;;  %v6795_v29 = vpop.f32.mrb[2].mxu0 }
 0xbcc   : > { %v18875_v1 = vadd.f32 %v6795_v29, %v6529_v11  ;;  %v11529_v39 = vpop.f32.mrb[3].mxu0  ;;  %11728 = vmatprep.mubr.msk.bf16.mxu1 %vm13358_vm0, %v21000_v10  ;;  %v7755_v11 = vor.u32 %v7753_v52, %v18155_v33  ;;  %v7759_v33 = vrot.slane %v21060_v26, 1  ;;  %v21097_v26 = vld [vmem:[#allocation85_spill] sm:$0xff] }
 0xbce   : > { %21090 = vst [vmem:[#allocation48_spill] sm:$0xff] %v18875_v1  ;;  %v6534_v31 = vpop.f32.mrb[148].mxu1  ;;  %11811 = vmatmul.mubr.msk.bf16.gmra.mrb[108].mxu0 %vm1048_vm3, %v18880_v41 }
 0xbcf   : > { %v11446_v6 = vpop.f32.mrb[149].mxu1  ;;  %11814 = vmatprep.mubr.msk.bf16.mxu0 %vm13358_vm0, %v21000_v10 }
 0xbd0   : > { %v6537_v44 = vpop.f32.mrb[150].mxu1 }
 0xbd1   : > { %v11447_v16 = vpop.f32.mrb[151].mxu1  ;;  %v6800_v34 = vpop.f32.mrb[4].mxu0 }
 0xbd2   : > { %v18887_v29 = vadd.f32 %v6800_v34, %v6534_v31  ;;  %v11532_v39 = vpop.f32.mrb[5].mxu0  ;;  %v18897_v16 = vsel %vm1938_vm9, %v7755_v11, %v7756_v0 }
 0xbd3   : > { %11729 = vmatmul.mubr.msk.bf16.gmra.mrb[0].mxu1 %vm1048_vm3, %v21092_v24  ;;  %v6803_v57 = vpop.f32.mrb[6].mxu0 }
 0xbd4   : > { %21091 = vst [vmem:[#allocation49_spill] sm:$0xff] %v18887_v29  ;;  %v18892_v46 = vadd.f32 %v6803_v57, %v6537_v44  ;;  %v11533_v6 = vpop.f32.mrb[7].mxu0  ;;  %11732 = vmatprep.mubr.msk.bf16.mxu1 %vm13358_vm0, %v21000_v10  ;;  %v7758_v44 = vor.u32 %v7756_v0, %v18176_v49  ;;  %v7762_v49 = vrot.slane %v21062_v62, 1  ;;  %v21100_v62 = vld [vmem:[#allocation50_spill] sm:$0xff] }
 0xbd6   : > { %21093 = vst [vmem:[#allocation52_spill] sm:$0xff] %v18892_v46  ;;  %v6542_v1 = vpop.f32.mrb[152].mxu1  ;;  %11815 = vmatmul.mubr.msk.bf16.gmra.mrb[112].mxu0 %vm1048_vm3, %v18897_v16 }
 0xbd7   : > { %v11450_v52 = vpop.f32.mrb[153].mxu1  ;;  %11818 = vmatprep.mubr.msk.bf16.mxu0 %vm13358_vm0, %v21000_v10 }
 0xbd8   : > { %v6545_v31 = vpop.f32.mrb[154].mxu1 }
 0xbd9   : > { %v11451_v34 = vpop.f32.mrb[155].mxu1  ;;  %v6808_v39 = vpop.f32.mrb[8].mxu0 }
 0xbda   : > { %v18904_v57 = vadd.f32 %v6808_v39, %v6542_v1  ;;  %v11536_v6 = vpop.f32.mrb[9].mxu0  ;;  %v18914_v34 = vsel %vm1938_vm9, %v7758_v44, %v7759_v33 }
 0xbdb   : > { %11733 = vmatmul.mubr.msk.bf16.gmra.mrb[4].mxu1 %vm1048_vm3, %v21095_v12  ;;  %v6811_v11 = vpop.f32.mrb[10].mxu0 }
 0xbdc   : > { %21094 = vst [vmem:[#allocation53_spill] sm:$0xff] %v18904_v57  ;;  %v18909_v46 = vadd.f32 %v6811_v11, %v6545_v31  ;;  %v11537_v52 = vpop.f32.mrb[11].mxu0  ;;  %11736 = vmatprep.mubr.msk.bf16.mxu1 %vm13358_vm0, %v21000_v10  ;;  %v7761_v31 = vor.u32 %v7759_v33, %v21059_v37  ;;  %v7765_v37 = vrot.slane %v18310_v42, 1 }
 0xbde   : > { %21096 = vst [vmem:[#allocation55_spill] sm:$0xff] %v18909_v46  ;;  %v6550_v29 = vpop.f32.mrb[156].mxu1  ;;  %11819 = vmatmul.mubr.msk.bf16.gmra.mrb[116].mxu0 %vm1048_vm3, %v18914_v34 }
 0xbdf   : > { %v11454_v0 = vpop.f32.mrb[157].mxu1  ;;  %11822 = vmatprep.mubr.msk.bf16.mxu0 %vm13358_vm0, %v21000_v10 }
 0xbe0   : > { %v6553_v1 = vpop.f32.mrb[158].mxu1 }
 0xbe1   : > { %v11455_v39 = vpop.f32.mrb[159].mxu1  ;;  %v6816_v6 = vpop.f32.mrb[12].mxu0 }
 0xbe2   : > { %v18921_v11 = vadd.f32 %v6816_v6, %v6550_v29  ;;  %v11540_v52 = vpop.f32.mrb[13].mxu0  ;;  %v18931_v39 = vsel %vm1938_vm9, %v7761_v31, %v7762_v49 }
 0xbe3   : > { %11737 = vmatmul.mubr.msk.bf16.gmra.mrb[8].mxu1 %vm1048_vm3, %v21097_v26  ;;  %v6819_v44 = vpop.f32.mrb[14].mxu0 }
 0xbe4   : > { %v18926_v46 = vadd.f32 %v6819_v44, %v6553_v1  ;;  %v11541_v0 = vpop.f32.mrb[15].mxu0  ;;  %11740 = vmatprep.mubr.msk.bf16.mxu1 %vm13358_vm0, %v21000_v10  ;;  %v7764_v1 = vor.u32 %v7762_v49, %v21061_v27 }
 0xbe6   : > { %21098 = vst [vmem:[#allocation57_spill] sm:$0xff] %v18926_v46  ;;  %v6558_v57 = vpop.f32.mrb[160].mxu1  ;;  %11823 = vmatmul.mubr.msk.bf16.gmra.mrb[120].mxu0 %vm1048_vm3, %v18931_v39 }
 0xbe7   : > { %v11458_v33 = vpop.f32.mrb[161].mxu1  ;;  %11826 = vmatprep.mubr.msk.bf16.mxu0 %vm13358_vm0, %v21000_v10 }
 0xbe8   : > { %v6561_v29 = vpop.f32.mrb[162].mxu1  ;;  %v8400_v33 = vld [vmem:[#allocation20 + $0x1c] sm:$0xf] }
 0xbe9   : > { %v11459_v6 = vpop.f32.mrb[163].mxu1  ;;  %v6824_v52 = vpop.f32.mrb[16].mxu0  ;;  %v18946_v29 = vsel %vm1938_vm9, %v7764_v1, %v7765_v37  ;;  %v7767_v1 = vor.u32 %v7765_v37, %v18307_v19 }
 0xbea   : > { %v18938_v44 = vadd.f32 %v6824_v52, %v6558_v57  ;;  %v11544_v0 = vpop.f32.mrb[17].mxu0  ;;  %21101 = vst [vmem:[#allocation59_spill] sm:$0xff] %v18946_v29  ;;  %v8456_v6 = vsel %vm720_vm1, %v8400_v33, 0 }
 0xbeb   : > { %11741 = vmatmul.mubr.msk.bf16.gmra.mrb[12].mxu1 %vm1048_vm3, %v21100_v62  ;;  %v6827_v31 = vpop.f32.mrb[18].mxu0  ;;  %11977 = vmatpush3.bf16.msra.mxu0 %v8456_v6 }
 0xbec   : > { %21099 = vst [vmem:[#allocation58_spill] sm:$0xff] %v18938_v44  ;;  %v11545_v46 = vpop.f32.mrb[19].mxu0  ;;  %11744 = vmatprep.mubr.msk.bf16.mxu1 %vm13358_vm0, %v21000_v10  ;;  %v21102_v44 = vld [vmem:[#allocation42_spill] sm:$0xff] }
 0xbee   : > { %v7001_v49 = vpop.f32.mrb[164].mxu1  ;;  %11827 = vmatmul.mubr.msk.bf16.gmra.mrb[124].mxu0 %vm1048_vm3, %v18946_v29 }
 0xbef   : > { %v11550_v57 = vpop.f32.mrb[165].mxu1  ;;  %v7167_v52 = vadd.f32 %v7001_v49, %v18668_v60  ;;  %11830 = vmatprep.mubr.msk.bf16.mxu0 %vm13358_vm0, %v21000_v10  ;;  %v7768_v60 = vrot.slane %v21063_v51, 1 }
 0xbf0   : > { %v7004_v46 = vpop.f32.mrb[166].mxu1 }
 0xbf1   : > { %v11551_v0 = vpop.f32.mrb[167].mxu1  ;;  %v7253_v31 = vpop.f32.mrb[20].mxu0  ;;  %v7168_v42 = vadd.f32 %v7004_v46, %v18671_v28  ;;  %v18966_v6 = vsel %vm1938_vm9, %v7767_v1, %v7768_v60 }
 0xbf2   : > { %v18956_v27 = vadd.f32 %v7253_v31, %v7167_v52  ;;  %v11636_v33 = vpop.f32.mrb[21].mxu0  ;;  %v7770_v31 = vor.u32 %v7768_v60, %v18336_v47 }
 0xbf3   : > { %11745 = vmatmul.mubr.msk.bf16.gmra.mrb[16].mxu1 %vm1048_vm3, %v21102_v44  ;;  %v7256_v57 = vpop.f32.mrb[22].mxu0 }
 0xbf4   : > { %v18961_v49 = vadd.f32 %v7256_v57, %v7168_v42  ;;  %v11637_v29 = vpop.f32.mrb[23].mxu0  ;;  %11748 = vmatprep.mubr.msk.bf16.mxu1 %vm13358_vm0, %v21000_v10  ;;  %v21103_v57 = vld [vmem:[#allocation129_spill] sm:$0xff] }
 0xbf6   : > { %v7009_v28 = vpop.f32.mrb[168].mxu1  ;;  %11831 = vmatmul.mubr.msk.bf16.gmra.mrb[128].mxu0 %vm1048_vm3, %v18966_v6 }
 0xbf7   : > { %v11554_v37 = vpop.f32.mrb[169].mxu1  ;;  %v7169_v52 = vadd.f32 %v7009_v28, %v18681_v59  ;;  %11834 = vmatprep.mubr.msk.bf16.mxu0 %vm13358_vm0, %v21000_v10 }
 0xbf8   : > { %v7012_v46 = vpop.f32.mrb[170].mxu1  ;;  %v7771_v37 = vrot.slane %v21065_v58, 1  ;;  %v21104_v58 = vld [vmem:[#allocation152_spill] sm:$0xff] }
 0xbf9   : > { %v11555_v42 = vpop.f32.mrb[171].mxu1  ;;  %v7261_v0 = vpop.f32.mrb[24].mxu0  ;;  %v7170_v29 = vadd.f32 %v7012_v46, %v18684_v20 }
 0xbfa   : > { %v18975_v33 = vadd.f32 %v7261_v0, %v7169_v52  ;;  %v11640_v1 = vpop.f32.mrb[25].mxu0  ;;  %v18985_v42 = vsel %vm1938_vm9, %v7770_v31, %v7771_v37 }
 0xbfb   : > { %11749 = vmatmul.mubr.msk.bf16.gmra.mrb[20].mxu1 %vm1048_vm3, %v21103_v57  ;;  %v7264_v51 = vpop.f32.mrb[26].mxu0  ;;  %v7773_v1 = vor.u32 %v7771_v37, %v21064_v5 }
 0xbfc   : > { %v18980_v59 = vadd.f32 %v7264_v51, %v7170_v29  ;;  %v11641_v28 = vpop.f32.mrb[27].mxu0  ;;  %11752 = vmatprep.mubr.msk.bf16.mxu1 %vm13358_vm0, %v21000_v10 }
 0xbfe   : > { %v7017_v20 = vpop.f32.mrb[172].mxu1  ;;  %11835 = vmatmul.mubr.msk.bf16.gmra.mrb[132].mxu0 %vm1048_vm3, %v18985_v42 }
 0xbff   : > { %v11558_v60 = vpop.f32.mrb[173].mxu1  ;;  %v7171_v52 = vadd.f32 %v7017_v20, %v18694_v2  ;;  %11838 = vmatprep.mubr.msk.bf16.mxu0 %vm13358_vm0, %v21000_v10 }
 0xc00   : > { %v7020_v46 = vpop.f32.mrb[174].mxu1  ;;  %v7774_v60 = vrot.slane %v21067_v48, 1  ;;  %v21105_v48 = vld [vmem:[#allocation92_spill] sm:$0xff] }
 0xc01   : > { %v11559_v51 = vpop.f32.mrb[175].mxu1  ;;  %v7269_v0 = vpop.f32.mrb[28].mxu0  ;;  %v7172_v29 = vadd.f32 %v7020_v46, %v18697_v15 }
 0xc02   : > { %v18994_v28 = vadd.f32 %v7269_v0, %v7171_v52  ;;  %v11644_v31 = vpop.f32.mrb[29].mxu0  ;;  %v19004_v51 = vsel %vm1938_vm9, %v7773_v1, %v7774_v60 }
 0xc03   : > { %11753 = vmatmul.mubr.msk.bf16.gmra.mrb[24].mxu1 %vm1048_vm3, %v21104_v58  ;;  %v7272_v47 = vpop.f32.mrb[30].mxu0  ;;  %v7776_v31 = vor.u32 %v7774_v60, %v21066_v55 }
 0xc04   : > { %v18999_v2 = vadd.f32 %v7272_v47, %v7172_v29  ;;  %v11645_v20 = vpop.f32.mrb[31].mxu0  ;;  %11756 = vmatprep.mubr.msk.bf16.mxu1 %vm13358_vm0, %v21000_v10 }
 0xc06   : > { %v7025_v15 = vpop.f32.mrb[176].mxu1  ;;  %11839 = vmatmul.mubr.msk.bf16.gmra.mrb[136].mxu0 %vm1048_vm3, %v19004_v51 }
 0xc07   : > { %v11562_v37 = vpop.f32.mrb[177].mxu1  ;;  %v7173_v52 = vadd.f32 %v7025_v15, %v18707_v9  ;;  %11842 = vmatprep.mubr.msk.bf16.mxu0 %vm13358_vm0, %v21000_v10 }
 0xc08   : > { %v7028_v46 = vpop.f32.mrb[178].mxu1  ;;  %v7777_v37 = vrot.slane %v21069_v36, 1  ;;  %v21106_v36 = vld [vmem:[#allocation153_spill] sm:$0xff] }
 0xc09   : > { %v11563_v47 = vpop.f32.mrb[179].mxu1  ;;  %v7277_v0 = vpop.f32.mrb[32].mxu0  ;;  %v7174_v29 = vadd.f32 %v7028_v46, %v18710_v23 }
 0xc0a   : > { %v19013_v20 = vadd.f32 %v7277_v0, %v7173_v52  ;;  %v11648_v1 = vpop.f32.mrb[33].mxu0  ;;  %v19023_v47 = vsel %vm1938_vm9, %v7776_v31, %v7777_v37 }
 0xc0b   : > { %11757 = vmatmul.mubr.msk.bf16.gmra.mrb[28].mxu1 %vm1048_vm3, %v21105_v48  ;;  %v7280_v5 = vpop.f32.mrb[34].mxu0  ;;  %v7779_v1 = vor.u32 %v7777_v37, %v21068_v25 }
 0xc0c   : > { %v19018_v9 = vadd.f32 %v7280_v5, %v7174_v29  ;;  %v11649_v15 = vpop.f32.mrb[35].mxu0  ;;  %11760 = vmatprep.mubr.msk.bf16.mxu1 %vm13358_vm0, %v21000_v10 }
 0xc0e   : > { %v7033_v23 = vpop.f32.mrb[180].mxu1  ;;  %11843 = vmatmul.mubr.msk.bf16.gmra.mrb[140].mxu0 %vm1048_vm3, %v19023_v47 }
 0xc0f   : > { %v11566_v60 = vpop.f32.mrb[181].mxu1  ;;  %v7175_v52 = vadd.f32 %v7033_v23, %v18720_v50  ;;  %11846 = vmatprep.mubr.msk.bf16.mxu0 %vm13358_vm0, %v21000_v10 }
 0xc10   : > { %v7036_v46 = vpop.f32.mrb[182].mxu1  ;;  %v7780_v60 = vrot.slane %v18472_v43, 1 }
 0xc11   : > { %v11567_v5 = vpop.f32.mrb[183].mxu1  ;;  %v7285_v0 = vpop.f32.mrb[36].mxu0  ;;  %v7176_v29 = vadd.f32 %v7036_v46, %v18723_v3 }
 0xc12   : > { %v19032_v15 = vadd.f32 %v7285_v0, %v7175_v52  ;;  %v11652_v31 = vpop.f32.mrb[37].mxu0  ;;  %v19042_v5 = vsel %vm1938_vm9, %v7779_v1, %v7780_v60 }
 0xc13   : > { %11761 = vmatmul.mubr.msk.bf16.gmra.mrb[32].mxu1 %vm1048_vm3, %v21106_v36  ;;  %v7288_v55 = vpop.f32.mrb[38].mxu0  ;;  %v7782_v31 = vor.u32 %v7780_v60, %v18453_v61 }
 0xc14   : > { %v19037_v50 = vadd.f32 %v7288_v55, %v7176_v29  ;;  %v11653_v23 = vpop.f32.mrb[39].mxu0  ;;  %11764 = vmatprep.mubr.msk.bf16.mxu1 %vm13358_vm0, %v21000_v10 }
 0xc16   : > { %v7041_v3 = vpop.f32.mrb[184].mxu1  ;;  %11847 = vmatmul.mubr.msk.bf16.gmra.mrb[144].mxu0 %vm1048_vm3, %v19042_v5 }
 0xc17   : > { %v11570_v37 = vpop.f32.mrb[185].mxu1  ;;  %v7177_v52 = vadd.f32 %v7041_v3, %v18733_v14  ;;  %11850 = vmatprep.mubr.msk.bf16.mxu0 %vm13358_vm0, %v21000_v10  ;;  %v21107_v3 = vrot.slane %v18326_v38, 1 }
 0xc18   : > { %v7044_v46 = vpop.f32.mrb[186].mxu1 }
 0xc19   : > { %v11571_v55 = vpop.f32.mrb[187].mxu1  ;;  %v7293_v0 = vpop.f32.mrb[40].mxu0  ;;  %v7178_v29 = vadd.f32 %v7044_v46, %v18736_v7 }
 0xc1a   : > { %v19051_v23 = vadd.f32 %v7293_v0, %v7177_v52  ;;  %v11656_v1 = vpop.f32.mrb[41].mxu0  ;;  %v19062_v55 = vsel %vm1938_vm9, %v7782_v31, %v21107_v3 }
 0xc1b   : > { %11765 = vmatmul.mubr.msk.bf16.gmra.mrb[36].mxu1 %vm1048_vm3, %v18025_v30  ;;  %v7296_v43 = vpop.f32.mrb[42].mxu0 }
 0xc1c   : > { %v19055_v37 = vadd.f32 %v7296_v43, %v7178_v29  ;;  %v11657_v14 = vpop.f32.mrb[43].mxu0  ;;  %11768 = vmatprep.mubr.msk.bf16.mxu1 %vm13358_vm0, %v21000_v10 }
 0xc1e   : > { %v7049_v7 = vpop.f32.mrb[188].mxu1  ;;  %11851 = vmatmul.mubr.msk.bf16.gmra.mrb[148].mxu0 %vm1048_vm3, %v19062_v55 }
 0xc1f   : > { %v11574_v60 = vpop.f32.mrb[189].mxu1  ;;  %v7179_v52 = vadd.f32 %v7049_v7, %v18746_v40  ;;  %11854 = vmatprep.mubr.msk.bf16.mxu0 %vm13358_vm0, %v21000_v10  ;;  %v21108_v7 = vld [vmem:[#allocation125_spill] sm:$0xff] }
 0xc20   : > { %v7052_v43 = vpop.f32.mrb[190].mxu1 }
 0xc21   : > { %v11575_v46 = vpop.f32.mrb[191].mxu1  ;;  %v7301_v0 = vpop.f32.mrb[44].mxu0  ;;  %v7180_v29 = vadd.f32 %v7052_v43, %v18749_v17 }
 0xc22   : > { %v19070_v1 = vadd.f32 %v7301_v0, %v7179_v52  ;;  %v11660_v38 = vpop.f32.mrb[45].mxu0 }
 0xc23   : > { %11769 = vmatmul.mubr.msk.bf16.gmra.mrb[40].mxu1 %vm1048_vm3, %v18031_v4  ;;  %v7304_v31 = vpop.f32.mrb[46].mxu0 }
 0xc24   : > { %v19074_v14 = vadd.f32 %v7304_v31, %v7180_v29  ;;  %v11661_v3 = vpop.f32.mrb[47].mxu0  ;;  %11772 = vmatprep.mubr.msk.bf16.mxu1 %vm13358_vm0, %v21000_v10 }
 0xc26   : > { %v7057_v40 = vpop.f32.mrb[192].mxu1  ;;  %11855 = vmatmul.mubr.msk.bf16.gmra.mrb[152].mxu0 %vm1048_vm3, %v21108_v7 }
 0xc27   : > { %v11578_v60 = vpop.f32.mrb[193].mxu1  ;;  %v7181_v17 = vadd.f32 %v7057_v40, %v18757_v21  ;;  %11858 = vmatprep.mubr.msk.bf16.mxu0 %vm13358_vm0, %v21000_v10  ;;  %v21109_v40 = vld [vmem:[#allocation126_spill] sm:$0xff] }
 0xc28   : > { %v7060_v52 = vpop.f32.mrb[194].mxu1 }
 0xc29   : > { %v11579_v43 = vpop.f32.mrb[195].mxu1  ;;  %v7309_v46 = vpop.f32.mrb[48].mxu0  ;;  %v7182_v0 = vadd.f32 %v7060_v52, %v18760_v32 }
 0xc2a   : > { %v19084_v29 = vadd.f32 %v7309_v46, %v7181_v17  ;;  %v11664_v38 = vpop.f32.mrb[49].mxu0 }
 0xc2b   : > { %11773 = vmatmul.mubr.msk.bf16.gmra.mrb[44].mxu1 %vm1048_vm3, %v18037_v54  ;;  %v7312_v31 = vpop.f32.mrb[50].mxu0 }
 0xc2c   : > { %v19088_v3 = vadd.f32 %v7312_v31, %v7182_v0  ;;  %v11665_v60 = vpop.f32.mrb[51].mxu0  ;;  %11776 = vmatprep.mubr.msk.bf16.mxu1 %vm13358_vm0, %v21000_v10 }
 0xc2e   : > { %v7065_v21 = vpop.f32.mrb[196].mxu1  ;;  %11859 = vmatmul.mubr.msk.bf16.gmra.mrb[156].mxu0 %vm1048_vm3, %v21109_v40 }
 0xc2f   : > { %v11582_v43 = vpop.f32.mrb[197].mxu1  ;;  %v7183_v32 = vadd.f32 %v7065_v21, %v18769_v8  ;;  %11862 = vmatprep.mubr.msk.bf16.mxu0 %vm13358_vm0, %v21000_v10  ;;  %v21112_v21 = vld [vmem:[#allocation127_spill] sm:$0xff] }
 0xc30   : > { %v7068_v17 = vpop.f32.mrb[198].mxu1 }
 0xc31   : > { %v11583_v52 = vpop.f32.mrb[199].mxu1  ;;  %v7317_v46 = vpop.f32.mrb[52].mxu0  ;;  %v7184_v0 = vadd.f32 %v7068_v17, %v18772_v63 }
 0xc32   : > { %v19098_v38 = vadd.f32 %v7317_v46, %v7183_v32  ;;  %v11668_v31 = vpop.f32.mrb[53].mxu0 }
 0xc33   : > { %11777 = vmatmul.mubr.msk.bf16.gmra.mrb[48].mxu1 %vm1048_vm3, %v18043_v35  ;;  %v7320_v60 = vpop.f32.mrb[54].mxu0 }
 0xc34   : > { %21110 = vst [vmem:[#allocation64_spill] sm:$0xff] %v19098_v38  ;;  %v19102_v61 = vadd.f32 %v7320_v60, %v7184_v0  ;;  %v11669_v43 = vpop.f32.mrb[55].mxu0  ;;  %11780 = vmatprep.mubr.msk.bf16.mxu1 %vm13358_vm0, %v21000_v10 }
 0xc35   : > { %v21114_v43 = vld [vmem:[#allocation77_spill] sm:$0xff] }
 0xc36   : > { %21111 = vst [vmem:[#allocation65_spill] sm:$0xff] %v19102_v61  ;;  %v7073_v8 = vpop.f32.mrb[200].mxu1  ;;  %11863 = vmatmul.mubr.msk.bf16.gmra.mrb[160].mxu0 %vm1048_vm3, %v21112_v21  ;;  %v21117_v61 = vld [vmem:[#allocation166_spill] sm:$0xff] }
 0xc37   : > { %v11586_v52 = vpop.f32.mrb[201].mxu1  ;;  %v7185_v63 = vadd.f32 %v7073_v8, %v18780_v45  ;;  %11866 = vmatprep.mubr.msk.bf16.mxu0 %vm13358_vm0, %v21000_v10  ;;  %v21116_v8 = vld [vmem:[#allocation114_spill] sm:$0xff] }
 0xc38   : > { %v7076_v32 = vpop.f32.mrb[202].mxu1 }
 0xc39   : > { %v11587_v17 = vpop.f32.mrb[203].mxu1  ;;  %v7325_v46 = vpop.f32.mrb[56].mxu0  ;;  %v7186_v0 = vadd.f32 %v7076_v32, %v18784_v22 }
 0xc3a   : > { %v19112_v31 = vadd.f32 %v7325_v46, %v7185_v63  ;;  %v11672_v60 = vpop.f32.mrb[57].mxu0 }
 0xc3b   : > { %11781 = vmatmul.mubr.msk.bf16.gmra.mrb[52].mxu1 %vm1048_vm3, %v21114_v43  ;;  %v7328_v25 = vpop.f32.mrb[58].mxu0  ;;  %v21118_v60 = vld [vmem:[#allocation131_spill] sm:$0xff] }
 0xc3c   : > { %21113 = vst [vmem:[#allocation66_spill] sm:$0xff] %v19112_v31  ;;  %v19116_v19 = vadd.f32 %v7328_v25, %v7186_v0  ;;  %v11673_v52 = vpop.f32.mrb[59].mxu0  ;;  %11784 = vmatprep.mubr.msk.bf16.mxu1 %vm13358_vm0, %v21000_v10 }
 0xc3e   : > { %21115 = vst [vmem:[#allocation67_spill] sm:$0xff] %v19116_v19  ;;  %v7081_v45 = vpop.f32.mrb[204].mxu1  ;;  %11867 = vmatmul.mubr.msk.bf16.gmra.mrb[164].mxu0 %vm1048_vm3, %v21116_v8  ;;  %v21120_v19 = vld [vmem:[#allocation138_spill] sm:$0xff]  ;;  %v21123_v8 = vld [vmem:[#allocation168_spill] sm:$0xff] }
 0xc3f   : > { %v11590_v17 = vpop.f32.mrb[205].mxu1  ;;  %v7187_v22 = vadd.f32 %v7081_v45, %v21117_v61  ;;  %11870 = vmatprep.mubr.msk.bf16.mxu0 %vm13358_vm0, %v21000_v10  ;;  %v21122_v45 = vld [vmem:[#allocation133_spill] sm:$0xff] }
 0xc40   : > { %v7084_v63 = vpop.f32.mrb[206].mxu1 }
 0xc41   : > { %v11591_v32 = vpop.f32.mrb[207].mxu1  ;;  %v7333_v46 = vpop.f32.mrb[60].mxu0  ;;  %v7188_v25 = vadd.f32 %v7084_v63, %v21118_v60 }
 0xc42   : > { %v19126_v0 = vadd.f32 %v7333_v46, %v7187_v22  ;;  %v11676_v52 = vpop.f32.mrb[61].mxu0 }
 0xc43   : > { %11785 = vmatmul.mubr.msk.bf16.gmra.mrb[56].mxu1 %vm1048_vm3, %v21120_v19  ;;  %v7336_v31 = vpop.f32.mrb[62].mxu0  ;;  %v21124_v52 = vld [vmem:[#allocation169_spill] sm:$0xff] }
 0xc44   : > { %21119 = vst [vmem:[#allocation71_spill] sm:$0xff] %v19126_v0  ;;  %v19130_v38 = vadd.f32 %v7336_v31, %v7188_v25  ;;  %v11677_v17 = vpop.f32.mrb[63].mxu0  ;;  %11788 = vmatprep.mubr.msk.bf16.mxu1 %vm13358_vm0, %v21000_v10 }
 0xc46   : > { %21121 = vst [vmem:[#allocation72_spill] sm:$0xff] %v19130_v38  ;;  %v7089_v61 = vpop.f32.mrb[208].mxu1  ;;  %11871 = vmatmul.mubr.msk.bf16.gmra.mrb[168].mxu0 %vm1048_vm3, %v21122_v45  ;;  %v21126_v38 = vld [vmem:[#allocation139_spill] sm:$0xff]  ;;  %v21129_v45 = vld [vmem:[#allocation162_spill] sm:$0xff] }
 0xc47   : > { %v11594_v32 = vpop.f32.mrb[209].mxu1  ;;  %v7189_v63 = vadd.f32 %v7089_v61, %v21123_v8  ;;  %11874 = vmatprep.mubr.msk.bf16.mxu0 %vm13358_vm0, %v21000_v10  ;;  %v21128_v61 = vld [vmem:[#allocation134_spill] sm:$0xff] }
 0xc48   : > { %v7092_v22 = vpop.f32.mrb[210].mxu1 }
 0xc49   : > { %v11595_v46 = vpop.f32.mrb[211].mxu1  ;;  %v7341_v60 = vpop.f32.mrb[64].mxu0  ;;  %v7190_v31 = vadd.f32 %v7092_v22, %v21124_v52 }
 0xc4a   : > { %v19140_v25 = vadd.f32 %v7341_v60, %v7189_v63  ;;  %v11680_v17 = vpop.f32.mrb[65].mxu0 }
 0xc4b   : > { %11789 = vmatmul.mubr.msk.bf16.gmra.mrb[60].mxu1 %vm1048_vm3, %v21126_v38  ;;  %v7344_v0 = vpop.f32.mrb[66].mxu0  ;;  %v21130_v17 = vld [vmem:[#allocation171_spill] sm:$0xff] }
 0xc4c   : > { %21125 = vst [vmem:[#allocation75_spill] sm:$0xff] %v19140_v25  ;;  %v19144_v19 = vadd.f32 %v7344_v0, %v7190_v31  ;;  %v11681_v32 = vpop.f32.mrb[67].mxu0  ;;  %11792 = vmatprep.mubr.msk.bf16.mxu1 %vm13358_vm0, %v21000_v10 }
 0xc4e   : > { %21127 = vst [vmem:[#allocation76_spill] sm:$0xff] %v19144_v19  ;;  %v7097_v8 = vpop.f32.mrb[212].mxu1  ;;  %11875 = vmatmul.mubr.msk.bf16.gmra.mrb[172].mxu0 %vm1048_vm3, %v21128_v61  ;;  %v21132_v19 = vld [vmem:[#allocation150_spill] sm:$0xff]  ;;  %v21135_v61 = vld [vmem:[#allocation44_spill] sm:$0xff] }
 0xc4f   : > { %v11598_v46 = vpop.f32.mrb[213].mxu1  ;;  %v7191_v22 = vadd.f32 %v7097_v8, %v21129_v45  ;;  %11878 = vmatprep.mubr.msk.bf16.mxu0 %vm13358_vm0, %v21000_v10  ;;  %v21134_v8 = vld [vmem:[#allocation142_spill] sm:$0xff] }
 0xc50   : > { %v7100_v63 = vpop.f32.mrb[214].mxu1 }
 0xc51   : > { %v11599_v60 = vpop.f32.mrb[215].mxu1  ;;  %v7349_v52 = vpop.f32.mrb[68].mxu0  ;;  %v7192_v0 = vadd.f32 %v7100_v63, %v21130_v17 }
 0xc52   : > { %v19154_v31 = vadd.f32 %v7349_v52, %v7191_v22  ;;  %v11684_v32 = vpop.f32.mrb[69].mxu0 }
 0xc53   : > { %11793 = vmatmul.mubr.msk.bf16.gmra.mrb[64].mxu1 %vm1048_vm3, %v21132_v19  ;;  %v7352_v25 = vpop.f32.mrb[70].mxu0  ;;  %v21136_v32 = vld [vmem:[#allocation41_spill] sm:$0xff] }
 0xc54   : > { %21131 = vst [vmem:[#allocation80_spill] sm:$0xff] %v19154_v31  ;;  %v19158_v38 = vadd.f32 %v7352_v25, %v7192_v0  ;;  %v11685_v46 = vpop.f32.mrb[71].mxu0  ;;  %11796 = vmatprep.mubr.msk.bf16.mxu1 %vm13358_vm0, %v21000_v10 }
 0xc56   : > { %21133 = vst [vmem:[#allocation83_spill] sm:$0xff] %v19158_v38  ;;  %v7105_v45 = vpop.f32.mrb[216].mxu1  ;;  %11879 = vmatmul.mubr.msk.bf16.gmra.mrb[176].mxu0 %vm1048_vm3, %v21134_v8  ;;  %v21138_v38 = vld [vmem:[#allocation151_spill] sm:$0xff]  ;;  %v21141_v8 = vld [vmem:[#allocation40_spill] sm:$0xff] }
 0xc57   : > { %v11602_v60 = vpop.f32.mrb[217].mxu1  ;;  %v7193_v63 = vadd.f32 %v7105_v45, %v21135_v61  ;;  %11882 = vmatprep.mubr.msk.bf16.mxu0 %vm13358_vm0, %v21000_v10  ;;  %v21140_v45 = vld [vmem:[#allocation82_spill] sm:$0xff] }
 0xc58   : > { %v7108_v22 = vpop.f32.mrb[218].mxu1 }
 0xc59   : > { %v11603_v52 = vpop.f32.mrb[219].mxu1  ;;  %v7357_v17 = vpop.f32.mrb[72].mxu0  ;;  %v7194_v25 = vadd.f32 %v7108_v22, %v21136_v32 }
 0xc5a   : > { %v19168_v0 = vadd.f32 %v7357_v17, %v7193_v63  ;;  %v11688_v46 = vpop.f32.mrb[73].mxu0 }
 0xc5b   : > { %11797 = vmatmul.mubr.msk.bf16.gmra.mrb[68].mxu1 %vm1048_vm3, %v21138_v38  ;;  %v7360_v31 = vpop.f32.mrb[74].mxu0  ;;  %v21142_v46 = vld [vmem:[#allocation43_spill] sm:$0xff] }
 0xc5c   : > { %21137 = vst [vmem:[#allocation36_spill] sm:$0xff] %v19168_v0  ;;  %v19172_v19 = vadd.f32 %v7360_v31, %v7194_v25  ;;  %v11689_v60 = vpop.f32.mrb[75].mxu0  ;;  %11800 = vmatprep.mubr.msk.bf16.mxu1 %vm13358_vm0, %v21000_v10 }
 0xc5e   : > { %21139 = vst [vmem:[#allocation90_spill] sm:$0xff] %v19172_v19  ;;  %v7113_v61 = vpop.f32.mrb[220].mxu1  ;;  %11883 = vmatmul.mubr.msk.bf16.gmra.mrb[180].mxu0 %vm1048_vm3, %v21140_v45  ;;  %v21143_v19 = vld [vmem:[#allocation120_spill] sm:$0xff]  ;;  %v21146_v45 = vld [vmem:[#allocation143_spill] sm:$0xff] }
 0xc5f   : > { %v11606_v52 = vpop.f32.mrb[221].mxu1  ;;  %v7195_v22 = vadd.f32 %v7113_v61, %v21141_v8  ;;  %11886 = vmatprep.mubr.msk.bf16.mxu0 %vm13358_vm0, %v21000_v10  ;;  %v21144_v8 = vld [vmem:[#allocation61_spill] sm:$0xff] }
 0xc60   : > { %v7116_v63 = vpop.f32.mrb[222].mxu1  ;;  %v21145_v61 = vrot.slane %v21144_v8, 7  ;;  %v8364_v8 = vrot.slane %v21092_v24, 1 }
 0xc61   : > { %v11607_v17 = vpop.f32.mrb[223].mxu1  ;;  %v7365_v32 = vpop.f32.mrb[76].mxu0  ;;  %v7196_v31 = vadd.f32 %v7116_v63, %v21142_v46 }
 0xc62   : > { %v19182_v25 = vadd.f32 %v7365_v32, %v7195_v22  ;;  %v11692_v60 = vpop.f32.mrb[77].mxu0  ;;  %v7806_v21 = vsel %vm15159_vm11, %v21146_v45, %v21145_v61  ;;  %v8772_v22 = vld [vmem:[#allocation20 + $0x20] sm:$0xf] }
 0xc63   : > { %11801 = vmatmul.mubr.msk.bf16.gmra.mrb[72].mxu1 %vm1048_vm3, %v21143_v19  ;;  %v7368_v0 = vpop.f32.mrb[78].mxu0  ;;  %v8828_v45 = vsel %vm720_vm1, %v8772_v22, 0 }
 0xc64   : > { %v19186_v38 = vadd.f32 %v7368_v0, %v7196_v31  ;;  %v11693_v52 = vpop.f32.mrb[79].mxu0  ;;  %11892 = vmatprep.mubr.msk.bf16.mxu1 %vm13358_vm0, %v21000_v10 }
 0xc65   : > { %v8363_v52 = vrot.slane %v21089_v18, 1 }
 0xc66   : > { %v7121_v63 = vpop.f32.mrb[224].mxu1  ;;  %11887 = vmatmul.mubr.msk.bf16.gmra.mrb[184].mxu0 %vm1048_vm3, %v7806_v21 }
 0xc67   : > { %v11610_v32 = vpop.f32.mrb[225].mxu1  ;;  %v7197_v19 = vadd.f32 %v7121_v63, %v18855_v13  ;;  %11978 = vmatprep.mubr.msk.bf16.mxu0 %vm13358_vm0, %v21000_v10 }
 0xc68   : > { %v7124_v0 = vpop.f32.mrb[226].mxu1 }
 0xc69   : > { %v11611_v46 = vpop.f32.mrb[227].mxu1  ;;  %v7373_v31 = vpop.f32.mrb[80].mxu0  ;;  %v7198_v60 = vadd.f32 %v7124_v0, %v18860_v56  ;;  %v8365_v56 = vsel %vm2135_vm4, %v8363_v52, %v8364_v8  ;;  %v21148_v0 = vld [vmem:[#allocation48_spill] sm:$0xff] }
 0xc6a   : > { %v19203_v61 = vadd.f32 %v7373_v31, %v7197_v19  ;;  %v11696_v21 = vpop.f32.mrb[81].mxu0  ;;  %v8366_v31 = vrot.slane %v21095_v12, 1  ;;  %v21149_v12 = vld [vmem:[#allocation49_spill] sm:$0xff] }
 0xc6b   : > { %11893 = vmatmul.mubr.msk.bf16.vlgmr.msra.gmra.mrb[76].mxu1 %vm1048_vm3, %v18880_v41  ;;  %v7376_v13 = vpop.f32.mrb[82].mxu0 }
 0xc6c   : > { %v19207_v17 = vadd.f32 %v7376_v13, %v7198_v60  ;;  %v11697_v63 = vpop.f32.mrb[83].mxu0  ;;  %11896 = vmatprep.mubr.msk.bf16.mxu1 %vm13358_vm0, %v21000_v10  ;;  %12063 = vmatpush3.bf16.msra.mxu1 %v8828_v45  ;;  %v8367_v13 = vsel %vm2135_vm4, %v8364_v8, %v8366_v31 }
 0xc6e   : > { %v7129_v18 = vpop.f32.mrb[228].mxu1  ;;  %11979 = vmatmul.mubr.msk.bf16.vlgmr.msra.gmra.mrb[188].mxu0 %vm1048_vm3, %v8365_v56 }
 0xc6f   : > { %v11614_v24 = vpop.f32.mrb[229].mxu1  ;;  %v7199_v22 = vadd.f32 %v7129_v18, %v18870_v53  ;;  %11982 = vmatprep.mubr.msk.bf16.mxu0 %vm13358_vm0, %v21000_v10 }
 0xc70   : > { %v7132_v41 = vpop.f32.mrb[230].mxu1 }
 0xc71   : > { %v11615_v32 = vpop.f32.mrb[231].mxu1  ;;  %v7381_v19 = vpop.f32.mrb[84].mxu0  ;;  %v7200_v46 = vadd.f32 %v7132_v41, %v21148_v0  ;;  %v21150_v41 = vld [vmem:[#allocation52_spill] sm:$0xff] }
 0xc72   : > { %v19218_v60 = vadd.f32 %v7381_v19, %v7199_v22  ;;  %v11700_v45 = vpop.f32.mrb[85].mxu0  ;;  %v8368_v19 = vrot.slane %v21097_v26, 1  ;;  %v21151_v26 = vld [vmem:[#allocation53_spill] sm:$0xff] }
 0xc73   : > { %11897 = vmatmul.mubr.msk.bf16.gmra.mrb[80].mxu1 %vm1048_vm3, %v18897_v16  ;;  %v7384_v52 = vpop.f32.mrb[86].mxu0 }
 0xc74   : > { %v19222_v21 = vadd.f32 %v7384_v52, %v7200_v46  ;;  %v11701_v53 = vpop.f32.mrb[87].mxu0  ;;  %11900 = vmatprep.mubr.msk.bf16.mxu1 %vm13358_vm0, %v21000_v10 }
 0xc75   : > { %v8369_v53 = vsel %vm2135_vm4, %v8366_v31, %v8368_v19 }
 0xc76   : > { %v7137_v63 = vpop.f32.mrb[232].mxu1  ;;  %11983 = vmatmul.mubr.msk.bf16.gmra.mrb[192].mxu0 %vm1048_vm3, %v8367_v13 }
 0xc77   : > { %v11618_v56 = vpop.f32.mrb[233].mxu1  ;;  %v7201_v18 = vadd.f32 %v7137_v63, %v21149_v12  ;;  %11986 = vmatprep.mubr.msk.bf16.mxu0 %vm13358_vm0, %v21000_v10 }
 0xc78   : > { %v7140_v24 = vpop.f32.mrb[234].mxu1 }
 0xc79   : > { %v11619_v16 = vpop.f32.mrb[235].mxu1  ;;  %v7389_v22 = vpop.f32.mrb[88].mxu0  ;;  %v7202_v32 = vadd.f32 %v7140_v24, %v21150_v41  ;;  %v21152_v24 = vld [vmem:[#allocation55_spill] sm:$0xff] }
 0xc7a   : > { %v19233_v0 = vadd.f32 %v7389_v22, %v7201_v18  ;;  %v11704_v46 = vpop.f32.mrb[89].mxu0  ;;  %v8370_v22 = vrot.slane %v21100_v62, 1 }
 0xc7b   : > { %11901 = vmatmul.mubr.msk.bf16.gmra.mrb[84].mxu1 %vm1048_vm3, %v18914_v34  ;;  %v7392_v8 = vpop.f32.mrb[90].mxu0 }
 0xc7c   : > { %v19237_v45 = vadd.f32 %v7392_v8, %v7202_v32  ;;  %v11705_v52 = vpop.f32.mrb[91].mxu0  ;;  %11904 = vmatprep.mubr.msk.bf16.mxu1 %vm13358_vm0, %v21000_v10 }
 0xc7d   : > { %v8371_v52 = vsel %vm2135_vm4, %v8368_v19, %v8370_v22  ;;  %v21154_v19 = vld [vmem:[#allocation59_spill] sm:$0xff] }
 0xc7e   : > { %v7145_v13 = vpop.f32.mrb[236].mxu1  ;;  %11987 = vmatmul.mubr.msk.bf16.gmra.mrb[196].mxu0 %vm1048_vm3, %v8369_v53 }
 0xc7f   : > { %v11622_v63 = vpop.f32.mrb[237].mxu1  ;;  %v7203_v56 = vadd.f32 %v7145_v13, %v21151_v26  ;;  %11990 = vmatprep.mubr.msk.bf16.mxu0 %vm13358_vm0, %v21000_v10 }
 0xc80   : > { %v7148_v12 = vpop.f32.mrb[238].mxu1 }
 0xc81   : > { %v11623_v34 = vpop.f32.mrb[239].mxu1  ;;  %v7397_v18 = vpop.f32.mrb[92].mxu0  ;;  %v7204_v16 = vadd.f32 %v7148_v12, %v21152_v24 }
 0xc82   : > { %v19248_v41 = vadd.f32 %v7397_v18, %v7203_v56  ;;  %v11708_v32 = vpop.f32.mrb[93].mxu0  ;;  %v21153_v56 = vld [vmem:[#allocation57_spill] sm:$0xff]  ;;  %v8372_v34 = vrot.slane %v21102_v44, 1 }
 0xc83   : > { %11905 = vmatmul.mubr.msk.bf16.gmra.mrb[88].mxu1 %vm1048_vm3, %v18931_v39  ;;  %v7400_v31 = vpop.f32.mrb[94].mxu0 }
 0xc84   : > { %v19252_v46 = vadd.f32 %v7400_v31, %v7204_v16  ;;  %v11709_v8 = vpop.f32.mrb[95].mxu0  ;;  %11908 = vmatprep.mubr.msk.bf16.mxu1 %vm13358_vm0, %v21000_v10  ;;  %v8373_v31 = vsel %vm2135_vm4, %v8370_v22, %v8372_v34 }
 0xc86   : > { %v7153_v53 = vpop.f32.mrb[240].mxu1  ;;  %11991 = vmatmul.mubr.msk.bf16.gmra.mrb[200].mxu0 %vm1048_vm3, %v8371_v52  ;;  %v21155_v52 = vld [vmem:[#allocation58_spill] sm:$0xff] }
 0xc87   : > { %v11626_v13 = vpop.f32.mrb[241].mxu1  ;;  %v7205_v62 = vadd.f32 %v7153_v53, %v18921_v11  ;;  %11994 = vmatprep.mubr.msk.bf16.mxu0 %vm13358_vm0, %v21000_v10 }
 0xc88   : > { %v7156_v63 = vpop.f32.mrb[242].mxu1 }
 0xc89   : > { %v11627_v39 = vpop.f32.mrb[243].mxu1  ;;  %v7405_v26 = vpop.f32.mrb[96].mxu0  ;;  %v7206_v12 = vadd.f32 %v7156_v63, %v21153_v56 }
 0xc8a   : > { %v19263_v18 = vadd.f32 %v7405_v26, %v7205_v62  ;;  %v11712_v24 = vpop.f32.mrb[97].mxu0  ;;  %v8374_v39 = vrot.slane %v21103_v57, 1 }
 0xc8b   : > { %11909 = vmatmul.mubr.msk.bf16.gmra.mrb[92].mxu1 %vm1048_vm3, %v21154_v19  ;;  %v7408_v16 = vpop.f32.mrb[98].mxu0 }
 0xc8c   : > { %v19267_v32 = vadd.f32 %v7408_v16, %v7206_v12  ;;  %v11713_v11 = vpop.f32.mrb[99].mxu0  ;;  %11912 = vmatprep.mubr.msk.bf16.mxu1 %vm13358_vm0, %v21000_v10  ;;  %v8375_v24 = vsel %vm2135_vm4, %v8372_v34, %v8374_v39 }
 0xc8e   : > { %v7161_v8 = vpop.f32.mrb[244].mxu1  ;;  %11995 = vmatmul.mubr.msk.bf16.gmra.mrb[204].mxu0 %vm1048_vm3, %v8373_v31 }
 0xc8f   : > { %v7207_v44 = vadd.f32 %v7161_v8, %v21155_v52  ;;  %v11630_v53 = vpop.f32.mrb[245].mxu1  ;;  %11998 = vmatprep.mubr.msk.bf16.mxu0 %vm13358_vm0, %v21000_v10  ;;  %v8376_v52 = vrot.slane %v21104_v58, 1 }
 0xc90   : > { %v7164_v13 = vpop.f32.mrb[246].mxu1 }
 0xc91   : > { %v11631_v62 = vpop.f32.mrb[247].mxu1  ;;  %v7413_v63 = vpop.f32.mrb[100].mxu0 }
 0xc92   : > { %v19277_v26 = vadd.f32 %v7413_v63, %v7207_v44  ;;  %v11716_v56 = vpop.f32.mrb[101].mxu0  ;;  %v8377_v62 = vsel %vm2135_vm4, %v8374_v39, %v8376_v52 }
 0xc93   : > { %11913 = vmatmul.mubr.msk.bf16.gmra.mrb[96].mxu1 %vm1048_vm3, %v18966_v6  ;;  %v7416_v22 = vpop.f32.mrb[102].mxu0 }
 0xc94   : > { %v11717_v12 = vpop.f32.mrb[103].mxu0  ;;  %11916 = vmatprep.mubr.msk.bf16.mxu1 %vm13358_vm0, %v21000_v10 }
 0xc96   : > { %v7541_v19 = vpop.f32.mrb[248].mxu1  ;;  %11999 = vmatmul.mubr.msk.bf16.gmra.mrb[208].mxu0 %vm1048_vm3, %v8375_v24  ;;  %v8378_v24 = vrot.slane %v21105_v48, 1 }
 0xc97   : > { %v7707_v16 = vadd.f32 %v7541_v19, %v18956_v27  ;;  %v11722_v11 = vpop.f32.mrb[249].mxu1  ;;  %12002 = vmatprep.mubr.msk.bf16.mxu0 %vm13358_vm0, %v21000_v10 }
 0xc98   : > { %v7544_v57 = vpop.f32.mrb[250].mxu1 }
 0xc99   : > { %v7708_v31 = vadd.f32 %v7544_v57, %v18961_v49  ;;  %v11723_v6 = vpop.f32.mrb[251].mxu1  ;;  %v7906_v8 = vpop.f32.mrb[104].mxu0  ;;  %v8379_v57 = vsel %vm2135_vm4, %v8376_v52, %v8378_v24 }
 0xc9a   : > { %v19290_v44 = vadd.f32 %v7906_v8, %v7707_v16  ;;  %v11808_v53 = vpop.f32.mrb[105].mxu0 }
 0xc9b   : > { %11917 = vmatmul.mubr.msk.bf16.gmra.mrb[100].mxu1 %vm1048_vm3, %v18985_v42  ;;  %v7909_v34 = vpop.f32.mrb[106].mxu0 }
 0xc9c   : > { %v19294_v13 = vadd.f32 %v7909_v34, %v7708_v31  ;;  %v11809_v27 = vpop.f32.mrb[107].mxu0  ;;  %11920 = vmatprep.mubr.msk.bf16.mxu1 %vm13358_vm0, %v21000_v10  ;;  %v8380_v34 = vrot.slane %v21106_v36, 1 }
 0xc9e   : > { %v7549_v49 = vpop.f32.mrb[252].mxu1  ;;  %12003 = vmatmul.mubr.msk.bf16.gmra.mrb[212].mxu0 %vm1048_vm3, %v8377_v62 }
 0xc9f   : > { %v7709_v58 = vadd.f32 %v7549_v49, %v18975_v33  ;;  %v11726_v63 = vpop.f32.mrb[253].mxu1  ;;  %12006 = vmatprep.mubr.msk.bf16.mxu0 %vm13358_vm0, %v21000_v10 }
 0xca0   : > { %v7552_v56 = vpop.f32.mrb[254].mxu1 }
 0xca1   : > { %v7710_v42 = vadd.f32 %v7552_v56, %v18980_v59  ;;  %v11727_v22 = vpop.f32.mrb[255].mxu1  ;;  %v7914_v12 = vpop.f32.mrb[108].mxu0 }
 0xca2   : > { %v19305_v19 = vadd.f32 %v7914_v12, %v7709_v58  ;;  %v11812_v16 = vpop.f32.mrb[109].mxu0  ;;  %v8381_v58 = vsel %vm2135_vm4, %v8378_v24, %v8380_v34  ;;  %v8382_v12 = vrot.slane %v18025_v30, 1 }
 0xca3   : > { %11921 = vmatmul.mubr.msk.bf16.gmra.mrb[104].mxu1 %vm1048_vm3, %v19004_v51  ;;  %v7917_v39 = vpop.f32.mrb[110].mxu0 }
 0xca4   : > { %v19309_v11 = vadd.f32 %v7917_v39, %v7710_v42  ;;  %v11813_v33 = vpop.f32.mrb[111].mxu0  ;;  %11924 = vmatprep.mubr.msk.bf16.mxu1 %vm13358_vm0, %v21000_v10 }
 0xca6   : > { %v7557_v59 = vpop.f32.mrb[0].mxu1  ;;  %12007 = vmatmul.mubr.msk.bf16.gmra.mrb[216].mxu0 %vm1048_vm3, %v8379_v57  ;;  %v8383_v57 = vsel %vm2135_vm4, %v8380_v34, %v8382_v12 }
 0xca7   : > { %v7711_v48 = vadd.f32 %v7557_v59, %v18994_v28  ;;  %v11730_v31 = vpop.f32.mrb[1].mxu1  ;;  %12010 = vmatprep.mubr.msk.bf16.mxu0 %vm13358_vm0, %v21000_v10 }
 0xca8   : > { %v7560_v6 = vpop.f32.mrb[2].mxu1 }
 0xca9   : > { %v7712_v51 = vadd.f32 %v7560_v6, %v18999_v2  ;;  %v11731_v8 = vpop.f32.mrb[3].mxu1  ;;  %v7922_v53 = vpop.f32.mrb[112].mxu0 }
 0xcaa   : > { %v19320_v27 = vadd.f32 %v7922_v53, %v7711_v48  ;;  %v11816_v62 = vpop.f32.mrb[113].mxu0 }
 0xcab   : > { %11925 = vmatmul.mubr.msk.bf16.gmra.mrb[108].mxu1 %vm1048_vm3, %v19023_v47  ;;  %v7925_v52 = vpop.f32.mrb[114].mxu0 }
 0xcac   : > { %v19324_v49 = vadd.f32 %v7925_v52, %v7712_v51  ;;  %v11817_v28 = vpop.f32.mrb[115].mxu0  ;;  %11928 = vmatprep.mubr.msk.bf16.mxu1 %vm13358_vm0, %v21000_v10  ;;  %v8384_v51 = vrot.slane %v18031_v4, 1 }
 0xcae   : > { %v7565_v2 = vpop.f32.mrb[4].mxu1  ;;  %12011 = vmatmul.mubr.msk.bf16.gmra.mrb[220].mxu0 %vm1048_vm3, %v8381_v58  ;;  %v8385_v52 = vsel %vm2135_vm4, %v8382_v12, %v8384_v51 }
 0xcaf   : > { %v7713_v36 = vadd.f32 %v7565_v2, %v19013_v20  ;;  %v11734_v63 = vpop.f32.mrb[5].mxu1  ;;  %12014 = vmatprep.mubr.msk.bf16.mxu0 %vm13358_vm0, %v21000_v10 }
 0xcb0   : > { %v7568_v56 = vpop.f32.mrb[6].mxu1  ;;  %v8386_v63 = vrot.slane %v18037_v54, 1 }
 0xcb1   : > { %v7714_v47 = vadd.f32 %v7568_v56, %v19018_v9  ;;  %v11735_v42 = vpop.f32.mrb[7].mxu1  ;;  %v7930_v22 = vpop.f32.mrb[116].mxu0 }
 0xcb2   : > { %v19335_v16 = vadd.f32 %v7930_v22, %v7713_v36  ;;  %v11820_v39 = vpop.f32.mrb[117].mxu0  ;;  %v8387_v12 = vsel %vm2135_vm4, %v8384_v51, %v8386_v63 }
 0xcb3   : > { %11929 = vmatmul.mubr.msk.bf16.gmra.mrb[112].mxu1 %vm1048_vm3, %v19042_v5  ;;  %v7933_v24 = vpop.f32.mrb[118].mxu0 }
 0xcb4   : > { %v19339_v33 = vadd.f32 %v7933_v24, %v7714_v47  ;;  %v11821_v20 = vpop.f32.mrb[119].mxu0  ;;  %11932 = vmatprep.mubr.msk.bf16.mxu1 %vm13358_vm0, %v21000_v10 }
 0xcb6   : > { %v7573_v9 = vpop.f32.mrb[8].mxu1  ;;  %12015 = vmatmul.mubr.msk.bf16.gmra.mrb[224].mxu0 %vm1048_vm3, %v8383_v57 }
 0xcb7   : > { %v7715_v30 = vadd.f32 %v7573_v9, %v19032_v15  ;;  %v11738_v59 = vpop.f32.mrb[9].mxu1  ;;  %12018 = vmatprep.mubr.msk.bf16.mxu0 %vm13358_vm0, %v21000_v10  ;;  %v8388_v9 = vrot.slane %v18043_v35, 1 }
 0xcb8   : > { %v7576_v48 = vpop.f32.mrb[10].mxu1 }
 0xcb9   : > { %v7716_v5 = vadd.f32 %v7576_v48, %v19037_v50  ;;  %v11739_v31 = vpop.f32.mrb[11].mxu1  ;;  %v7938_v6 = vpop.f32.mrb[120].mxu0 }
 0xcba   : > { %v19350_v8 = vadd.f32 %v7938_v6, %v7715_v30  ;;  %v11824_v53 = vpop.f32.mrb[121].mxu0  ;;  %v8389_v31 = vsel %vm2135_vm4, %v8386_v63, %v8388_v9 }
 0xcbb   : > { %11933 = vmatmul.mubr.msk.bf16.gmra.mrb[116].mxu1 %vm1048_vm3, %v19062_v55  ;;  %v7941_v34 = vpop.f32.mrb[122].mxu0 }
 0xcbc   : > { %v19354_v62 = vadd.f32 %v7941_v34, %v7716_v5  ;;  %v11825_v15 = vpop.f32.mrb[123].mxu0  ;;  %11936 = vmatprep.mubr.msk.bf16.mxu1 %vm13358_vm0, %v21000_v10 }
 0xcbd   : > { %v8390_v15 = vrot.slane %v21114_v43, 1 }
 0xcbe   : > { %v7581_v50 = vpop.f32.mrb[12].mxu1  ;;  %12019 = vmatmul.mubr.msk.bf16.gmra.mrb[228].mxu0 %vm1048_vm3, %v8385_v52 }
 0xcbf   : > { %v7717_v4 = vadd.f32 %v7581_v50, %v19051_v23  ;;  %v11742_v28 = vpop.f32.mrb[13].mxu1  ;;  %12022 = vmatprep.mubr.msk.bf16.mxu0 %vm13358_vm0, %v21000_v10 }
 0xcc0   : > { %v7584_v58 = vpop.f32.mrb[14].mxu1 }
 0xcc1   : > { %v7718_v55 = vadd.f32 %v7584_v58, %v19055_v37  ;;  %v11743_v2 = vpop.f32.mrb[15].mxu1  ;;  %v7946_v36 = vpop.f32.mrb[124].mxu0 }
 0xcc2   : > { %v19365_v56 = vadd.f32 %v7946_v36, %v7717_v4  ;;  %v11828_v47 = vpop.f32.mrb[125].mxu0  ;;  %v21156_v4 = vld [vmem:[#allocation127_spill] sm:$0xff]  ;;  %v21157_v2 = vld [vmem:[#allocation64_spill] sm:$0xff] }
 0xcc3   : > { %11937 = vmatmul.mubr.msk.bf16.gmra.mrb[120].mxu1 %vm1048_vm3, %v21108_v7  ;;  %v7949_v42 = vpop.f32.mrb[126].mxu0  ;;  %v21158_v47 = vld [vmem:[#allocation65_spill] sm:$0xff] }
 0xcc4   : > { %v19369_v22 = vadd.f32 %v7949_v42, %v7718_v55  ;;  %v11829_v23 = vpop.f32.mrb[127].mxu0  ;;  %11940 = vmatprep.mubr.msk.bf16.mxu1 %vm13358_vm0, %v21000_v10  ;;  %v8391_v55 = vsel %vm2135_vm4, %v8388_v9, %v8390_v15 }
 0xcc6   : > { %v7589_v37 = vpop.f32.mrb[16].mxu1  ;;  %12023 = vmatmul.mubr.msk.bf16.gmra.mrb[232].mxu0 %vm1048_vm3, %v8387_v12 }
 0xcc7   : > { %v7719_v54 = vadd.f32 %v7589_v37, %v19070_v1  ;;  %v11746_v39 = vpop.f32.mrb[17].mxu1  ;;  %12026 = vmatprep.mubr.msk.bf16.mxu0 %vm13358_vm0, %v21000_v10  ;;  %v21159_v37 = vld [vmem:[#allocation138_spill] sm:$0xff] }
 0xcc8   : > { %v7592_v24 = vpop.f32.mrb[18].mxu1 }
 0xcc9   : > { %v7720_v7 = vadd.f32 %v7592_v24, %v19074_v14  ;;  %v11747_v20 = vpop.f32.mrb[19].mxu1  ;;  %v7954_v57 = vpop.f32.mrb[128].mxu0 }
 0xcca   : > { %v19380_v30 = vadd.f32 %v7954_v57, %v7719_v54  ;;  %v11832_v59 = vpop.f32.mrb[129].mxu0  ;;  %v8392_v54 = vrot.slane %v21159_v37, 1 }
 0xccb   : > { %11941 = vmatmul.mubr.msk.bf16.gmra.mrb[124].mxu1 %vm1048_vm3, %v21109_v40  ;;  %v7957_v48 = vpop.f32.mrb[130].mxu0 }
 0xccc   : > { %v19384_v5 = vadd.f32 %v7957_v48, %v7720_v7  ;;  %v11833_v1 = vpop.f32.mrb[131].mxu0  ;;  %11944 = vmatprep.mubr.msk.bf16.mxu1 %vm13358_vm0, %v21000_v10  ;;  %v21160_v7 = vld [vmem:[#allocation114_spill] sm:$0xff]  ;;  %v8393_v59 = vsel %vm2135_vm4, %v8390_v15, %v8392_v54  ;;  %v21164_v15 = vld [vmem:[#allocation133_spill] sm:$0xff] }
 0xccd   : > { %v21161_v1 = vld [vmem:[#allocation66_spill] sm:$0xff] }
 0xcce   : > { %v7597_v14 = vpop.f32.mrb[20].mxu1  ;;  %12027 = vmatmul.mubr.msk.bf16.gmra.mrb[236].mxu0 %vm1048_vm3, %v8389_v31 }
 0xccf   : > { %v7721_v35 = vadd.f32 %v7597_v14, %v19084_v29  ;;  %v11750_v6 = vpop.f32.mrb[21].mxu1  ;;  %12030 = vmatprep.mubr.msk.bf16.mxu0 %vm13358_vm0, %v21000_v10 }
 0xcd0   : > { %v7600_v51 = vpop.f32.mrb[22].mxu1  ;;  %v21162_v6 = vld [vmem:[#allocation67_spill] sm:$0xff] }
 0xcd1   : > { %v7722_v40 = vadd.f32 %v7600_v51, %v19088_v3  ;;  %v11751_v53 = vpop.f32.mrb[23].mxu1  ;;  %v7962_v34 = vpop.f32.mrb[132].mxu0 }
 0xcd2   : > { %v19395_v52 = vadd.f32 %v7962_v34, %v7721_v35  ;;  %v11836_v50 = vpop.f32.mrb[133].mxu0  ;;  %v21163_v34 = vld [vmem:[#allocation139_spill] sm:$0xff] }
 0xcd3   : > { %11945 = vmatmul.mubr.msk.bf16.gmra.mrb[128].mxu1 %vm1048_vm3, %v21156_v4  ;;  %v7965_v28 = vpop.f32.mrb[134].mxu0  ;;  %v8394_v50 = vrot.slane %v21163_v34, 1  ;;  %v21170_v34 = vld [vmem:[#allocation76_spill] sm:$0xff] }
 0xcd4   : > { %v19399_v58 = vadd.f32 %v7965_v28, %v7722_v40  ;;  %v11837_v29 = vpop.f32.mrb[135].mxu0  ;;  %11948 = vmatprep.mubr.msk.bf16.mxu1 %vm13358_vm0, %v21000_v10 }
 0xcd6   : > { %v7605_v3 = vpop.f32.mrb[24].mxu1  ;;  %12031 = vmatmul.mubr.msk.bf16.gmra.mrb[240].mxu0 %vm1048_vm3, %v8391_v55 }
 0xcd7   : > { %v7723_v43 = vadd.f32 %v7605_v3, %v21157_v2  ;;  %v11754_v36 = vpop.f32.mrb[25].mxu1  ;;  %12034 = vmatprep.mubr.msk.bf16.mxu0 %vm13358_vm0, %v21000_v10  ;;  %v8395_v2 = vsel %vm2135_vm4, %v8392_v54, %v8394_v50  ;;  %v21168_v54 = vld [vmem:[#allocation134_spill] sm:$0xff] }
 0xcd8   : > { %v7608_v63 = vpop.f32.mrb[26].mxu1  ;;  %v21165_v36 = vld [vmem:[#allocation71_spill] sm:$0xff] }
 0xcd9   : > { %v7724_v42 = vadd.f32 %v7608_v63, %v21158_v47  ;;  %v11755_v23 = vpop.f32.mrb[27].mxu1  ;;  %v7970_v12 = vpop.f32.mrb[136].mxu0 }
 0xcda   : > { %v19410_v39 = vadd.f32 %v7970_v12, %v7723_v43  ;;  %v11840_v24 = vpop.f32.mrb[137].mxu0  ;;  %v21166_v23 = vld [vmem:[#allocation72_spill] sm:$0xff] }
 0xcdb   : > { %11949 = vmatmul.mubr.msk.bf16.gmra.mrb[132].mxu1 %vm1048_vm3, %v21160_v7  ;;  %v7973_v20 = vpop.f32.mrb[138].mxu0  ;;  %v21167_v7 = vld [vmem:[#allocation150_spill] sm:$0xff] }
 0xcdc   : > { %v19414_v57 = vadd.f32 %v7973_v20, %v7724_v42  ;;  %v11841_v9 = vpop.f32.mrb[139].mxu0  ;;  %11952 = vmatprep.mubr.msk.bf16.mxu1 %vm13358_vm0, %v21000_v10  ;;  %v8396_v20 = vrot.slane %v21167_v7, 1 }
 0xcde   : > { %v7613_v48 = vpop.f32.mrb[28].mxu1  ;;  %12035 = vmatmul.mubr.msk.bf16.gmra.mrb[244].mxu0 %vm1048_vm3, %v8393_v59 }
 0xcdf   : > { %v7725_v31 = vadd.f32 %v7613_v48, %v21161_v1  ;;  %v11758_v14 = vpop.f32.mrb[29].mxu1  ;;  %12038 = vmatprep.mubr.msk.bf16.mxu0 %vm13358_vm0, %v21000_v10 }
 0xce0   : > { %v7616_v35 = vpop.f32.mrb[30].mxu1  ;;  %v8397_v14 = vsel %vm2135_vm4, %v8394_v50, %v8396_v20 }
 0xce1   : > { %v7726_v51 = vadd.f32 %v7616_v35, %v21162_v6  ;;  %v11759_v40 = vpop.f32.mrb[31].mxu1  ;;  %v7978_v53 = vpop.f32.mrb[140].mxu0  ;;  %v21169_v6 = vld [vmem:[#allocation75_spill] sm:$0xff] }
 0xce2   : > { %v19425_v4 = vadd.f32 %v7978_v53, %v7725_v31  ;;  %v11844_v28 = vpop.f32.mrb[141].mxu0 }
 0xce3   : > { %11953 = vmatmul.mubr.msk.bf16.gmra.mrb[136].mxu1 %vm1048_vm3, %v21164_v15  ;;  %v7981_v29 = vpop.f32.mrb[142].mxu0 }
 0xce4   : > { %v19429_v55 = vadd.f32 %v7981_v29, %v7726_v51  ;;  %v11845_v3 = vpop.f32.mrb[143].mxu0  ;;  %11956 = vmatprep.mubr.msk.bf16.mxu1 %vm13358_vm0, %v21000_v10 }
 0xce6   : > { %v7621_v43 = vpop.f32.mrb[32].mxu1  ;;  %12039 = vmatmul.mubr.msk.bf16.gmra.mrb[248].mxu0 %vm1048_vm3, %v8395_v2 }
 0xce7   : > { %v7727_v63 = vadd.f32 %v7621_v43, %v21165_v36  ;;  %v11762_v47 = vpop.f32.mrb[33].mxu1  ;;  %12042 = vmatprep.mubr.msk.bf16.mxu0 %vm13358_vm0, %v21000_v10  ;;  %v21171_v43 = vld [vmem:[#allocation142_spill] sm:$0xff] }
 0xce8   : > { %v7624_v42 = vpop.f32.mrb[34].mxu1  ;;  %v21172_v47 = vld [vmem:[#allocation151_spill] sm:$0xff] }
 0xce9   : > { %v7728_v12 = vadd.f32 %v7624_v42, %v21166_v23  ;;  %v11763_v37 = vpop.f32.mrb[35].mxu1  ;;  %v7986_v24 = vpop.f32.mrb[144].mxu0  ;;  %v21173_v42 = vrot.slane %v21172_v47, 1 }
 0xcea   : > { %v19440_v9 = vadd.f32 %v7986_v24, %v7727_v63  ;;  %v11848_v59 = vpop.f32.mrb[145].mxu0  ;;  %v21174_v37 = vld [vmem:[#allocation80_spill] sm:$0xff] }
 0xceb   : > { %11957 = vmatmul.mubr.msk.bf16.gmra.mrb[140].mxu1 %vm1048_vm3, %v21168_v54  ;;  %v7989_v48 = vpop.f32.mrb[146].mxu0  ;;  %v8398_v23 = vsel %vm2135_vm4, %v8396_v20, %v21173_v42  ;;  %v21175_v54 = vld [vmem:[#allocation83_spill] sm:$0xff] }
 0xcec   : > { %v19444_v1 = vadd.f32 %v7989_v48, %v7728_v12  ;;  %v11849_v31 = vpop.f32.mrb[147].mxu0  ;;  %11960 = vmatprep.mubr.msk.bf16.mxu1 %vm13358_vm0, %v21000_v10 }
 0xcee   : > { %v7629_v35 = vpop.f32.mrb[36].mxu1  ;;  %12043 = vmatmul.mubr.msk.bf16.gmra.mrb[252].mxu0 %vm1048_vm3, %v8397_v14 }
 0xcef   : > { %v7729_v51 = vadd.f32 %v7629_v35, %v21169_v6  ;;  %v11766_v40 = vpop.f32.mrb[37].mxu1  ;;  %12046 = vmatprep.mubr.msk.bf16.mxu0 %vm13358_vm0, %v21000_v10 }
 0xcf0   : > { %v7632_v53 = vpop.f32.mrb[38].mxu1 }
 0xcf1   : > { %v7730_v28 = vadd.f32 %v7632_v53, %v21170_v34  ;;  %v11767_v15 = vpop.f32.mrb[39].mxu1  ;;  %v7994_v29 = vpop.f32.mrb[148].mxu0 }
 0xcf2   : > { %v19454_v3 = vadd.f32 %v7994_v29, %v7729_v51  ;;  %v11852_v2 = vpop.f32.mrb[149].mxu0  ;;  %v21176_v51 = vld [vmem:[#allocation82_spill] sm:$0xff]  ;;  %v21178_v15 = vld [vmem:[#allocation36_spill] sm:$0xff] }
 0xcf3   : > { %11961 = vmatmul.mubr.msk.bf16.gmra.mrb[144].mxu1 %vm1048_vm3, %v21171_v43  ;;  %v7997_v50 = vpop.f32.mrb[150].mxu0 }
 0xcf4   : > { %v19458_v36 = vadd.f32 %v7997_v50, %v7730_v28  ;;  %v11853_v63 = vpop.f32.mrb[151].mxu0  ;;  %11964 = vmatprep.mubr.msk.bf16.mxu1 %vm13358_vm0, %v21000_v10  ;;  %v21177_v28 = vld [vmem:[#allocation81_spill] sm:$0xff]  ;;  %v21179_v50 = vld [vmem:[#allocation90_spill] sm:$0xff] }
 0xcf6   : > { %v7637_v12 = vpop.f32.mrb[40].mxu1  ;;  %12047 = vmatmul.mubr.msk.bf16.gmra.mrb[0].mxu0 %vm1048_vm3, %v8398_v23 }
 0xcf7   : > { %v7731_v24 = vadd.f32 %v7637_v12, %v21174_v37  ;;  %v11770_v7 = vpop.f32.mrb[41].mxu1  ;;  %12050 = vmatprep.mubr.msk.bf16.mxu0 %vm13358_vm0, %v21000_v10  ;;  %v21180_v37 = vld [vmem:[#allocation106_spill] sm:$0xff] }
 0xcf8   : > { %v7640_v59 = vpop.f32.mrb[42].mxu1 }
 0xcf9   : > { %v7732_v48 = vadd.f32 %v7640_v59, %v21175_v54  ;;  %v11771_v31 = vpop.f32.mrb[43].mxu1  ;;  %v8002_v14 = vpop.f32.mrb[152].mxu0 }
 0xcfa   : > { %v19470_v35 = vadd.f32 %v8002_v14, %v7731_v24  ;;  %v11856_v6 = vpop.f32.mrb[153].mxu0 }
 0xcfb   : > { %11965 = vmatmul.mubr.msk.bf16.gmra.mrb[148].mxu1 %vm1048_vm3, %v21176_v51  ;;  %v8005_v20 = vpop.f32.mrb[154].mxu0 }
 0xcfc   : > { %v19474_v40 = vadd.f32 %v8005_v20, %v7732_v48  ;;  %v11857_v53 = vpop.f32.mrb[155].mxu0  ;;  %11968 = vmatprep.mubr.msk.bf16.mxu1 %vm13358_vm0, %v21000_v10  ;;  %v21181_v48 = vld [vmem:[#allocation86_spill] sm:$0xff] }
 0xcfe   : > { %v7645_v34 = vpop.f32.mrb[44].mxu1  ;;  %12051 = vmatmul.mubr.msk.bf16.gmra.mrb[4].mxu0 %vm1048_vm3, %v21177_v28 }
 0xcff   : > { %v7733_v29 = vadd.f32 %v7645_v34, %v21178_v15  ;;  %v11774_v2 = vpop.f32.mrb[45].mxu1  ;;  %12054 = vmatprep.mubr.msk.bf16.mxu0 %vm13358_vm0, %v21000_v10  ;;  %v21182_v34 = vld [vmem:[#allocation84_spill] sm:$0xff]  ;;  %v21184_v15 = vld [vmem:[#allocation63_spill] sm:$0xff] }
 0xd00   : > { %v7648_v43 = vpop.f32.mrb[46].mxu1  ;;  %v21183_v28 = vrot.slane %v21182_v34, 7  ;;  %v21185_v2 = vld [vmem:[#allocation140_spill] sm:$0xff] }
 0xd01   : > { %v7734_v63 = vadd.f32 %v7648_v43, %v21179_v50  ;;  %v11775_v47 = vpop.f32.mrb[47].mxu1  ;;  %v8010_v42 = vpop.f32.mrb[156].mxu0  ;;  %v8699_v43 = vrot.slane %v21185_v2, 1 }
 0xd02   : > { %v19484_v23 = vadd.f32 %v8010_v42, %v7733_v29  ;;  %v11860_v12 = vpop.f32.mrb[157].mxu0  ;;  %v8113_v29 = vsel %vm1955_vm5, %v21184_v15, %v21183_v28  ;;  %v21186_v47 = vld [vmem:[#allocation54_spill] sm:$0xff] }
 0xd03   : > { %11969 = vmatmul.mubr.msk.bf16.gmra.mrb[152].mxu1 %vm1048_vm3, %v21180_v37  ;;  %v8013_v24 = vpop.f32.mrb[158].mxu0  ;;  %v8702_v42 = vrot.slane %v21186_v47, 1  ;;  %v21187_v12 = vld [vmem:[#allocation91_spill] sm:$0xff] }
 0xd04   : > { %v19488_v7 = vadd.f32 %v8013_v24, %v7734_v63  ;;  %v11861_v59 = vpop.f32.mrb[159].mxu0  ;;  %11972 = vmatprep.mubr.msk.bf16.mxu1 %vm13358_vm0, %v21000_v10  ;;  %v8703_v37 = vrot.slane %v21187_v12, 2  ;;  %v21190_v12 = vld [vmem:[#allocation89_spill] sm:$0xff] }
 0xd06   : > { %v7653_v54 = vpop.f32.mrb[48].mxu1  ;;  %12055 = vmatmul.mubr.msk.bf16.gmra.mrb[8].mxu0 %vm1048_vm3, %v21181_v48  ;;  %v21188_v48 = vld [vmem:[#allocation158_spill] sm:$0xff] }
 0xd07   : > { %v7735_v31 = vadd.f32 %v7653_v54, %v19182_v25  ;;  %v11778_v14 = vpop.f32.mrb[49].mxu1  ;;  %12058 = vmatprep.mubr.msk.bf16.mxu0 %vm13358_vm0, %v21000_v10  ;;  %v8700_v25 = vrot.slane %v21182_v34, 2 }
 0xd08   : > { %v7656_v6 = vpop.f32.mrb[50].mxu1  ;;  %v8704_v14 = vor.u32 %v8703_v37, %v8702_v42 }
 0xd09   : > { %v7736_v51 = vadd.f32 %v7656_v6, %v19186_v38  ;;  %v11779_v20 = vpop.f32.mrb[51].mxu1  ;;  %v8018_v53 = vpop.f32.mrb[160].mxu0 }
 0xd0a   : > { %v19503_v50 = vadd.f32 %v8018_v53, %v7735_v31  ;;  %v11864_v63 = vpop.f32.mrb[161].mxu0  ;;  %v8701_v31 = vor.u32 %v8700_v25, %v8699_v43 }
 0xd0b   : > { %11973 = vmatmul.mubr.msk.bf16.gmra.mrb[156].mxu1 %vm1048_vm3, %v8113_v29  ;;  %v8021_v38 = vpop.f32.mrb[162].mxu0  ;;  %v21189_v63 = vld [vmem:[#allocation88_spill] sm:$0xff] }
 0xd0c   : > { %v19509_v24 = vadd.f32 %v8021_v38, %v7736_v51  ;;  %v11865_v59 = vpop.f32.mrb[163].mxu0  ;;  %12064 = vmatprep.mubr.msk.bf16.mxu1 %vm13358_vm0, %v21000_v10  ;;  %v8705_v2 = vsel %vm2735_vm7, %v8701_v31, %v8704_v14  ;;  %v8706_v47 = vrot.slane %v21189_v63, 1  ;;  %v8707_v38 = vrot.slane %v21190_v12, 2 }
 0xd0e   : > { %v7661_v54 = vpop.f32.mrb[52].mxu1  ;;  %12059 = vmatmul.mubr.msk.bf16.gmra.mrb[12].mxu0 %vm1048_vm3, %v21188_v48  ;;  %v8708_v42 = vor.u32 %v8707_v38, %v8706_v47 }
 0xd0f   : > { %v7737_v6 = vadd.f32 %v7661_v54, %v19203_v61  ;;  %v11782_v20 = vpop.f32.mrb[53].mxu1 }
 0xd10   : > { %v7664_v53 = vpop.f32.mrb[54].mxu1 }
 0xd11   : > { %v7738_v34 = vadd.f32 %v7664_v53, %v19207_v17  ;;  %v11783_v28 = vpop.f32.mrb[55].mxu1  ;;  %v8026_v15 = vpop.f32.mrb[164].mxu0 }
 0xd12   : > { %v19517_v51 = vadd.f32 %v8026_v15, %v7737_v6  ;;  %v11868_v29 = vpop.f32.mrb[165].mxu0  ;;  %v21191_v28 = vld [vmem:[#allocation93_spill] sm:$0xff] }
 0xd13   : > { %12065 = vmatmul.mubr.msk.bf16.vlgmr.msra.gmra.mrb[160].mxu1 %vm1048_vm3, %v8705_v2  ;;  %v8029_v43 = vpop.f32.mrb[166].mxu0  ;;  %v8710_v15 = vrot.slane %v21191_v28, 1  ;;  %v21192_v29 = vld [vmem:[#allocation94_spill] sm:$0xff] }
 0xd14   : > { %v19523_v25 = vadd.f32 %v8029_v43, %v7738_v34  ;;  %v11869_v61 = vpop.f32.mrb[167].mxu0  ;;  %12068 = vmatprep.mubr.msk.bf16.mxu1 %vm13358_vm0, %v21000_v10  ;;  %v8709_v34 = vsel %vm2735_vm7, %v8704_v14, %v8708_v42  ;;  %v8711_v2 = vrot.slane %v21192_v29, 2 }
 0xd16   : > { %v7669_v17 = vpop.f32.mrb[56].mxu1  ;;  %v8712_v12 = vor.u32 %v8711_v2, %v8710_v15 }
 0xd17   : > { %v7739_v37 = vadd.f32 %v7669_v17, %v19218_v60  ;;  %v11786_v59 = vpop.f32.mrb[57].mxu1 }
 0xd18   : > { %v7672_v54 = vpop.f32.mrb[58].mxu1 }
 0xd19   : > { %v7740_v48 = vadd.f32 %v7672_v54, %v19222_v21  ;;  %v11787_v31 = vpop.f32.mrb[59].mxu1  ;;  %v8034_v6 = vpop.f32.mrb[168].mxu0 }
 0xd1a   : > { %v19529_v20 = vadd.f32 %v8034_v6, %v7739_v37  ;;  %v11872_v53 = vpop.f32.mrb[169].mxu0  ;;  %v21193_v31 = vld [vmem:[#allocation100_spill] sm:$0xff] }
 0xd1b   : > { %12069 = vmatmul.mubr.msk.bf16.gmra.mrb[164].mxu1 %vm1048_vm3, %v8709_v34  ;;  %v8037_v63 = vpop.f32.mrb[170].mxu0  ;;  %v8714_v6 = vrot.slane %v21193_v31, 1  ;;  %v21194_v53 = vld [vmem:[#allocation103_spill] sm:$0xff] }
 0xd1c   : > { %v19535_v47 = vadd.f32 %v8037_v63, %v7740_v48  ;;  %v11873_v60 = vpop.f32.mrb[171].mxu0  ;;  %12072 = vmatprep.mubr.msk.bf16.mxu1 %vm13358_vm0, %v21000_v10  ;;  %v8713_v48 = vsel %vm2735_vm7, %v8708_v42, %v8712_v12  ;;  %v8715_v34 = vrot.slane %v21194_v53, 2 }
 0xd1e   : > { %v7677_v21 = vpop.f32.mrb[60].mxu1  ;;  %v8716_v29 = vor.u32 %v8715_v34, %v8714_v6 }
 0xd1f   : > { %v7741_v38 = vadd.f32 %v7677_v21, %v19233_v0  ;;  %v11790_v43 = vpop.f32.mrb[61].mxu1 }
 0xd20   : > { %v7680_v61 = vpop.f32.mrb[62].mxu1 }
 0xd21   : > { %v7742_v14 = vadd.f32 %v7680_v61, %v19237_v45  ;;  %v11791_v17 = vpop.f32.mrb[63].mxu1  ;;  %v8042_v37 = vpop.f32.mrb[172].mxu0 }
 0xd22   : > { %v19541_v59 = vadd.f32 %v8042_v37, %v7741_v38  ;;  %v11876_v54 = vpop.f32.mrb[173].mxu0  ;;  %v21195_v17 = vld [vmem:[#allocation137_spill] sm:$0xff] }
 0xd23   : > { %12073 = vmatmul.mubr.msk.bf16.gmra.mrb[168].mxu1 %vm1048_vm3, %v8713_v48  ;;  %v8045_v28 = vpop.f32.mrb[174].mxu0  ;;  %v8718_v37 = vrot.slane %v21195_v17, 1  ;;  %v21196_v54 = vld [vmem:[#allocation159_spill] sm:$0xff] }
 0xd24   : > { %v19547_v15 = vadd.f32 %v8045_v28, %v7742_v14  ;;  %v11877_v0 = vpop.f32.mrb[175].mxu0  ;;  %12076 = vmatprep.mubr.msk.bf16.mxu1 %vm13358_vm0, %v21000_v10  ;;  %v8717_v14 = vsel %vm2735_vm7, %v8712_v12, %v8716_v29  ;;  %v8719_v48 = vrot.slane %v21196_v54, 2 }
 0xd26   : > { %v7685_v45 = vpop.f32.mrb[64].mxu1  ;;  %v8720_v53 = vor.u32 %v8719_v48, %v8718_v37 }
 0xd27   : > { %v7743_v2 = vadd.f32 %v7685_v45, %v19248_v41  ;;  %v11794_v63 = vpop.f32.mrb[65].mxu1 }
 0xd28   : > { %v7688_v60 = vpop.f32.mrb[66].mxu1 }
 0xd29   : > { %v7744_v42 = vadd.f32 %v7688_v60, %v19252_v46  ;;  %v11795_v21 = vpop.f32.mrb[67].mxu1  ;;  %v8050_v38 = vpop.f32.mrb[176].mxu0 }
 0xd2a   : > { %v19553_v43 = vadd.f32 %v8050_v38, %v7743_v2  ;;  %v11880_v61 = vpop.f32.mrb[177].mxu0  ;;  %v21197_v21 = vld [vmem:[#allocation160_spill] sm:$0xff] }
 0xd2b   : > { %12077 = vmatmul.mubr.msk.bf16.gmra.mrb[172].mxu1 %vm1048_vm3, %v8717_v14  ;;  %v8053_v31 = vpop.f32.mrb[178].mxu0  ;;  %v8722_v38 = vrot.slane %v21197_v21, 1  ;;  %v21198_v61 = vld [vmem:[#allocation124_spill] sm:$0xff] }
 0xd2c   : > { %v19559_v6 = vadd.f32 %v8053_v31, %v7744_v42  ;;  %v11881_v41 = vpop.f32.mrb[179].mxu0  ;;  %12080 = vmatprep.mubr.msk.bf16.mxu1 %vm13358_vm0, %v21000_v10  ;;  %v8721_v42 = vsel %vm2735_vm7, %v8716_v29, %v8720_v53  ;;  %v8723_v14 = vrot.slane %v21198_v61, 2 }
 0xd2e   : > { %v7693_v46 = vpop.f32.mrb[68].mxu1  ;;  %v8724_v54 = vor.u32 %v8723_v14, %v8722_v38 }
 0xd2f   : > { %v7745_v34 = vadd.f32 %v7693_v46, %v19263_v18  ;;  %v11798_v28 = vpop.f32.mrb[69].mxu1 }
 0xd30   : > { %v7696_v0 = vpop.f32.mrb[70].mxu1 }
 0xd31   : > { %v7746_v12 = vadd.f32 %v7696_v0, %v19267_v32  ;;  %v11799_v45 = vpop.f32.mrb[71].mxu1  ;;  %v8058_v2 = vpop.f32.mrb[180].mxu0  ;;  %v8725_v0 = vsel %vm2735_vm7, %v8720_v53, %v8724_v54 }
 0xd32   : > { %v19565_v63 = vadd.f32 %v8058_v2, %v7745_v34  ;;  %v11884_v60 = vpop.f32.mrb[181].mxu0  ;;  %v21199_v45 = vld [vmem:[#allocation119_spill] sm:$0xff]  ;;  %v21200_v2 = vld [vmem:[#allocation141_spill] sm:$0xff] }
 0xd33   : > { %12081 = vmatmul.mubr.msk.bf16.gmra.mrb[176].mxu1 %vm1048_vm3, %v8721_v42  ;;  %v8061_v17 = vpop.f32.mrb[182].mxu0  ;;  %v8727_v60 = vrot.slane %v21200_v2, 2 }
 0xd34   : > { %v19571_v37 = vadd.f32 %v8061_v17, %v7746_v12  ;;  %v11885_v18 = vpop.f32.mrb[183].mxu0  ;;  %12084 = vmatprep.mubr.msk.bf16.mxu1 %vm13358_vm0, %v21000_v10  ;;  %v8726_v12 = vrot.slane %v21199_v45, 1 }
 0xd36   : > { %v7701_v32 = vpop.f32.mrb[72].mxu1  ;;  %v8728_v38 = vor.u32 %v8727_v60, %v8726_v12 }
 0xd37   : > { %v7747_v48 = vadd.f32 %v7701_v32, %v19277_v26  ;;  %v11802_v31 = vpop.f32.mrb[73].mxu1 }
 0xd38   : > { %v7704_v41 = vpop.f32.mrb[74].mxu1 }
 0xd39   : > { %v11803_v29 = vpop.f32.mrb[75].mxu1  ;;  %v8066_v46 = vpop.f32.mrb[184].mxu0  ;;  %v8729_v41 = vsel %vm2735_vm7, %v8724_v54, %v8728_v38 }
 0xd3a   : > { %v19576_v34 = vadd.f32 %v8066_v46, %v7747_v48  ;;  %v11888_v28 = vpop.f32.mrb[185].mxu0  ;;  %v21201_v29 = vld [vmem:[#allocation144_spill] sm:$0xff] }
 0xd3b   : > { %12085 = vmatmul.mubr.msk.bf16.gmra.mrb[180].mxu1 %vm1048_vm3, %v8725_v0  ;;  %v8069_v42 = vpop.f32.mrb[186].mxu0  ;;  %v8730_v46 = vrot.slane %v21201_v29, 1  ;;  %v21202_v28 = vld [vmem:[#allocation145_spill] sm:$0xff] }
 0xd3c   : > { %v11889_v21 = vpop.f32.mrb[187].mxu0  ;;  %12088 = vmatprep.mubr.msk.bf16.mxu1 %vm13358_vm0, %v21000_v10  ;;  %v8731_v0 = vrot.slane %v21202_v28, 2 }
 0xd3e   : > { %v8156_v26 = vpop.f32.mrb[76].mxu1  ;;  %v8732_v2 = vor.u32 %v8731_v0, %v8730_v46 }
 0xd3f   : > { %v8322_v61 = vadd.f32 %v8156_v26, %v19290_v44  ;;  %v11894_v14 = vpop.f32.mrb[77].mxu1 }
 0xd40   : > { %v8159_v17 = vpop.f32.mrb[78].mxu1 }
 0xd41   : > { %v8323_v18 = vadd.f32 %v8159_v17, %v19294_v13  ;;  %v11895_v53 = vpop.f32.mrb[79].mxu1  ;;  %v8492_v32 = vpop.f32.mrb[188].mxu0 }
 0xd42   : > { %v19586_v48 = vadd.f32 %v8492_v32, %v8322_v61  ;;  %v11980_v31 = vpop.f32.mrb[189].mxu0  ;;  %v21203_v53 = vld [vmem:[#allocation146_spill] sm:$0xff] }
 0xd43   : > { %12089 = vmatmul.mubr.msk.bf16.gmra.mrb[184].mxu1 %vm1048_vm3, %v8729_v41  ;;  %v8495_v45 = vpop.f32.mrb[190].mxu0  ;;  %v8734_v32 = vrot.slane %v21203_v53, 1  ;;  %v21204_v31 = vld [vmem:[#allocation128_spill] sm:$0xff] }
 0xd44   : > { %v19592_v12 = vadd.f32 %v8495_v45, %v8323_v18  ;;  %v11981_v44 = vpop.f32.mrb[191].mxu0  ;;  %12092 = vmatprep.mubr.msk.bf16.mxu1 %vm13358_vm0, %v21000_v10  ;;  %v8733_v18 = vsel %vm2735_vm7, %v8728_v38, %v8732_v2  ;;  %v8735_v41 = vrot.slane %v21204_v31, 2 }
 0xd46   : > { %v8164_v13 = vpop.f32.mrb[80].mxu1  ;;  %v8736_v28 = vor.u32 %v8735_v41, %v8734_v32 }
 0xd47   : > { %v8324_v60 = vadd.f32 %v8164_v13, %v19305_v19  ;;  %v11898_v42 = vpop.f32.mrb[81].mxu1 }
 0xd48   : > { %v8167_v21 = vpop.f32.mrb[82].mxu1 }
 0xd49   : > { %v8325_v54 = vadd.f32 %v8167_v21, %v19309_v11  ;;  %v11899_v26 = vpop.f32.mrb[83].mxu1  ;;  %v8500_v61 = vpop.f32.mrb[192].mxu0 }
 0xd4a   : > { %v19598_v14 = vadd.f32 %v8500_v61, %v8324_v60  ;;  %v11984_v17 = vpop.f32.mrb[193].mxu0  ;;  %v21205_v26 = vld [vmem:[#allocation123_spill] sm:$0xff] }
 0xd4b   : > { %12093 = vmatmul.mubr.msk.bf16.gmra.mrb[188].mxu1 %vm1048_vm3, %v8733_v18  ;;  %v8503_v29 = vpop.f32.mrb[194].mxu0  ;;  %v8738_v61 = vrot.slane %v21205_v26, 1  ;;  %v21206_v17 = vld [vmem:[#allocation132_spill] sm:$0xff] }
 0xd4c   : > { %v19604_v46 = vadd.f32 %v8503_v29, %v8325_v54  ;;  %v11985_v19 = vpop.f32.mrb[195].mxu0  ;;  %12096 = vmatprep.mubr.msk.bf16.mxu1 %vm13358_vm0, %v21000_v10  ;;  %v8737_v54 = vsel %vm2735_vm7, %v8732_v2, %v8736_v28  ;;  %v8739_v18 = vrot.slane %v21206_v17, 2 }
 0xd4e   : > { %v8172_v11 = vpop.f32.mrb[84].mxu1  ;;  %v8740_v31 = vor.u32 %v8739_v18, %v8738_v61 }
 0xd4f   : > { %v8326_v0 = vadd.f32 %v8172_v11, %v19320_v27  ;;  %v11902_v45 = vpop.f32.mrb[85].mxu1 }
 0xd50   : > { %v8175_v44 = vpop.f32.mrb[86].mxu1 }
 0xd51   : > { %v8327_v38 = vadd.f32 %v8175_v44, %v19324_v49  ;;  %v11903_v13 = vpop.f32.mrb[87].mxu1  ;;  %v8508_v60 = vpop.f32.mrb[196].mxu0 }
 0xd52   : > { %v19610_v42 = vadd.f32 %v8508_v60, %v8326_v0  ;;  %v11988_v21 = vpop.f32.mrb[197].mxu0 }
 0xd53   : > { %12097 = vmatmul.mubr.msk.bf16.gmra.mrb[192].mxu1 %vm1048_vm3, %v8737_v54  ;;  %v8511_v53 = vpop.f32.mrb[198].mxu0 }
 0xd54   : > { %v19616_v32 = vadd.f32 %v8511_v53, %v8327_v38  ;;  %v11989_v27 = vpop.f32.mrb[199].mxu0  ;;  %12100 = vmatprep.mubr.msk.bf16.mxu1 %vm13358_vm0, %v21000_v10  ;;  %v8741_v38 = vsel %vm2735_vm7, %v8736_v28, %v8740_v31 }
 0xd55   : > { %v21207_v27 = vld [vmem:[#allocation130_spill] sm:$0xff] }
 0xd56   : > { %v8180_v49 = vpop.f32.mrb[88].mxu1 }
 0xd57   : > { %v8328_v41 = vadd.f32 %v8180_v49, %v19335_v16  ;;  %v11906_v29 = vpop.f32.mrb[89].mxu1  ;;  %v8745_v49 = vsel %vm2735_vm7, %v8740_v31, %v21207_v27 }
 0xd58   : > { %v8183_v19 = vpop.f32.mrb[90].mxu1 }
 0xd59   : > { %v8329_v2 = vadd.f32 %v8183_v19, %v19339_v33  ;;  %v11907_v11 = vpop.f32.mrb[91].mxu1  ;;  %v8516_v0 = vpop.f32.mrb[200].mxu0 }
 0xd5a   : > { %v19622_v45 = vadd.f32 %v8516_v0, %v8328_v41  ;;  %v11992_v44 = vpop.f32.mrb[201].mxu0 }
 0xd5b   : > { %12101 = vmatmul.mubr.msk.bf16.gmra.mrb[196].mxu1 %vm1048_vm3, %v8741_v38  ;;  %v8519_v13 = vpop.f32.mrb[202].mxu0 }
 0xd5c   : > { %v19626_v60 = vadd.f32 %v8519_v13, %v8329_v2  ;;  %v11993_v21 = vpop.f32.mrb[203].mxu0  ;;  %12104 = vmatprep.mubr.msk.bf16.mxu1 %vm13358_vm0, %v21000_v10 }
 0xd5d   : > { %v21208_v21 = vld [vmem:[#allocation148_spill] sm:$0xff] }
 0xd5e   : > { %v8188_v16 = vpop.f32.mrb[92].mxu1 }
 0xd5f   : > { %v8330_v54 = vadd.f32 %v8188_v16, %v19350_v8  ;;  %v11910_v33 = vpop.f32.mrb[93].mxu1 }
 0xd60   : > { %v8191_v26 = vpop.f32.mrb[94].mxu1 }
 0xd61   : > { %v8331_v61 = vadd.f32 %v8191_v26, %v19354_v62  ;;  %v11911_v17 = vpop.f32.mrb[95].mxu1  ;;  %v8524_v18 = vpop.f32.mrb[204].mxu0 }
 0xd62   : > { %v19632_v53 = vadd.f32 %v8524_v18, %v8330_v54  ;;  %v11996_v28 = vpop.f32.mrb[205].mxu0 }
 0xd63   : > { %12105 = vmatmul.mubr.msk.bf16.gmra.mrb[200].mxu1 %vm1048_vm3, %v8745_v49  ;;  %v8527_v41 = vpop.f32.mrb[206].mxu0 }
 0xd64   : > { %v19637_v29 = vadd.f32 %v8527_v41, %v8331_v61  ;;  %v11997_v19 = vpop.f32.mrb[207].mxu0  ;;  %12108 = vmatprep.mubr.msk.bf16.mxu1 %vm13358_vm0, %v21000_v10  ;;  %v21209_v41 = vld [vmem:[#allocation161_spill] sm:$0xff] }
 0xd66   : > { %v8196_v8 = vpop.f32.mrb[96].mxu1 }
 0xd67   : > { %v8332_v62 = vadd.f32 %v8196_v8, %v19365_v56  ;;  %v11914_v2 = vpop.f32.mrb[97].mxu1 }
 0xd68   : > { %v8199_v11 = vpop.f32.mrb[98].mxu1 }
 0xd69   : > { %v8333_v0 = vadd.f32 %v8199_v11, %v19369_v22  ;;  %v11915_v44 = vpop.f32.mrb[99].mxu1  ;;  %v8532_v38 = vpop.f32.mrb[208].mxu0 }
 0xd6a   : > { %v19643_v13 = vadd.f32 %v8532_v38, %v8332_v62  ;;  %v12000_v31 = vpop.f32.mrb[209].mxu0 }
 0xd6b   : > { %12109 = vmatmul.mubr.msk.bf16.gmra.mrb[204].mxu1 %vm1048_vm3, %v21208_v21  ;;  %v8535_v16 = vpop.f32.mrb[210].mxu0 }
 0xd6c   : > { %v19647_v54 = vadd.f32 %v8535_v16, %v8333_v0  ;;  %v12001_v33 = vpop.f32.mrb[211].mxu0  ;;  %12112 = vmatprep.mubr.msk.bf16.mxu1 %vm13358_vm0, %v21000_v10  ;;  %v21210_v16 = vld [vmem:[#allocation149_spill] sm:$0xff] }
 0xd6e   : > { %v8204_v56 = vpop.f32.mrb[100].mxu1 }
 0xd6f   : > { %v8334_v26 = vadd.f32 %v8204_v56, %v19380_v30  ;;  %v11918_v61 = vpop.f32.mrb[101].mxu1 }
 0xd70   : > { %v8207_v22 = vpop.f32.mrb[102].mxu1 }
 0xd71   : > { %v8335_v17 = vadd.f32 %v8207_v22, %v19384_v5  ;;  %v11919_v18 = vpop.f32.mrb[103].mxu1  ;;  %v8540_v28 = vpop.f32.mrb[212].mxu0 }
 0xd72   : > { %v19653_v27 = vadd.f32 %v8540_v28, %v8334_v26  ;;  %v12004_v49 = vpop.f32.mrb[213].mxu0 }
 0xd73   : > { %12113 = vmatmul.mubr.msk.bf16.gmra.mrb[208].mxu1 %vm1048_vm3, %v21209_v41  ;;  %v8543_v19 = vpop.f32.mrb[214].mxu0 }
 0xd74   : > { %v19657_v8 = vadd.f32 %v8543_v19, %v8335_v17  ;;  %v12005_v62 = vpop.f32.mrb[215].mxu0  ;;  %12116 = vmatprep.mubr.msk.bf16.mxu1 %vm13358_vm0, %v21000_v10  ;;  %v21211_v19 = vld [vmem:[#allocation136_spill] sm:$0xff] }
 0xd76   : > { %v8212_v30 = vpop.f32.mrb[104].mxu1 }
 0xd77   : > { %v8336_v2 = vadd.f32 %v8212_v30, %v19395_v52  ;;  %v11922_v11 = vpop.f32.mrb[105].mxu1 }
 0xd78   : > { %v8215_v5 = vpop.f32.mrb[106].mxu1 }
 0xd79   : > { %v8337_v0 = vadd.f32 %v8215_v5, %v19399_v58  ;;  %v11923_v44 = vpop.f32.mrb[107].mxu1  ;;  %v8548_v38 = vpop.f32.mrb[216].mxu0 }
 0xd7a   : > { %v19663_v31 = vadd.f32 %v8548_v38, %v8336_v2  ;;  %v12008_v21 = vpop.f32.mrb[217].mxu0 }
 0xd7b   : > { %12117 = vmatmul.mubr.msk.bf16.gmra.mrb[212].mxu1 %vm1048_vm3, %v21210_v16  ;;  %v8551_v33 = vpop.f32.mrb[218].mxu0 }
 0xd7c   : > { %v19667_v56 = vadd.f32 %v8551_v33, %v8337_v0  ;;  %v12009_v26 = vpop.f32.mrb[219].mxu0  ;;  %12120 = vmatprep.mubr.msk.bf16.mxu1 %vm13358_vm0, %v21000_v10  ;;  %v21212_v33 = vld [vmem:[#allocation121_spill] sm:$0xff] }
 0xd7e   : > { %v8220_v52 = vpop.f32.mrb[108].mxu1 }
 0xd7f   : > { %v8338_v61 = vadd.f32 %v8220_v52, %v19410_v39  ;;  %v11926_v22 = vpop.f32.mrb[109].mxu1 }
 0xd80   : > { %v8223_v58 = vpop.f32.mrb[110].mxu1 }
 0xd81   : > { %v8339_v17 = vadd.f32 %v8223_v58, %v19414_v57  ;;  %v11927_v18 = vpop.f32.mrb[111].mxu1  ;;  %v8556_v28 = vpop.f32.mrb[220].mxu0 }
 0xd82   : > { %v19673_v49 = vadd.f32 %v8556_v28, %v8338_v61  ;;  %v12012_v41 = vpop.f32.mrb[221].mxu0 }
 0xd83   : > { %12121 = vmatmul.mubr.msk.bf16.gmra.mrb[216].mxu1 %vm1048_vm3, %v21211_v19  ;;  %v8559_v62 = vpop.f32.mrb[222].mxu0 }
 0xd84   : > { %v19677_v30 = vadd.f32 %v8559_v62, %v8339_v17  ;;  %v12013_v2 = vpop.f32.mrb[223].mxu0  ;;  %12124 = vmatprep.mubr.msk.bf16.mxu1 %vm13358_vm0, %v21000_v10  ;;  %v21213_v62 = vld [vmem:[#allocation122_spill] sm:$0xff] }
 0xd86   : > { %v8228_v39 = vpop.f32.mrb[112].mxu1 }
 0xd87   : > { %v8340_v11 = vadd.f32 %v8228_v39, %v19425_v4  ;;  %v11930_v5 = vpop.f32.mrb[113].mxu1 }
 0xd88   : > { %v8231_v57 = vpop.f32.mrb[114].mxu1 }
 0xd89   : > { %v8341_v0 = vadd.f32 %v8231_v57, %v19429_v55  ;;  %v11931_v44 = vpop.f32.mrb[115].mxu1  ;;  %v8564_v38 = vpop.f32.mrb[224].mxu0 }
 0xd8a   : > { %v19683_v21 = vadd.f32 %v8564_v38, %v8340_v11  ;;  %v12016_v16 = vpop.f32.mrb[225].mxu0 }
 0xd8b   : > { %12125 = vmatmul.mubr.msk.bf16.gmra.mrb[220].mxu1 %vm1048_vm3, %v21212_v33  ;;  %v8567_v26 = vpop.f32.mrb[226].mxu0 }
 0xd8c   : > { %v19687_v52 = vadd.f32 %v8567_v26, %v8341_v0  ;;  %v12017_v61 = vpop.f32.mrb[227].mxu0  ;;  %12128 = vmatprep.mubr.msk.bf16.mxu1 %vm13358_vm0, %v21000_v10  ;;  %v21214_v26 = vld [vmem:[#allocation73_spill] sm:$0xff] }
 0xd8e   : > { %v8236_v4 = vpop.f32.mrb[116].mxu1 }
 0xd8f   : > { %v8342_v22 = vadd.f32 %v8236_v4, %v19440_v9  ;;  %v11934_v58 = vpop.f32.mrb[117].mxu1 }
 0xd90   : > { %v8239_v55 = vpop.f32.mrb[118].mxu1 }
 0xd91   : > { %v8343_v17 = vadd.f32 %v8239_v55, %v19444_v1  ;;  %v11935_v18 = vpop.f32.mrb[119].mxu1  ;;  %v8572_v28 = vpop.f32.mrb[228].mxu0 }
 0xd92   : > { %v19693_v41 = vadd.f32 %v8572_v28, %v8342_v22  ;;  %v12020_v19 = vpop.f32.mrb[229].mxu0 }
 0xd93   : > { %12129 = vmatmul.mubr.msk.bf16.gmra.mrb[224].mxu1 %vm1048_vm3, %v21213_v62  ;;  %v8575_v2 = vpop.f32.mrb[230].mxu0 }
 0xd94   : > { %v19697_v39 = vadd.f32 %v8575_v2, %v8343_v17  ;;  %v12021_v11 = vpop.f32.mrb[231].mxu0  ;;  %12132 = vmatprep.mubr.msk.bf16.mxu1 %vm13358_vm0, %v21000_v10  ;;  %v21215_v2 = vld [vmem:[#allocation99_spill] sm:$0xff] }
 0xd96   : > { %v8244_v9 = vpop.f32.mrb[120].mxu1 }
 0xd97   : > { %v8344_v5 = vadd.f32 %v8244_v9, %v19454_v3  ;;  %v11938_v57 = vpop.f32.mrb[121].mxu1 }
 0xd98   : > { %v8247_v1 = vpop.f32.mrb[122].mxu1 }
 0xd99   : > { %v8345_v0 = vadd.f32 %v8247_v1, %v19458_v36  ;;  %v11939_v44 = vpop.f32.mrb[123].mxu1  ;;  %v8580_v38 = vpop.f32.mrb[232].mxu0 }
 0xd9a   : > { %v19703_v16 = vadd.f32 %v8580_v38, %v8344_v5  ;;  %v12024_v33 = vpop.f32.mrb[233].mxu0 }
 0xd9b   : > { %12133 = vmatmul.mubr.msk.bf16.gmra.mrb[228].mxu1 %vm1048_vm3, %v21214_v26  ;;  %v8583_v61 = vpop.f32.mrb[234].mxu0 }
 0xd9c   : > { %v19707_v4 = vadd.f32 %v8583_v61, %v8345_v0  ;;  %v12025_v22 = vpop.f32.mrb[235].mxu0  ;;  %12136 = vmatprep.mubr.msk.bf16.mxu1 %vm13358_vm0, %v21000_v10  ;;  %v21216_v61 = vld [vmem:[#allocation74_spill] sm:$0xff] }
 0xd9e   : > { %v8252_v3 = vpop.f32.mrb[124].mxu1 }
 0xd9f   : > { %v8346_v58 = vadd.f32 %v8252_v3, %v19470_v35  ;;  %v11942_v55 = vpop.f32.mrb[125].mxu1 }
 0xda0   : > { %v8255_v36 = vpop.f32.mrb[126].mxu1 }
 0xda1   : > { %v8347_v17 = vadd.f32 %v8255_v36, %v19474_v40  ;;  %v11943_v18 = vpop.f32.mrb[127].mxu1  ;;  %v8588_v28 = vpop.f32.mrb[236].mxu0 }
 0xda2   : > { %v19713_v19 = vadd.f32 %v8588_v28, %v8346_v58  ;;  %v12028_v62 = vpop.f32.mrb[237].mxu0 }
 0xda3   : > { %12137 = vmatmul.mubr.msk.bf16.gmra.mrb[232].mxu1 %vm1048_vm3, %v21215_v2  ;;  %v8591_v11 = vpop.f32.mrb[238].mxu0 }
 0xda4   : > { %v19717_v9 = vadd.f32 %v8591_v11, %v8347_v17  ;;  %v12029_v5 = vpop.f32.mrb[239].mxu0  ;;  %12140 = vmatprep.mubr.msk.bf16.mxu1 %vm13358_vm0, %v21000_v10  ;;  %v21217_v11 = vld [vmem:[#allocation165_spill] sm:$0xff] }
 0xda6   : > { %v8260_v35 = vpop.f32.mrb[128].mxu1 }
 0xda7   : > { %v8348_v57 = vadd.f32 %v8260_v35, %v19484_v23  ;;  %v11946_v1 = vpop.f32.mrb[129].mxu1 }
 0xda8   : > { %v8263_v40 = vpop.f32.mrb[130].mxu1 }
 0xda9   : > { %v8349_v0 = vadd.f32 %v8263_v40, %v19488_v7  ;;  %v11947_v44 = vpop.f32.mrb[131].mxu1  ;;  %v8596_v38 = vpop.f32.mrb[240].mxu0 }
 0xdaa   : > { %v19723_v33 = vadd.f32 %v8596_v38, %v8348_v57  ;;  %v12032_v26 = vpop.f32.mrb[241].mxu0 }
 0xdab   : > { %12141 = vmatmul.mubr.msk.bf16.gmra.mrb[236].mxu1 %vm1048_vm3, %v21216_v61  ;;  %v8599_v22 = vpop.f32.mrb[242].mxu0 }
 0xdac   : > { %v19727_v3 = vadd.f32 %v8599_v22, %v8349_v0  ;;  %v12033_v58 = vpop.f32.mrb[243].mxu0  ;;  %12144 = vmatprep.mubr.msk.bf16.mxu1 %vm13358_vm0, %v21000_v10 }
 0xdae   : > { %v8268_v23 = vpop.f32.mrb[132].mxu1 }
 0xdaf   : > { %v8350_v55 = vadd.f32 %v8268_v23, %v19503_v50  ;;  %v11950_v36 = vpop.f32.mrb[133].mxu1 }
 0xdb0   : > { %v8271_v7 = vpop.f32.mrb[134].mxu1 }
 0xdb1   : > { %v8351_v17 = vadd.f32 %v8271_v7, %v19509_v24  ;;  %v11951_v18 = vpop.f32.mrb[135].mxu1  ;;  %v8604_v28 = vpop.f32.mrb[244].mxu0 }
 0xdb2   : > { %v19733_v62 = vadd.f32 %v8604_v28, %v8350_v55  ;;  %v12036_v2 = vpop.f32.mrb[245].mxu0 }
 0xdb3   : > { %12145 = vmatmul.mubr.msk.bf16.gmra.mrb[240].mxu1 %vm1048_vm3, %v21217_v11  ;;  %v8607_v5 = vpop.f32.mrb[246].mxu0 }
 0xdb4   : > { %v19737_v35 = vadd.f32 %v8607_v5, %v8351_v17  ;;  %v12037_v57 = vpop.f32.mrb[247].mxu0 }
 0xdb6   : > { %v8276_v10 = vpop.f32.mrb[136].mxu1 }
 0xdb7   : > { %v8352_v1 = vadd.f32 %v8276_v10, %v19517_v51  ;;  %v11954_v50 = vpop.f32.mrb[137].mxu1 }
 0xdb8   : > { %v8279_v40 = vpop.f32.mrb[138].mxu1 }
 0xdb9   : > { %v8353_v0 = vadd.f32 %v8279_v40, %v19523_v25  ;;  %v11955_v24 = vpop.f32.mrb[139].mxu1  ;;  %v8612_v44 = vpop.f32.mrb[248].mxu0 }
 0xdba   : > { %v19741_v38 = vadd.f32 %v8612_v44, %v8352_v1  ;;  %v12040_v26 = vpop.f32.mrb[249].mxu0 }
 0xdbb   : > { %v8615_v61 = vpop.f32.mrb[250].mxu0 }
 0xdbc   : > { %v19743_v22 = vadd.f32 %v8615_v61, %v8353_v0  ;;  %v12041_v58 = vpop.f32.mrb[251].mxu0 }
 0xdbe   : > { %v8284_v23 = vpop.f32.mrb[140].mxu1 }
 0xdbf   : > { %v8354_v55 = vadd.f32 %v8284_v23, %v19529_v20  ;;  %v11958_v36 = vpop.f32.mrb[141].mxu1 }
 0xdc0   : > { %v8287_v7 = vpop.f32.mrb[142].mxu1 }
 0xdc1   : > { %v8355_v51 = vadd.f32 %v8287_v7, %v19535_v47  ;;  %v11959_v17 = vpop.f32.mrb[143].mxu1  ;;  %v8620_v18 = vpop.f32.mrb[252].mxu0 }
 0xdc2   : > { %v19747_v28 = vadd.f32 %v8620_v18, %v8354_v55  ;;  %v12044_v25 = vpop.f32.mrb[253].mxu0 }
 0xdc3   : > { %v8623_v2 = vpop.f32.mrb[254].mxu0 }
 0xdc4   : > { %v19749_v11 = vadd.f32 %v8623_v2, %v8355_v51  ;;  %v12045_v5 = vpop.f32.mrb[255].mxu0 }
 0xdc6   : > { %v8292_v57 = vpop.f32.mrb[144].mxu1 }
 0xdc7   : > { %v8356_v10 = vadd.f32 %v8292_v57, %v19541_v59  ;;  %v11962_v1 = vpop.f32.mrb[145].mxu1 }
 0xdc8   : > { %v8295_v50 = vpop.f32.mrb[146].mxu1 }
 0xdc9   : > { %v8357_v20 = vadd.f32 %v8295_v50, %v19547_v15  ;;  %v11963_v40 = vpop.f32.mrb[147].mxu1  ;;  %v8628_v0 = vpop.f32.mrb[0].mxu0 }
 0xdca   : > { %v19753_v24 = vadd.f32 %v8628_v0, %v8356_v10  ;;  %v12048_v47 = vpop.f32.mrb[1].mxu0 }
 0xdcb   : > { %v8631_v44 = vpop.f32.mrb[2].mxu0 }
 0xdcc   : > { %v19755_v26 = vadd.f32 %v8631_v44, %v8357_v20  ;;  %v12049_v61 = vpop.f32.mrb[3].mxu0 }
 0xdce   : > { %v8300_v58 = vpop.f32.mrb[148].mxu1 }
 0xdcf   : > { %v8358_v23 = vadd.f32 %v8300_v58, %v19553_v43  ;;  %v11966_v55 = vpop.f32.mrb[149].mxu1 }
 0xdd0   : > { %v8303_v36 = vpop.f32.mrb[150].mxu1 }
 0xdd1   : > { %v8359_v59 = vadd.f32 %v8303_v36, %v19559_v6  ;;  %v11967_v7 = vpop.f32.mrb[151].mxu1  ;;  %v8636_v51 = vpop.f32.mrb[4].mxu0 }
 0xdd2   : > { %v19759_v17 = vadd.f32 %v8636_v51, %v8358_v23  ;;  %v12052_v15 = vpop.f32.mrb[5].mxu0 }
 0xdd3   : > { %v8639_v18 = vpop.f32.mrb[6].mxu0  ;;  %v19772_v15 = vld [vmem:[#allocation22] ss:$0 sm:$0xff] }
 0xdd4   : > { %v19761_v25 = vadd.f32 %v8639_v18, %v8359_v59  ;;  %v12053_v2 = vpop.f32.mrb[7].mxu0 }
 0xdd6   : > { %v8308_v5 = vpop.f32.mrb[152].mxu1 }
 0xdd7   : > { %v8360_v57 = vadd.f32 %v8308_v5, %v19565_v63  ;;  %v11970_v10 = vpop.f32.mrb[153].mxu1 }
 0xdd8   : > { %v8311_v1 = vpop.f32.mrb[154].mxu1 }
 0xdd9   : > { %v8361_v43 = vadd.f32 %v8311_v1, %v19571_v37  ;;  %v11971_v50 = vpop.f32.mrb[155].mxu1  ;;  %v8644_v20 = vpop.f32.mrb[8].mxu0 }
 0xdda   : > { %v19765_v40 = vadd.f32 %v8644_v20, %v8360_v57  ;;  %v12056_v6 = vpop.f32.mrb[9].mxu0 }
 0xddb   : > { %v8647_v0 = vpop.f32.mrb[10].mxu0 }
 0xddc   : > { %v19767_v47 = vadd.f32 %v8647_v0, %v8361_v43  ;;  %v12057_v44 = vpop.f32.mrb[11].mxu0  ;;  %v12841_v43 = vld [vmem:[%s13810_s25] sm:$0xff] }
 0xdde   : > { %v8316_v61 = vpop.f32.mrb[156].mxu1 }
 0xddf   : > { %v8362_v58 = vadd.f32 %v8316_v61, %v19576_v34  ;;  %v11974_v23 = vpop.f32.mrb[157].mxu1 }
 0xde0   : > { %v8319_v55 = vpop.f32.mrb[158].mxu1 }
 0xde1   : > { %v11975_v63 = vpop.f32.mrb[159].mxu1  ;;  %v8652_v36 = vpop.f32.mrb[12].mxu0 }
 0xde2   : > { %v19770_v59 = vadd.f32 %v8652_v36, %v8362_v58  ;;  %v12060_v37 = vpop.f32.mrb[13].mxu0  ;;  %v12843_v63 = vld [vmem:[%s13810_s25 + $0x10] sm:$0xff] }
 0xde3   : > { %v8655_v7 = vpop.f32.mrb[14].mxu0 }
 0xde4   : > { %v12061_v51 = vpop.f32.mrb[15].mxu0  ;;  %v12844_v7 = vld [vmem:[%s13810_s25 + $0x18] sm:$0xff] }
 0xde6   : > { %v8864_v18 = vpop.f32.mrb[160].mxu1 }
 0xde7   : > { %v9030_v2 = vadd.f32 %v8864_v18, %v19586_v48  ;;  %v12066_v5 = vpop.f32.mrb[161].mxu1  ;;  %v12842_v48 = vld [vmem:[%s13810_s25 + $0x8] sm:$0xff] }
 0xde8   : > { %v8867_v57 = vpop.f32.mrb[162].mxu1 }
 0xde9   : > { %v9077_v34 = vadd.f32 %v19772_v15, %v9030_v2  ;;  %v9031_v10 = vadd.f32 %v8867_v57, %v19592_v12  ;;  %v12067_v1 = vpop.f32.mrb[163].mxu1 }
 0xdeb   : > { %v9118_v50 = vadd.f32 %v12841_v43, %v9077_v34  ;;  %v9078_v20 = vadd.f32 %v19772_v15, %v9031_v10  ;;  %v12845_v10 = vld [vmem:[%s13810_s25 + $0x20] sm:$0xff] }
 0xded   : > { %9159 = vst.msk [vmem:[%s19781_s30] sm:$0xff] %vm1048_vm3, %v9118_v50  ;;  %v9119_v6 = vadd.f32 %v12842_v48, %v9078_v20  ;;  %v12846_v50 = vld [vmem:[%s13810_s25 + $0x28] sm:$0xff] }
 0xdee   : > { %v8872_v0 = vpop.f32.mrb[164].mxu1 }
 0xdef   : > { %9160 = vst.msk [vmem:[%s19781_s30 + $0x8] sm:$0xff] %vm1048_vm3, %v9119_v6  ;;  %v9032_v12 = vadd.f32 %v8872_v0, %v19598_v14  ;;  %v12070_v44 = vpop.f32.mrb[165].mxu1 }
 0xdf0   : > { %v8875_v61 = vpop.f32.mrb[166].mxu1 }
 0xdf1   : > { %v9079_v58 = vadd.f32 %v19772_v15, %v9032_v12  ;;  %v9033_v23 = vadd.f32 %v8875_v61, %v19604_v46  ;;  %v12071_v55 = vpop.f32.mrb[167].mxu1  ;;  %v12847_v61 = vld [vmem:[%s13810_s25 + $0x30] sm:$0xff] }
 0xdf2   : > { %v12848_v55 = vld [vmem:[%s13810_s25 + $0x38] sm:$0xff] }
 0xdf3   : > { %v9120_v36 = vadd.f32 %v12843_v63, %v9079_v58  ;;  %v9080_v37 = vadd.f32 %v19772_v15, %v9033_v23 }
 0xdf5   : > { %9161 = vst.msk [vmem:[%s19781_s30 + $0x10] sm:$0xff] %vm1048_vm3, %v9120_v36  ;;  %v9121_v51 = vadd.f32 %v12844_v7, %v9080_v37 }
 0xdf6   : > { %v8880_v14 = vpop.f32.mrb[168].mxu1 }
 0xdf7   : > { %9162 = vst.msk [vmem:[%s19781_s30 + $0x18] sm:$0xff] %vm1048_vm3, %v9121_v51  ;;  %v9034_v18 = vadd.f32 %v8880_v14, %v19610_v42  ;;  %v12074_v2 = vpop.f32.mrb[169].mxu1 }
 0xdf8   : > { %v8883_v46 = vpop.f32.mrb[170].mxu1 }
 0xdf9   : > { %v9081_v5 = vadd.f32 %v19772_v15, %v9034_v18  ;;  %v9035_v57 = vadd.f32 %v8883_v46, %v19616_v32  ;;  %v12075_v34 = vpop.f32.mrb[171].mxu1  ;;  %v12849_v18 = vld [vmem:[%s13810_s25 + $0x40] sm:$0xff] }
 0xdfb   : > { %v9122_v1 = vadd.f32 %v12845_v10, %v9081_v5  ;;  %v9082_v43 = vadd.f32 %v19772_v15, %v9035_v57  ;;  %v12850_v5 = vld [vmem:[%s13810_s25 + $0x48] sm:$0xff] }
 0xdfd   : > { %9163 = vst.msk [vmem:[%s19781_s30 + $0x20] sm:$0xff] %vm1048_vm3, %v9122_v1  ;;  %v9123_v20 = vadd.f32 %v12846_v50, %v9082_v43 }
 0xdfe   : > { %v8888_v42 = vpop.f32.mrb[172].mxu1 }
 0xdff   : > { %9164 = vst.msk [vmem:[%s19781_s30 + $0x28] sm:$0xff] %vm1048_vm3, %v9123_v20  ;;  %v9036_v48 = vadd.f32 %v8888_v42, %v19622_v45  ;;  %v12078_v6 = vpop.f32.mrb[173].mxu1  ;;  %v12851_v20 = vld [vmem:[%s13810_s25 + $0x50] sm:$0xff] }
 0xe00   : > { %v8891_v32 = vpop.f32.mrb[174].mxu1  ;;  %v12852_v6 = vld [vmem:[%s13810_s25 + $0x58] sm:$0xff] }
 0xe01   : > { %v9083_v0 = vadd.f32 %v19772_v15, %v9036_v48  ;;  %v9037_v12 = vadd.f32 %v8891_v32, %v19626_v60  ;;  %v12079_v44 = vpop.f32.mrb[175].mxu1 }
 0xe03   : > { %v9124_v58 = vadd.f32 %v12847_v61, %v9083_v0  ;;  %v9084_v23 = vadd.f32 %v19772_v15, %v9037_v12 }
 0xe05   : > { %9165 = vst.msk [vmem:[%s19781_s30 + $0x30] sm:$0xff] %vm1048_vm3, %v9124_v58  ;;  %v9125_v63 = vadd.f32 %v12848_v55, %v9084_v23  ;;  %v12853_v23 = vld [vmem:[%s13810_s25 + $0x60] sm:$0xff] }
 0xe06   : > { %v8896_v45 = vpop.f32.mrb[176].mxu1 }
 0xe07   : > { %9166 = vst.msk [vmem:[%s19781_s30 + $0x38] sm:$0xff] %vm1048_vm3, %v9125_v63  ;;  %v9038_v36 = vadd.f32 %v8896_v45, %v19632_v53  ;;  %v12082_v37 = vpop.f32.mrb[177].mxu1  ;;  %v12854_v45 = vld [vmem:[%s13810_s25 + $0x68] sm:$0xff] }
 0xe08   : > { %v8899_v60 = vpop.f32.mrb[178].mxu1 }
 0xe09   : > { %v9085_v7 = vadd.f32 %v19772_v15, %v9038_v36  ;;  %v9039_v51 = vadd.f32 %v8899_v60, %v19637_v29  ;;  %v12083_v14 = vpop.f32.mrb[179].mxu1 }
 0xe0b   : > { %v9126_v2 = vadd.f32 %v12849_v18, %v9085_v7  ;;  %v9086_v46 = vadd.f32 %v19772_v15, %v9039_v51  ;;  %v12855_v18 = vld [vmem:[%s13810_s25 + $0x70] sm:$0xff] }
 0xe0d   : > { %9167 = vst.msk [vmem:[%s19781_s30 + $0x40] sm:$0xff] %vm1048_vm3, %v9126_v2  ;;  %v9127_v57 = vadd.f32 %v12850_v5, %v9086_v46  ;;  %v12856_v5 = vld [vmem:[%s13810_s25 + $0x78] sm:$0xff] }
 0xe0e   : > { %v8904_v53 = vpop.f32.mrb[180].mxu1 }
 0xe0f   : > { %9168 = vst.msk [vmem:[%s19781_s30 + $0x48] sm:$0xff] %vm1048_vm3, %v9127_v57  ;;  %v9040_v34 = vadd.f32 %v8904_v53, %v19643_v13  ;;  %v12086_v10 = vpop.f32.mrb[181].mxu1 }
 0xe10   : > { %v8907_v29 = vpop.f32.mrb[182].mxu1 }
 0xe11   : > { %v9087_v1 = vadd.f32 %v19772_v15, %v9040_v34  ;;  %v9041_v43 = vadd.f32 %v8907_v29, %v19647_v54  ;;  %v12087_v50 = vpop.f32.mrb[183].mxu1 }
 0xe13   : > { %v9128_v42 = vadd.f32 %v12851_v20, %v9087_v1  ;;  %v9088_v48 = vadd.f32 %v19772_v15, %v9041_v43  ;;  %v12857_v43 = vld [vmem:[%s13810_s25 + $0x80] sm:$0xff] }
 0xe15   : > { %9169 = vst.msk [vmem:[%s19781_s30 + $0x50] sm:$0xff] %vm1048_vm3, %v9128_v42  ;;  %v9129_v32 = vadd.f32 %v12852_v6, %v9088_v48  ;;  %v12858_v42 = vld [vmem:[%s13810_s25 + $0x88] sm:$0xff] }
 0xe16   : > { %v8912_v13 = vpop.f32.mrb[184].mxu1 }
 0xe17   : > { %9170 = vst.msk [vmem:[%s19781_s30 + $0x58] sm:$0xff] %vm1048_vm3, %v9129_v32  ;;  %v9042_v0 = vadd.f32 %v8912_v13, %v19653_v27  ;;  %v12090_v12 = vpop.f32.mrb[185].mxu1 }
 0xe18   : > { %v8915_v54 = vpop.f32.mrb[186].mxu1 }
 0xe19   : > { %v9089_v44 = vadd.f32 %v19772_v15, %v9042_v0  ;;  %v9043_v61 = vadd.f32 %v8915_v54, %v19657_v8  ;;  %v12091_v58 = vpop.f32.mrb[187].mxu1  ;;  %v12859_v54 = vld [vmem:[%s13810_s25 + $0x90] sm:$0xff] }
 0xe1a   : > { %v12860_v58 = vld [vmem:[%s13810_s25 + $0x98] sm:$0xff] }
 0xe1b   : > { %v9130_v55 = vadd.f32 %v12853_v23, %v9089_v44  ;;  %v9090_v63 = vadd.f32 %v19772_v15, %v9043_v61 }
 0xe1d   : > { %9171 = vst.msk [vmem:[%s19781_s30 + $0x60] sm:$0xff] %vm1048_vm3, %v9130_v55  ;;  %v9131_v36 = vadd.f32 %v12854_v45, %v9090_v63 }
 0xe1e   : > { %v8920_v27 = vpop.f32.mrb[188].mxu1 }
 0xe1f   : > { %9172 = vst.msk [vmem:[%s19781_s30 + $0x68] sm:$0xff] %vm1048_vm3, %v9131_v36  ;;  %v9044_v37 = vadd.f32 %v8920_v27, %v19663_v31  ;;  %v12094_v60 = vpop.f32.mrb[189].mxu1 }
 0xe20   : > { %v8923_v8 = vpop.f32.mrb[190].mxu1 }
 0xe21   : > { %v9091_v7 = vadd.f32 %v19772_v15, %v9044_v37  ;;  %v9045_v51 = vadd.f32 %v8923_v8, %v19667_v56  ;;  %v12095_v14 = vpop.f32.mrb[191].mxu1  ;;  %v12861_v37 = vld [vmem:[%s13810_s25 + $0xa0] sm:$0xff] }
 0xe23   : > { %v9132_v2 = vadd.f32 %v12855_v18, %v9091_v7  ;;  %v9092_v46 = vadd.f32 %v19772_v15, %v9045_v51  ;;  %v12862_v7 = vld [vmem:[%s13810_s25 + $0xa8] sm:$0xff] }
 0xe25   : > { %9173 = vst.msk [vmem:[%s19781_s30 + $0x70] sm:$0xff] %vm1048_vm3, %v9132_v2  ;;  %v9133_v57 = vadd.f32 %v12856_v5, %v9092_v46 }
 0xe26   : > { %v8928_v31 = vpop.f32.mrb[192].mxu1 }
 0xe27   : > { %9174 = vst.msk [vmem:[%s19781_s30 + $0x78] sm:$0xff] %vm1048_vm3, %v9133_v57  ;;  %v9046_v53 = vadd.f32 %v8928_v31, %v19673_v49  ;;  %v12098_v34 = vpop.f32.mrb[193].mxu1  ;;  %v12863_v57 = vld [vmem:[%s13810_s25 + $0xb0] sm:$0xff] }
 0xe28   : > { %v8931_v56 = vpop.f32.mrb[194].mxu1  ;;  %v12864_v34 = vld [vmem:[%s13810_s25 + $0xb8] sm:$0xff] }
 0xe29   : > { %v9093_v10 = vadd.f32 %v19772_v15, %v9046_v53  ;;  %v9047_v29 = vadd.f32 %v8931_v56, %v19677_v30  ;;  %v12099_v1 = vpop.f32.mrb[195].mxu1 }
 0xe2b   : > { %v9134_v50 = vadd.f32 %v12857_v43, %v9093_v10  ;;  %v9094_v20 = vadd.f32 %v19772_v15, %v9047_v29 }
 0xe2d   : > { %9175 = vst.msk [vmem:[%s19781_s30 + $0x80] sm:$0xff] %vm1048_vm3, %v9134_v50  ;;  %v9135_v48 = vadd.f32 %v12858_v42, %v9094_v20  ;;  %v12865_v20 = vld [vmem:[%s13810_s25 + $0xc0] sm:$0xff] }
 0xe2e   : > { %v8936_v49 = vpop.f32.mrb[196].mxu1 }
 0xe2f   : > { %9176 = vst.msk [vmem:[%s19781_s30 + $0x88] sm:$0xff] %vm1048_vm3, %v9135_v48  ;;  %v9048_v6 = vadd.f32 %v8936_v49, %v19683_v21  ;;  %v12102_v32 = vpop.f32.mrb[197].mxu1  ;;  %v12866_v49 = vld [vmem:[%s13810_s25 + $0xc8] sm:$0xff] }
 0xe30   : > { %v8939_v30 = vpop.f32.mrb[198].mxu1 }
 0xe31   : > { %v9095_v13 = vadd.f32 %v19772_v15, %v9048_v6  ;;  %v9049_v0 = vadd.f32 %v8939_v30, %v19687_v52  ;;  %v12103_v12 = vpop.f32.mrb[199].mxu1 }
 0xe33   : > { %v9136_v44 = vadd.f32 %v12859_v54, %v9095_v13  ;;  %v9096_v61 = vadd.f32 %v19772_v15, %v9049_v0  ;;  %v12867_v54 = vld [vmem:[%s13810_s25 + $0xd0] sm:$0xff] }
 0xe35   : > { %9177 = vst.msk [vmem:[%s19781_s30 + $0x90] sm:$0xff] %vm1048_vm3, %v9136_v44  ;;  %v9137_v23 = vadd.f32 %v12860_v58, %v9096_v61  ;;  %v12868_v58 = vld [vmem:[%s13810_s25 + $0xd8] sm:$0xff] }
 0xe36   : > { %v8944_v21 = vpop.f32.mrb[200].mxu1 }
 0xe37   : > { %9178 = vst.msk [vmem:[%s19781_s30 + $0x98] sm:$0xff] %vm1048_vm3, %v9137_v23  ;;  %v9050_v55 = vadd.f32 %v8944_v21, %v19693_v41  ;;  %v12106_v63 = vpop.f32.mrb[201].mxu1 }
 0xe38   : > { %v8947_v52 = vpop.f32.mrb[202].mxu1 }
 0xe39   : > { %v9097_v45 = vadd.f32 %v19772_v15, %v9050_v55  ;;  %v9051_v36 = vadd.f32 %v8947_v52, %v19697_v39  ;;  %v12107_v27 = vpop.f32.mrb[203].mxu1 }
 0xe3b   : > { %v9138_v60 = vadd.f32 %v12861_v37, %v9097_v45  ;;  %v9098_v8 = vadd.f32 %v19772_v15, %v9051_v36  ;;  %v12869_v36 = vld [vmem:[%s13810_s25 + $0xe0] sm:$0xff] }
 0xe3d   : > { %9179 = vst.msk [vmem:[%s19781_s30 + $0xa0] sm:$0xff] %vm1048_vm3, %v9138_v60  ;;  %v9139_v51 = vadd.f32 %v12862_v7, %v9098_v8  ;;  %v12870_v60 = vld [vmem:[%s13810_s25 + $0xe8] sm:$0xff] }
 0xe3e   : > { %v8952_v41 = vpop.f32.mrb[204].mxu1 }
 0xe3f   : > { %9180 = vst.msk [vmem:[%s19781_s30 + $0xa8] sm:$0xff] %vm1048_vm3, %v9139_v51  ;;  %v9052_v14 = vadd.f32 %v8952_v41, %v19703_v16  ;;  %v12110_v18 = vpop.f32.mrb[205].mxu1 }
 0xe40   : > { %v8955_v39 = vpop.f32.mrb[206].mxu1 }
 0xe41   : > { %v9099_v2 = vadd.f32 %v19772_v15, %v9052_v14  ;;  %v9053_v46 = vadd.f32 %v8955_v39, %v19707_v4  ;;  %v12111_v5 = vpop.f32.mrb[207].mxu1  ;;  %v12871_v39 = vld [vmem:[%s13810_s25 + $0xf0] sm:$0xff] }
 0xe42   : > { %v12872_v5 = vld [vmem:[%s13810_s25 + $0xf8] sm:$0xff] }
 0xe43   : > { %v9140_v31 = vadd.f32 %v12863_v57, %v9099_v2  ;;  %v9100_v53 = vadd.f32 %v19772_v15, %v9053_v46 }
 0xe45   : > { %9181 = vst.msk [vmem:[%s19781_s30 + $0xb0] sm:$0xff] %vm1048_vm3, %v9140_v31  ;;  %v9141_v56 = vadd.f32 %v12864_v34, %v9100_v53 }
 0xe46   : > { %v8960_v16 = vpop.f32.mrb[208].mxu1 }
 0xe47   : > { %9182 = vst.msk [vmem:[%s19781_s30 + $0xb8] sm:$0xff] %vm1048_vm3, %v9141_v56  ;;  %v9054_v10 = vadd.f32 %v8960_v16, %v19713_v19  ;;  %v12114_v29 = vpop.f32.mrb[209].mxu1 }
 0xe48   : > { %v8963_v4 = vpop.f32.mrb[210].mxu1 }
 0xe49   : > { %v9101_v1 = vadd.f32 %v19772_v15, %v9054_v10  ;;  %v9055_v43 = vadd.f32 %v8963_v4, %v19717_v9  ;;  %v12115_v50 = vpop.f32.mrb[211].mxu1  ;;  %v12873_v10 = vld [vmem:[%s13810_s25 + $0x100] sm:$0xff] }
 0xe4b   : > { %v9142_v42 = vadd.f32 %v12865_v20, %v9101_v1  ;;  %v9102_v48 = vadd.f32 %v19772_v15, %v9055_v43  ;;  %v12874_v1 = vld [vmem:[%s13810_s25 + $0x108] sm:$0xff] }
 0xe4d   : > { %9183 = vst.msk [vmem:[%s19781_s30 + $0xc0] sm:$0xff] %vm1048_vm3, %v9142_v42  ;;  %v9143_v6 = vadd.f32 %v12866_v49, %v9102_v48 }
 0xe4e   : > { %v8968_v19 = vpop.f32.mrb[212].mxu1 }
 0xe4f   : > { %9184 = vst.msk [vmem:[%s19781_s30 + $0xc8] sm:$0xff] %vm1048_vm3, %v9143_v6  ;;  %v9056_v32 = vadd.f32 %v8968_v19, %v19723_v33  ;;  %v12118_v30 = vpop.f32.mrb[213].mxu1  ;;  %v12875_v6 = vld [vmem:[%s13810_s25 + $0x110] sm:$0xff] }
 0xe50   : > { %v8971_v9 = vpop.f32.mrb[214].mxu1  ;;  %v12876_v30 = vld [vmem:[%s13810_s25 + $0x118] sm:$0xff] }
 0xe51   : > { %v9103_v13 = vadd.f32 %v19772_v15, %v9056_v32  ;;  %v9057_v0 = vadd.f32 %v8971_v9, %v19727_v3  ;;  %v12119_v12 = vpop.f32.mrb[215].mxu1 }
 0xe53   : > { %v9144_v44 = vadd.f32 %v12867_v54, %v9103_v13  ;;  %v9104_v61 = vadd.f32 %v19772_v15, %v9057_v0 }
 0xe55   : > { %9185 = vst.msk [vmem:[%s19781_s30 + $0xd0] sm:$0xff] %vm1048_vm3, %v9144_v44  ;;  %v9145_v23 = vadd.f32 %v12868_v58, %v9104_v61  ;;  %v12877_v61 = vld [vmem:[%s13810_s25 + $0x120] sm:$0xff] }
 0xe56   : > { %v8976_v33 = vpop.f32.mrb[216].mxu1 }
 0xe57   : > { %9186 = vst.msk [vmem:[%s19781_s30 + $0xd8] sm:$0xff] %vm1048_vm3, %v9145_v23  ;;  %v9058_v21 = vadd.f32 %v8976_v33, %v19733_v62  ;;  %v12122_v55 = vpop.f32.mrb[217].mxu1  ;;  %v12878_v33 = vld [vmem:[%s13810_s25 + $0x128] sm:$0xff] }
 0xe58   : > { %v8979_v3 = vpop.f32.mrb[218].mxu1 }
 0xe59   : > { %v9105_v63 = vadd.f32 %v19772_v15, %v9058_v21  ;;  %v9059_v52 = vadd.f32 %v8979_v3, %v19737_v35  ;;  %v12123_v45 = vpop.f32.mrb[219].mxu1 }
 0xe5b   : > { %v9146_v27 = vadd.f32 %v12869_v36, %v9105_v63  ;;  %v9106_v37 = vadd.f32 %v19772_v15, %v9059_v52  ;;  %v12879_v36 = vld [vmem:[%s13810_s25 + $0x130] sm:$0xff] }
 0xe5d   : > { %9187 = vst.msk [vmem:[%s19781_s30 + $0xe0] sm:$0xff] %vm1048_vm3, %v9146_v27  ;;  %v9147_v8 = vadd.f32 %v12870_v60, %v9106_v37  ;;  %v12880_v60 = vld [vmem:[%s13810_s25 + $0x138] sm:$0xff] }
 0xe5e   : > { %v8984_v62 = vpop.f32.mrb[220].mxu1 }
 0xe5f   : > { %9188 = vst.msk [vmem:[%s19781_s30 + $0xe8] sm:$0xff] %vm1048_vm3, %v9147_v8  ;;  %v9060_v7 = vadd.f32 %v8984_v62, %v19741_v38  ;;  %v12126_v51 = vpop.f32.mrb[221].mxu1 }
 0xe60   : > { %v8987_v35 = vpop.f32.mrb[222].mxu1 }
 0xe61   : > { %v9107_v41 = vadd.f32 %v19772_v15, %v9060_v7  ;;  %v9061_v14 = vadd.f32 %v8987_v35, %v19743_v22  ;;  %v12127_v18 = vpop.f32.mrb[223].mxu1 }
 0xe63   : > { %v9148_v2 = vadd.f32 %v12871_v39, %v9107_v41  ;;  %v9108_v46 = vadd.f32 %v19772_v15, %v9061_v14  ;;  %v12881_v41 = vld [vmem:[%s13810_s25 + $0x140] sm:$0xf] }
 0xe65   : > { %9189 = vst.msk [vmem:[%s19781_s30 + $0xf0] sm:$0xff] %vm1048_vm3, %v9148_v2  ;;  %v9149_v57 = vadd.f32 %v12872_v5, %v9108_v46 }
 0xe66   : > { %v8992_v38 = vpop.f32.mrb[224].mxu1 }
 0xe67   : > { %9190 = vst.msk [vmem:[%s19781_s30 + $0xf8] sm:$0xff] %vm1048_vm3, %v9149_v57  ;;  %v9062_v31 = vadd.f32 %v8992_v38, %v19747_v28  ;;  %v12130_v53 = vpop.f32.mrb[225].mxu1 }
 0xe68   : > { %v8995_v22 = vpop.f32.mrb[226].mxu1 }
 0xe69   : > { %v9109_v34 = vadd.f32 %v19772_v15, %v9062_v31  ;;  %v9063_v56 = vadd.f32 %v8995_v22, %v19749_v11  ;;  %v12131_v16 = vpop.f32.mrb[227].mxu1 }
 0xe6b   : > { %v9150_v29 = vadd.f32 %v12873_v10, %v9109_v34  ;;  %v9110_v4 = vadd.f32 %v19772_v15, %v9063_v56 }
 0xe6d   : > { %9191 = vst.msk [vmem:[%s19781_s30 + $0x100] sm:$0xff] %vm1048_vm3, %v9150_v29  ;;  %v9151_v43 = vadd.f32 %v12874_v1, %v9110_v4 }
 0xe6e   : > { %v9000_v28 = vpop.f32.mrb[228].mxu1 }
 0xe6f   : > { %9192 = vst.msk [vmem:[%s19781_s30 + $0x108] sm:$0xff] %vm1048_vm3, %v9151_v43  ;;  %v9064_v50 = vadd.f32 %v9000_v28, %v19753_v24  ;;  %v12134_v20 = vpop.f32.mrb[229].mxu1 }
 0xe70   : > { %v9003_v11 = vpop.f32.mrb[230].mxu1 }
 0xe71   : > { %v9111_v42 = vadd.f32 %v19772_v15, %v9064_v50  ;;  %v9065_v48 = vadd.f32 %v9003_v11, %v19755_v26  ;;  %v12135_v49 = vpop.f32.mrb[231].mxu1 }
 0xe73   : > { %v9152_v19 = vadd.f32 %v12875_v6, %v9111_v42  ;;  %v9112_v32 = vadd.f32 %v19772_v15, %v9065_v48 }
 0xe75   : > { %9193 = vst.msk [vmem:[%s19781_s30 + $0x110] sm:$0xff] %vm1048_vm3, %v9152_v19  ;;  %v9153_v9 = vadd.f32 %v12876_v30, %v9112_v32 }
 0xe76   : > { %v9008_v24 = vpop.f32.mrb[232].mxu1 }
 0xe77   : > { %9194 = vst.msk [vmem:[%s19781_s30 + $0x118] sm:$0xff] %vm1048_vm3, %v9153_v9  ;;  %v9066_v13 = vadd.f32 %v9008_v24, %v19759_v17  ;;  %v12138_v0 = vpop.f32.mrb[233].mxu1 }
 0xe78   : > { %v9011_v26 = vpop.f32.mrb[234].mxu1 }
 0xe79   : > { %v9113_v12 = vadd.f32 %v19772_v15, %v9066_v13  ;;  %v9067_v54 = vadd.f32 %v9011_v26, %v19761_v25  ;;  %v12139_v44 = vpop.f32.mrb[235].mxu1 }
 0xe7b   : > { %v9154_v58 = vadd.f32 %v12877_v61, %v9113_v12  ;;  %v9114_v23 = vadd.f32 %v19772_v15, %v9067_v54 }
 0xe7d   : > { %9195 = vst.msk [vmem:[%s19781_s30 + $0x120] sm:$0xff] %vm1048_vm3, %v9154_v58  ;;  %v9155_v21 = vadd.f32 %v12878_v33, %v9114_v23 }
 0xe7e   : > { %v9016_v17 = vpop.f32.mrb[236].mxu1 }
 0xe7f   : > { %9196 = vst.msk [vmem:[%s19781_s30 + $0x128] sm:$0xff] %vm1048_vm3, %v9155_v21  ;;  %v9068_v55 = vadd.f32 %v9016_v17, %v19765_v40  ;;  %v12142_v25 = vpop.f32.mrb[237].mxu1 }
 0xe80   : > { %v9019_v3 = vpop.f32.mrb[238].mxu1 }
 0xe81   : > { %v9115_v63 = vadd.f32 %v19772_v15, %v9068_v55  ;;  %v9069_v52 = vadd.f32 %v9019_v3, %v19767_v47  ;;  %v12143_v45 = vpop.f32.mrb[239].mxu1 }
 0xe83   : > { %v9156_v27 = vadd.f32 %v12879_v36, %v9115_v63  ;;  %v9116_v37 = vadd.f32 %v19772_v15, %v9069_v52 }
 0xe85   : > { %9197 = vst.msk [vmem:[%s19781_s30 + $0x130] sm:$0xff] %vm1048_vm3, %v9156_v27  ;;  %v9157_v8 = vadd.f32 %v12880_v60, %v9116_v37 }
 0xe86   : > { %v9024_v40 = vpop.f32.mrb[240].mxu1 }
 0xe87   : > { %9198 = vst.msk [vmem:[%s19781_s30 + $0x138] sm:$0xff] %vm1048_vm3, %v9157_v8  ;;  %v9070_v62 = vadd.f32 %v9024_v40, %v19770_v59  ;;  %v12146_v47 = vpop.f32.mrb[241].mxu1 }
 0xe88   : > { %v9027_v7 = vpop.f32.mrb[242].mxu1 }
 0xe89   : > { %v9117_v51 = vadd.f32 %v19772_v15, %v9070_v62  ;;  %v12147_v35 = vpop.f32.mrb[243].mxu1 }
 0xe8b   : > { %v9158_v14 = vadd.f32 %v12881_v41, %v9117_v51 }
 0xe8d   : > { %9200 = vst.msk [vmem:[%s19781_s30 + $0x140] sm:$0xf] %vm9199_vm13, %v9158_v14 }
 0xe8e   : > { %13261 = shalt.err (!%p13258_p7)
}
 0xe8f   : > { %s13262_s25 = scalar_lea.hbm %s19985_s3, 5248  ;;  %s13266_s24 = scalar_lea.hbm %s21218_s2, 10496 }
 0xe90   : > { %p13263_p5 = scmp.ne.s32.totalorder %s19985_s3, %s13262_s25  ;;  %p13267_p13 = scmp.lt.u32.totalorder %s19985_s3, %s21218_s2 }
 0xe91   : > { %p13268_p1 = scmp.lt.u32.totalorder %s13266_s24, %s13262_s25  ;;  %p13270_p2 = scmp.lt.u32.totalorder %s13262_s25, %s19985_s3 }
 0xe92   : > { %p13264_p9 = pnand %p13263_p5, %p21219_p8 }
 0xe93   : > { %p13269_p3 = por %p13268_p1, %p13267_p13 }
 0xe94   : > { %p13265_p12 = pneg %p13264_p9 }
 0xe95   : > { %p13271_p4 = por %p13270_p2, %p13269_p3 }
 0xe97   : > { %p13272_p10 = pnand %p13271_p4, %p13265_p12 }
 0xe99   : > { %13275 = shalt.err (!%p13272_p10)
}
 0xe9a   : > { %s13362_s29 = smov 128   ;;  %s13363_s15 = smov 8  }
 0xe9b   : > { %12380 = dma.vmem_to_hbm [thread:$0]  (%p21219_p8), %s19988_s23, 5248, %s19985_s3, %s9202_s0, %s13362_s29, %s13362_s29, %s13363_s15  }
 0xe9c PF: > { %s21220_s16 = sld [smem:[#allocation32_spill]]  ;;  %p21221_p11 = scmp.ne.s32.totalorder %s20429_s14, 0 }
 0xe9d   : > { %p21222_p0 = scmp.ge.s32.totalorder %s13338_s28, 2 }
 0xe9f   : > { %p12424_p6 = pnand %p21222_p0, %p21221_p11 }
 0xea2   : > { %s9230_s30 = sand.u32 1, %s21220_s16  }
 0xea3   : > { %s9231_s25 = scalar_lea.sflag [#allocation4], %s9230_s30 }
 0xea4   : > { %13321 = dma.done.wait (!%p12424_p6), %s9231_s25, 5248  }
 0xea5   : > { %13323 = vsyncadd (!%p12424_p6), %s9231_s25, 4294962048  ;;  %p32_p7 = scmp.ge.s32.totalorder %s13728_s18, 4   ;;  %s21223_s25 = smov %s13330_s26 }
 0xea6   : > { %s21224_s26 = smov %s13334_s27  ;;  %s21225_s27 = smov %s13739_s1 }
 0xea7   : > { %s21226_s28 = smov %s13728_s18  ;;  %34 = sbr.rel (!%p32_p7) target bundleno = 17 (0x11), region = 181 }
 0xeae   :  { %9236 = vsyncpa [#allocation3], 1 }
 0xeaf   :  { %9238 = vsyncpa [#allocation3 + $0x1], 1 }
 0xeb0   :  { %9239 = vsyncpa [#allocation6], 1 }
 0xeb1   :  { %9240 = vsyncpa [#allocation9], 1 }
 0xeb2   :  { %9241 = vsyncpa [#allocation12], 1 }
 0xeb3   :  { %9242 = vsyncpa [#allocation15], 1 }
 0xeb4   :  { %9243 = vsyncpa [#allocation18], 1 }
 0xeb5   :  { %9244 = vsyncpa [#allocation21], 1 }
 0xeb6   :  { %9245 = vsyncpa [#allocation4], 1 }
 0xeb7   :  { %9247 = vsyncpa [#allocation4 + $0x1], 1 }

</bundles_post_ra>
